<compile_context>
chip_gen: v7x
topology: tpu7x:2x2x1
jax: 0.10.0
libtpu: 0.0.40
codegen_flags: <defaults>
</compile_context>

<pallas_src>
import math
from functools import partial

import jax
import jax.numpy as jnp
from jax.experimental import pallas as pl
from jax.experimental.pallas import tpu as pltpu


# ----------------------------------------------------------------------------
# generation-tuned limits / tiling helpers
# ----------------------------------------------------------------------------
def _vmem_limit():
    cap = None
    try:
        info = pltpu.get_tpu_info()
        cap = int(getattr(info, "vmem_capacity_bytes", 0)) or None
    except Exception:
        cap = None
    if cap is None:
        return 48 * 1024 * 1024                      # safe on every generation
    return int(min(96 * 1024 * 1024, (cap * 3) // 4))  # 96 MiB on v5e/v6e, 48 MiB on v7x


VMEM_LIMIT = _vmem_limit()
ROW_TILE = 1024        # mem-bound kernels (elementwise / linear / BN / kmax)
CONV_ROW_TILE = 256    # fused PointTransformerConv (K*tn scratch + vreg pressure)


def _ceil_div(a, b):
    return -(-a // b)


def _round_up(a, b):
    return _ceil_div(a, b) * b


def _row_tile(n, tile):
    """(tile_rows, num_blocks). Rows always padded to a multiple of 8 (sublane align)."""
    if n <= tile:
        return _round_up(n, 8), 1
    return tile, _ceil_div(n, tile)


def _pad_rows(a, n_pad, axis=0):
    if a.shape[axis] == n_pad:
        return a
    pads = [(0, 0)] * a.ndim
    pads[axis] = (0, n_pad - a.shape[axis])
    return jnp.pad(a, pads)


def _full_spec(shape):
    nd = len(shape)
    return pl.BlockSpec(tuple(shape), lambda i: (0,) * nd)


# ----------------------------------------------------------------------------
# Fused chain of Linear(+bias)+activation (no BatchNorm) — one row-tiled kernel
# ----------------------------------------------------------------------------
def _fused_linears_kernel(x_ref, *refs, acts):
    o_ref = refs[-1]
    wbs = refs[:-1]
    h = x_ref[...]
    for li, act in enumerate(acts):
        w = wbs[2 * li][...]           # bf16
        b = wbs[2 * li + 1][...]       # f32 [1, cout]
        h = jnp.dot(h.astype(jnp.bfloat16), w,
                    preferred_element_type=jnp.float32) + b
        if act == "relu":
            h = jnp.maximum(h, 0.0)
        elif act == "log_softmax":
            m = jnp.max(h, axis=-1, keepdims=True)
            s = h - m
            h = s - jnp.log(jnp.sum(jnp.exp(s), axis=-1, keepdims=True))
    o_ref[...] = h.astype(o_ref.dtype)


def pallas_fused_linears(x, layers, acts, out_dtype=jnp.float32):
    """Apply a list of (w, b) linear layers (activation per layer) fused in one kernel."""
    n, cin = x.shape
    cout = layers[-1][0].shape[1]
    tm, nblk = _row_tile(n, ROW_TILE)
    n_pad = tm * nblk
    xp = _pad_rows(x, n_pad)

    ops, specs = [], []
    for (w, b) in layers:
        c_l = w.shape[1]
        if b is None:
            b = jnp.zeros((c_l,), jnp.float32)
        ops += [w.astype(jnp.bfloat16), b.reshape(1, c_l).astype(jnp.float32)]
        specs += [_full_spec(w.shape), _full_spec((1, c_l))]

    out = pl.pallas_call(
        partial(_fused_linears_kernel, acts=tuple(acts)),
        out_shape=jax.ShapeDtypeStruct((n_pad, cout), out_dtype),
        grid=(nblk,),
        in_specs=[pl.BlockSpec((tm, cin), lambda i: (i, 0))] + specs,
        out_specs=pl.BlockSpec((tm, cout), lambda i: (i, 0)),
        compiler_params=pltpu.CompilerParams(
            dimension_semantics=("parallel",), vmem_limit_bytes=VMEM_LIMIT),
    )(xp, *ops)
    return out[:n]


# ----------------------------------------------------------------------------
# Linear + BatchNorm1d(batch stats) + ReLU — two-pass, correct under row tiling
# ----------------------------------------------------------------------------
def _linear_stats_kernel(x_ref, w_ref, b_ref, y_ref, s_ref, q_ref, *, n_valid, tm):
    i = pl.program_id(0)
    y = jnp.dot(x_ref[...].astype(jnp.bfloat16), w_ref[...],
                preferred_element_type=jnp.float32) + b_ref[...]
    y_ref[...] = y.astype(y_ref.dtype)           # bf16 intermediate: halves HBM round trip

    @pl.when(i == 0)
    def _():
        s_ref[...] = jnp.zeros_like(s_ref)
        q_ref[...] = jnp.zeros_like(q_ref)

    # mask rows beyond the true batch size so the global stats are exact
    rows = i * tm + jax.lax.broadcasted_iota(jnp.int32, y.shape, 0)
    yv = jnp.where(rows < n_valid, y, 0.0)
    s_ref[...] += jnp.sum(yv, axis=0, keepdims=True)
    q_ref[...] += jnp.sum(yv * yv, axis=0, keepdims=True)


def _bn_relu_kernel(y_ref, s_ref, q_ref, o_ref, *, n_valid, eps):
    inv_n = 1.0 / n_valid
    mean = s_ref[...] * inv_n
    var = jnp.maximum(q_ref[...] * inv_n - mean * mean, 0.0)   # guard E[x^2]-E[x]^2 < 0
    istd = jax.lax.rsqrt(var + eps)
    o_ref[...] = jnp.maximum((y_ref[...].astype(jnp.float32) - mean) * istd, 0.0)


def pallas_linear_bn_relu(x, w, b, eps=1e-5):
    n, cin = x.shape
    cout = w.shape[1]
    tm, nblk = _row_tile(n, ROW_TILE)
    n_pad = tm * nblk
    xp = _pad_rows(x, n_pad)
    wb = w.astype(jnp.bfloat16)
    b2 = b.reshape(1, cout).astype(jnp.float32)

    # pass 1: tiled matmul + resident sum / sumsq accumulators (reduction over rows)
    y, s, q = pl.pallas_call(
        partial(_linear_stats_kernel, n_valid=n, tm=tm),
        out_shape=(jax.ShapeDtypeStruct((n_pad, cout), jnp.bfloat16),
                   jax.ShapeDtypeStruct((1, cout), jnp.float32),
                   jax.ShapeDtypeStruct((1, cout), jnp.float32)),
        grid=(nblk,),
        in_specs=[pl.BlockSpec((tm, cin), lambda i: (i, 0)),
                  _full_spec((cin, cout)), _full_spec((1, cout))],
        out_specs=(pl.BlockSpec((tm, cout), lambda i: (i, 0)),
                   pl.BlockSpec((1, cout), lambda i: (0, 0)),
                   pl.BlockSpec((1, cout), lambda i: (0, 0))),
        compiler_params=pltpu.CompilerParams(
            dimension_semantics=("arbitrary",), vmem_limit_bytes=VMEM_LIMIT),
    )(xp, wb, b2)

    # pass 2: normalize with global stats + ReLU (fully parallel over row tiles)
    out = pl.pallas_call(
        partial(_bn_relu_kernel, n_valid=n, eps=eps),
        out_shape=jax.ShapeDtypeStruct((n_pad, cout), jnp.float32),
        grid=(nblk,),
        in_specs=[pl.BlockSpec((tm, cout), lambda i: (i, 0)),
                  _full_spec((1, cout)), _full_spec((1, cout))],
        out_specs=pl.BlockSpec((tm, cout), lambda i: (i, 0)),
        compiler_params=pltpu.CompilerParams(
            dimension_semantics=("parallel",), vmem_limit_bytes=VMEM_LIMIT),
    )(y, s, q)
    return out[:n]


# ----------------------------------------------------------------------------
# Fused PointTransformerConv: pos_nn + attn_nn (stacked-K matmuls) + softmax-over-K
# aggregation (VMEM stash + online reduction) + linear_out + ReLU epilogue
# ----------------------------------------------------------------------------
def _pt_conv_kernel(ar_ref, mb_ref,
                    pw1_ref, pb1_ref, pw2_ref, pb2_ref,
                    aw1_ref, ab1_ref, aw2_ref, ab2_ref,
                    wo_ref, bo_ref, o_ref,
                    alpha_sc, msg_sc):
    K = ar_ref.shape[0]
    C = mb_ref.shape[2]
    tn = o_ref.shape[0]
    ktn = K * tn

    # Stack the K neighbor slices along the row axis: one big matmul per weight.
    ar = ar_ref[...].reshape(ktn, C + 3)                 # bf16 [(a_dst-a_src) | rel]
    ab = ar[:, :C].astype(jnp.float32)
    r = ar[:, C:C + 3].astype(jnp.float32)

    # pos_nn layer 1: contraction dim is 3 -> three broadcast FMAs on the VPU
    pw1 = pw1_ref[...]
    h = (r[:, 0:1] * pw1[0:1, :] + r[:, 1:2] * pw1[1:2, :]
         + r[:, 2:3] * pw1[2:3, :] + pb1_ref[...])
    h = jnp.maximum(h, 0.0)
    delta = jnp.dot(h.astype(jnp.bfloat16), pw2_ref[...],
                    preferred_element_type=jnp.float32) + pb2_ref[...]
    delta = jnp.maximum(delta, 0.0)                      # pos_nn output   [K*tn, C]

    # stash messages: lin(x)_j + delta
    msg_sc[...] = mb_ref[...].reshape(ktn, C).astype(jnp.float32) + delta

    # attn_nn((a_dst_i - a_src_j) + delta), stacked over all K neighbors
    a = ab + delta
    a = jnp.dot(a.astype(jnp.bfloat16), aw1_ref[...],
                preferred_element_type=jnp.float32) + ab1_ref[...]
    a = jnp.maximum(a, 0.0)
    a = jnp.dot(a.astype(jnp.bfloat16), aw2_ref[...],
                preferred_element_type=jnp.float32) + ab2_ref[...]
    alpha_sc[...] = jnp.maximum(a, 0.0)                  # attn_nn output  [K*tn, C]

    # per-(node, channel) softmax over K neighbors: only 3 [tn,C] running values live,
    # per-k slices are re-read from the VMEM stash (no K-deep vreg live set).
    m = alpha_sc[pl.ds(0, tn), :]
    for k in range(1, K):
        m = jnp.maximum(m, alpha_sc[pl.ds(k * tn, tn), :])
    den = jnp.zeros((tn, C), jnp.float32)
    acc = jnp.zeros((tn, C), jnp.float32)
    for k in range(K):
        e = jnp.exp(alpha_sc[pl.ds(k * tn, tn), :] - m)
        den = den + e
        acc = acc + e * msg_sc[pl.ds(k * tn, tn), :]
    agg = acc * pl.reciprocal(den, approx=True)          # divide on the EUP slot

    # linear_out + ReLU epilogue
    out = jnp.dot(agg.astype(jnp.bfloat16), wo_ref[...],
                  preferred_element_type=jnp.float32) + bo_ref[...]
    o_ref[...] = jnp.maximum(out, 0.0)


def pallas_point_transformer_conv(ar, mb, pos_nn, attn_nn, linear_out):
    K, N, Cp3 = ar.shape
    C = mb.shape[2]
    (pw1, pb1), (pw2, pb2) = pos_nn
    (aw1, ab1), (aw2, ab2) = attn_nn
    wo, bo = linear_out

    tn, nblk = _row_tile(N, CONV_ROW_TILE)
    n_pad = tn * nblk
    ar = _pad_rows(ar, n_pad, axis=1)
    mb = _pad_rows(mb, n_pad, axis=1)

    h1 = pw1.shape[1]
    h2 = aw1.shape[1]
    weights = [pw1.astype(jnp.float32), pb1.reshape(1, h1).astype(jnp.float32),
               pw2.astype(jnp.bfloat16), pb2.reshape(1, C).astype(jnp.float32),
               aw1.astype(jnp.bfloat16), ab1.reshape(1, h2).astype(jnp.float32),
               aw2.astype(jnp.bfloat16), ab2.reshape(1, C).astype(jnp.float32),
               wo.astype(jnp.bfloat16), bo.reshape(1, C).astype(jnp.float32)]
    w_specs = [_full_spec(w.shape) for w in weights]

    out = pl.pallas_call(
        _pt_conv_kernel,
        out_shape=jax.ShapeDtypeStruct((n_pad, C), jnp.float32),
        grid=(nblk,),
        in_specs=[pl.BlockSpec((K, tn, Cp3), lambda i: (0, i, 0)),
                  pl.BlockSpec((K, tn, C), lambda i: (0, i, 0))] + w_specs,
        out_specs=pl.BlockSpec((tn, C), lambda i: (i, 0)),
        scratch_shapes=[pltpu.VMEM((K * tn, C), jnp.float32),   # alpha stash
                        pltpu.VMEM((K * tn, C), jnp.float32)],  # msg stash
        compiler_params=pltpu.CompilerParams(
            dimension_semantics=("parallel",), vmem_limit_bytes=VMEM_LIMIT),
    )(ar, mb, *weights)
    return out[:N]


# ----------------------------------------------------------------------------
# K-max (dense scatter_max over the fixed-k neighborhood) — row tiled
# ----------------------------------------------------------------------------
def _kmax_kernel(x_ref, o_ref):
    K = x_ref.shape[0]
    m = x_ref[0]
    for k in range(1, K):
        m = jnp.maximum(m, x_ref[k])
    o_ref[...] = m.astype(o_ref.dtype)


def pallas_kmax(x_kmc):
    K, M, C = x_kmc.shape
    tm, nblk = _row_tile(M, ROW_TILE)
    m_pad = tm * nblk
    xp = _pad_rows(x_kmc, m_pad, axis=1)
    out = pl.pallas_call(
        _kmax_kernel,
        out_shape=jax.ShapeDtypeStruct((m_pad, C), x_kmc.dtype),
        grid=(nblk,),
        in_specs=[pl.BlockSpec((K, tm, C), lambda i: (0, i, 0))],
        out_specs=pl.BlockSpec((tm, C), lambda i: (i, 0)),
        compiler_params=pltpu.CompilerParams(
            dimension_semantics=("parallel",), vmem_limit_bytes=VMEM_LIMIT),
    )(xp)
    return out[:M]


# ----------------------------------------------------------------------------
# Graph / geometry glue (plain JAX: index construction & gathers)
# ----------------------------------------------------------------------------
def knn_graph_nbrs(pos, k):
    # k nearest neighbors excluding self; returns [N, k] source indices per target.
    N = pos.shape[0]
    d2 = jnp.sum((pos[:, None, :] - pos[None, :, :]) ** 2, axis=-1)
    d2 = d2 + jnp.eye(N, dtype=d2.dtype) * 1e10
    _, idx = jax.lax.top_k(-d2, k)
    return idx


def with_self_loops(nbr):
    # PointTransformerConv adds self loops after removing them.
    N = nbr.shape[0]
    return jnp.concatenate([jnp.arange(N, dtype=nbr.dtype)[:, None], nbr], axis=1)


def knn(x_pos, y_pos, k):
    # For each y, indices of its k nearest points in x.  [M, k]
    d2 = jnp.sum((y_pos[:, None, :] - x_pos[None, :, :]) ** 2, axis=-1)
    _, idx = jax.lax.top_k(-d2, k)
    return idx


def fps(pos, m):
    # Farthest point sampling, deterministic start at index 0.
    # TODO(synk): torch_geometric fps uses a random start point by default.
    d2 = jnp.sum((pos[:, None, :] - pos[None, :, :]) ** 2, axis=-1)

    def body(i, carry):
        idx, mind = carry
        nxt = jnp.argmax(mind).astype(jnp.int32)
        idx = idx.at[i].set(nxt)
        mind = jnp.minimum(mind, d2[nxt])
        return idx, mind

    idx0 = jnp.zeros((m,), jnp.int32)          # idx[0] = 0
    idx, _ = jax.lax.fori_loop(1, m, body, (idx0, d2[0]))
    return idx


def knn_interpolate(x_sub, pos_sub, pos, k=3):
    d2 = jnp.sum((pos[:, None, :] - pos_sub[None, :, :]) ** 2, axis=-1)   # [N, M]
    neg_d, idx = jax.lax.top_k(-d2, k)
    w = 1.0 / jnp.maximum(-neg_d, 1e-16)                                  # [N, k]
    num = jnp.sum(w[:, :, None] * x_sub[idx], axis=1)
    den = jnp.sum(w, axis=1, keepdims=True)
    return num / den


# ----------------------------------------------------------------------------
# Parameter init (deterministic, torch-Linear-style uniform)
# ----------------------------------------------------------------------------
class KeyGen:
    def __init__(self, seed):
        self.key = jax.random.PRNGKey(seed)

    def __call__(self):
        self.key, sub = jax.random.split(self.key)
        return sub


def init_linear(kg, cin, cout, bias=True):
    bound = 1.0 / math.sqrt(cin)
    w = jax.random.uniform(kg(), (cin, cout), jnp.float32, -bound, bound)
    b = jax.random.uniform(kg(), (cout,), jnp.float32, -bound, bound) if bias else None
    return (w, b)


def make_mlp_params(kg, channels):
    return [init_linear(kg, channels[i - 1], channels[i]) for i in range(1, len(channels))]


def init_transformer_block(kg, cin, cout):
    return {
        "linear_in": init_linear(kg, cin, cin),
        "linear_out": init_linear(kg, cout, cout),
        "pos_nn": make_mlp_params(kg, (3, 64, cout)),
        "attn_nn": make_mlp_params(kg, (cout, 64, cout)),
        "lin_w": init_linear(kg, cin, cout, bias=False)[0],
        "lin_src_w": init_linear(kg, cin, cout, bias=False)[0],
        "lin_dst_w": init_linear(kg, cin, cout, bias=False)[0],
    }


def init_segmentation_gnn(kg, in_channels, out_channels, dim_model):
    in_channels = max(in_channels, 1)
    p = {
        "mlp_input": make_mlp_params(kg, (in_channels, dim_model[0])),
        "transformer_input": init_transformer_block(kg, dim_model[0], dim_model[0]),
        "transition_down": [], "transformers_down": [],
        "transition_up": [], "transformers_up": [],
    }
    for i in range(len(dim_model) - 1):
        p["transition_down"].append({"mlp": make_mlp_params(kg, (dim_model[i], dim_model[i + 1]))})
        p["transformers_down"].append(init_transformer_block(kg, dim_model[i + 1], dim_model[i + 1]))
        p["transition_up"].append({
            "mlp_sub": make_mlp_params(kg, (dim_model[i + 1], dim_model[i])),
            "mlp": make_mlp_params(kg, (dim_model[i], dim_model[i])),
        })
        p["transformers_up"].append(init_transformer_block(kg, dim_model[i], dim_model[i]))
    p["mlp_summit"] = make_mlp_params(kg, (dim_model[-1], dim_model[-1]))
    p["transformer_summit"] = init_transformer_block(kg, dim_model[-1], dim_model[-1])
    p["mlp_output"] = [
        init_linear(kg, dim_model[0], 64),
        init_linear(kg, 64, 64),
        init_linear(kg, 64, out_channels),
    ]
    return p


# ----------------------------------------------------------------------------
# Module forward passes (built from the Pallas kernels)
# ----------------------------------------------------------------------------
def apply_mlp_bn(params, x):
    # MLP = [Linear -> BatchNorm1d -> ReLU] per layer (ReLU after last too).
    for (w, b) in params:
        x = pallas_linear_bn_relu(x, w, b)
    return x


def apply_mlp_nobn(params, x):
    # MLP without BatchNorm -> a single fused chain of Linear+ReLU.
    return pallas_fused_linears(x, params, ("relu",) * len(params))


def apply_transformer_block(p, x, pos, nbr):
    # PyG PointTransformerConv semantics with dense (k+1)-regular neighborhoods.
    C = p["lin_w"].shape[1]
    w_in, b_in = p["linear_in"]
    wcat = jnp.concatenate([p["lin_w"], p["lin_src_w"], p["lin_dst_w"]], axis=1)  # [cin, 3C]

    # fused: relu(linear_in(x)) chained into one 3-wide matmul for lin | lin_src | lin_dst;
    # emitted directly in bf16 so the gathered [K,N,*] streams are half-width in HBM.
    y = pallas_fused_linears(x, [(w_in, b_in), (wcat, None)], ("relu", "none"),
                             out_dtype=jnp.bfloat16)
    x_lin, a_src, a_dst = y[:, :C], y[:, C:2 * C], y[:, 2 * C:]

    nbr_t = nbr.T                                             # [K, N]
    rel = (pos[None, :, :] - pos[nbr_t]).astype(jnp.bfloat16)  # pos_i - pos_j     [K, N, 3]
    alpha_base = a_dst[None, :, :] - a_src[nbr_t]             # alpha_i - alpha_j [K, N, C]
    ar = jnp.concatenate([alpha_base, rel], axis=-1)          # one bf16 stream   [K, N, C+3]
    msg_base = x_lin[nbr_t]                                   # lin(x)_j          [K, N, C]

    # fused conv (pos_nn + attn_nn + softmax aggregation) with linear_out + ReLU epilogue
    return pallas_point_transformer_conv(
        ar, msg_base, p["pos_nn"], p["attn_nn"], p["linear_out"])


def apply_transition_down(p, x, pos, k, ratio=0.1):
    N = pos.shape[0]
    M = math.ceil(ratio * N)
    id_clusters = fps(pos, M)
    sub_pos = pos[id_clusters]
    id_k_nbr = knn(pos, sub_pos, k)                    # [M, k] indices into the full set
    x = apply_mlp_bn(p["mlp"], x)                      # [N, out]
    gathered = x.astype(jnp.bfloat16)[id_k_nbr.T]      # [k, M, out] bf16 (halved HBM stream)
    x_out = pallas_kmax(gathered)                      # scatter_max over fixed-k neighborhood
    return x_out, sub_pos


def apply_transition_up(p, x, x_sub, pos, pos_sub):
    x_sub = apply_mlp_bn(p["mlp_sub"], x_sub)
    x_interp = knn_interpolate(x_sub, pos_sub, pos, k=3)
    return apply_mlp_bn(p["mlp"], x) + x_interp


def segmentation_gnn_forward(p, x, pos, k):
    out_x, out_pos = [], []
    x = apply_mlp_bn(p["mlp_input"], x)
    nbr = with_self_loops(knn_graph_nbrs(pos, k))
    x = apply_transformer_block(p["transformer_input"], x, pos, nbr)
    out_x.append(x); out_pos.append(pos)

    for i in range(len(p["transformers_down"])):
        x, pos = apply_transition_down(p["transition_down"][i], x, pos, k)
        nbr = with_self_loops(knn_graph_nbrs(pos, k))
        x = apply_transformer_block(p["transformers_down"][i], x, pos, nbr)
        out_x.append(x); out_pos.append(pos)

    x = apply_mlp_nobn(p["mlp_summit"], x)
    nbr = with_self_loops(knn_graph_nbrs(pos, k))
    x = apply_transformer_block(p["transformer_summit"], x, pos, nbr)

    n = len(p["transformers_down"])
    for i in range(n):
        x = apply_transition_up(
            p["transition_up"][-(1 + i)],
            x=out_x[-(2 + i)], x_sub=x,
            pos=out_pos[-(2 + i)], pos_sub=out_pos[-(1 + i)],
        )
        nbr = with_self_loops(knn_graph_nbrs(out_pos[-(2 + i)], k))
        x = apply_transformer_block(p["transformers_up"][-(1 + i)], x, out_pos[-(2 + i)], nbr)

    # fused output head: Linear -> ReLU -> Linear -> ReLU -> Linear -> log_softmax
    return pallas_fused_linears(x, p["mlp_output"], ("relu", "relu", "log_softmax"))


# ----------------------------------------------------------------------------
if __name__ == "__main__":
    N = 64
    in_channels, out_channels = 3, 5
    dim_model = [32, 64]
    k = 4  # keep k small so the downsampled cloud (ceil(0.1*N)=7 points) still has k neighbors

    key = jax.random.PRNGKey(0)
    kx, kp = jax.random.split(key)
    x = jax.random.normal(kx, (N, in_channels), jnp.float32)
    pos = jax.random.normal(kp, (N, 3), jnp.float32)

    params = init_segmentation_gnn(KeyGen(42), in_channels, out_channels, dim_model)

    fwd = jax.jit(segmentation_gnn_forward, static_argnames=("k",))
    out = jax.block_until_ready(fwd(params, x, pos, k=k))

    assert out.shape == (N, out_channels)
    # log_softmax rows should exponentiate to 1
    assert bool(jnp.allclose(jnp.sum(jnp.exp(out), axis=-1), 1.0, atol=1e-4))
    assert bool(jnp.all(jnp.isfinite(out)))
    print("KERNEL_OK")
</pallas_src>

<mosaic_0001>
module attributes {stable_mosaic.version = 11 : i64} {
  func.func @_linear_stats_kernel(%arg0: i32, %arg1: memref<64x3xf32, #tpu.memory_space<vmem>>, %arg2: memref<3x32xbf16, #tpu.memory_space<vmem>>, %arg3: memref<1x32xf32, #tpu.memory_space<vmem>>, %arg4: memref<64x32xbf16, #tpu.memory_space<vmem>>, %arg5: memref<1x32xf32, #tpu.memory_space<vmem>>, %arg6: memref<1x32xf32, #tpu.memory_space<vmem>>) attributes {dimension_semantics = [#tpu.dimension_semantics<arbitrary>], iteration_bounds = array<i64: 1>, scalar_prefetch = 0 : i64, scratch_operands = 0 : i64, tpu.core_type = #tpu.core_type<tc>, window_params = [{transform_indices = @transform_0, window_bounds = array<i64: 64, 3>}, {pipeline_mode = #tpu.pipeline_mode<synchronous>, transform_indices = @transform_1, window_bounds = array<i64: 3, 32>}, {pipeline_mode = #tpu.pipeline_mode<synchronous>, transform_indices = @transform_2, window_bounds = array<i64: 1, 32>}, {transform_indices = @transform_3, window_bounds = array<i64: 64, 32>}, {pipeline_mode = #tpu.pipeline_mode<synchronous>, transform_indices = @transform_4, window_bounds = array<i64: 1, 32>}, {pipeline_mode = #tpu.pipeline_mode<synchronous>, transform_indices = @transform_5, window_bounds = array<i64: 1, 32>}]} {
    %c0 = arith.constant 0 : index
    %c0_0 = arith.constant 0 : index
    %0 = vector.load %arg1[%c0, %c0_0] : memref<64x3xf32, #tpu.memory_space<vmem>>, vector<64x3xf32>
    %1 = arith.truncf %0 : vector<64x3xf32> to vector<64x3xbf16>
    %c0_1 = arith.constant 0 : index
    %c0_2 = arith.constant 0 : index
    %2 = vector.load %arg2[%c0_1, %c0_2] : memref<3x32xbf16, #tpu.memory_space<vmem>>, vector<3x32xbf16>
    %cst = arith.constant dense<0.000000e+00> : vector<64x32xf32>
    %3 = tpu.matmul %1, %2, %cst {dimension_numbers = #tpu.dot_dimension_numbers<[1], [0], [0], [1], [0, 0, 1, 1], [], []>} : vector<64x3xbf16>, vector<3x32xbf16>, vector<64x32xf32> -> vector<64x32xf32>
    %c0_3 = arith.constant 0 : index
    %c0_4 = arith.constant 0 : index
    %4 = vector.load %arg3[%c0_3, %c0_4] : memref<1x32xf32, #tpu.memory_space<vmem>>, vector<1x32xf32>
    %5 = vector.broadcast %4 : vector<1x32xf32> to vector<64x32xf32>
    %6 = arith.addf %3, %5 : vector<64x32xf32>
    %7 = arith.truncf %6 : vector<64x32xf32> to vector<64x32xbf16>
    %c0_5 = arith.constant 0 : index
    %c0_6 = arith.constant 0 : index
    %8 = vector.load %arg4[%c0_5, %c0_6] : memref<64x32xbf16, #tpu.memory_space<vmem>>, vector<64x32xbf16>
    tpu.vector_store %arg4[%c0_5, %c0_6], %7 {strides = array<i32>} : memref<64x32xbf16, #tpu.memory_space<vmem>>, vector<64x32xbf16>,
    %c0_i32 = arith.constant 0 : i32
    %9 = arith.cmpi eq, %arg0, %c0_i32 : i32
    %10 = arith.extui %9 : i1 to i32
    %c0_i32_7 = arith.constant 0 : i32
    %11 = arith.cmpi ne, %10, %c0_i32_7 : i32
    scf.if %11 {
      %cst_20 = arith.constant 0.000000e+00 : f32
      %31 = vector.broadcast %cst_20 : f32 to vector<1x32xf32>
      %c0_21 = arith.constant 0 : index
      %c0_22 = arith.constant 0 : index
      %32 = vector.load %arg5[%c0_21, %c0_22] : memref<1x32xf32, #tpu.memory_space<vmem>>, vector<1x32xf32>
      tpu.vector_store %arg5[%c0_21, %c0_22], %31 {strides = array<i32>} : memref<1x32xf32, #tpu.memory_space<vmem>>, vector<1x32xf32>,
      %cst_23 = arith.constant 0.000000e+00 : f32
      %33 = vector.broadcast %cst_23 : f32 to vector<1x32xf32>
      %c0_24 = arith.constant 0 : index
      %c0_25 = arith.constant 0 : index
      %34 = vector.load %arg6[%c0_24, %c0_25] : memref<1x32xf32, #tpu.memory_space<vmem>>, vector<1x32xf32>
      tpu.vector_store %arg6[%c0_24, %c0_25], %33 {strides = array<i32>} : memref<1x32xf32, #tpu.memory_space<vmem>>, vector<1x32xf32>,
    } else {
    }
    %c64_i32 = arith.constant 64 : i32
    %12 = arith.muli %arg0, %c64_i32 : i32
    %13 = tpu.iota {dimensions = array<i32: 0>} : vector<64x32xi32>
    %14 = vector.broadcast %12 : i32 to vector<64x32xi32>
    %15 = arith.addi %14, %13 : vector<64x32xi32>
    %c64_i32_8 = arith.constant 64 : i32
    %16 = vector.broadcast %c64_i32_8 : i32 to vector<64x32xi32>
    %17 = arith.cmpi slt, %15, %16 : vector<64x32xi32>
    %cst_9 = arith.constant 0.000000e+00 : f32
    %18 = vector.broadcast %cst_9 : f32 to vector<64x32xf32>
    %19 = arith.select %17, %6, %18 : vector<64x32xi1>, vector<64x32xf32>
    %c0_10 = arith.constant 0 : index
    %c0_11 = arith.constant 0 : index
    %20 = vector.load %arg5[%c0_10, %c0_11] : memref<1x32xf32, #tpu.memory_space<vmem>>, vector<1x32xf32>
    %cst_12 = arith.constant dense<0.000000e+00> : vector<32xf32>
    %21 = vector.multi_reduction <add>, %19, %cst_12 [0] : vector<64x32xf32> to vector<32xf32>
    %22 = vector.shape_cast %21 : vector<32xf32> to vector<1x32xf32>
    %23 = arith.addf %20, %22 : vector<1x32xf32>
    %c0_13 = arith.constant 0 : index
    %c0_14 = arith.constant 0 : index
    %24 = vector.load %arg5[%c0_13, %c0_14] : memref<1x32xf32, #tpu.memory_space<vmem>>, vector<1x32xf32>
    tpu.vector_store %arg5[%c0_13, %c0_14], %23 {strides = array<i32>} : memref<1x32xf32, #tpu.memory_space<vmem>>, vector<1x32xf32>,
    %c0_15 = arith.constant 0 : index
    %c0_16 = arith.constant 0 : index
    %25 = vector.load %arg6[%c0_15, %c0_16] : memref<1x32xf32, #tpu.memory_space<vmem>>, vector<1x32xf32>
    %26 = arith.mulf %19, %19 : vector<64x32xf32>
    %cst_17 = arith.constant dense<0.000000e+00> : vector<32xf32>
    %27 = vector.multi_reduction <add>, %26, %cst_17 [0] : vector<64x32xf32> to vector<32xf32>
    %28 = vector.shape_cast %27 : vector<32xf32> to vector<1x32xf32>
    %29 = arith.addf %25, %28 : vector<1x32xf32>
    %c0_18 = arith.constant 0 : index
    %c0_19 = arith.constant 0 : index
    %30 = vector.load %arg6[%c0_18, %c0_19] : memref<1x32xf32, #tpu.memory_space<vmem>>, vector<1x32xf32>
    tpu.vector_store %arg6[%c0_18, %c0_19], %29 {strides = array<i32>} : memref<1x32xf32, #tpu.memory_space<vmem>>, vector<1x32xf32>,
    return
  }
  func.func @transform_0(%arg0: i32) -> (i32, i32) {
    %c0_i32 = arith.constant 0 : i32
    %c0_i32_0 = arith.constant 0 : i32
    return %arg0, %c0_i32 : i32, i32
  }
  func.func @transform_1(%arg0: i32) -> (i32, i32) {
    %c0_i32 = arith.constant 0 : i32
    %c0_i32_0 = arith.constant 0 : i32
    %c0_i32_1 = arith.constant 0 : i32
    return %c0_i32, %c0_i32_0 : i32, i32
  }
  func.func @transform_2(%arg0: i32) -> (i32, i32) {
    %c0_i32 = arith.constant 0 : i32
    %c0_i32_0 = arith.constant 0 : i32
    %c0_i32_1 = arith.constant 0 : i32
    return %c0_i32, %c0_i32_0 : i32, i32
  }
  func.func @transform_3(%arg0: i32) -> (i32, i32) {
    %c0_i32 = arith.constant 0 : i32
    %c0_i32_0 = arith.constant 0 : i32
    return %arg0, %c0_i32 : i32, i32
  }
  func.func @transform_4(%arg0: i32) -> (i32, i32) {
    %c0_i32 = arith.constant 0 : i32
    %c0_i32_0 = arith.constant 0 : i32
    %c0_i32_1 = arith.constant 0 : i32
    return %c0_i32, %c0_i32_0 : i32, i32
  }
  func.func @transform_5(%arg0: i32) -> (i32, i32) {
    %c0_i32 = arith.constant 0 : i32
    %c0_i32_0 = arith.constant 0 : i32
    %c0_i32_1 = arith.constant 0 : i32
    return %c0_i32, %c0_i32_0 : i32, i32
  }
}

module attributes {stable_mosaic.version = 11 : i64} {
  func.func @_bn_relu_kernel(%arg0: i32, %arg1: memref<64x32xbf16, #tpu.memory_space<vmem>>, %arg2: memref<1x32xf32, #tpu.memory_space<vmem>>, %arg3: memref<1x32xf32, #tpu.memory_space<vmem>>, %arg4: memref<64x32xf32, #tpu.memory_space<vmem>>) attributes {dimension_semantics = [#tpu.dimension_semantics<parallel>], iteration_bounds = array<i64: 1>, scalar_prefetch = 0 : i64, scratch_operands = 0 : i64, tpu.core_type = #tpu.core_type<tc>, window_params = [{transform_indices = @transform_0, window_bounds = array<i64: 64, 32>}, {pipeline_mode = #tpu.pipeline_mode<synchronous>, transform_indices = @transform_1, window_bounds = array<i64: 1, 32>}, {pipeline_mode = #tpu.pipeline_mode<synchronous>, transform_indices = @transform_2, window_bounds = array<i64: 1, 32>}, {transform_indices = @transform_3, window_bounds = array<i64: 64, 32>}]} {
    %c0 = arith.constant 0 : index
    %c0_0 = arith.constant 0 : index
    %0 = vector.load %arg2[%c0, %c0_0] : memref<1x32xf32, #tpu.memory_space<vmem>>, vector<1x32xf32>
    %cst = arith.constant 1.562500e-02 : f32
    %1 = vector.broadcast %cst : f32 to vector<1x32xf32>
    %2 = arith.mulf %0, %1 : vector<1x32xf32>
    %c0_1 = arith.constant 0 : index
    %c0_2 = arith.constant 0 : index
    %3 = vector.load %arg3[%c0_1, %c0_2] : memref<1x32xf32, #tpu.memory_space<vmem>>, vector<1x32xf32>
    %cst_3 = arith.constant 1.562500e-02 : f32
    %4 = vector.broadcast %cst_3 : f32 to vector<1x32xf32>
    %5 = arith.mulf %3, %4 : vector<1x32xf32>
    %6 = arith.mulf %2, %2 : vector<1x32xf32>
    %7 = arith.subf %5, %6 : vector<1x32xf32>
    %cst_4 = arith.constant 0.000000e+00 : f32
    %8 = vector.broadcast %cst_4 : f32 to vector<1x32xf32>
    %9 = arith.maximumf %7, %8 : vector<1x32xf32>
    %cst_5 = arith.constant 9.99999974E-6 : f32
    %10 = vector.broadcast %cst_5 : f32 to vector<1x32xf32>
    %11 = arith.addf %9, %10 : vector<1x32xf32>
    %12 = math.rsqrt %11 : vector<1x32xf32>
    %c0_6 = arith.constant 0 : index
    %c0_7 = arith.constant 0 : index
    %13 = vector.load %arg1[%c0_6, %c0_7] : memref<64x32xbf16, #tpu.memory_space<vmem>>, vector<64x32xbf16>
    %14 = arith.extf %13 : vector<64x32xbf16> to vector<64x32xf32>
    %15 = vector.broadcast %2 : vector<1x32xf32> to vector<64x32xf32>
    %16 = arith.subf %14, %15 : vector<64x32xf32>
    %17 = vector.broadcast %12 : vector<1x32xf32> to vector<64x32xf32>
    %18 = arith.mulf %16, %17 : vector<64x32xf32>
    %cst_8 = arith.constant 0.000000e+00 : f32
    %19 = vector.broadcast %cst_8 : f32 to vector<64x32xf32>
    %20 = arith.maximumf %18, %19 : vector<64x32xf32>
    %c0_9 = arith.constant 0 : index
    %c0_10 = arith.constant 0 : index
    %21 = vector.load %arg4[%c0_9, %c0_10] : memref<64x32xf32, #tpu.memory_space<vmem>>, vector<64x32xf32>
    tpu.vector_store %arg4[%c0_9, %c0_10], %20 {strides = array<i32>} : memref<64x32xf32, #tpu.memory_space<vmem>>, vector<64x32xf32>,
    return
  }
  func.func @transform_0(%arg0: i32) -> (i32, i32) {
    %c0_i32 = arith.constant 0 : i32
    %c0_i32_0 = arith.constant 0 : i32
    return %arg0, %c0_i32 : i32, i32
  }
  func.func @transform_1(%arg0: i32) -> (i32, i32) {
    %c0_i32 = arith.constant 0 : i32
    %c0_i32_0 = arith.constant 0 : i32
    %c0_i32_1 = arith.constant 0 : i32
    return %c0_i32, %c0_i32_0 : i32, i32
  }
  func.func @transform_2(%arg0: i32) -> (i32, i32) {
    %c0_i32 = arith.constant 0 : i32
    %c0_i32_0 = arith.constant 0 : i32
    %c0_i32_1 = arith.constant 0 : i32
    return %c0_i32, %c0_i32_0 : i32, i32
  }
  func.func @transform_3(%arg0: i32) -> (i32, i32) {
    %c0_i32 = arith.constant 0 : i32
    %c0_i32_0 = arith.constant 0 : i32
    return %arg0, %c0_i32 : i32, i32
  }
}

module attributes {stable_mosaic.version = 11 : i64} {
  func.func @_fused_linears_kernel(%arg0: i32, %arg1: memref<64x32xf32, #tpu.memory_space<vmem>>, %arg2: memref<32x32xbf16, #tpu.memory_space<vmem>>, %arg3: memref<1x32xf32, #tpu.memory_space<vmem>>, %arg4: memref<32x96xbf16, #tpu.memory_space<vmem>>, %arg5: memref<1x96xf32, #tpu.memory_space<vmem>>, %arg6: memref<64x96xbf16, #tpu.memory_space<vmem>>) attributes {dimension_semantics = [#tpu.dimension_semantics<parallel>], iteration_bounds = array<i64: 1>, scalar_prefetch = 0 : i64, scratch_operands = 0 : i64, tpu.core_type = #tpu.core_type<tc>, window_params = [{transform_indices = @transform_0, window_bounds = array<i64: 64, 32>}, {pipeline_mode = #tpu.pipeline_mode<synchronous>, transform_indices = @transform_1, window_bounds = array<i64: 32, 32>}, {pipeline_mode = #tpu.pipeline_mode<synchronous>, transform_indices = @transform_2, window_bounds = array<i64: 1, 32>}, {pipeline_mode = #tpu.pipeline_mode<synchronous>, transform_indices = @transform_3, window_bounds = array<i64: 32, 96>}, {pipeline_mode = #tpu.pipeline_mode<synchronous>, transform_indices = @transform_4, window_bounds = array<i64: 1, 96>}, {transform_indices = @transform_5, window_bounds = array<i64: 64, 96>}]} {
    %c0 = arith.constant 0 : index
    %c0_0 = arith.constant 0 : index
    %0 = vector.load %arg1[%c0, %c0_0] : memref<64x32xf32, #tpu.memory_space<vmem>>, vector<64x32xf32>
    %c0_1 = arith.constant 0 : index
    %c0_2 = arith.constant 0 : index
    %1 = vector.load %arg2[%c0_1, %c0_2] : memref<32x32xbf16, #tpu.memory_space<vmem>>, vector<32x32xbf16>
    %c0_3 = arith.constant 0 : index
    %c0_4 = arith.constant 0 : index
    %2 = vector.load %arg3[%c0_3, %c0_4] : memref<1x32xf32, #tpu.memory_space<vmem>>, vector<1x32xf32>
    %3 = arith.truncf %0 : vector<64x32xf32> to vector<64x32xbf16>
    %cst = arith.constant dense<0.000000e+00> : vector<64x32xf32>
    %4 = tpu.matmul %3, %1, %cst {dimension_numbers = #tpu.dot_dimension_numbers<[1], [0], [0], [1], [0, 0, 1, 1], [], []>} : vector<64x32xbf16>, vector<32x32xbf16>, vector<64x32xf32> -> vector<64x32xf32>
    %5 = vector.broadcast %2 : vector<1x32xf32> to vector<64x32xf32>
    %6 = arith.addf %4, %5 : vector<64x32xf32>
    %cst_5 = arith.constant 0.000000e+00 : f32
    %7 = vector.broadcast %cst_5 : f32 to vector<64x32xf32>
    %8 = arith.maximumf %6, %7 : vector<64x32xf32>
    %c0_6 = arith.constant 0 : index
    %c0_7 = arith.constant 0 : index
    %9 = vector.load %arg4[%c0_6, %c0_7] : memref<32x96xbf16, #tpu.memory_space<vmem>>, vector<32x96xbf16>
    %c0_8 = arith.constant 0 : index
    %c0_9 = arith.constant 0 : index
    %10 = vector.load %arg5[%c0_8, %c0_9] : memref<1x96xf32, #tpu.memory_space<vmem>>, vector<1x96xf32>
    %11 = arith.truncf %8 : vector<64x32xf32> to vector<64x32xbf16>
    %cst_10 = arith.constant dense<0.000000e+00> : vector<64x96xf32>
    %12 = tpu.matmul %11, %9, %cst_10 {dimension_numbers = #tpu.dot_dimension_numbers<[1], [0], [0], [1], [0, 0, 1, 1], [], []>} : vector<64x32xbf16>, vector<32x96xbf16>, vector<64x96xf32> -> vector<64x96xf32>
    %13 = vector.broadcast %10 : vector<1x96xf32> to vector<64x96xf32>
    %14 = arith.addf %12, %13 : vector<64x96xf32>
    %15 = arith.truncf %14 : vector<64x96xf32> to vector<64x96xbf16>
    %c0_11 = arith.constant 0 : index
    %c0_12 = arith.constant 0 : index
    %16 = vector.load %arg6[%c0_11, %c0_12] : memref<64x96xbf16, #tpu.memory_space<vmem>>, vector<64x96xbf16>
    tpu.vector_store %arg6[%c0_11, %c0_12], %15 {strides = array<i32>} : memref<64x96xbf16, #tpu.memory_space<vmem>>, vector<64x96xbf16>,
    return
  }
  func.func @transform_0(%arg0: i32) -> (i32, i32) {
    %c0_i32 = arith.constant 0 : i32
    %c0_i32_0 = arith.constant 0 : i32
    return %arg0, %c0_i32 : i32, i32
  }
  func.func @transform_1(%arg0: i32) -> (i32, i32) {
    %c0_i32 = arith.constant 0 : i32
    %c0_i32_0 = arith.constant 0 : i32
    %c0_i32_1 = arith.constant 0 : i32
    return %c0_i32, %c0_i32_0 : i32, i32
  }
  func.func @transform_2(%arg0: i32) -> (i32, i32) {
    %c0_i32 = arith.constant 0 : i32
    %c0_i32_0 = arith.constant 0 : i32
    %c0_i32_1 = arith.constant 0 : i32
    return %c0_i32, %c0_i32_0 : i32, i32
  }
  func.func @transform_3(%arg0: i32) -> (i32, i32) {
    %c0_i32 = arith.constant 0 : i32
    %c0_i32_0 = arith.constant 0 : i32
    %c0_i32_1 = arith.constant 0 : i32
    return %c0_i32, %c0_i32_0 : i32, i32
  }
  func.func @transform_4(%arg0: i32) -> (i32, i32) {
    %c0_i32 = arith.constant 0 : i32
    %c0_i32_0 = arith.constant 0 : i32
    %c0_i32_1 = arith.constant 0 : i32
    return %c0_i32, %c0_i32_0 : i32, i32
  }
  func.func @transform_5(%arg0: i32) -> (i32, i32) {
    %c0_i32 = arith.constant 0 : i32
    %c0_i32_0 = arith.constant 0 : i32
    return %arg0, %c0_i32 : i32, i32
  }
}

module attributes {stable_mosaic.version = 11 : i64} {
  func.func @_bn_relu_kernel(%arg0: i32, %arg1: memref<64x64xbf16, #tpu.memory_space<vmem>>, %arg2: memref<1x64xf32, #tpu.memory_space<vmem>>, %arg3: memref<1x64xf32, #tpu.memory_space<vmem>>, %arg4: memref<64x64xf32, #tpu.memory_space<vmem>>) attributes {dimension_semantics = [#tpu.dimension_semantics<parallel>], iteration_bounds = array<i64: 1>, scalar_prefetch = 0 : i64, scratch_operands = 0 : i64, tpu.core_type = #tpu.core_type<tc>, window_params = [{transform_indices = @transform_0, window_bounds = array<i64: 64, 64>}, {pipeline_mode = #tpu.pipeline_mode<synchronous>, transform_indices = @transform_1, window_bounds = array<i64: 1, 64>}, {pipeline_mode = #tpu.pipeline_mode<synchronous>, transform_indices = @transform_2, window_bounds = array<i64: 1, 64>}, {transform_indices = @transform_3, window_bounds = array<i64: 64, 64>}]} {
    %c0 = arith.constant 0 : index
    %c0_0 = arith.constant 0 : index
    %0 = vector.load %arg2[%c0, %c0_0] : memref<1x64xf32, #tpu.memory_space<vmem>>, vector<1x64xf32>
    %cst = arith.constant 1.562500e-02 : f32
    %1 = vector.broadcast %cst : f32 to vector<1x64xf32>
    %2 = arith.mulf %0, %1 : vector<1x64xf32>
    %c0_1 = arith.constant 0 : index
    %c0_2 = arith.constant 0 : index
    %3 = vector.load %arg3[%c0_1, %c0_2] : memref<1x64xf32, #tpu.memory_space<vmem>>, vector<1x64xf32>
    %cst_3 = arith.constant 1.562500e-02 : f32
    %4 = vector.broadcast %cst_3 : f32 to vector<1x64xf32>
    %5 = arith.mulf %3, %4 : vector<1x64xf32>
    %6 = arith.mulf %2, %2 : vector<1x64xf32>
    %7 = arith.subf %5, %6 : vector<1x64xf32>
    %cst_4 = arith.constant 0.000000e+00 : f32
    %8 = vector.broadcast %cst_4 : f32 to vector<1x64xf32>
    %9 = arith.maximumf %7, %8 : vector<1x64xf32>
    %cst_5 = arith.constant 9.99999974E-6 : f32
    %10 = vector.broadcast %cst_5 : f32 to vector<1x64xf32>
    %11 = arith.addf %9, %10 : vector<1x64xf32>
    %12 = math.rsqrt %11 : vector<1x64xf32>
    %c0_6 = arith.constant 0 : index
    %c0_7 = arith.constant 0 : index
    %13 = vector.load %arg1[%c0_6, %c0_7] : memref<64x64xbf16, #tpu.memory_space<vmem>>, vector<64x64xbf16>
    %14 = arith.extf %13 : vector<64x64xbf16> to vector<64x64xf32>
    %15 = vector.broadcast %2 : vector<1x64xf32> to vector<64x64xf32>
    %16 = arith.subf %14, %15 : vector<64x64xf32>
    %17 = vector.broadcast %12 : vector<1x64xf32> to vector<64x64xf32>
    %18 = arith.mulf %16, %17 : vector<64x64xf32>
    %cst_8 = arith.constant 0.000000e+00 : f32
    %19 = vector.broadcast %cst_8 : f32 to vector<64x64xf32>
    %20 = arith.maximumf %18, %19 : vector<64x64xf32>
    %c0_9 = arith.constant 0 : index
    %c0_10 = arith.constant 0 : index
    %21 = vector.load %arg4[%c0_9, %c0_10] : memref<64x64xf32, #tpu.memory_space<vmem>>, vector<64x64xf32>
    tpu.vector_store %arg4[%c0_9, %c0_10], %20 {strides = array<i32>} : memref<64x64xf32, #tpu.memory_space<vmem>>, vector<64x64xf32>,
    return
  }
  func.func @transform_0(%arg0: i32) -> (i32, i32) {
    %c0_i32 = arith.constant 0 : i32
    %c0_i32_0 = arith.constant 0 : i32
    return %arg0, %c0_i32 : i32, i32
  }
  func.func @transform_1(%arg0: i32) -> (i32, i32) {
    %c0_i32 = arith.constant 0 : i32
    %c0_i32_0 = arith.constant 0 : i32
    %c0_i32_1 = arith.constant 0 : i32
    return %c0_i32, %c0_i32_0 : i32, i32
  }
  func.func @transform_2(%arg0: i32) -> (i32, i32) {
    %c0_i32 = arith.constant 0 : i32
    %c0_i32_0 = arith.constant 0 : i32
    %c0_i32_1 = arith.constant 0 : i32
    return %c0_i32, %c0_i32_0 : i32, i32
  }
  func.func @transform_3(%arg0: i32) -> (i32, i32) {
    %c0_i32 = arith.constant 0 : i32
    %c0_i32_0 = arith.constant 0 : i32
    return %arg0, %c0_i32 : i32, i32
  }
}

module attributes {stable_mosaic.version = 11 : i64} {
  func.func @_pt_conv_kernel(%arg0: i32, %arg1: memref<5x64x35xbf16, #tpu.memory_space<vmem>>, %arg2: memref<5x64x32xbf16, #tpu.memory_space<vmem>>, %arg3: memref<3x64xf32, #tpu.memory_space<vmem>>, %arg4: memref<1x64xf32, #tpu.memory_space<vmem>>, %arg5: memref<64x32xbf16, #tpu.memory_space<vmem>>, %arg6: memref<1x32xf32, #tpu.memory_space<vmem>>, %arg7: memref<32x64xbf16, #tpu.memory_space<vmem>>, %arg8: memref<1x64xf32, #tpu.memory_space<vmem>>, %arg9: memref<64x32xbf16, #tpu.memory_space<vmem>>, %arg10: memref<1x32xf32, #tpu.memory_space<vmem>>, %arg11: memref<32x32xbf16, #tpu.memory_space<vmem>>, %arg12: memref<1x32xf32, #tpu.memory_space<vmem>>, %arg13: memref<64x32xf32, #tpu.memory_space<vmem>>, %arg14: memref<320x32xf32, #tpu.memory_space<vmem>>, %arg15: memref<320x32xf32, #tpu.memory_space<vmem>>) attributes {dimension_semantics = [#tpu.dimension_semantics<parallel>], iteration_bounds = array<i64: 1>, scalar_prefetch = 0 : i64, scratch_operands = 2 : i64, tpu.core_type = #tpu.core_type<tc>, window_params = [{transform_indices = @transform_0, window_bounds = array<i64: 5, 64, 35>}, {transform_indices = @transform_1, window_bounds = array<i64: 5, 64, 32>}, {pipeline_mode = #tpu.pipeline_mode<synchronous>, transform_indices = @transform_2, window_bounds = array<i64: 3, 64>}, {pipeline_mode = #tpu.pipeline_mode<synchronous>, transform_indices = @transform_3, window_bounds = array<i64: 1, 64>}, {pipeline_mode = #tpu.pipeline_mode<synchronous>, transform_indices = @transform_4, window_bounds = array<i64: 64, 32>}, {pipeline_mode = #tpu.pipeline_mode<synchronous>, transform_indices = @transform_5, window_bounds = array<i64: 1, 32>}, {pipeline_mode = #tpu.pipeline_mode<synchronous>, transform_indices = @transform_6, window_bounds = array<i64: 32, 64>}, {pipeline_mode = #tpu.pipeline_mode<synchronous>, transform_indices = @transform_7, window_bounds = array<i64: 1, 64>}, {pipeline_mode = #tpu.pipeline_mode<synchronous>, transform_indices = @transform_8, window_bounds = array<i64: 64, 32>}, {pipeline_mode = #tpu.pipeline_mode<synchronous>, transform_indices = @transform_9, window_bounds = array<i64: 1, 32>}, {pipeline_mode = #tpu.pipeline_mode<synchronous>, transform_indices = @transform_10, window_bounds = array<i64: 32, 32>}, {pipeline_mode = #tpu.pipeline_mode<synchronous>, transform_indices = @transform_11, window_bounds = array<i64: 1, 32>}, {transform_indices = @transform_12, window_bounds = array<i64: 64, 32>}]} {
    %c0 = arith.constant 0 : index
    %c0_0 = arith.constant 0 : index
    %c0_1 = arith.constant 0 : index
    %0 = vector.load %arg1[%c0, %c0_0, %c0_1] : memref<5x64x35xbf16, #tpu.memory_space<vmem>>, vector<5x64x35xbf16>
    %1 = vector.shape_cast %0 : vector<5x64x35xbf16> to vector<320x35xbf16>
    %2 = vector.extract_strided_slice %1 {offsets = [0, 0], sizes = [320, 32], strides = [1, 1]} : vector<320x35xbf16> to vector<320x32xbf16>
    %3 = arith.extf %2 : vector<320x32xbf16> to vector<320x32xf32>
    %4 = vector.extract_strided_slice %1 {offsets = [0, 32], sizes = [320, 3], strides = [1, 1]} : vector<320x35xbf16> to vector<320x3xbf16>
    %5 = arith.extf %4 : vector<320x3xbf16> to vector<320x3xf32>
    %c0_2 = arith.constant 0 : index
    %c0_3 = arith.constant 0 : index
    %6 = vector.load %arg3[%c0_2, %c0_3] : memref<3x64xf32, #tpu.memory_space<vmem>>, vector<3x64xf32>
    %7 = vector.extract_strided_slice %5 {offsets = [0, 0], sizes = [320, 1], strides = [1, 1]} : vector<320x3xf32> to vector<320x1xf32>
    %8 = vector.extract_strided_slice %6 {offsets = [0, 0], sizes = [1, 64], strides = [1, 1]} : vector<3x64xf32> to vector<1x64xf32>
    %9 = vector.broadcast %7 : vector<320x1xf32> to vector<320x64xf32>
    %10 = vector.broadcast %8 : vector<1x64xf32> to vector<320x64xf32>
    %11 = arith.mulf %9, %10 : vector<320x64xf32>
    %12 = vector.extract_strided_slice %5 {offsets = [0, 1], sizes = [320, 1], strides = [1, 1]} : vector<320x3xf32> to vector<320x1xf32>
    %13 = vector.extract_strided_slice %6 {offsets = [1, 0], sizes = [1, 64], strides = [1, 1]} : vector<3x64xf32> to vector<1x64xf32>
    %14 = vector.broadcast %12 : vector<320x1xf32> to vector<320x64xf32>
    %15 = vector.broadcast %13 : vector<1x64xf32> to vector<320x64xf32>
    %16 = arith.mulf %14, %15 : vector<320x64xf32>
    %17 = arith.addf %11, %16 : vector<320x64xf32>
    %18 = vector.extract_strided_slice %5 {offsets = [0, 2], sizes = [320, 1], strides = [1, 1]} : vector<320x3xf32> to vector<320x1xf32>
    %19 = vector.extract_strided_slice %6 {offsets = [2, 0], sizes = [1, 64], strides = [1, 1]} : vector<3x64xf32> to vector<1x64xf32>
    %20 = vector.broadcast %18 : vector<320x1xf32> to vector<320x64xf32>
    %21 = vector.broadcast %19 : vector<1x64xf32> to vector<320x64xf32>
    %22 = arith.mulf %20, %21 : vector<320x64xf32>
    %23 = arith.addf %17, %22 : vector<320x64xf32>
    %c0_4 = arith.constant 0 : index
    %c0_5 = arith.constant 0 : index
    %24 = vector.load %arg4[%c0_4, %c0_5] : memref<1x64xf32, #tpu.memory_space<vmem>>, vector<1x64xf32>
    %25 = vector.broadcast %24 : vector<1x64xf32> to vector<320x64xf32>
    %26 = arith.addf %23, %25 : vector<320x64xf32>
    %cst = arith.constant 0.000000e+00 : f32
    %27 = vector.broadcast %cst : f32 to vector<320x64xf32>
    %28 = arith.maximumf %26, %27 : vector<320x64xf32>
    %29 = arith.truncf %28 : vector<320x64xf32> to vector<320x64xbf16>
    %c0_6 = arith.constant 0 : index
    %c0_7 = arith.constant 0 : index
    %30 = vector.load %arg5[%c0_6, %c0_7] : memref<64x32xbf16, #tpu.memory_space<vmem>>, vector<64x32xbf16>
    %cst_8 = arith.constant dense<0.000000e+00> : vector<320x32xf32>
    %31 = tpu.matmul %29, %30, %cst_8 {dimension_numbers = #tpu.dot_dimension_numbers<[1], [0], [0], [1], [0, 0, 1, 1], [], []>} : vector<320x64xbf16>, vector<64x32xbf16>, vector<320x32xf32> -> vector<320x32xf32>
    %c0_9 = arith.constant 0 : index
    %c0_10 = arith.constant 0 : index
    %32 = vector.load %arg6[%c0_9, %c0_10] : memref<1x32xf32, #tpu.memory_space<vmem>>, vector<1x32xf32>
    %33 = vector.broadcast %32 : vector<1x32xf32> to vector<320x32xf32>
    %34 = arith.addf %31, %33 : vector<320x32xf32>
    %cst_11 = arith.constant 0.000000e+00 : f32
    %35 = vector.broadcast %cst_11 : f32 to vector<320x32xf32>
    %36 = arith.maximumf %34, %35 : vector<320x32xf32>
    %c0_12 = arith.constant 0 : index
    %c0_13 = arith.constant 0 : index
    %c0_14 = arith.constant 0 : index
    %37 = vector.load %arg2[%c0_12, %c0_13, %c0_14] : memref<5x64x32xbf16, #tpu.memory_space<vmem>>, vector<5x64x32xbf16>
    %38 = vector.shape_cast %37 : vector<5x64x32xbf16> to vector<320x32xbf16>
    %39 = arith.extf %38 : vector<320x32xbf16> to vector<320x32xf32>
    %40 = arith.addf %39, %36 : vector<320x32xf32>
    %c0_15 = arith.constant 0 : index
    %c0_16 = arith.constant 0 : index
    %41 = vector.load %arg15[%c0_15, %c0_16] : memref<320x32xf32, #tpu.memory_space<vmem>>, vector<320x32xf32>
    tpu.vector_store %arg15[%c0_15, %c0_16], %40 {strides = array<i32>} : memref<320x32xf32, #tpu.memory_space<vmem>>, vector<320x32xf32>,
    %42 = arith.addf %3, %36 : vector<320x32xf32>
    %43 = arith.truncf %42 : vector<320x32xf32> to vector<320x32xbf16>
    %c0_17 = arith.constant 0 : index
    %c0_18 = arith.constant 0 : index
    %44 = vector.load %arg7[%c0_17, %c0_18] : memref<32x64xbf16, #tpu.memory_space<vmem>>, vector<32x64xbf16>
    %cst_19 = arith.constant dense<0.000000e+00> : vector<320x64xf32>
    %45 = tpu.matmul %43, %44, %cst_19 {dimension_numbers = #tpu.dot_dimension_numbers<[1], [0], [0], [1], [0, 0, 1, 1], [], []>} : vector<320x32xbf16>, vector<32x64xbf16>, vector<320x64xf32> -> vector<320x64xf32>
    %c0_20 = arith.constant 0 : index
    %c0_21 = arith.constant 0 : index
    %46 = vector.load %arg8[%c0_20, %c0_21] : memref<1x64xf32, #tpu.memory_space<vmem>>, vector<1x64xf32>
    %47 = vector.broadcast %46 : vector<1x64xf32> to vector<320x64xf32>
    %48 = arith.addf %45, %47 : vector<320x64xf32>
    %cst_22 = arith.constant 0.000000e+00 : f32
    %49 = vector.broadcast %cst_22 : f32 to vector<320x64xf32>
    %50 = arith.maximumf %48, %49 : vector<320x64xf32>
    %51 = arith.truncf %50 : vector<320x64xf32> to vector<320x64xbf16>
    %c0_23 = arith.constant 0 : index
    %c0_24 = arith.constant 0 : index
    %52 = vector.load %arg9[%c0_23, %c0_24] : memref<64x32xbf16, #tpu.memory_space<vmem>>, vector<64x32xbf16>
    %cst_25 = arith.constant dense<0.000000e+00> : vector<320x32xf32>
    %53 = tpu.matmul %51, %52, %cst_25 {dimension_numbers = #tpu.dot_dimension_numbers<[1], [0], [0], [1], [0, 0, 1, 1], [], []>} : vector<320x64xbf16>, vector<64x32xbf16>, vector<320x32xf32> -> vector<320x32xf32>
    %c0_26 = arith.constant 0 : index
    %c0_27 = arith.constant 0 : index
    %54 = vector.load %arg10[%c0_26, %c0_27] : memref<1x32xf32, #tpu.memory_space<vmem>>, vector<1x32xf32>
    %55 = vector.broadcast %54 : vector<1x32xf32> to vector<320x32xf32>
    %56 = arith.addf %53, %55 : vector<320x32xf32>
    %cst_28 = arith.constant 0.000000e+00 : f32
    %57 = vector.broadcast %cst_28 : f32 to vector<320x32xf32>
    %58 = arith.maximumf %56, %57 : vector<320x32xf32>
    %c0_29 = arith.constant 0 : index
    %c0_30 = arith.constant 0 : index
    %59 = vector.load %arg14[%c0_29, %c0_30] : memref<320x32xf32, #tpu.memory_space<vmem>>, vector<320x32xf32>
    tpu.vector_store %arg14[%c0_29, %c0_30], %58 {strides = array<i32>} : memref<320x32xf32, #tpu.memory_space<vmem>>, vector<320x32xf32>,
    %c0_31 = arith.constant 0 : index
    %c0_32 = arith.constant 0 : index
    %60 = vector.load %arg14[%c0_31, %c0_32] : memref<320x32xf32, #tpu.memory_space<vmem>>, vector<64x32xf32>
    %c64 = arith.constant 64 : index
    %c0_33 = arith.constant 0 : index
    %61 = vector.load %arg14[%c64, %c0_33] : memref<320x32xf32, #tpu.memory_space<vmem>>, vector<64x32xf32>
    %62 = arith.maximumf %60, %61 : vector<64x32xf32>
    %c128 = arith.constant 128 : index
    %c0_34 = arith.constant 0 : index
    %63 = vector.load %arg14[%c128, %c0_34] : memref<320x32xf32, #tpu.memory_space<vmem>>, vector<64x32xf32>
    %64 = arith.maximumf %62, %63 : vector<64x32xf32>
    %c192 = arith.constant 192 : index
    %c0_35 = arith.constant 0 : index
    %65 = vector.load %arg14[%c192, %c0_35] : memref<320x32xf32, #tpu.memory_space<vmem>>, vector<64x32xf32>
    %66 = arith.maximumf %64, %65 : vector<64x32xf32>
    %c256 = arith.constant 256 : index
    %c0_36 = arith.constant 0 : index
    %67 = vector.load %arg14[%c256, %c0_36] : memref<320x32xf32, #tpu.memory_space<vmem>>, vector<64x32xf32>
    %68 = arith.maximumf %66, %67 : vector<64x32xf32>
    %cst_37 = arith.constant 0.000000e+00 : f32
    %69 = vector.broadcast %cst_37 : f32 to vector<64x32xf32>
    %cst_38 = arith.constant 0.000000e+00 : f32
    %70 = vector.broadcast %cst_38 : f32 to vector<64x32xf32>
    %c0_39 = arith.constant 0 : index
    %c0_40 = arith.constant 0 : index
    %71 = vector.load %arg14[%c0_39, %c0_40] : memref<320x32xf32, #tpu.memory_space<vmem>>, vector<64x32xf32>
    %72 = arith.subf %71, %68 : vector<64x32xf32>
    %73 = math.exp %72 : vector<64x32xf32>
    %74 = arith.addf %69, %73 : vector<64x32xf32>
    %c0_41 = arith.constant 0 : index
    %c0_42 = arith.constant 0 : index
    %75 = vector.load %arg15[%c0_41, %c0_42] : memref<320x32xf32, #tpu.memory_space<vmem>>, vector<64x32xf32>
    %76 = arith.mulf %73, %75 : vector<64x32xf32>
    %77 = arith.addf %70, %76 : vector<64x32xf32>
    %c64_43 = arith.constant 64 : index
    %c0_44 = arith.constant 0 : index
    %78 = vector.load %arg14[%c64_43, %c0_44] : memref<320x32xf32, #tpu.memory_space<vmem>>, vector<64x32xf32>
    %79 = arith.subf %78, %68 : vector<64x32xf32>
    %80 = math.exp %79 : vector<64x32xf32>
    %81 = arith.addf %74, %80 : vector<64x32xf32>
    %c64_45 = arith.constant 64 : index
    %c0_46 = arith.constant 0 : index
    %82 = vector.load %arg15[%c64_45, %c0_46] : memref<320x32xf32, #tpu.memory_space<vmem>>, vector<64x32xf32>
    %83 = arith.mulf %80, %82 : vector<64x32xf32>
    %84 = arith.addf %77, %83 : vector<64x32xf32>
    %c128_47 = arith.constant 128 : index
    %c0_48 = arith.constant 0 : index
    %85 = vector.load %arg14[%c128_47, %c0_48] : memref<320x32xf32, #tpu.memory_space<vmem>>, vector<64x32xf32>
    %86 = arith.subf %85, %68 : vector<64x32xf32>
    %87 = math.exp %86 : vector<64x32xf32>
    %88 = arith.addf %81, %87 : vector<64x32xf32>
    %c128_49 = arith.constant 128 : index
    %c0_50 = arith.constant 0 : index
    %89 = vector.load %arg15[%c128_49, %c0_50] : memref<320x32xf32, #tpu.memory_space<vmem>>, vector<64x32xf32>
    %90 = arith.mulf %87, %89 : vector<64x32xf32>
    %91 = arith.addf %84, %90 : vector<64x32xf32>
    %c192_51 = arith.constant 192 : index
    %c0_52 = arith.constant 0 : index
    %92 = vector.load %arg14[%c192_51, %c0_52] : memref<320x32xf32, #tpu.memory_space<vmem>>, vector<64x32xf32>
    %93 = arith.subf %92, %68 : vector<64x32xf32>
    %94 = math.exp %93 : vector<64x32xf32>
    %95 = arith.addf %88, %94 : vector<64x32xf32>
    %c192_53 = arith.constant 192 : index
    %c0_54 = arith.constant 0 : index
    %96 = vector.load %arg15[%c192_53, %c0_54] : memref<320x32xf32, #tpu.memory_space<vmem>>, vector<64x32xf32>
    %97 = arith.mulf %94, %96 : vector<64x32xf32>
    %98 = arith.addf %91, %97 : vector<64x32xf32>
    %c256_55 = arith.constant 256 : index
    %c0_56 = arith.constant 0 : index
    %99 = vector.load %arg14[%c256_55, %c0_56] : memref<320x32xf32, #tpu.memory_space<vmem>>, vector<64x32xf32>
    %100 = arith.subf %99, %68 : vector<64x32xf32>
    %101 = math.exp %100 : vector<64x32xf32>
    %102 = arith.addf %95, %101 : vector<64x32xf32>
    %c256_57 = arith.constant 256 : index
    %c0_58 = arith.constant 0 : index
    %103 = vector.load %arg15[%c256_57, %c0_58] : memref<320x32xf32, #tpu.memory_space<vmem>>, vector<64x32xf32>
    %104 = arith.mulf %101, %103 : vector<64x32xf32>
    %105 = arith.addf %98, %104 : vector<64x32xf32>
    %106 = tpu.reciprocal %102 {approx = true} : vector<64x32xf32> -> vector<64x32xf32>
    %107 = arith.mulf %105, %106 : vector<64x32xf32>
    %108 = arith.truncf %107 : vector<64x32xf32> to vector<64x32xbf16>
    %c0_59 = arith.constant 0 : index
    %c0_60 = arith.constant 0 : index
    %109 = vector.load %arg11[%c0_59, %c0_60] : memref<32x32xbf16, #tpu.memory_space<vmem>>, vector<32x32xbf16>
    %cst_61 = arith.constant dense<0.000000e+00> : vector<64x32xf32>
    %110 = tpu.matmul %108, %109, %cst_61 {dimension_numbers = #tpu.dot_dimension_numbers<[1], [0], [0], [1], [0, 0, 1, 1], [], []>} : vector<64x32xbf16>, vector<32x32xbf16>, vector<64x32xf32> -> vector<64x32xf32>
    %c0_62 = arith.constant 0 : index
    %c0_63 = arith.constant 0 : index
    %111 = vector.load %arg12[%c0_62, %c0_63] : memref<1x32xf32, #tpu.memory_space<vmem>>, vector<1x32xf32>
    %112 = vector.broadcast %111 : vector<1x32xf32> to vector<64x32xf32>
    %113 = arith.addf %110, %112 : vector<64x32xf32>
    %cst_64 = arith.constant 0.000000e+00 : f32
    %114 = vector.broadcast %cst_64 : f32 to vector<64x32xf32>
    %115 = arith.maximumf %113, %114 : vector<64x32xf32>
    %c0_65 = arith.constant 0 : index
    %c0_66 = arith.constant 0 : index
    %116 = vector.load %arg13[%c0_65, %c0_66] : memref<64x32xf32, #tpu.memory_space<vmem>>, vector<64x32xf32>
    tpu.vector_store %arg13[%c0_65, %c0_66], %115 {strides = array<i32>} : memref<64x32xf32, #tpu.memory_space<vmem>>, vector<64x32xf32>,
    return
  }
  func.func @transform_0(%arg0: i32) -> (i32, i32, i32) {
    %c0_i32 = arith.constant 0 : i32
    %c0_i32_0 = arith.constant 0 : i32
    %c0_i32_1 = arith.constant 0 : i32
    return %c0_i32, %arg0, %c0_i32_0 : i32, i32, i32
  }
  func.func @transform_1(%arg0: i32) -> (i32, i32, i32) {
    %c0_i32 = arith.constant 0 : i32
    %c0_i32_0 = arith.constant 0 : i32
    %c0_i32_1 = arith.constant 0 : i32
    return %c0_i32, %arg0, %c0_i32_0 : i32, i32, i32
  }
  func.func @transform_2(%arg0: i32) -> (i32, i32) {
    %c0_i32 = arith.constant 0 : i32
    %c0_i32_0 = arith.constant 0 : i32
    %c0_i32_1 = arith.constant 0 : i32
    return %c0_i32, %c0_i32_0 : i32, i32
  }
  func.func @transform_3(%arg0: i32) -> (i32, i32) {
    %c0_i32 = arith.constant 0 : i32
    %c0_i32_0 = arith.constant 0 : i32
    %c0_i32_1 = arith.constant 0 : i32
    return %c0_i32, %c0_i32_0 : i32, i32
  }
  func.func @transform_4(%arg0: i32) -> (i32, i32) {
    %c0_i32 = arith.constant 0 : i32
    %c0_i32_0 = arith.constant 0 : i32
    %c0_i32_1 = arith.constant 0 : i32
    return %c0_i32, %c0_i32_0 : i32, i32
  }
  func.func @transform_5(%arg0: i32) -> (i32, i32) {
    %c0_i32 = arith.constant 0 : i32
    %c0_i32_0 = arith.constant 0 : i32
    %c0_i32_1 = arith.constant 0 : i32
    return %c0_i32, %c0_i32_0 : i32, i32
  }
  func.func @transform_6(%arg0: i32) -> (i32, i32) {
    %c0_i32 = arith.constant 0 : i32
    %c0_i32_0 = arith.constant 0 : i32
    %c0_i32_1 = arith.constant 0 : i32
    return %c0_i32, %c0_i32_0 : i32, i32
  }
  func.func @transform_7(%arg0: i32) -> (i32, i32) {
    %c0_i32 = arith.constant 0 : i32
    %c0_i32_0 = arith.constant 0 : i32
    %c0_i32_1 = arith.constant 0 : i32
    return %c0_i32, %c0_i32_0 : i32, i32
  }
  func.func @transform_8(%arg0: i32) -> (i32, i32) {
    %c0_i32 = arith.constant 0 : i32
    %c0_i32_0 = arith.constant 0 : i32
    %c0_i32_1 = arith.constant 0 : i32
    return %c0_i32, %c0_i32_0 : i32, i32
  }
  func.func @transform_9(%arg0: i32) -> (i32, i32) {
    %c0_i32 = arith.constant 0 : i32
    %c0_i32_0 = arith.constant 0 : i32
    %c0_i32_1 = arith.constant 0 : i32
    return %c0_i32, %c0_i32_0 : i32, i32
  }
  func.func @transform_10(%arg0: i32) -> (i32, i32) {
    %c0_i32 = arith.constant 0 : i32
    %c0_i32_0 = arith.constant 0 : i32
    %c0_i32_1 = arith.constant 0 : i32
    return %c0_i32, %c0_i32_0 : i32, i32
  }
  func.func @transform_11(%arg0: i32) -> (i32, i32) {
    %c0_i32 = arith.constant 0 : i32
    %c0_i32_0 = arith.constant 0 : i32
    %c0_i32_1 = arith.constant 0 : i32
    return %c0_i32, %c0_i32_0 : i32, i32
  }
  func.func @transform_12(%arg0: i32) -> (i32, i32) {
    %c0_i32 = arith.constant 0 : i32
    %c0_i32_0 = arith.constant 0 : i32
    return %arg0, %c0_i32 : i32, i32
  }
}

module attributes {stable_mosaic.version = 11 : i64} {
  func.func @_linear_stats_kernel(%arg0: i32, %arg1: memref<64x32xf32, #tpu.memory_space<vmem>>, %arg2: memref<32x64xbf16, #tpu.memory_space<vmem>>, %arg3: memref<1x64xf32, #tpu.memory_space<vmem>>, %arg4: memref<64x64xbf16, #tpu.memory_space<vmem>>, %arg5: memref<1x64xf32, #tpu.memory_space<vmem>>, %arg6: memref<1x64xf32, #tpu.memory_space<vmem>>) attributes {dimension_semantics = [#tpu.dimension_semantics<arbitrary>], iteration_bounds = array<i64: 1>, scalar_prefetch = 0 : i64, scratch_operands = 0 : i64, tpu.core_type = #tpu.core_type<tc>, window_params = [{transform_indices = @transform_0, window_bounds = array<i64: 64, 32>}, {pipeline_mode = #tpu.pipeline_mode<synchronous>, transform_indices = @transform_1, window_bounds = array<i64: 32, 64>}, {pipeline_mode = #tpu.pipeline_mode<synchronous>, transform_indices = @transform_2, window_bounds = array<i64: 1, 64>}, {transform_indices = @transform_3, window_bounds = array<i64: 64, 64>}, {pipeline_mode = #tpu.pipeline_mode<synchronous>, transform_indices = @transform_4, window_bounds = array<i64: 1, 64>}, {pipeline_mode = #tpu.pipeline_mode<synchronous>, transform_indices = @transform_5, window_bounds = array<i64: 1, 64>}]} {
    %c0 = arith.constant 0 : index
    %c0_0 = arith.constant 0 : index
    %0 = vector.load %arg1[%c0, %c0_0] : memref<64x32xf32, #tpu.memory_space<vmem>>, vector<64x32xf32>
    %1 = arith.truncf %0 : vector<64x32xf32> to vector<64x32xbf16>
    %c0_1 = arith.constant 0 : index
    %c0_2 = arith.constant 0 : index
    %2 = vector.load %arg2[%c0_1, %c0_2] : memref<32x64xbf16, #tpu.memory_space<vmem>>, vector<32x64xbf16>
    %cst = arith.constant dense<0.000000e+00> : vector<64x64xf32>
    %3 = tpu.matmul %1, %2, %cst {dimension_numbers = #tpu.dot_dimension_numbers<[1], [0], [0], [1], [0, 0, 1, 1], [], []>} : vector<64x32xbf16>, vector<32x64xbf16>, vector<64x64xf32> -> vector<64x64xf32>
    %c0_3 = arith.constant 0 : index
    %c0_4 = arith.constant 0 : index
    %4 = vector.load %arg3[%c0_3, %c0_4] : memref<1x64xf32, #tpu.memory_space<vmem>>, vector<1x64xf32>
    %5 = vector.broadcast %4 : vector<1x64xf32> to vector<64x64xf32>
    %6 = arith.addf %3, %5 : vector<64x64xf32>
    %7 = arith.truncf %6 : vector<64x64xf32> to vector<64x64xbf16>
    %c0_5 = arith.constant 0 : index
    %c0_6 = arith.constant 0 : index
    %8 = vector.load %arg4[%c0_5, %c0_6] : memref<64x64xbf16, #tpu.memory_space<vmem>>, vector<64x64xbf16>
    tpu.vector_store %arg4[%c0_5, %c0_6], %7 {strides = array<i32>} : memref<64x64xbf16, #tpu.memory_space<vmem>>, vector<64x64xbf16>,
    %c0_i32 = arith.constant 0 : i32
    %9 = arith.cmpi eq, %arg0, %c0_i32 : i32
    %10 = arith.extui %9 : i1 to i32
    %c0_i32_7 = arith.constant 0 : i32
    %11 = arith.cmpi ne, %10, %c0_i32_7 : i32
    scf.if %11 {
      %cst_20 = arith.constant 0.000000e+00 : f32
      %31 = vector.broadcast %cst_20 : f32 to vector<1x64xf32>
      %c0_21 = arith.constant 0 : index
      %c0_22 = arith.constant 0 : index
      %32 = vector.load %arg5[%c0_21, %c0_22] : memref<1x64xf32, #tpu.memory_space<vmem>>, vector<1x64xf32>
      tpu.vector_store %arg5[%c0_21, %c0_22], %31 {strides = array<i32>} : memref<1x64xf32, #tpu.memory_space<vmem>>, vector<1x64xf32>,
      %cst_23 = arith.constant 0.000000e+00 : f32
      %33 = vector.broadcast %cst_23 : f32 to vector<1x64xf32>
      %c0_24 = arith.constant 0 : index
      %c0_25 = arith.constant 0 : index
      %34 = vector.load %arg6[%c0_24, %c0_25] : memref<1x64xf32, #tpu.memory_space<vmem>>, vector<1x64xf32>
      tpu.vector_store %arg6[%c0_24, %c0_25], %33 {strides = array<i32>} : memref<1x64xf32, #tpu.memory_space<vmem>>, vector<1x64xf32>,
    } else {
    }
    %c64_i32 = arith.constant 64 : i32
    %12 = arith.muli %arg0, %c64_i32 : i32
    %13 = tpu.iota {dimensions = array<i32: 0>} : vector<64x64xi32>
    %14 = vector.broadcast %12 : i32 to vector<64x64xi32>
    %15 = arith.addi %14, %13 : vector<64x64xi32>
    %c64_i32_8 = arith.constant 64 : i32
    %16 = vector.broadcast %c64_i32_8 : i32 to vector<64x64xi32>
    %17 = arith.cmpi slt, %15, %16 : vector<64x64xi32>
    %cst_9 = arith.constant 0.000000e+00 : f32
    %18 = vector.broadcast %cst_9 : f32 to vector<64x64xf32>
    %19 = arith.select %17, %6, %18 : vector<64x64xi1>, vector<64x64xf32>
    %c0_10 = arith.constant 0 : index
    %c0_11 = arith.constant 0 : index
    %20 = vector.load %arg5[%c0_10, %c0_11] : memref<1x64xf32, #tpu.memory_space<vmem>>, vector<1x64xf32>
    %cst_12 = arith.constant dense<0.000000e+00> : vector<64xf32>
    %21 = vector.multi_reduction <add>, %19, %cst_12 [0] : vector<64x64xf32> to vector<64xf32>
    %22 = vector.shape_cast %21 : vector<64xf32> to vector<1x64xf32>
    %23 = arith.addf %20, %22 : vector<1x64xf32>
    %c0_13 = arith.constant 0 : index
    %c0_14 = arith.constant 0 : index
    %24 = vector.load %arg5[%c0_13, %c0_14] : memref<1x64xf32, #tpu.memory_space<vmem>>, vector<1x64xf32>
    tpu.vector_store %arg5[%c0_13, %c0_14], %23 {strides = array<i32>} : memref<1x64xf32, #tpu.memory_space<vmem>>, vector<1x64xf32>,
    %c0_15 = arith.constant 0 : index
    %c0_16 = arith.constant 0 : index
    %25 = vector.load %arg6[%c0_15, %c0_16] : memref<1x64xf32, #tpu.memory_space<vmem>>, vector<1x64xf32>
    %26 = arith.mulf %19, %19 : vector<64x64xf32>
    %cst_17 = arith.constant dense<0.000000e+00> : vector<64xf32>
    %27 = vector.multi_reduction <add>, %26, %cst_17 [0] : vector<64x64xf32> to vector<64xf32>
    %28 = vector.shape_cast %27 : vector<64xf32> to vector<1x64xf32>
    %29 = arith.addf %25, %28 : vector<1x64xf32>
    %c0_18 = arith.constant 0 : index
    %c0_19 = arith.constant 0 : index
    %30 = vector.load %arg6[%c0_18, %c0_19] : memref<1x64xf32, #tpu.memory_space<vmem>>, vector<1x64xf32>
    tpu.vector_store %arg6[%c0_18, %c0_19], %29 {strides = array<i32>} : memref<1x64xf32, #tpu.memory_space<vmem>>, vector<1x64xf32>,
    return
  }
  func.func @transform_0(%arg0: i32) -> (i32, i32) {
    %c0_i32 = arith.constant 0 : i32
    %c0_i32_0 = arith.constant 0 : i32
    return %arg0, %c0_i32 : i32, i32
  }
  func.func @transform_1(%arg0: i32) -> (i32, i32) {
    %c0_i32 = arith.constant 0 : i32
    %c0_i32_0 = arith.constant 0 : i32
    %c0_i32_1 = arith.constant 0 : i32
    return %c0_i32, %c0_i32_0 : i32, i32
  }
  func.func @transform_2(%arg0: i32) -> (i32, i32) {
    %c0_i32 = arith.constant 0 : i32
    %c0_i32_0 = arith.constant 0 : i32
    %c0_i32_1 = arith.constant 0 : i32
    return %c0_i32, %c0_i32_0 : i32, i32
  }
  func.func @transform_3(%arg0: i32) -> (i32, i32) {
    %c0_i32 = arith.constant 0 : i32
    %c0_i32_0 = arith.constant 0 : i32
    return %arg0, %c0_i32 : i32, i32
  }
  func.func @transform_4(%arg0: i32) -> (i32, i32) {
    %c0_i32 = arith.constant 0 : i32
    %c0_i32_0 = arith.constant 0 : i32
    %c0_i32_1 = arith.constant 0 : i32
    return %c0_i32, %c0_i32_0 : i32, i32
  }
  func.func @transform_5(%arg0: i32) -> (i32, i32) {
    %c0_i32 = arith.constant 0 : i32
    %c0_i32_0 = arith.constant 0 : i32
    %c0_i32_1 = arith.constant 0 : i32
    return %c0_i32, %c0_i32_0 : i32, i32
  }
}

module attributes {stable_mosaic.version = 11 : i64} {
  func.func @_kmax_kernel(%arg0: i32, %arg1: memref<4x8x64xbf16, #tpu.memory_space<vmem>>, %arg2: memref<8x64xbf16, #tpu.memory_space<vmem>>) attributes {dimension_semantics = [#tpu.dimension_semantics<parallel>], iteration_bounds = array<i64: 1>, scalar_prefetch = 0 : i64, scratch_operands = 0 : i64, tpu.core_type = #tpu.core_type<tc>, window_params = [{transform_indices = @transform_0, window_bounds = array<i64: 4, 8, 64>}, {transform_indices = @transform_1, window_bounds = array<i64: 8, 64>}]} {
    %c0 = arith.constant 0 : index
    %c0_0 = arith.constant 0 : index
    %c0_1 = arith.constant 0 : index
    %0 = vector.load %arg1[%c0, %c0_0, %c0_1] : memref<4x8x64xbf16, #tpu.memory_space<vmem>>, vector<1x8x64xbf16>
    %1 = vector.shape_cast %0 : vector<1x8x64xbf16> to vector<8x64xbf16>
    %c1 = arith.constant 1 : index
    %c0_2 = arith.constant 0 : index
    %c0_3 = arith.constant 0 : index
    %2 = vector.load %arg1[%c1, %c0_2, %c0_3] : memref<4x8x64xbf16, #tpu.memory_space<vmem>>, vector<1x8x64xbf16>
    %3 = vector.shape_cast %2 : vector<1x8x64xbf16> to vector<8x64xbf16>
    %4 = arith.maximumf %1, %3 : vector<8x64xbf16>
    %c2 = arith.constant 2 : index
    %c0_4 = arith.constant 0 : index
    %c0_5 = arith.constant 0 : index
    %5 = vector.load %arg1[%c2, %c0_4, %c0_5] : memref<4x8x64xbf16, #tpu.memory_space<vmem>>, vector<1x8x64xbf16>
    %6 = vector.shape_cast %5 : vector<1x8x64xbf16> to vector<8x64xbf16>
    %7 = arith.maximumf %4, %6 : vector<8x64xbf16>
    %c3 = arith.constant 3 : index
    %c0_6 = arith.constant 0 : index
    %c0_7 = arith.constant 0 : index
    %8 = vector.load %arg1[%c3, %c0_6, %c0_7] : memref<4x8x64xbf16, #tpu.memory_space<vmem>>, vector<1x8x64xbf16>
    %9 = vector.shape_cast %8 : vector<1x8x64xbf16> to vector<8x64xbf16>
    %10 = arith.maximumf %7, %9 : vector<8x64xbf16>
    %c0_8 = arith.constant 0 : index
    %c0_9 = arith.constant 0 : index
    %11 = vector.load %arg2[%c0_8, %c0_9] : memref<8x64xbf16, #tpu.memory_space<vmem>>, vector<8x64xbf16>
    tpu.vector_store %arg2[%c0_8, %c0_9], %10 {strides = array<i32>} : memref<8x64xbf16, #tpu.memory_space<vmem>>, vector<8x64xbf16>,
    return
  }
  func.func @transform_0(%arg0: i32) -> (i32, i32, i32) {
    %c0_i32 = arith.constant 0 : i32
    %c0_i32_0 = arith.constant 0 : i32
    %c0_i32_1 = arith.constant 0 : i32
    return %c0_i32, %arg0, %c0_i32_0 : i32, i32, i32
  }
  func.func @transform_1(%arg0: i32) -> (i32, i32) {
    %c0_i32 = arith.constant 0 : i32
    %c0_i32_0 = arith.constant 0 : i32
    return %arg0, %c0_i32 : i32, i32
  }
}

module attributes {stable_mosaic.version = 11 : i64} {
  func.func @_fused_linears_kernel(%arg0: i32, %arg1: memref<8x64xbf16, #tpu.memory_space<vmem>>, %arg2: memref<64x64xbf16, #tpu.memory_space<vmem>>, %arg3: memref<1x64xf32, #tpu.memory_space<vmem>>, %arg4: memref<64x192xbf16, #tpu.memory_space<vmem>>, %arg5: memref<1x192xf32, #tpu.memory_space<vmem>>, %arg6: memref<8x192xbf16, #tpu.memory_space<vmem>>) attributes {dimension_semantics = [#tpu.dimension_semantics<parallel>], iteration_bounds = array<i64: 1>, scalar_prefetch = 0 : i64, scratch_operands = 0 : i64, tpu.core_type = #tpu.core_type<tc>, window_params = [{transform_indices = @transform_0, window_bounds = array<i64: 8, 64>}, {pipeline_mode = #tpu.pipeline_mode<synchronous>, transform_indices = @transform_1, window_bounds = array<i64: 64, 64>}, {pipeline_mode = #tpu.pipeline_mode<synchronous>, transform_indices = @transform_2, window_bounds = array<i64: 1, 64>}, {pipeline_mode = #tpu.pipeline_mode<synchronous>, transform_indices = @transform_3, window_bounds = array<i64: 64, 192>}, {pipeline_mode = #tpu.pipeline_mode<synchronous>, transform_indices = @transform_4, window_bounds = array<i64: 1, 192>}, {transform_indices = @transform_5, window_bounds = array<i64: 8, 192>}]} {
    %c0 = arith.constant 0 : index
    %c0_0 = arith.constant 0 : index
    %0 = vector.load %arg1[%c0, %c0_0] : memref<8x64xbf16, #tpu.memory_space<vmem>>, vector<8x64xbf16>
    %c0_1 = arith.constant 0 : index
    %c0_2 = arith.constant 0 : index
    %1 = vector.load %arg2[%c0_1, %c0_2] : memref<64x64xbf16, #tpu.memory_space<vmem>>, vector<64x64xbf16>
    %c0_3 = arith.constant 0 : index
    %c0_4 = arith.constant 0 : index
    %2 = vector.load %arg3[%c0_3, %c0_4] : memref<1x64xf32, #tpu.memory_space<vmem>>, vector<1x64xf32>
    %cst = arith.constant dense<0.000000e+00> : vector<8x64xf32>
    %3 = tpu.matmul %0, %1, %cst {dimension_numbers = #tpu.dot_dimension_numbers<[1], [0], [0], [1], [0, 0, 1, 1], [], []>} : vector<8x64xbf16>, vector<64x64xbf16>, vector<8x64xf32> -> vector<8x64xf32>
    %4 = vector.broadcast %2 : vector<1x64xf32> to vector<8x64xf32>
    %5 = arith.addf %3, %4 : vector<8x64xf32>
    %cst_5 = arith.constant 0.000000e+00 : f32
    %6 = vector.broadcast %cst_5 : f32 to vector<8x64xf32>
    %7 = arith.maximumf %5, %6 : vector<8x64xf32>
    %c0_6 = arith.constant 0 : index
    %c0_7 = arith.constant 0 : index
    %8 = vector.load %arg4[%c0_6, %c0_7] : memref<64x192xbf16, #tpu.memory_space<vmem>>, vector<64x192xbf16>
    %c0_8 = arith.constant 0 : index
    %c0_9 = arith.constant 0 : index
    %9 = vector.load %arg5[%c0_8, %c0_9] : memref<1x192xf32, #tpu.memory_space<vmem>>, vector<1x192xf32>
    %10 = arith.truncf %7 : vector<8x64xf32> to vector<8x64xbf16>
    %cst_10 = arith.constant dense<0.000000e+00> : vector<8x192xf32>
    %11 = tpu.matmul %10, %8, %cst_10 {dimension_numbers = #tpu.dot_dimension_numbers<[1], [0], [0], [1], [0, 0, 1, 1], [], []>} : vector<8x64xbf16>, vector<64x192xbf16>, vector<8x192xf32> -> vector<8x192xf32>
    %12 = vector.broadcast %9 : vector<1x192xf32> to vector<8x192xf32>
    %13 = arith.addf %11, %12 : vector<8x192xf32>
    %14 = arith.truncf %13 : vector<8x192xf32> to vector<8x192xbf16>
    %c0_11 = arith.constant 0 : index
    %c0_12 = arith.constant 0 : index
    %15 = vector.load %arg6[%c0_11, %c0_12] : memref<8x192xbf16, #tpu.memory_space<vmem>>, vector<8x192xbf16>
    tpu.vector_store %arg6[%c0_11, %c0_12], %14 {strides = array<i32>} : memref<8x192xbf16, #tpu.memory_space<vmem>>, vector<8x192xbf16>,
    return
  }
  func.func @transform_0(%arg0: i32) -> (i32, i32) {
    %c0_i32 = arith.constant 0 : i32
    %c0_i32_0 = arith.constant 0 : i32
    return %arg0, %c0_i32 : i32, i32
  }
  func.func @transform_1(%arg0: i32) -> (i32, i32) {
    %c0_i32 = arith.constant 0 : i32
    %c0_i32_0 = arith.constant 0 : i32
    %c0_i32_1 = arith.constant 0 : i32
    return %c0_i32, %c0_i32_0 : i32, i32
  }
  func.func @transform_2(%arg0: i32) -> (i32, i32) {
    %c0_i32 = arith.constant 0 : i32
    %c0_i32_0 = arith.constant 0 : i32
    %c0_i32_1 = arith.constant 0 : i32
    return %c0_i32, %c0_i32_0 : i32, i32
  }
  func.func @transform_3(%arg0: i32) -> (i32, i32) {
    %c0_i32 = arith.constant 0 : i32
    %c0_i32_0 = arith.constant 0 : i32
    %c0_i32_1 = arith.constant 0 : i32
    return %c0_i32, %c0_i32_0 : i32, i32
  }
  func.func @transform_4(%arg0: i32) -> (i32, i32) {
    %c0_i32 = arith.constant 0 : i32
    %c0_i32_0 = arith.constant 0 : i32
    %c0_i32_1 = arith.constant 0 : i32
    return %c0_i32, %c0_i32_0 : i32, i32
  }
  func.func @transform_5(%arg0: i32) -> (i32, i32) {
    %c0_i32 = arith.constant 0 : i32
    %c0_i32_0 = arith.constant 0 : i32
    return %arg0, %c0_i32 : i32, i32
  }
}

module attributes {stable_mosaic.version = 11 : i64} {
  func.func @_pt_conv_kernel(%arg0: i32, %arg1: memref<5x8x67xbf16, #tpu.memory_space<vmem>>, %arg2: memref<5x8x64xbf16, #tpu.memory_space<vmem>>, %arg3: memref<3x64xf32, #tpu.memory_space<vmem>>, %arg4: memref<1x64xf32, #tpu.memory_space<vmem>>, %arg5: memref<64x64xbf16, #tpu.memory_space<vmem>>, %arg6: memref<1x64xf32, #tpu.memory_space<vmem>>, %arg7: memref<64x64xbf16, #tpu.memory_space<vmem>>, %arg8: memref<1x64xf32, #tpu.memory_space<vmem>>, %arg9: memref<64x64xbf16, #tpu.memory_space<vmem>>, %arg10: memref<1x64xf32, #tpu.memory_space<vmem>>, %arg11: memref<64x64xbf16, #tpu.memory_space<vmem>>, %arg12: memref<1x64xf32, #tpu.memory_space<vmem>>, %arg13: memref<8x64xf32, #tpu.memory_space<vmem>>, %arg14: memref<40x64xf32, #tpu.memory_space<vmem>>, %arg15: memref<40x64xf32, #tpu.memory_space<vmem>>) attributes {dimension_semantics = [#tpu.dimension_semantics<parallel>], iteration_bounds = array<i64: 1>, scalar_prefetch = 0 : i64, scratch_operands = 2 : i64, tpu.core_type = #tpu.core_type<tc>, window_params = [{transform_indices = @transform_0, window_bounds = array<i64: 5, 8, 67>}, {transform_indices = @transform_1, window_bounds = array<i64: 5, 8, 64>}, {pipeline_mode = #tpu.pipeline_mode<synchronous>, transform_indices = @transform_2, window_bounds = array<i64: 3, 64>}, {pipeline_mode = #tpu.pipeline_mode<synchronous>, transform_indices = @transform_3, window_bounds = array<i64: 1, 64>}, {pipeline_mode = #tpu.pipeline_mode<synchronous>, transform_indices = @transform_4, window_bounds = array<i64: 64, 64>}, {pipeline_mode = #tpu.pipeline_mode<synchronous>, transform_indices = @transform_5, window_bounds = array<i64: 1, 64>}, {pipeline_mode = #tpu.pipeline_mode<synchronous>, transform_indices = @transform_6, window_bounds = array<i64: 64, 64>}, {pipeline_mode = #tpu.pipeline_mode<synchronous>, transform_indices = @transform_7, window_bounds = array<i64: 1, 64>}, {pipeline_mode = #tpu.pipeline_mode<synchronous>, transform_indices = @transform_8, window_bounds = array<i64: 64, 64>}, {pipeline_mode = #tpu.pipeline_mode<synchronous>, transform_indices = @transform_9, window_bounds = array<i64: 1, 64>}, {pipeline_mode = #tpu.pipeline_mode<synchronous>, transform_indices = @transform_10, window_bounds = array<i64: 64, 64>}, {pipeline_mode = #tpu.pipeline_mode<synchronous>, transform_indices = @transform_11, window_bounds = array<i64: 1, 64>}, {transform_indices = @transform_12, window_bounds = array<i64: 8, 64>}]} {
    %c0 = arith.constant 0 : index
    %c0_0 = arith.constant 0 : index
    %c0_1 = arith.constant 0 : index
    %0 = vector.load %arg1[%c0, %c0_0, %c0_1] : memref<5x8x67xbf16, #tpu.memory_space<vmem>>, vector<5x8x67xbf16>
    %1 = vector.shape_cast %0 : vector<5x8x67xbf16> to vector<40x67xbf16>
    %2 = vector.extract_strided_slice %1 {offsets = [0, 0], sizes = [40, 64], strides = [1, 1]} : vector<40x67xbf16> to vector<40x64xbf16>
    %3 = arith.extf %2 : vector<40x64xbf16> to vector<40x64xf32>
    %4 = vector.extract_strided_slice %1 {offsets = [0, 64], sizes = [40, 3], strides = [1, 1]} : vector<40x67xbf16> to vector<40x3xbf16>
    %5 = arith.extf %4 : vector<40x3xbf16> to vector<40x3xf32>
    %c0_2 = arith.constant 0 : index
    %c0_3 = arith.constant 0 : index
    %6 = vector.load %arg3[%c0_2, %c0_3] : memref<3x64xf32, #tpu.memory_space<vmem>>, vector<3x64xf32>
    %7 = vector.extract_strided_slice %5 {offsets = [0, 0], sizes = [40, 1], strides = [1, 1]} : vector<40x3xf32> to vector<40x1xf32>
    %8 = vector.extract_strided_slice %6 {offsets = [0, 0], sizes = [1, 64], strides = [1, 1]} : vector<3x64xf32> to vector<1x64xf32>
    %9 = vector.broadcast %7 : vector<40x1xf32> to vector<40x64xf32>
    %10 = vector.broadcast %8 : vector<1x64xf32> to vector<40x64xf32>
    %11 = arith.mulf %9, %10 : vector<40x64xf32>
    %12 = vector.extract_strided_slice %5 {offsets = [0, 1], sizes = [40, 1], strides = [1, 1]} : vector<40x3xf32> to vector<40x1xf32>
    %13 = vector.extract_strided_slice %6 {offsets = [1, 0], sizes = [1, 64], strides = [1, 1]} : vector<3x64xf32> to vector<1x64xf32>
    %14 = vector.broadcast %12 : vector<40x1xf32> to vector<40x64xf32>
    %15 = vector.broadcast %13 : vector<1x64xf32> to vector<40x64xf32>
    %16 = arith.mulf %14, %15 : vector<40x64xf32>
    %17 = arith.addf %11, %16 : vector<40x64xf32>
    %18 = vector.extract_strided_slice %5 {offsets = [0, 2], sizes = [40, 1], strides = [1, 1]} : vector<40x3xf32> to vector<40x1xf32>
    %19 = vector.extract_strided_slice %6 {offsets = [2, 0], sizes = [1, 64], strides = [1, 1]} : vector<3x64xf32> to vector<1x64xf32>
    %20 = vector.broadcast %18 : vector<40x1xf32> to vector<40x64xf32>
    %21 = vector.broadcast %19 : vector<1x64xf32> to vector<40x64xf32>
    %22 = arith.mulf %20, %21 : vector<40x64xf32>
    %23 = arith.addf %17, %22 : vector<40x64xf32>
    %c0_4 = arith.constant 0 : index
    %c0_5 = arith.constant 0 : index
    %24 = vector.load %arg4[%c0_4, %c0_5] : memref<1x64xf32, #tpu.memory_space<vmem>>, vector<1x64xf32>
    %25 = vector.broadcast %24 : vector<1x64xf32> to vector<40x64xf32>
    %26 = arith.addf %23, %25 : vector<40x64xf32>
    %cst = arith.constant 0.000000e+00 : f32
    %27 = vector.broadcast %cst : f32 to vector<40x64xf32>
    %28 = arith.maximumf %26, %27 : vector<40x64xf32>
    %29 = arith.truncf %28 : vector<40x64xf32> to vector<40x64xbf16>
    %c0_6 = arith.constant 0 : index
    %c0_7 = arith.constant 0 : index
    %30 = vector.load %arg5[%c0_6, %c0_7] : memref<64x64xbf16, #tpu.memory_space<vmem>>, vector<64x64xbf16>
    %cst_8 = arith.constant dense<0.000000e+00> : vector<40x64xf32>
    %31 = tpu.matmul %29, %30, %cst_8 {dimension_numbers = #tpu.dot_dimension_numbers<[1], [0], [0], [1], [0, 0, 1, 1], [], []>} : vector<40x64xbf16>, vector<64x64xbf16>, vector<40x64xf32> -> vector<40x64xf32>
    %c0_9 = arith.constant 0 : index
    %c0_10 = arith.constant 0 : index
    %32 = vector.load %arg6[%c0_9, %c0_10] : memref<1x64xf32, #tpu.memory_space<vmem>>, vector<1x64xf32>
    %33 = vector.broadcast %32 : vector<1x64xf32> to vector<40x64xf32>
    %34 = arith.addf %31, %33 : vector<40x64xf32>
    %cst_11 = arith.constant 0.000000e+00 : f32
    %35 = vector.broadcast %cst_11 : f32 to vector<40x64xf32>
    %36 = arith.maximumf %34, %35 : vector<40x64xf32>
    %c0_12 = arith.constant 0 : index
    %c0_13 = arith.constant 0 : index
    %c0_14 = arith.constant 0 : index
    %37 = vector.load %arg2[%c0_12, %c0_13, %c0_14] : memref<5x8x64xbf16, #tpu.memory_space<vmem>>, vector<5x8x64xbf16>
    %38 = vector.shape_cast %37 : vector<5x8x64xbf16> to vector<40x64xbf16>
    %39 = arith.extf %38 : vector<40x64xbf16> to vector<40x64xf32>
    %40 = arith.addf %39, %36 : vector<40x64xf32>
    %c0_15 = arith.constant 0 : index
    %c0_16 = arith.constant 0 : index
    %41 = vector.load %arg15[%c0_15, %c0_16] : memref<40x64xf32, #tpu.memory_space<vmem>>, vector<40x64xf32>
    tpu.vector_store %arg15[%c0_15, %c0_16], %40 {strides = array<i32>} : memref<40x64xf32, #tpu.memory_space<vmem>>, vector<40x64xf32>,
    %42 = arith.addf %3, %36 : vector<40x64xf32>
    %43 = arith.truncf %42 : vector<40x64xf32> to vector<40x64xbf16>
    %c0_17 = arith.constant 0 : index
    %c0_18 = arith.constant 0 : index
    %44 = vector.load %arg7[%c0_17, %c0_18] : memref<64x64xbf16, #tpu.memory_space<vmem>>, vector<64x64xbf16>
    %cst_19 = arith.constant dense<0.000000e+00> : vector<40x64xf32>
    %45 = tpu.matmul %43, %44, %cst_19 {dimension_numbers = #tpu.dot_dimension_numbers<[1], [0], [0], [1], [0, 0, 1, 1], [], []>} : vector<40x64xbf16>, vector<64x64xbf16>, vector<40x64xf32> -> vector<40x64xf32>
    %c0_20 = arith.constant 0 : index
    %c0_21 = arith.constant 0 : index
    %46 = vector.load %arg8[%c0_20, %c0_21] : memref<1x64xf32, #tpu.memory_space<vmem>>, vector<1x64xf32>
    %47 = vector.broadcast %46 : vector<1x64xf32> to vector<40x64xf32>
    %48 = arith.addf %45, %47 : vector<40x64xf32>
    %cst_22 = arith.constant 0.000000e+00 : f32
    %49 = vector.broadcast %cst_22 : f32 to vector<40x64xf32>
    %50 = arith.maximumf %48, %49 : vector<40x64xf32>
    %51 = arith.truncf %50 : vector<40x64xf32> to vector<40x64xbf16>
    %c0_23 = arith.constant 0 : index
    %c0_24 = arith.constant 0 : index
    %52 = vector.load %arg9[%c0_23, %c0_24] : memref<64x64xbf16, #tpu.memory_space<vmem>>, vector<64x64xbf16>
    %cst_25 = arith.constant dense<0.000000e+00> : vector<40x64xf32>
    %53 = tpu.matmul %51, %52, %cst_25 {dimension_numbers = #tpu.dot_dimension_numbers<[1], [0], [0], [1], [0, 0, 1, 1], [], []>} : vector<40x64xbf16>, vector<64x64xbf16>, vector<40x64xf32> -> vector<40x64xf32>
    %c0_26 = arith.constant 0 : index
    %c0_27 = arith.constant 0 : index
    %54 = vector.load %arg10[%c0_26, %c0_27] : memref<1x64xf32, #tpu.memory_space<vmem>>, vector<1x64xf32>
    %55 = vector.broadcast %54 : vector<1x64xf32> to vector<40x64xf32>
    %56 = arith.addf %53, %55 : vector<40x64xf32>
    %cst_28 = arith.constant 0.000000e+00 : f32
    %57 = vector.broadcast %cst_28 : f32 to vector<40x64xf32>
    %58 = arith.maximumf %56, %57 : vector<40x64xf32>
    %c0_29 = arith.constant 0 : index
    %c0_30 = arith.constant 0 : index
    %59 = vector.load %arg14[%c0_29, %c0_30] : memref<40x64xf32, #tpu.memory_space<vmem>>, vector<40x64xf32>
    tpu.vector_store %arg14[%c0_29, %c0_30], %58 {strides = array<i32>} : memref<40x64xf32, #tpu.memory_space<vmem>>, vector<40x64xf32>,
    %c0_31 = arith.constant 0 : index
    %c0_32 = arith.constant 0 : index
    %60 = vector.load %arg14[%c0_31, %c0_32] : memref<40x64xf32, #tpu.memory_space<vmem>>, vector<8x64xf32>
    %c8 = arith.constant 8 : index
    %c0_33 = arith.constant 0 : index
    %61 = vector.load %arg14[%c8, %c0_33] : memref<40x64xf32, #tpu.memory_space<vmem>>, vector<8x64xf32>
    %62 = arith.maximumf %60, %61 : vector<8x64xf32>
    %c16 = arith.constant 16 : index
    %c0_34 = arith.constant 0 : index
    %63 = vector.load %arg14[%c16, %c0_34] : memref<40x64xf32, #tpu.memory_space<vmem>>, vector<8x64xf32>
    %64 = arith.maximumf %62, %63 : vector<8x64xf32>
    %c24 = arith.constant 24 : index
    %c0_35 = arith.constant 0 : index
    %65 = vector.load %arg14[%c24, %c0_35] : memref<40x64xf32, #tpu.memory_space<vmem>>, vector<8x64xf32>
    %66 = arith.maximumf %64, %65 : vector<8x64xf32>
    %c32 = arith.constant 32 : index
    %c0_36 = arith.constant 0 : index
    %67 = vector.load %arg14[%c32, %c0_36] : memref<40x64xf32, #tpu.memory_space<vmem>>, vector<8x64xf32>
    %68 = arith.maximumf %66, %67 : vector<8x64xf32>
    %cst_37 = arith.constant 0.000000e+00 : f32
    %69 = vector.broadcast %cst_37 : f32 to vector<8x64xf32>
    %cst_38 = arith.constant 0.000000e+00 : f32
    %70 = vector.broadcast %cst_38 : f32 to vector<8x64xf32>
    %c0_39 = arith.constant 0 : index
    %c0_40 = arith.constant 0 : index
    %71 = vector.load %arg14[%c0_39, %c0_40] : memref<40x64xf32, #tpu.memory_space<vmem>>, vector<8x64xf32>
    %72 = arith.subf %71, %68 : vector<8x64xf32>
    %73 = math.exp %72 : vector<8x64xf32>
    %74 = arith.addf %69, %73 : vector<8x64xf32>
    %c0_41 = arith.constant 0 : index
    %c0_42 = arith.constant 0 : index
    %75 = vector.load %arg15[%c0_41, %c0_42] : memref<40x64xf32, #tpu.memory_space<vmem>>, vector<8x64xf32>
    %76 = arith.mulf %73, %75 : vector<8x64xf32>
    %77 = arith.addf %70, %76 : vector<8x64xf32>
    %c8_43 = arith.constant 8 : index
    %c0_44 = arith.constant 0 : index
    %78 = vector.load %arg14[%c8_43, %c0_44] : memref<40x64xf32, #tpu.memory_space<vmem>>, vector<8x64xf32>
    %79 = arith.subf %78, %68 : vector<8x64xf32>
    %80 = math.exp %79 : vector<8x64xf32>
    %81 = arith.addf %74, %80 : vector<8x64xf32>
    %c8_45 = arith.constant 8 : index
    %c0_46 = arith.constant 0 : index
    %82 = vector.load %arg15[%c8_45, %c0_46] : memref<40x64xf32, #tpu.memory_space<vmem>>, vector<8x64xf32>
    %83 = arith.mulf %80, %82 : vector<8x64xf32>
    %84 = arith.addf %77, %83 : vector<8x64xf32>
    %c16_47 = arith.constant 16 : index
    %c0_48 = arith.constant 0 : index
    %85 = vector.load %arg14[%c16_47, %c0_48] : memref<40x64xf32, #tpu.memory_space<vmem>>, vector<8x64xf32>
    %86 = arith.subf %85, %68 : vector<8x64xf32>
    %87 = math.exp %86 : vector<8x64xf32>
    %88 = arith.addf %81, %87 : vector<8x64xf32>
    %c16_49 = arith.constant 16 : index
    %c0_50 = arith.constant 0 : index
    %89 = vector.load %arg15[%c16_49, %c0_50] : memref<40x64xf32, #tpu.memory_space<vmem>>, vector<8x64xf32>
    %90 = arith.mulf %87, %89 : vector<8x64xf32>
    %91 = arith.addf %84, %90 : vector<8x64xf32>
    %c24_51 = arith.constant 24 : index
    %c0_52 = arith.constant 0 : index
    %92 = vector.load %arg14[%c24_51, %c0_52] : memref<40x64xf32, #tpu.memory_space<vmem>>, vector<8x64xf32>
    %93 = arith.subf %92, %68 : vector<8x64xf32>
    %94 = math.exp %93 : vector<8x64xf32>
    %95 = arith.addf %88, %94 : vector<8x64xf32>
    %c24_53 = arith.constant 24 : index
    %c0_54 = arith.constant 0 : index
    %96 = vector.load %arg15[%c24_53, %c0_54] : memref<40x64xf32, #tpu.memory_space<vmem>>, vector<8x64xf32>
    %97 = arith.mulf %94, %96 : vector<8x64xf32>
    %98 = arith.addf %91, %97 : vector<8x64xf32>
    %c32_55 = arith.constant 32 : index
    %c0_56 = arith.constant 0 : index
    %99 = vector.load %arg14[%c32_55, %c0_56] : memref<40x64xf32, #tpu.memory_space<vmem>>, vector<8x64xf32>
    %100 = arith.subf %99, %68 : vector<8x64xf32>
    %101 = math.exp %100 : vector<8x64xf32>
    %102 = arith.addf %95, %101 : vector<8x64xf32>
    %c32_57 = arith.constant 32 : index
    %c0_58 = arith.constant 0 : index
    %103 = vector.load %arg15[%c32_57, %c0_58] : memref<40x64xf32, #tpu.memory_space<vmem>>, vector<8x64xf32>
    %104 = arith.mulf %101, %103 : vector<8x64xf32>
    %105 = arith.addf %98, %104 : vector<8x64xf32>
    %106 = tpu.reciprocal %102 {approx = true} : vector<8x64xf32> -> vector<8x64xf32>
    %107 = arith.mulf %105, %106 : vector<8x64xf32>
    %108 = arith.truncf %107 : vector<8x64xf32> to vector<8x64xbf16>
    %c0_59 = arith.constant 0 : index
    %c0_60 = arith.constant 0 : index
    %109 = vector.load %arg11[%c0_59, %c0_60] : memref<64x64xbf16, #tpu.memory_space<vmem>>, vector<64x64xbf16>
    %cst_61 = arith.constant dense<0.000000e+00> : vector<8x64xf32>
    %110 = tpu.matmul %108, %109, %cst_61 {dimension_numbers = #tpu.dot_dimension_numbers<[1], [0], [0], [1], [0, 0, 1, 1], [], []>} : vector<8x64xbf16>, vector<64x64xbf16>, vector<8x64xf32> -> vector<8x64xf32>
    %c0_62 = arith.constant 0 : index
    %c0_63 = arith.constant 0 : index
    %111 = vector.load %arg12[%c0_62, %c0_63] : memref<1x64xf32, #tpu.memory_space<vmem>>, vector<1x64xf32>
    %112 = vector.broadcast %111 : vector<1x64xf32> to vector<8x64xf32>
    %113 = arith.addf %110, %112 : vector<8x64xf32>
    %cst_64 = arith.constant 0.000000e+00 : f32
    %114 = vector.broadcast %cst_64 : f32 to vector<8x64xf32>
    %115 = arith.maximumf %113, %114 : vector<8x64xf32>
    %c0_65 = arith.constant 0 : index
    %c0_66 = arith.constant 0 : index
    %116 = vector.load %arg13[%c0_65, %c0_66] : memref<8x64xf32, #tpu.memory_space<vmem>>, vector<8x64xf32>
    tpu.vector_store %arg13[%c0_65, %c0_66], %115 {strides = array<i32>} : memref<8x64xf32, #tpu.memory_space<vmem>>, vector<8x64xf32>,
    return
  }
  func.func @transform_0(%arg0: i32) -> (i32, i32, i32) {
    %c0_i32 = arith.constant 0 : i32
    %c0_i32_0 = arith.constant 0 : i32
    %c0_i32_1 = arith.constant 0 : i32
    return %c0_i32, %arg0, %c0_i32_0 : i32, i32, i32
  }
  func.func @transform_1(%arg0: i32) -> (i32, i32, i32) {
    %c0_i32 = arith.constant 0 : i32
    %c0_i32_0 = arith.constant 0 : i32
    %c0_i32_1 = arith.constant 0 : i32
    return %c0_i32, %arg0, %c0_i32_0 : i32, i32, i32
  }
  func.func @transform_2(%arg0: i32) -> (i32, i32) {
    %c0_i32 = arith.constant 0 : i32
    %c0_i32_0 = arith.constant 0 : i32
    %c0_i32_1 = arith.constant 0 : i32
    return %c0_i32, %c0_i32_0 : i32, i32
  }
  func.func @transform_3(%arg0: i32) -> (i32, i32) {
    %c0_i32 = arith.constant 0 : i32
    %c0_i32_0 = arith.constant 0 : i32
    %c0_i32_1 = arith.constant 0 : i32
    return %c0_i32, %c0_i32_0 : i32, i32
  }
  func.func @transform_4(%arg0: i32) -> (i32, i32) {
    %c0_i32 = arith.constant 0 : i32
    %c0_i32_0 = arith.constant 0 : i32
    %c0_i32_1 = arith.constant 0 : i32
    return %c0_i32, %c0_i32_0 : i32, i32
  }
  func.func @transform_5(%arg0: i32) -> (i32, i32) {
    %c0_i32 = arith.constant 0 : i32
    %c0_i32_0 = arith.constant 0 : i32
    %c0_i32_1 = arith.constant 0 : i32
    return %c0_i32, %c0_i32_0 : i32, i32
  }
  func.func @transform_6(%arg0: i32) -> (i32, i32) {
    %c0_i32 = arith.constant 0 : i32
    %c0_i32_0 = arith.constant 0 : i32
    %c0_i32_1 = arith.constant 0 : i32
    return %c0_i32, %c0_i32_0 : i32, i32
  }
  func.func @transform_7(%arg0: i32) -> (i32, i32) {
    %c0_i32 = arith.constant 0 : i32
    %c0_i32_0 = arith.constant 0 : i32
    %c0_i32_1 = arith.constant 0 : i32
    return %c0_i32, %c0_i32_0 : i32, i32
  }
  func.func @transform_8(%arg0: i32) -> (i32, i32) {
    %c0_i32 = arith.constant 0 : i32
    %c0_i32_0 = arith.constant 0 : i32
    %c0_i32_1 = arith.constant 0 : i32
    return %c0_i32, %c0_i32_0 : i32, i32
  }
  func.func @transform_9(%arg0: i32) -> (i32, i32) {
    %c0_i32 = arith.constant 0 : i32
    %c0_i32_0 = arith.constant 0 : i32
    %c0_i32_1 = arith.constant 0 : i32
    return %c0_i32, %c0_i32_0 : i32, i32
  }
  func.func @transform_10(%arg0: i32) -> (i32, i32) {
    %c0_i32 = arith.constant 0 : i32
    %c0_i32_0 = arith.constant 0 : i32
    %c0_i32_1 = arith.constant 0 : i32
    return %c0_i32, %c0_i32_0 : i32, i32
  }
  func.func @transform_11(%arg0: i32) -> (i32, i32) {
    %c0_i32 = arith.constant 0 : i32
    %c0_i32_0 = arith.constant 0 : i32
    %c0_i32_1 = arith.constant 0 : i32
    return %c0_i32, %c0_i32_0 : i32, i32
  }
  func.func @transform_12(%arg0: i32) -> (i32, i32) {
    %c0_i32 = arith.constant 0 : i32
    %c0_i32_0 = arith.constant 0 : i32
    return %arg0, %c0_i32 : i32, i32
  }
}

module attributes {stable_mosaic.version = 11 : i64} {
  func.func @_fused_linears_kernel(%arg0: i32, %arg1: memref<8x64xf32, #tpu.memory_space<vmem>>, %arg2: memref<64x64xbf16, #tpu.memory_space<vmem>>, %arg3: memref<1x64xf32, #tpu.memory_space<vmem>>, %arg4: memref<8x64xf32, #tpu.memory_space<vmem>>) attributes {dimension_semantics = [#tpu.dimension_semantics<parallel>], iteration_bounds = array<i64: 1>, scalar_prefetch = 0 : i64, scratch_operands = 0 : i64, tpu.core_type = #tpu.core_type<tc>, window_params = [{transform_indices = @transform_0, window_bounds = array<i64: 8, 64>}, {pipeline_mode = #tpu.pipeline_mode<synchronous>, transform_indices = @transform_1, window_bounds = array<i64: 64, 64>}, {pipeline_mode = #tpu.pipeline_mode<synchronous>, transform_indices = @transform_2, window_bounds = array<i64: 1, 64>}, {transform_indices = @transform_3, window_bounds = array<i64: 8, 64>}]} {
    %c0 = arith.constant 0 : index
    %c0_0 = arith.constant 0 : index
    %0 = vector.load %arg1[%c0, %c0_0] : memref<8x64xf32, #tpu.memory_space<vmem>>, vector<8x64xf32>
    %c0_1 = arith.constant 0 : index
    %c0_2 = arith.constant 0 : index
    %1 = vector.load %arg2[%c0_1, %c0_2] : memref<64x64xbf16, #tpu.memory_space<vmem>>, vector<64x64xbf16>
    %c0_3 = arith.constant 0 : index
    %c0_4 = arith.constant 0 : index
    %2 = vector.load %arg3[%c0_3, %c0_4] : memref<1x64xf32, #tpu.memory_space<vmem>>, vector<1x64xf32>
    %3 = arith.truncf %0 : vector<8x64xf32> to vector<8x64xbf16>
    %cst = arith.constant dense<0.000000e+00> : vector<8x64xf32>
    %4 = tpu.matmul %3, %1, %cst {dimension_numbers = #tpu.dot_dimension_numbers<[1], [0], [0], [1], [0, 0, 1, 1], [], []>} : vector<8x64xbf16>, vector<64x64xbf16>, vector<8x64xf32> -> vector<8x64xf32>
    %5 = vector.broadcast %2 : vector<1x64xf32> to vector<8x64xf32>
    %6 = arith.addf %4, %5 : vector<8x64xf32>
    %cst_5 = arith.constant 0.000000e+00 : f32
    %7 = vector.broadcast %cst_5 : f32 to vector<8x64xf32>
    %8 = arith.maximumf %6, %7 : vector<8x64xf32>
    %c0_6 = arith.constant 0 : index
    %c0_7 = arith.constant 0 : index
    %9 = vector.load %arg4[%c0_6, %c0_7] : memref<8x64xf32, #tpu.memory_space<vmem>>, vector<8x64xf32>
    tpu.vector_store %arg4[%c0_6, %c0_7], %8 {strides = array<i32>} : memref<8x64xf32, #tpu.memory_space<vmem>>, vector<8x64xf32>,
    return
  }
  func.func @transform_0(%arg0: i32) -> (i32, i32) {
    %c0_i32 = arith.constant 0 : i32
    %c0_i32_0 = arith.constant 0 : i32
    return %arg0, %c0_i32 : i32, i32
  }
  func.func @transform_1(%arg0: i32) -> (i32, i32) {
    %c0_i32 = arith.constant 0 : i32
    %c0_i32_0 = arith.constant 0 : i32
    %c0_i32_1 = arith.constant 0 : i32
    return %c0_i32, %c0_i32_0 : i32, i32
  }
  func.func @transform_2(%arg0: i32) -> (i32, i32) {
    %c0_i32 = arith.constant 0 : i32
    %c0_i32_0 = arith.constant 0 : i32
    %c0_i32_1 = arith.constant 0 : i32
    return %c0_i32, %c0_i32_0 : i32, i32
  }
  func.func @transform_3(%arg0: i32) -> (i32, i32) {
    %c0_i32 = arith.constant 0 : i32
    %c0_i32_0 = arith.constant 0 : i32
    return %arg0, %c0_i32 : i32, i32
  }
}

module attributes {stable_mosaic.version = 11 : i64} {
  func.func @_fused_linears_kernel(%arg0: i32, %arg1: memref<8x64xf32, #tpu.memory_space<vmem>>, %arg2: memref<64x64xbf16, #tpu.memory_space<vmem>>, %arg3: memref<1x64xf32, #tpu.memory_space<vmem>>, %arg4: memref<64x192xbf16, #tpu.memory_space<vmem>>, %arg5: memref<1x192xf32, #tpu.memory_space<vmem>>, %arg6: memref<8x192xbf16, #tpu.memory_space<vmem>>) attributes {dimension_semantics = [#tpu.dimension_semantics<parallel>], iteration_bounds = array<i64: 1>, scalar_prefetch = 0 : i64, scratch_operands = 0 : i64, tpu.core_type = #tpu.core_type<tc>, window_params = [{transform_indices = @transform_0, window_bounds = array<i64: 8, 64>}, {pipeline_mode = #tpu.pipeline_mode<synchronous>, transform_indices = @transform_1, window_bounds = array<i64: 64, 64>}, {pipeline_mode = #tpu.pipeline_mode<synchronous>, transform_indices = @transform_2, window_bounds = array<i64: 1, 64>}, {pipeline_mode = #tpu.pipeline_mode<synchronous>, transform_indices = @transform_3, window_bounds = array<i64: 64, 192>}, {pipeline_mode = #tpu.pipeline_mode<synchronous>, transform_indices = @transform_4, window_bounds = array<i64: 1, 192>}, {transform_indices = @transform_5, window_bounds = array<i64: 8, 192>}]} {
    %c0 = arith.constant 0 : index
    %c0_0 = arith.constant 0 : index
    %0 = vector.load %arg1[%c0, %c0_0] : memref<8x64xf32, #tpu.memory_space<vmem>>, vector<8x64xf32>
    %c0_1 = arith.constant 0 : index
    %c0_2 = arith.constant 0 : index
    %1 = vector.load %arg2[%c0_1, %c0_2] : memref<64x64xbf16, #tpu.memory_space<vmem>>, vector<64x64xbf16>
    %c0_3 = arith.constant 0 : index
    %c0_4 = arith.constant 0 : index
    %2 = vector.load %arg3[%c0_3, %c0_4] : memref<1x64xf32, #tpu.memory_space<vmem>>, vector<1x64xf32>
    %3 = arith.truncf %0 : vector<8x64xf32> to vector<8x64xbf16>
    %cst = arith.constant dense<0.000000e+00> : vector<8x64xf32>
    %4 = tpu.matmul %3, %1, %cst {dimension_numbers = #tpu.dot_dimension_numbers<[1], [0], [0], [1], [0, 0, 1, 1], [], []>} : vector<8x64xbf16>, vector<64x64xbf16>, vector<8x64xf32> -> vector<8x64xf32>
    %5 = vector.broadcast %2 : vector<1x64xf32> to vector<8x64xf32>
    %6 = arith.addf %4, %5 : vector<8x64xf32>
    %cst_5 = arith.constant 0.000000e+00 : f32
    %7 = vector.broadcast %cst_5 : f32 to vector<8x64xf32>
    %8 = arith.maximumf %6, %7 : vector<8x64xf32>
    %c0_6 = arith.constant 0 : index
    %c0_7 = arith.constant 0 : index
    %9 = vector.load %arg4[%c0_6, %c0_7] : memref<64x192xbf16, #tpu.memory_space<vmem>>, vector<64x192xbf16>
    %c0_8 = arith.constant 0 : index
    %c0_9 = arith.constant 0 : index
    %10 = vector.load %arg5[%c0_8, %c0_9] : memref<1x192xf32, #tpu.memory_space<vmem>>, vector<1x192xf32>
    %11 = arith.truncf %8 : vector<8x64xf32> to vector<8x64xbf16>
    %cst_10 = arith.constant dense<0.000000e+00> : vector<8x192xf32>
    %12 = tpu.matmul %11, %9, %cst_10 {dimension_numbers = #tpu.dot_dimension_numbers<[1], [0], [0], [1], [0, 0, 1, 1], [], []>} : vector<8x64xbf16>, vector<64x192xbf16>, vector<8x192xf32> -> vector<8x192xf32>
    %13 = vector.broadcast %10 : vector<1x192xf32> to vector<8x192xf32>
    %14 = arith.addf %12, %13 : vector<8x192xf32>
    %15 = arith.truncf %14 : vector<8x192xf32> to vector<8x192xbf16>
    %c0_11 = arith.constant 0 : index
    %c0_12 = arith.constant 0 : index
    %16 = vector.load %arg6[%c0_11, %c0_12] : memref<8x192xbf16, #tpu.memory_space<vmem>>, vector<8x192xbf16>
    tpu.vector_store %arg6[%c0_11, %c0_12], %15 {strides = array<i32>} : memref<8x192xbf16, #tpu.memory_space<vmem>>, vector<8x192xbf16>,
    return
  }
  func.func @transform_0(%arg0: i32) -> (i32, i32) {
    %c0_i32 = arith.constant 0 : i32
    %c0_i32_0 = arith.constant 0 : i32
    return %arg0, %c0_i32 : i32, i32
  }
  func.func @transform_1(%arg0: i32) -> (i32, i32) {
    %c0_i32 = arith.constant 0 : i32
    %c0_i32_0 = arith.constant 0 : i32
    %c0_i32_1 = arith.constant 0 : i32
    return %c0_i32, %c0_i32_0 : i32, i32
  }
  func.func @transform_2(%arg0: i32) -> (i32, i32) {
    %c0_i32 = arith.constant 0 : i32
    %c0_i32_0 = arith.constant 0 : i32
    %c0_i32_1 = arith.constant 0 : i32
    return %c0_i32, %c0_i32_0 : i32, i32
  }
  func.func @transform_3(%arg0: i32) -> (i32, i32) {
    %c0_i32 = arith.constant 0 : i32
    %c0_i32_0 = arith.constant 0 : i32
    %c0_i32_1 = arith.constant 0 : i32
    return %c0_i32, %c0_i32_0 : i32, i32
  }
  func.func @transform_4(%arg0: i32) -> (i32, i32) {
    %c0_i32 = arith.constant 0 : i32
    %c0_i32_0 = arith.constant 0 : i32
    %c0_i32_1 = arith.constant 0 : i32
    return %c0_i32, %c0_i32_0 : i32, i32
  }
  func.func @transform_5(%arg0: i32) -> (i32, i32) {
    %c0_i32 = arith.constant 0 : i32
    %c0_i32_0 = arith.constant 0 : i32
    return %arg0, %c0_i32 : i32, i32
  }
}

module attributes {stable_mosaic.version = 11 : i64} {
  func.func @_linear_stats_kernel(%arg0: i32, %arg1: memref<8x64xf32, #tpu.memory_space<vmem>>, %arg2: memref<64x32xbf16, #tpu.memory_space<vmem>>, %arg3: memref<1x32xf32, #tpu.memory_space<vmem>>, %arg4: memref<8x32xbf16, #tpu.memory_space<vmem>>, %arg5: memref<1x32xf32, #tpu.memory_space<vmem>>, %arg6: memref<1x32xf32, #tpu.memory_space<vmem>>) attributes {dimension_semantics = [#tpu.dimension_semantics<arbitrary>], iteration_bounds = array<i64: 1>, scalar_prefetch = 0 : i64, scratch_operands = 0 : i64, tpu.core_type = #tpu.core_type<tc>, window_params = [{transform_indices = @transform_0, window_bounds = array<i64: 8, 64>}, {pipeline_mode = #tpu.pipeline_mode<synchronous>, transform_indices = @transform_1, window_bounds = array<i64: 64, 32>}, {pipeline_mode = #tpu.pipeline_mode<synchronous>, transform_indices = @transform_2, window_bounds = array<i64: 1, 32>}, {transform_indices = @transform_3, window_bounds = array<i64: 8, 32>}, {pipeline_mode = #tpu.pipeline_mode<synchronous>, transform_indices = @transform_4, window_bounds = array<i64: 1, 32>}, {pipeline_mode = #tpu.pipeline_mode<synchronous>, transform_indices = @transform_5, window_bounds = array<i64: 1, 32>}]} {
    %c0 = arith.constant 0 : index
    %c0_0 = arith.constant 0 : index
    %0 = vector.load %arg1[%c0, %c0_0] : memref<8x64xf32, #tpu.memory_space<vmem>>, vector<8x64xf32>
    %1 = arith.truncf %0 : vector<8x64xf32> to vector<8x64xbf16>
    %c0_1 = arith.constant 0 : index
    %c0_2 = arith.constant 0 : index
    %2 = vector.load %arg2[%c0_1, %c0_2] : memref<64x32xbf16, #tpu.memory_space<vmem>>, vector<64x32xbf16>
    %cst = arith.constant dense<0.000000e+00> : vector<8x32xf32>
    %3 = tpu.matmul %1, %2, %cst {dimension_numbers = #tpu.dot_dimension_numbers<[1], [0], [0], [1], [0, 0, 1, 1], [], []>} : vector<8x64xbf16>, vector<64x32xbf16>, vector<8x32xf32> -> vector<8x32xf32>
    %c0_3 = arith.constant 0 : index
    %c0_4 = arith.constant 0 : index
    %4 = vector.load %arg3[%c0_3, %c0_4] : memref<1x32xf32, #tpu.memory_space<vmem>>, vector<1x32xf32>
    %5 = vector.broadcast %4 : vector<1x32xf32> to vector<8x32xf32>
    %6 = arith.addf %3, %5 : vector<8x32xf32>
    %7 = arith.truncf %6 : vector<8x32xf32> to vector<8x32xbf16>
    %c0_5 = arith.constant 0 : index
    %c0_6 = arith.constant 0 : index
    %8 = vector.load %arg4[%c0_5, %c0_6] : memref<8x32xbf16, #tpu.memory_space<vmem>>, vector<8x32xbf16>
    tpu.vector_store %arg4[%c0_5, %c0_6], %7 {strides = array<i32>} : memref<8x32xbf16, #tpu.memory_space<vmem>>, vector<8x32xbf16>,
    %c0_i32 = arith.constant 0 : i32
    %9 = arith.cmpi eq, %arg0, %c0_i32 : i32
    %10 = arith.extui %9 : i1 to i32
    %c0_i32_7 = arith.constant 0 : i32
    %11 = arith.cmpi ne, %10, %c0_i32_7 : i32
    scf.if %11 {
      %cst_19 = arith.constant 0.000000e+00 : f32
      %31 = vector.broadcast %cst_19 : f32 to vector<1x32xf32>
      %c0_20 = arith.constant 0 : index
      %c0_21 = arith.constant 0 : index
      %32 = vector.load %arg5[%c0_20, %c0_21] : memref<1x32xf32, #tpu.memory_space<vmem>>, vector<1x32xf32>
      tpu.vector_store %arg5[%c0_20, %c0_21], %31 {strides = array<i32>} : memref<1x32xf32, #tpu.memory_space<vmem>>, vector<1x32xf32>,
      %cst_22 = arith.constant 0.000000e+00 : f32
      %33 = vector.broadcast %cst_22 : f32 to vector<1x32xf32>
      %c0_23 = arith.constant 0 : index
      %c0_24 = arith.constant 0 : index
      %34 = vector.load %arg6[%c0_23, %c0_24] : memref<1x32xf32, #tpu.memory_space<vmem>>, vector<1x32xf32>
      tpu.vector_store %arg6[%c0_23, %c0_24], %33 {strides = array<i32>} : memref<1x32xf32, #tpu.memory_space<vmem>>, vector<1x32xf32>,
    } else {
    }
    %c8_i32 = arith.constant 8 : i32
    %12 = arith.muli %arg0, %c8_i32 : i32
    %13 = tpu.iota {dimensions = array<i32: 0>} : vector<8x32xi32>
    %14 = vector.broadcast %12 : i32 to vector<8x32xi32>
    %15 = arith.addi %14, %13 : vector<8x32xi32>
    %c7_i32 = arith.constant 7 : i32
    %16 = vector.broadcast %c7_i32 : i32 to vector<8x32xi32>
    %17 = arith.cmpi slt, %15, %16 : vector<8x32xi32>
    %cst_8 = arith.constant 0.000000e+00 : f32
    %18 = vector.broadcast %cst_8 : f32 to vector<8x32xf32>
    %19 = arith.select %17, %6, %18 : vector<8x32xi1>, vector<8x32xf32>
    %c0_9 = arith.constant 0 : index
    %c0_10 = arith.constant 0 : index
    %20 = vector.load %arg5[%c0_9, %c0_10] : memref<1x32xf32, #tpu.memory_space<vmem>>, vector<1x32xf32>
    %cst_11 = arith.constant dense<0.000000e+00> : vector<32xf32>
    %21 = vector.multi_reduction <add>, %19, %cst_11 [0] : vector<8x32xf32> to vector<32xf32>
    %22 = vector.shape_cast %21 : vector<32xf32> to vector<1x32xf32>
    %23 = arith.addf %20, %22 : vector<1x32xf32>
    %c0_12 = arith.constant 0 : index
    %c0_13 = arith.constant 0 : index
    %24 = vector.load %arg5[%c0_12, %c0_13] : memref<1x32xf32, #tpu.memory_space<vmem>>, vector<1x32xf32>
    tpu.vector_store %arg5[%c0_12, %c0_13], %23 {strides = array<i32>} : memref<1x32xf32, #tpu.memory_space<vmem>>, vector<1x32xf32>,
    %c0_14 = arith.constant 0 : index
    %c0_15 = arith.constant 0 : index
    %25 = vector.load %arg6[%c0_14, %c0_15] : memref<1x32xf32, #tpu.memory_space<vmem>>, vector<1x32xf32>
    %26 = arith.mulf %19, %19 : vector<8x32xf32>
    %cst_16 = arith.constant dense<0.000000e+00> : vector<32xf32>
    %27 = vector.multi_reduction <add>, %26, %cst_16 [0] : vector<8x32xf32> to vector<32xf32>
    %28 = vector.shape_cast %27 : vector<32xf32> to vector<1x32xf32>
    %29 = arith.addf %25, %28 : vector<1x32xf32>
    %c0_17 = arith.constant 0 : index
    %c0_18 = arith.constant 0 : index
    %30 = vector.load %arg6[%c0_17, %c0_18] : memref<1x32xf32, #tpu.memory_space<vmem>>, vector<1x32xf32>
    tpu.vector_store %arg6[%c0_17, %c0_18], %29 {strides = array<i32>} : memref<1x32xf32, #tpu.memory_space<vmem>>, vector<1x32xf32>,
    return
  }
  func.func @transform_0(%arg0: i32) -> (i32, i32) {
    %c0_i32 = arith.constant 0 : i32
    %c0_i32_0 = arith.constant 0 : i32
    return %arg0, %c0_i32 : i32, i32
  }
  func.func @transform_1(%arg0: i32) -> (i32, i32) {
    %c0_i32 = arith.constant 0 : i32
    %c0_i32_0 = arith.constant 0 : i32
    %c0_i32_1 = arith.constant 0 : i32
    return %c0_i32, %c0_i32_0 : i32, i32
  }
  func.func @transform_2(%arg0: i32) -> (i32, i32) {
    %c0_i32 = arith.constant 0 : i32
    %c0_i32_0 = arith.constant 0 : i32
    %c0_i32_1 = arith.constant 0 : i32
    return %c0_i32, %c0_i32_0 : i32, i32
  }
  func.func @transform_3(%arg0: i32) -> (i32, i32) {
    %c0_i32 = arith.constant 0 : i32
    %c0_i32_0 = arith.constant 0 : i32
    return %arg0, %c0_i32 : i32, i32
  }
  func.func @transform_4(%arg0: i32) -> (i32, i32) {
    %c0_i32 = arith.constant 0 : i32
    %c0_i32_0 = arith.constant 0 : i32
    %c0_i32_1 = arith.constant 0 : i32
    return %c0_i32, %c0_i32_0 : i32, i32
  }
  func.func @transform_5(%arg0: i32) -> (i32, i32) {
    %c0_i32 = arith.constant 0 : i32
    %c0_i32_0 = arith.constant 0 : i32
    %c0_i32_1 = arith.constant 0 : i32
    return %c0_i32, %c0_i32_0 : i32, i32
  }
}

module attributes {stable_mosaic.version = 11 : i64} {
  func.func @_bn_relu_kernel(%arg0: i32, %arg1: memref<8x32xbf16, #tpu.memory_space<vmem>>, %arg2: memref<1x32xf32, #tpu.memory_space<vmem>>, %arg3: memref<1x32xf32, #tpu.memory_space<vmem>>, %arg4: memref<8x32xf32, #tpu.memory_space<vmem>>) attributes {dimension_semantics = [#tpu.dimension_semantics<parallel>], iteration_bounds = array<i64: 1>, scalar_prefetch = 0 : i64, scratch_operands = 0 : i64, tpu.core_type = #tpu.core_type<tc>, window_params = [{transform_indices = @transform_0, window_bounds = array<i64: 8, 32>}, {pipeline_mode = #tpu.pipeline_mode<synchronous>, transform_indices = @transform_1, window_bounds = array<i64: 1, 32>}, {pipeline_mode = #tpu.pipeline_mode<synchronous>, transform_indices = @transform_2, window_bounds = array<i64: 1, 32>}, {transform_indices = @transform_3, window_bounds = array<i64: 8, 32>}]} {
    %c0 = arith.constant 0 : index
    %c0_0 = arith.constant 0 : index
    %0 = vector.load %arg2[%c0, %c0_0] : memref<1x32xf32, #tpu.memory_space<vmem>>, vector<1x32xf32>
    %cst = arith.constant 0.142857149 : f32
    %1 = vector.broadcast %cst : f32 to vector<1x32xf32>
    %2 = arith.mulf %0, %1 : vector<1x32xf32>
    %c0_1 = arith.constant 0 : index
    %c0_2 = arith.constant 0 : index
    %3 = vector.load %arg3[%c0_1, %c0_2] : memref<1x32xf32, #tpu.memory_space<vmem>>, vector<1x32xf32>
    %cst_3 = arith.constant 0.142857149 : f32
    %4 = vector.broadcast %cst_3 : f32 to vector<1x32xf32>
    %5 = arith.mulf %3, %4 : vector<1x32xf32>
    %6 = arith.mulf %2, %2 : vector<1x32xf32>
    %7 = arith.subf %5, %6 : vector<1x32xf32>
    %cst_4 = arith.constant 0.000000e+00 : f32
    %8 = vector.broadcast %cst_4 : f32 to vector<1x32xf32>
    %9 = arith.maximumf %7, %8 : vector<1x32xf32>
    %cst_5 = arith.constant 9.99999974E-6 : f32
    %10 = vector.broadcast %cst_5 : f32 to vector<1x32xf32>
    %11 = arith.addf %9, %10 : vector<1x32xf32>
    %12 = math.rsqrt %11 : vector<1x32xf32>
    %c0_6 = arith.constant 0 : index
    %c0_7 = arith.constant 0 : index
    %13 = vector.load %arg1[%c0_6, %c0_7] : memref<8x32xbf16, #tpu.memory_space<vmem>>, vector<8x32xbf16>
    %14 = arith.extf %13 : vector<8x32xbf16> to vector<8x32xf32>
    %15 = vector.broadcast %2 : vector<1x32xf32> to vector<8x32xf32>
    %16 = arith.subf %14, %15 : vector<8x32xf32>
    %17 = vector.broadcast %12 : vector<1x32xf32> to vector<8x32xf32>
    %18 = arith.mulf %16, %17 : vector<8x32xf32>
    %cst_8 = arith.constant 0.000000e+00 : f32
    %19 = vector.broadcast %cst_8 : f32 to vector<8x32xf32>
    %20 = arith.maximumf %18, %19 : vector<8x32xf32>
    %c0_9 = arith.constant 0 : index
    %c0_10 = arith.constant 0 : index
    %21 = vector.load %arg4[%c0_9, %c0_10] : memref<8x32xf32, #tpu.memory_space<vmem>>, vector<8x32xf32>
    tpu.vector_store %arg4[%c0_9, %c0_10], %20 {strides = array<i32>} : memref<8x32xf32, #tpu.memory_space<vmem>>, vector<8x32xf32>,
    return
  }
  func.func @transform_0(%arg0: i32) -> (i32, i32) {
    %c0_i32 = arith.constant 0 : i32
    %c0_i32_0 = arith.constant 0 : i32
    return %arg0, %c0_i32 : i32, i32
  }
  func.func @transform_1(%arg0: i32) -> (i32, i32) {
    %c0_i32 = arith.constant 0 : i32
    %c0_i32_0 = arith.constant 0 : i32
    %c0_i32_1 = arith.constant 0 : i32
    return %c0_i32, %c0_i32_0 : i32, i32
  }
  func.func @transform_2(%arg0: i32) -> (i32, i32) {
    %c0_i32 = arith.constant 0 : i32
    %c0_i32_0 = arith.constant 0 : i32
    %c0_i32_1 = arith.constant 0 : i32
    return %c0_i32, %c0_i32_0 : i32, i32
  }
  func.func @transform_3(%arg0: i32) -> (i32, i32) {
    %c0_i32 = arith.constant 0 : i32
    %c0_i32_0 = arith.constant 0 : i32
    return %arg0, %c0_i32 : i32, i32
  }
}

module attributes {stable_mosaic.version = 11 : i64} {
  func.func @_linear_stats_kernel(%arg0: i32, %arg1: memref<64x32xf32, #tpu.memory_space<vmem>>, %arg2: memref<32x32xbf16, #tpu.memory_space<vmem>>, %arg3: memref<1x32xf32, #tpu.memory_space<vmem>>, %arg4: memref<64x32xbf16, #tpu.memory_space<vmem>>, %arg5: memref<1x32xf32, #tpu.memory_space<vmem>>, %arg6: memref<1x32xf32, #tpu.memory_space<vmem>>) attributes {dimension_semantics = [#tpu.dimension_semantics<arbitrary>], iteration_bounds = array<i64: 1>, scalar_prefetch = 0 : i64, scratch_operands = 0 : i64, tpu.core_type = #tpu.core_type<tc>, window_params = [{transform_indices = @transform_0, window_bounds = array<i64: 64, 32>}, {pipeline_mode = #tpu.pipeline_mode<synchronous>, transform_indices = @transform_1, window_bounds = array<i64: 32, 32>}, {pipeline_mode = #tpu.pipeline_mode<synchronous>, transform_indices = @transform_2, window_bounds = array<i64: 1, 32>}, {transform_indices = @transform_3, window_bounds = array<i64: 64, 32>}, {pipeline_mode = #tpu.pipeline_mode<synchronous>, transform_indices = @transform_4, window_bounds = array<i64: 1, 32>}, {pipeline_mode = #tpu.pipeline_mode<synchronous>, transform_indices = @transform_5, window_bounds = array<i64: 1, 32>}]} {
    %c0 = arith.constant 0 : index
    %c0_0 = arith.constant 0 : index
    %0 = vector.load %arg1[%c0, %c0_0] : memref<64x32xf32, #tpu.memory_space<vmem>>, vector<64x32xf32>
    %1 = arith.truncf %0 : vector<64x32xf32> to vector<64x32xbf16>
    %c0_1 = arith.constant 0 : index
    %c0_2 = arith.constant 0 : index
    %2 = vector.load %arg2[%c0_1, %c0_2] : memref<32x32xbf16, #tpu.memory_space<vmem>>, vector<32x32xbf16>
    %cst = arith.constant dense<0.000000e+00> : vector<64x32xf32>
    %3 = tpu.matmul %1, %2, %cst {dimension_numbers = #tpu.dot_dimension_numbers<[1], [0], [0], [1], [0, 0, 1, 1], [], []>} : vector<64x32xbf16>, vector<32x32xbf16>, vector<64x32xf32> -> vector<64x32xf32>
    %c0_3 = arith.constant 0 : index
    %c0_4 = arith.constant 0 : index
    %4 = vector.load %arg3[%c0_3, %c0_4] : memref<1x32xf32, #tpu.memory_space<vmem>>, vector<1x32xf32>
    %5 = vector.broadcast %4 : vector<1x32xf32> to vector<64x32xf32>
    %6 = arith.addf %3, %5 : vector<64x32xf32>
    %7 = arith.truncf %6 : vector<64x32xf32> to vector<64x32xbf16>
    %c0_5 = arith.constant 0 : index
    %c0_6 = arith.constant 0 : index
    %8 = vector.load %arg4[%c0_5, %c0_6] : memref<64x32xbf16, #tpu.memory_space<vmem>>, vector<64x32xbf16>
    tpu.vector_store %arg4[%c0_5, %c0_6], %7 {strides = array<i32>} : memref<64x32xbf16, #tpu.memory_space<vmem>>, vector<64x32xbf16>,
    %c0_i32 = arith.constant 0 : i32
    %9 = arith.cmpi eq, %arg0, %c0_i32 : i32
    %10 = arith.extui %9 : i1 to i32
    %c0_i32_7 = arith.constant 0 : i32
    %11 = arith.cmpi ne, %10, %c0_i32_7 : i32
    scf.if %11 {
      %cst_20 = arith.constant 0.000000e+00 : f32
      %31 = vector.broadcast %cst_20 : f32 to vector<1x32xf32>
      %c0_21 = arith.constant 0 : index
      %c0_22 = arith.constant 0 : index
      %32 = vector.load %arg5[%c0_21, %c0_22] : memref<1x32xf32, #tpu.memory_space<vmem>>, vector<1x32xf32>
      tpu.vector_store %arg5[%c0_21, %c0_22], %31 {strides = array<i32>} : memref<1x32xf32, #tpu.memory_space<vmem>>, vector<1x32xf32>,
      %cst_23 = arith.constant 0.000000e+00 : f32
      %33 = vector.broadcast %cst_23 : f32 to vector<1x32xf32>
      %c0_24 = arith.constant 0 : index
      %c0_25 = arith.constant 0 : index
      %34 = vector.load %arg6[%c0_24, %c0_25] : memref<1x32xf32, #tpu.memory_space<vmem>>, vector<1x32xf32>
      tpu.vector_store %arg6[%c0_24, %c0_25], %33 {strides = array<i32>} : memref<1x32xf32, #tpu.memory_space<vmem>>, vector<1x32xf32>,
    } else {
    }
    %c64_i32 = arith.constant 64 : i32
    %12 = arith.muli %arg0, %c64_i32 : i32
    %13 = tpu.iota {dimensions = array<i32: 0>} : vector<64x32xi32>
    %14 = vector.broadcast %12 : i32 to vector<64x32xi32>
    %15 = arith.addi %14, %13 : vector<64x32xi32>
    %c64_i32_8 = arith.constant 64 : i32
    %16 = vector.broadcast %c64_i32_8 : i32 to vector<64x32xi32>
    %17 = arith.cmpi slt, %15, %16 : vector<64x32xi32>
    %cst_9 = arith.constant 0.000000e+00 : f32
    %18 = vector.broadcast %cst_9 : f32 to vector<64x32xf32>
    %19 = arith.select %17, %6, %18 : vector<64x32xi1>, vector<64x32xf32>
    %c0_10 = arith.constant 0 : index
    %c0_11 = arith.constant 0 : index
    %20 = vector.load %arg5[%c0_10, %c0_11] : memref<1x32xf32, #tpu.memory_space<vmem>>, vector<1x32xf32>
    %cst_12 = arith.constant dense<0.000000e+00> : vector<32xf32>
    %21 = vector.multi_reduction <add>, %19, %cst_12 [0] : vector<64x32xf32> to vector<32xf32>
    %22 = vector.shape_cast %21 : vector<32xf32> to vector<1x32xf32>
    %23 = arith.addf %20, %22 : vector<1x32xf32>
    %c0_13 = arith.constant 0 : index
    %c0_14 = arith.constant 0 : index
    %24 = vector.load %arg5[%c0_13, %c0_14] : memref<1x32xf32, #tpu.memory_space<vmem>>, vector<1x32xf32>
    tpu.vector_store %arg5[%c0_13, %c0_14], %23 {strides = array<i32>} : memref<1x32xf32, #tpu.memory_space<vmem>>, vector<1x32xf32>,
    %c0_15 = arith.constant 0 : index
    %c0_16 = arith.constant 0 : index
    %25 = vector.load %arg6[%c0_15, %c0_16] : memref<1x32xf32, #tpu.memory_space<vmem>>, vector<1x32xf32>
    %26 = arith.mulf %19, %19 : vector<64x32xf32>
    %cst_17 = arith.constant dense<0.000000e+00> : vector<32xf32>
    %27 = vector.multi_reduction <add>, %26, %cst_17 [0] : vector<64x32xf32> to vector<32xf32>
    %28 = vector.shape_cast %27 : vector<32xf32> to vector<1x32xf32>
    %29 = arith.addf %25, %28 : vector<1x32xf32>
    %c0_18 = arith.constant 0 : index
    %c0_19 = arith.constant 0 : index
    %30 = vector.load %arg6[%c0_18, %c0_19] : memref<1x32xf32, #tpu.memory_space<vmem>>, vector<1x32xf32>
    tpu.vector_store %arg6[%c0_18, %c0_19], %29 {strides = array<i32>} : memref<1x32xf32, #tpu.memory_space<vmem>>, vector<1x32xf32>,
    return
  }
  func.func @transform_0(%arg0: i32) -> (i32, i32) {
    %c0_i32 = arith.constant 0 : i32
    %c0_i32_0 = arith.constant 0 : i32
    return %arg0, %c0_i32 : i32, i32
  }
  func.func @transform_1(%arg0: i32) -> (i32, i32) {
    %c0_i32 = arith.constant 0 : i32
    %c0_i32_0 = arith.constant 0 : i32
    %c0_i32_1 = arith.constant 0 : i32
    return %c0_i32, %c0_i32_0 : i32, i32
  }
  func.func @transform_2(%arg0: i32) -> (i32, i32) {
    %c0_i32 = arith.constant 0 : i32
    %c0_i32_0 = arith.constant 0 : i32
    %c0_i32_1 = arith.constant 0 : i32
    return %c0_i32, %c0_i32_0 : i32, i32
  }
  func.func @transform_3(%arg0: i32) -> (i32, i32) {
    %c0_i32 = arith.constant 0 : i32
    %c0_i32_0 = arith.constant 0 : i32
    return %arg0, %c0_i32 : i32, i32
  }
  func.func @transform_4(%arg0: i32) -> (i32, i32) {
    %c0_i32 = arith.constant 0 : i32
    %c0_i32_0 = arith.constant 0 : i32
    %c0_i32_1 = arith.constant 0 : i32
    return %c0_i32, %c0_i32_0 : i32, i32
  }
  func.func @transform_5(%arg0: i32) -> (i32, i32) {
    %c0_i32 = arith.constant 0 : i32
    %c0_i32_0 = arith.constant 0 : i32
    %c0_i32_1 = arith.constant 0 : i32
    return %c0_i32, %c0_i32_0 : i32, i32
  }
}

module attributes {stable_mosaic.version = 11 : i64} {
  func.func @_fused_linears_kernel(%arg0: i32, %arg1: memref<64x32xf32, #tpu.memory_space<vmem>>, %arg2: memref<32x64xbf16, #tpu.memory_space<vmem>>, %arg3: memref<1x64xf32, #tpu.memory_space<vmem>>, %arg4: memref<64x64xbf16, #tpu.memory_space<vmem>>, %arg5: memref<1x64xf32, #tpu.memory_space<vmem>>, %arg6: memref<64x5xbf16, #tpu.memory_space<vmem>>, %arg7: memref<1x5xf32, #tpu.memory_space<vmem>>, %arg8: memref<64x5xf32, #tpu.memory_space<vmem>>) attributes {dimension_semantics = [#tpu.dimension_semantics<parallel>], iteration_bounds = array<i64: 1>, scalar_prefetch = 0 : i64, scratch_operands = 0 : i64, tpu.core_type = #tpu.core_type<tc>, window_params = [{transform_indices = @transform_0, window_bounds = array<i64: 64, 32>}, {pipeline_mode = #tpu.pipeline_mode<synchronous>, transform_indices = @transform_1, window_bounds = array<i64: 32, 64>}, {pipeline_mode = #tpu.pipeline_mode<synchronous>, transform_indices = @transform_2, window_bounds = array<i64: 1, 64>}, {pipeline_mode = #tpu.pipeline_mode<synchronous>, transform_indices = @transform_3, window_bounds = array<i64: 64, 64>}, {pipeline_mode = #tpu.pipeline_mode<synchronous>, transform_indices = @transform_4, window_bounds = array<i64: 1, 64>}, {pipeline_mode = #tpu.pipeline_mode<synchronous>, transform_indices = @transform_5, window_bounds = array<i64: 64, 5>}, {pipeline_mode = #tpu.pipeline_mode<synchronous>, transform_indices = @transform_6, window_bounds = array<i64: 1, 5>}, {transform_indices = @transform_7, window_bounds = array<i64: 64, 5>}]} {
    %c0 = arith.constant 0 : index
    %c0_0 = arith.constant 0 : index
    %0 = vector.load %arg1[%c0, %c0_0] : memref<64x32xf32, #tpu.memory_space<vmem>>, vector<64x32xf32>
    %c0_1 = arith.constant 0 : index
    %c0_2 = arith.constant 0 : index
    %1 = vector.load %arg2[%c0_1, %c0_2] : memref<32x64xbf16, #tpu.memory_space<vmem>>, vector<32x64xbf16>
    %c0_3 = arith.constant 0 : index
    %c0_4 = arith.constant 0 : index
    %2 = vector.load %arg3[%c0_3, %c0_4] : memref<1x64xf32, #tpu.memory_space<vmem>>, vector<1x64xf32>
    %3 = arith.truncf %0 : vector<64x32xf32> to vector<64x32xbf16>
    %cst = arith.constant dense<0.000000e+00> : vector<64x64xf32>
    %4 = tpu.matmul %3, %1, %cst {dimension_numbers = #tpu.dot_dimension_numbers<[1], [0], [0], [1], [0, 0, 1, 1], [], []>} : vector<64x32xbf16>, vector<32x64xbf16>, vector<64x64xf32> -> vector<64x64xf32>
    %5 = vector.broadcast %2 : vector<1x64xf32> to vector<64x64xf32>
    %6 = arith.addf %4, %5 : vector<64x64xf32>
    %cst_5 = arith.constant 0.000000e+00 : f32
    %7 = vector.broadcast %cst_5 : f32 to vector<64x64xf32>
    %8 = arith.maximumf %6, %7 : vector<64x64xf32>
    %c0_6 = arith.constant 0 : index
    %c0_7 = arith.constant 0 : index
    %9 = vector.load %arg4[%c0_6, %c0_7] : memref<64x64xbf16, #tpu.memory_space<vmem>>, vector<64x64xbf16>
    %c0_8 = arith.constant 0 : index
    %c0_9 = arith.constant 0 : index
    %10 = vector.load %arg5[%c0_8, %c0_9] : memref<1x64xf32, #tpu.memory_space<vmem>>, vector<1x64xf32>
    %11 = arith.truncf %8 : vector<64x64xf32> to vector<64x64xbf16>
    %cst_10 = arith.constant dense<0.000000e+00> : vector<64x64xf32>
    %12 = tpu.matmul %11, %9, %cst_10 {dimension_numbers = #tpu.dot_dimension_numbers<[1], [0], [0], [1], [0, 0, 1, 1], [], []>} : vector<64x64xbf16>, vector<64x64xbf16>, vector<64x64xf32> -> vector<64x64xf32>
    %13 = vector.broadcast %10 : vector<1x64xf32> to vector<64x64xf32>
    %14 = arith.addf %12, %13 : vector<64x64xf32>
    %cst_11 = arith.constant 0.000000e+00 : f32
    %15 = vector.broadcast %cst_11 : f32 to vector<64x64xf32>
    %16 = arith.maximumf %14, %15 : vector<64x64xf32>
    %c0_12 = arith.constant 0 : index
    %c0_13 = arith.constant 0 : index
    %17 = vector.load %arg6[%c0_12, %c0_13] : memref<64x5xbf16, #tpu.memory_space<vmem>>, vector<64x5xbf16>
    %c0_14 = arith.constant 0 : index
    %c0_15 = arith.constant 0 : index
    %18 = vector.load %arg7[%c0_14, %c0_15] : memref<1x5xf32, #tpu.memory_space<vmem>>, vector<1x5xf32>
    %19 = arith.truncf %16 : vector<64x64xf32> to vector<64x64xbf16>
    %cst_16 = arith.constant dense<0.000000e+00> : vector<64x5xf32>
    %20 = tpu.matmul %19, %17, %cst_16 {dimension_numbers = #tpu.dot_dimension_numbers<[1], [0], [0], [1], [0, 0, 1, 1], [], []>} : vector<64x64xbf16>, vector<64x5xbf16>, vector<64x5xf32> -> vector<64x5xf32>
    %21 = vector.broadcast %18 : vector<1x5xf32> to vector<64x5xf32>
    %22 = arith.addf %20, %21 : vector<64x5xf32>
    %cst_17 = arith.constant dense<0xFF800000> : vector<64xf32>
    %23 = vector.multi_reduction <maximumf>, %22, %cst_17 [1] : vector<64x5xf32> to vector<64xf32>
    %24 = vector.shape_cast %23 : vector<64xf32> to vector<64x1xf32>
    %25 = vector.broadcast %24 : vector<64x1xf32> to vector<64x5xf32>
    %26 = arith.subf %22, %25 : vector<64x5xf32>
    %27 = math.exp %26 : vector<64x5xf32>
    %cst_18 = arith.constant dense<0.000000e+00> : vector<64xf32>
    %28 = vector.multi_reduction <add>, %27, %cst_18 [1] : vector<64x5xf32> to vector<64xf32>
    %29 = vector.shape_cast %28 : vector<64xf32> to vector<64x1xf32>
    %30 = math.log %29 : vector<64x1xf32>
    %31 = vector.broadcast %30 : vector<64x1xf32> to vector<64x5xf32>
    %32 = arith.subf %26, %31 : vector<64x5xf32>
    %c0_19 = arith.constant 0 : index
    %c0_20 = arith.constant 0 : index
    %33 = vector.load %arg8[%c0_19, %c0_20] : memref<64x5xf32, #tpu.memory_space<vmem>>, vector<64x5xf32>
    tpu.vector_store %arg8[%c0_19, %c0_20], %32 {strides = array<i32>} : memref<64x5xf32, #tpu.memory_space<vmem>>, vector<64x5xf32>,
    return
  }
  func.func @transform_0(%arg0: i32) -> (i32, i32) {
    %c0_i32 = arith.constant 0 : i32
    %c0_i32_0 = arith.constant 0 : i32
    return %arg0, %c0_i32 : i32, i32
  }
  func.func @transform_1(%arg0: i32) -> (i32, i32) {
    %c0_i32 = arith.constant 0 : i32
    %c0_i32_0 = arith.constant 0 : i32
    %c0_i32_1 = arith.constant 0 : i32
    return %c0_i32, %c0_i32_0 : i32, i32
  }
  func.func @transform_2(%arg0: i32) -> (i32, i32) {
    %c0_i32 = arith.constant 0 : i32
    %c0_i32_0 = arith.constant 0 : i32
    %c0_i32_1 = arith.constant 0 : i32
    return %c0_i32, %c0_i32_0 : i32, i32
  }
  func.func @transform_3(%arg0: i32) -> (i32, i32) {
    %c0_i32 = arith.constant 0 : i32
    %c0_i32_0 = arith.constant 0 : i32
    %c0_i32_1 = arith.constant 0 : i32
    return %c0_i32, %c0_i32_0 : i32, i32
  }
  func.func @transform_4(%arg0: i32) -> (i32, i32) {
    %c0_i32 = arith.constant 0 : i32
    %c0_i32_0 = arith.constant 0 : i32
    %c0_i32_1 = arith.constant 0 : i32
    return %c0_i32, %c0_i32_0 : i32, i32
  }
  func.func @transform_5(%arg0: i32) -> (i32, i32) {
    %c0_i32 = arith.constant 0 : i32
    %c0_i32_0 = arith.constant 0 : i32
    %c0_i32_1 = arith.constant 0 : i32
    return %c0_i32, %c0_i32_0 : i32, i32
  }
  func.func @transform_6(%arg0: i32) -> (i32, i32) {
    %c0_i32 = arith.constant 0 : i32
    %c0_i32_0 = arith.constant 0 : i32
    %c0_i32_1 = arith.constant 0 : i32
    return %c0_i32, %c0_i32_0 : i32, i32
  }
  func.func @transform_7(%arg0: i32) -> (i32, i32) {
    %c0_i32 = arith.constant 0 : i32
    %c0_i32_0 = arith.constant 0 : i32
    return %arg0, %c0_i32 : i32, i32
  }
}

</mosaic_0001>

<bundles_post_ra>
// kernel: segmentation_gnn_forward.20
= control target key start
LH: loop header
LB: loop body
LE: loop exit
PB: predicated region body
PF: predicated region fallthrough
CT: control target
= control target key end

     0   :  { %v40_v5 = vlaneseq  ;;  %vm75_vm0 = vcmask 261120   ;;  %s179_s1 = inlined_call_operand.vmem [shape: f32[1,32], index: 1, kind: input, shape index: {}]   ;;  %s180_s2 = inlined_call_operand.vmem [shape: f32[1,32], index: 2, kind: input, shape index: {}]   ;;  %s181_s0 = inlined_call_operand.vmem [shape: bf16[64,32], index: 0, kind: input, shape index: {}]   ;;  %s182_s3 = inlined_call_operand.vmem [shape: f32[64,32], index: 3, kind: output, shape index: {}]  }
   0x1   :  { %v14_v0 = vld [vmem:[%s179_s1] sm:$0x1]  ;;  %v104_v12 = vld [vmem:[%s181_s0 + $0x8] sm:$0xff]   ;;  %v105_v13 = vld [vmem:[%s181_s0 + $0x10] sm:$0xff]  }
   0x2   :  { %v16_v1 = vld [vmem:[%s180_s2] sm:$0x1]  ;;  %v15_v2 = vmul.f32 0.015625, %v14_v0  ;;  %v41_v8 = vshrl.u32 %v40_v5, 7  ;;  %v106_v14 = vld [vmem:[%s181_s0 + $0x18] sm:$0xff]   ;;  %v94_v18 = vunpack.c.l.bf16 %v104_v12  ;;  %v95_v19 = vunpack.c.h.bf16 %v104_v12 }
   0x3   :  { %v17_v3 = vmul.f32 0.015625, %v16_v1  ;;  %v89_v10 = vld [vmem:[%s181_s0] sm:$0xff]   ;;  %v98_v20 = vunpack.c.l.bf16 %v105_v13  ;;  %v99_v21 = vunpack.c.h.bf16 %v105_v13  ;;  %v102_v22 = vunpack.c.l.bf16 %v106_v14 }
   0x4   :  { %v18_v4 = vmul.f32 %v15_v2, %v15_v2  ;;  %v42_v11 = vsub.s32 0, %v41_v8  ;;  %v90_v15 = vunpack.c.l.bf16 %v89_v10  ;;  %v91_v17 = vunpack.c.h.bf16 %v89_v10 }
   0x5   :  { %v103_v23 = vunpack.c.h.bf16 %v106_v14 }
   0x6   :  { %v19_v6 = vsub.f32 %v17_v3, %v18_v4  ;;  %v43_v16 = vrot.slane %v15_v2, %v42_v11 }
   0x8   :  { %v20_v7 = vmax.f32 %v19_v6, 0.0  ;;  %v45_v24 = vsub.f32 %v90_v15, %v43_v16  ;;  %v46_v25 = vsub.f32 %v91_v17, %v43_v16  ;;  %v47_v26 = vsub.f32 %v94_v18, %v43_v16 }
   0x9   :  { %v48_v27 = vsub.f32 %v95_v19, %v43_v16  ;;  %v49_v29 = vsub.f32 %v98_v20, %v43_v16  ;;  %v50_v30 = vsub.f32 %v99_v21, %v43_v16  ;;  %v51_v31 = vsub.f32 %v102_v22, %v43_v16 }
   0xa   :  { %v21_v9 = vadd.f32 1e-05, %v20_v7  ;;  %v52_v32 = vsub.f32 %v103_v23, %v43_v16 }
   0xc   :  { %107 = vrsqrt.f32 %v21_v9 }
  0x16   :  { %v108_v28 = vpop.eup %107 }
  0x17   :  { %v57_v33 = vrot.slane %v108_v28, %v42_v11 }
  0x19   :  { %v59_v34 = vmul.f32 %v57_v33, %v45_v24  ;;  %v60_v35 = vmul.f32 %v57_v33, %v46_v25  ;;  %v61_v36 = vmul.f32 %v57_v33, %v47_v26  ;;  %v62_v37 = vmul.f32 %v57_v33, %v48_v27 }
  0x1a   :  { %v63_v38 = vmul.f32 %v57_v33, %v49_v29  ;;  %v64_v39 = vmul.f32 %v57_v33, %v50_v30  ;;  %v65_v40 = vmul.f32 %v57_v33, %v51_v31  ;;  %v66_v41 = vmul.f32 %v57_v33, %v52_v32 }
  0x1b   :  { %v67_v42 = vmax.f32 %v59_v34, 0.0  ;;  %v68_v43 = vmax.f32 %v60_v35, 0.0  ;;  %v69_v44 = vmax.f32 %v61_v36, 0.0  ;;  %v70_v45 = vmax.f32 %v62_v37, 0.0 }
  0x1c   :  { %v71_v46 = vmax.f32 %v63_v38, 0.0  ;;  %v72_v47 = vmax.f32 %v64_v39, 0.0  ;;  %v73_v48 = vmax.f32 %v65_v40, 0.0  ;;  %v74_v49 = vmax.f32 %v66_v41, 0.0 }
  0x1d   :  { %76 = vst.msk [vmem:[%s182_s3] sm:$0xff] %vm75_vm0, %v67_v42  ;;  %77 = vst.msk [vmem:[%s182_s3 + $0x8] sm:$0xff] %vm75_vm0, %v68_v43 }
  0x1e   :  { %78 = vst.msk [vmem:[%s182_s3 + $0x10] sm:$0xff] %vm75_vm0, %v69_v44  ;;  %79 = vst.msk [vmem:[%s182_s3 + $0x18] sm:$0xff] %vm75_vm0, %v70_v45 }
  0x1f   :  { %80 = vst.msk [vmem:[%s182_s3 + $0x20] sm:$0xff] %vm75_vm0, %v71_v46  ;;  %81 = vst.msk [vmem:[%s182_s3 + $0x28] sm:$0xff] %vm75_vm0, %v72_v47 }
  0x20   :  { %82 = vst.msk [vmem:[%s182_s3 + $0x30] sm:$0xff] %vm75_vm0, %v73_v48  ;;  %83 = vst.msk [vmem:[%s182_s3 + $0x38] sm:$0xff] %vm75_vm0, %v74_v49 }

// kernel: segmentation_gnn_forward.19
= control target key start
LH: loop header
LB: loop body
LE: loop exit
PB: predicated region body
PF: predicated region fallthrough
CT: control target
= control target key end

     0   :  { %vm51_vm0 = vcmask 1040384   ;;  %vm52_vm1 = vcmask 1041408   ;;  %v316_v1 = vmov 65535   ;;  %vm38_vm2 = vcmask 23552   ;;  %s452_s1 = inlined_call_operand.vmem [shape: bf16[3,32], index: 1, kind: input, shape index: {}]   ;;  %s453_s0 = inlined_call_operand.vmem [shape: f32[64,3], index: 0, kind: input, shape index: {}]   ;;  %s454_s4 = inlined_call_operand.vmem [shape: f32[1,32], index: 4, kind: output, shape index: {1}]   ;;  %s455_s5 = inlined_call_operand.vmem [shape: f32[1,32], index: 5, kind: output, shape index: {2}]   ;;  %s456_s2 = inlined_call_operand.vmem [shape: f32[1,32], index: 2, kind: input, shape index: {}]   ;;  %s457_s3 = inlined_call_operand.vmem [shape: bf16[64,32], index: 3, kind: output, shape index: {0}]  }
   0x1   :  { %v30_v0 = vld [vmem:[%s452_s1] sm:$0x3]  ;;  %v53_v2 = vsel %vm51_vm0, 4294967295, %v316_v1  ;;  %v19_v4 = vld [vmem:[%s453_s0 + $0x8] sm:$0xff]  ;;  %v20_v7 = vld [vmem:[%s453_s0 + $0x10] sm:$0xff]  ;;  %vm168_vm3 = vcmask 253952  }
   0x2   :  { %v18_v3 = vld [vmem:[%s453_s0] sm:$0xff]  ;;  %v54_v5 = vsel %vm52_vm1, %v53_v2, 0  ;;  %v21_v8 = vld [vmem:[%s453_s0 + $0x18] sm:$0xff]  ;;  %v23_v11 = vld [vmem:[%s453_s0 + $0x28] sm:$0xff]  ;;  %v317_v17 = vmov 0.0   ;;  %vm155_vm4 = vcmask 257024  }
   0x3   :  { %v26_v6 = vpack.c.bf16 %v19_v4, %v18_v3  ;;  %v22_v9 = vld [vmem:[%s453_s0 + $0x20] sm:$0xff]  ;;  %v56_v10 = vand.u32 %v54_v5, %v30_v0  ;;  %v24_v12 = vld [vmem:[%s453_s0 + $0x30] sm:$0xff]  ;;  %v25_v13 = vld [vmem:[%s453_s0 + $0x38] sm:$0xff]  ;;  %v27_v15 = vpack.c.bf16 %v21_v8, %v20_v7  ;;  %169 = vst.msk [vmem:[%s454_s4] sm:$0x1] %vm168_vm3, %v317_v17  ;;  %vm207_vm5 = vcmask 261120  }
   0x4   :  { %v28_v14 = vpack.c.bf16 %v23_v11, %v22_v9  ;;  %v29_v16 = vpack.c.bf16 %v25_v13, %v24_v12  ;;  %170 = vst.msk [vmem:[%s455_s5] sm:$0x1] %vm168_vm3, %v317_v17  ;;  %v276_v18 = vld [vmem:[%s456_s2] ss:$0 sm:$0xff] }
   0x5   :  { %304 = vmatprep.mubr.msk.bf16.mxu0 %vm38_vm2, %v26_v6  ;;  %302 = vmatprep.subr.bf16.mxu0 %v56_v10 }
   0x6   :  { %312 = vmatprep.subr.bf16.mxu1 %v56_v10  ;;  %303 = vmatpush3.bf16.msra.mxu0 %v56_v10 }
   0x7   :  { %313 = vmatpush3.bf16.msra.mxu1 %v56_v10  ;;  %308 = vmatprep.mubr.msk.bf16.mxu1 %vm38_vm2, %v28_v14 }
   0x9   :  { %305 = vmatmul.mubr.msk.bf16.vlgmr.msra.gmra.mrb[0].mxu0 %vm38_vm2, %v27_v15 }
   0xa   :  { %309 = vmatmul.mubr.msk.bf16.vlgmr.msra.gmra.mrb[0].mxu1 %vm38_vm2, %v29_v16 }
  0xdc   :  { %v306_v19 = vpop.f32.mrb[0].mxu0 }
  0xdd   :  { %v310_v20 = vpop.f32.mrb[0].mxu1  ;;  %v101_v21 = vadd.f32 %v306_v19, %v276_v18  ;;  %v92_v22 = vpop.f32.mrb[1].mxu0 }
  0xde   :  { %v108_v23 = vpop.f32.mrb[1].mxu1  ;;  %v93_v24 = vadd.f32 %v276_v18, %v92_v22  ;;  %v307_v25 = vpop.f32.mrb[2].mxu0  ;;  %v117_v30 = vadd.f32 %v310_v20, %v276_v18 }
  0xdf   :  { %v311_v26 = vpop.f32.mrb[2].mxu1  ;;  %v291_v27 = vpack.c.bf16 %v101_v21, %v101_v21  ;;  %v104_v28 = vadd.f32 %v307_v25, %v276_v18  ;;  %v95_v29 = vpop.f32.mrb[3].mxu0  ;;  %v109_v35 = vadd.f32 %v276_v18, %v108_v23  ;;  %v235_v36 = vmul.f32 %v101_v21, %v101_v21 }
  0xe0   :  { %v111_v31 = vpop.f32.mrb[3].mxu1  ;;  %v289_v32 = vpack.c.bf16 %v93_v24, %v93_v24  ;;  %v233_v33 = vmul.f32 %v93_v24, %v93_v24  ;;  %v96_v34 = vadd.f32 %v276_v18, %v95_v29  ;;  %v208_v38 = vsel %vm207_vm5, %v93_v24, 0.0  ;;  %v232_v29 = vld [vmem:[%s455_s5] sm:$0x1] }
  0xe1   :  { %158 = vst.msk [vmem:[%s457_s3 + $0x8] sm:$0xf] %vm155_vm4, %v291_v27  ;;  %v292_v37 = vpack.c.bf16 %v104_v28, %v104_v28  ;;  %v211_v42 = vsel %vm207_vm5, %v101_v21, 0.0  ;;  %v295_v44 = vpack.c.bf16 %v117_v30, %v117_v30  ;;  %v236_v46 = vmul.f32 %v104_v28, %v104_v28 }
  0xe2   :  { %156 = vst.msk [vmem:[%s457_s3] sm:$0xf] %vm155_vm4, %v289_v32  ;;  %v290_v39 = vpack.c.bf16 %v96_v34, %v96_v34  ;;  %v209_v40 = vsel %vm207_vm5, %v96_v34, 0.0  ;;  %v234_v41 = vmul.f32 %v96_v34, %v96_v34  ;;  %v241_v45 = vsel %vm207_vm5, %v233_v33, 0.0 }
  0xe3   :  { %159 = vst.msk [vmem:[%s457_s3 + $0xc] sm:$0xf] %vm155_vm4, %v292_v37  ;;  %v210_v43 = vadd.f32 %v209_v40, %v208_v38  ;;  %v293_v48 = vpack.c.bf16 %v109_v35, %v109_v35  ;;  %162 = vst.msk [vmem:[%s457_s3 + $0x18] sm:$0xf] %vm155_vm4, %v295_v44  ;;  %v237_v51 = vmul.f32 %v109_v35, %v109_v35  ;;  %v244_v53 = vsel %vm207_vm5, %v235_v36, 0.0 }
  0xe4   :  { %157 = vst.msk [vmem:[%s457_s3 + $0x4] sm:$0xf] %vm155_vm4, %v290_v39  ;;  %v242_v47 = vsel %vm207_vm5, %v234_v41, 0.0  ;;  %v120_v52 = vadd.f32 %v311_v26, %v276_v18  ;;  %v213_v54 = vsel %vm207_vm5, %v104_v28, 0.0  ;;  %v215_v55 = vsel %vm207_vm5, %v109_v35, 0.0 }
  0xe5   :  { %v212_v49 = vadd.f32 %v211_v42, %v210_v43  ;;  %v243_v50 = vadd.f32 %v242_v47, %v241_v45  ;;  %160 = vst.msk [vmem:[%s457_s3 + $0x10] sm:$0xf] %vm155_vm4, %v293_v48  ;;  %v112_v56 = vadd.f32 %v276_v18, %v111_v31  ;;  %v246_v60 = vsel %vm207_vm5, %v236_v46, 0.0  ;;  %v206_v26 = vld [vmem:[%s454_s4] sm:$0x1] }
  0xe6   :  { %v296_v59 = vpack.c.bf16 %v120_v52, %v120_v52  ;;  %v248_v61 = vsel %vm207_vm5, %v237_v51, 0.0  ;;  %v239_v2 = vmul.f32 %v117_v30, %v117_v30  ;;  %v219_v6 = vsel %vm207_vm5, %v117_v30, 0.0 }
  0xe7   :  { %v245_v57 = vadd.f32 %v244_v53, %v243_v50  ;;  %v214_v58 = vadd.f32 %v213_v54, %v212_v49  ;;  %v294_v62 = vpack.c.bf16 %v112_v56, %v112_v56  ;;  %v238_v1 = vmul.f32 %v112_v56, %v112_v56 }
  0xe8   :  { %163 = vst.msk [vmem:[%s457_s3 + $0x1c] sm:$0xf] %vm155_vm4, %v296_v59  ;;  %v217_v3 = vsel %vm207_vm5, %v112_v56, 0.0  ;;  %v240_v7 = vmul.f32 %v120_v52, %v120_v52  ;;  %v252_v11 = vsel %vm207_vm5, %v239_v2, 0.0  ;;  %v221_v12 = vsel %vm207_vm5, %v120_v52, 0.0 }
  0xe9   :  { %v216_v63 = vadd.f32 %v215_v55, %v214_v58  ;;  %v247_v0 = vadd.f32 %v246_v60, %v245_v57  ;;  %161 = vst.msk [vmem:[%s457_s3 + $0x14] sm:$0xf] %vm155_vm4, %v294_v62  ;;  %v250_v8 = vsel %vm207_vm5, %v238_v1, 0.0 }
  0xea   :  { %v254_v15 = vsel %vm207_vm5, %v240_v7, 0.0 }
  0xeb   :  { %v249_v4 = vadd.f32 %v248_v61, %v247_v0  ;;  %v218_v5 = vadd.f32 %v217_v3, %v216_v63 }
  0xed   :  { %v220_v9 = vadd.f32 %v219_v6, %v218_v5  ;;  %v251_v10 = vadd.f32 %v250_v8, %v249_v4 }
  0xef   :  { %v222_v13 = vadd.f32 %v221_v12, %v220_v9  ;;  %v253_v14 = vadd.f32 %v252_v11, %v251_v10 }
  0xf1   :  { %v223_v16 = vrot.slane %v222_v13, 4  ;;  %v255_v17 = vadd.f32 %v254_v15, %v253_v14 }
  0xf3   :  { %v224_v18 = vadd.f32 %v223_v16, %v222_v13  ;;  %v256_v19 = vrot.slane %v255_v17, 4 }
  0xf5   :  { %v225_v20 = vrot.slane %v224_v18, 2  ;;  %v257_v21 = vadd.f32 %v256_v19, %v255_v17 }
  0xf7   :  { %v226_v22 = vadd.f32 %v225_v20, %v224_v18  ;;  %v258_v23 = vrot.slane %v257_v21, 2 }
  0xf9   :  { %v227_v24 = vrot.slane %v226_v22, 1  ;;  %v259_v25 = vadd.f32 %v258_v23, %v257_v21 }
  0xfb   :  { %v228_v27 = vadd.f32 %v227_v24, %v226_v22  ;;  %v260_v28 = vrot.slane %v259_v25, 1 }
  0xfd   :  { %v229_v30 = vadd.f32 %v228_v27, %v206_v26  ;;  %v261_v31 = vadd.f32 %v260_v28, %v259_v25 }
  0xff   :  { %231 = vst.msk [vmem:[%s454_s4] sm:$0x1] %vm168_vm3, %v229_v30  ;;  %v262_v32 = vadd.f32 %v261_v31, %v232_v29 }
 0x101   :  { %263 = vst.msk [vmem:[%s455_s5] sm:$0x1] %vm168_vm3, %v262_v32 }

// kernel: segmentation_gnn_forward.21
= control target key start
LH: loop header
LB: loop body
LE: loop exit
PB: predicated region body
PF: predicated region fallthrough
CT: control target
= control target key end

     0   :  { %vm56_vm0 = vcmask 261120   ;;  %vm278_vm1 = vcmask 781312   ;;  %s473_s1 = inlined_call_operand.vmem [shape: bf16[32,32], index: 1, kind: input, shape index: {}]   ;;  %s474_s0 = inlined_call_operand.vmem [shape: f32[64,32], index: 0, kind: input, shape index: {}]   ;;  %s475_s3 = inlined_call_operand.vmem [shape: bf16[32,96], index: 3, kind: input, shape index: {}]   ;;  %s476_s2 = inlined_call_operand.vmem [shape: f32[1,32], index: 2, kind: input, shape index: {}]   ;;  %s477_s4 = inlined_call_operand.vmem [shape: f32[1,96], index: 4, kind: input, shape index: {}]   ;;  %s478_s5 = inlined_call_operand.vmem [shape: bf16[64,96], index: 5, kind: output, shape index: {}]  }
   0x1   :  { %v357_v0 = vld [vmem:[%s473_s1] sm:$0xff]   ;;  %v358_v1 = vld [vmem:[%s473_s1 + $0x8] sm:$0xff]   ;;  %v23_v5 = vld [vmem:[%s474_s0 + $0x10] sm:$0xff] }
   0x2   :  { %333 = vmatprep.subr.bf16.mxu0 %v357_v0  ;;  %v21_v2 = vld [vmem:[%s474_s0] sm:$0xff]  ;;  %v22_v3 = vld [vmem:[%s474_s0 + $0x8] sm:$0xff]  ;;  %v24_v6 = vld [vmem:[%s474_s0 + $0x18] sm:$0xff] }
   0x3   :  { %334 = vmatpush3.bf16.msra.mxu0 %v357_v0  ;;  %v34_v4 = vpack.c.bf16 %v22_v3, %v21_v2  ;;  %v25_v7 = vld [vmem:[%s474_s0 + $0x20] sm:$0xff]  ;;  %v26_v8 = vld [vmem:[%s474_s0 + $0x28] sm:$0xff]  ;;  %v35_v9 = vpack.c.bf16 %v24_v6, %v23_v5  ;;  %v27_v11 = vld [vmem:[%s474_s0 + $0x30] sm:$0xff] }
   0x4   :  { %335 = vmatprep.subr.bf16.mxu0 %v358_v1  ;;  %v36_v10 = vpack.c.bf16 %v26_v8, %v25_v7  ;;  %v28_v12 = vld [vmem:[%s474_s0 + $0x38] sm:$0xff]  ;;  %v359_v14 = vld [vmem:[%s475_s3] sm:$0xff]   ;;  %v360_v15 = vld [vmem:[%s475_s3 + $0x8] sm:$0xff]  }
   0x5   :  { %337 = vmatprep.mubr.msk.bf16.mxu0 %vm56_vm0, %v34_v4  ;;  %v37_v13 = vpack.c.bf16 %v28_v12, %v27_v11  ;;  %345 = vmatprep.subr.bf16.mxu1 %v359_v14  ;;  %v291_v16 = vld [vmem:[%s476_s2] ss:$0 sm:$0xff] }
   0x6   :  { %346 = vmatpush3.bf16.msra.mxu1 %v359_v14  ;;  %v298_v45 = vld [vmem:[%s477_s4] ss:$0 sm:$0xff] }
   0x7   :  { %336 = vmatpush3.bf16.msra.mxu0 %v358_v1  ;;  %347 = vmatprep.subr.bf16.mxu1 %v360_v15 }
   0xa   :  { %338 = vmatmul.mubr.msk.bf16.vlgmr.msra.gmra.mrb[0].mxu0 %vm56_vm0, %v35_v9  ;;  %348 = vmatpush3.bf16.msra.mxu1 %v360_v15 }
   0xb   :  { %341 = vmatprep.mubr.msk.bf16.mxu0 %vm56_vm0, %v36_v10 }
  0x12   :  { %342 = vmatmul.mubr.msk.bf16.gmra.mrb[4].mxu0 %vm56_vm0, %v37_v13 }
  0xdd   :  { %v339_v17 = vpop.f32.mrb[0].mxu0 }
  0xde   :  { %v112_v18 = vadd.f32 %v339_v17, %v291_v16  ;;  %v103_v19 = vpop.f32.mrb[1].mxu0 }
  0xdf   :  { %v104_v20 = vadd.f32 %v291_v16, %v103_v19  ;;  %v340_v21 = vpop.f32.mrb[2].mxu0 }
  0xe0   :  { %v115_v22 = vadd.f32 %v340_v21, %v291_v16  ;;  %v106_v23 = vpop.f32.mrb[3].mxu0  ;;  %v136_v25 = vmax.f32 %v112_v18, 0.0 }
  0xe1   :  { %v107_v24 = vadd.f32 %v291_v16, %v106_v23  ;;  %v134_v27 = vmax.f32 %v104_v20, 0.0 }
  0xe2   :  { %v137_v26 = vmax.f32 %v115_v22, 0.0 }
  0xe3   :  { %v135_v28 = vmax.f32 %v107_v24, 0.0 }
  0xe4   :  { %v148_v29 = vpack.c.bf16 %v137_v26, %v136_v25 }
  0xe5   :  { %v343_v30 = vpop.f32.mrb[4].mxu0  ;;  %v147_v31 = vpack.c.bf16 %v135_v28, %v134_v27 }
  0xe6   :  { %v128_v32 = vadd.f32 %v343_v30, %v291_v16  ;;  %v119_v33 = vpop.f32.mrb[5].mxu0 }
  0xe7   :  { %v120_v34 = vadd.f32 %v291_v16, %v119_v33  ;;  %v344_v35 = vpop.f32.mrb[6].mxu0  ;;  %349 = vmatprep.mubr.msk.bf16.mxu1 %vm56_vm0, %v147_v31 }
  0xe8   :  { %v131_v36 = vadd.f32 %v344_v35, %v291_v16  ;;  %v122_v37 = vpop.f32.mrb[7].mxu0  ;;  %350 = vmatmul.mubr.msk.bf16.vlgmr.msra.gmra.mrb[0].mxu1 %vm56_vm0, %v148_v29  ;;  %v140_v39 = vmax.f32 %v128_v32, 0.0 }
  0xe9   :  { %v123_v38 = vadd.f32 %v291_v16, %v122_v37  ;;  %v138_v41 = vmax.f32 %v120_v34, 0.0 }
  0xea   :  { %v141_v40 = vmax.f32 %v131_v36, 0.0 }
  0xeb   :  { %v139_v42 = vmax.f32 %v123_v38, 0.0 }
  0xec   :  { %v150_v43 = vpack.c.bf16 %v141_v40, %v140_v39 }
  0xed   :  { %v149_v44 = vpack.c.bf16 %v139_v42, %v138_v41 }
  0xef   :  { %353 = vmatprep.mubr.msk.bf16.mxu1 %vm56_vm0, %v149_v44 }
  0xf0   :  { %354 = vmatmul.mubr.msk.bf16.gmra.mrb[4].mxu1 %vm56_vm0, %v150_v43 }
 0x1bb   :  { %v351_v46 = vpop.f32.mrb[0].mxu1 }
 0x1bc   :  { %v224_v47 = vadd.f32 %v351_v46, %v298_v45  ;;  %v215_v48 = vpop.f32.mrb[1].mxu1 }
 0x1bd   :  { %v216_v49 = vadd.f32 %v298_v45, %v215_v48  ;;  %v352_v50 = vpop.f32.mrb[2].mxu1 }
 0x1be   :  { %v315_v51 = vpack.c.bf16 %v224_v47, %v224_v47  ;;  %v227_v52 = vadd.f32 %v352_v50, %v298_v45  ;;  %v218_v53 = vpop.f32.mrb[3].mxu1 }
 0x1bf   :  { %v313_v54 = vpack.c.bf16 %v216_v49, %v216_v49  ;;  %v219_v55 = vadd.f32 %v298_v45, %v218_v53 }
 0x1c0   :  { %281 = vst.msk [vmem:[%s478_s5 + $0x8] sm:$0xf] %vm278_vm1, %v315_v51  ;;  %v316_v56 = vpack.c.bf16 %v227_v52, %v227_v52 }
 0x1c1   :  { %279 = vst.msk [vmem:[%s478_s5] sm:$0xf] %vm278_vm1, %v313_v54  ;;  %v314_v57 = vpack.c.bf16 %v219_v55, %v219_v55 }
 0x1c2   :  { %282 = vst.msk [vmem:[%s478_s5 + $0xc] sm:$0xf] %vm278_vm1, %v316_v56 }
 0x1c3   :  { %280 = vst.msk [vmem:[%s478_s5 + $0x4] sm:$0xf] %vm278_vm1, %v314_v57  ;;  %v355_v58 = vpop.f32.mrb[4].mxu1 }
 0x1c4   :  { %v240_v59 = vadd.f32 %v355_v58, %v298_v45  ;;  %v231_v60 = vpop.f32.mrb[5].mxu1 }
 0x1c5   :  { %v232_v61 = vadd.f32 %v298_v45, %v231_v60  ;;  %v356_v62 = vpop.f32.mrb[6].mxu1 }
 0x1c6   :  { %v319_v63 = vpack.c.bf16 %v240_v59, %v240_v59  ;;  %v243_v0 = vadd.f32 %v356_v62, %v298_v45  ;;  %v234_v1 = vpop.f32.mrb[7].mxu1 }
 0x1c7   :  { %v317_v2 = vpack.c.bf16 %v232_v61, %v232_v61  ;;  %v235_v3 = vadd.f32 %v298_v45, %v234_v1 }
 0x1c8   :  { %285 = vst.msk [vmem:[%s478_s5 + $0x18] sm:$0xf] %vm278_vm1, %v319_v63  ;;  %v320_v4 = vpack.c.bf16 %v243_v0, %v243_v0 }
 0x1c9   :  { %283 = vst.msk [vmem:[%s478_s5 + $0x10] sm:$0xf] %vm278_vm1, %v317_v2  ;;  %v318_v5 = vpack.c.bf16 %v235_v3, %v235_v3 }
 0x1ca   :  { %286 = vst.msk [vmem:[%s478_s5 + $0x1c] sm:$0xf] %vm278_vm1, %v320_v4 }
 0x1cb   :  { %284 = vst.msk [vmem:[%s478_s5 + $0x14] sm:$0xf] %vm278_vm1, %v318_v5 }

// kernel: segmentation_gnn_forward.24
= control target key start
LH: loop header
LB: loop body
LE: loop exit
PB: predicated region body
PF: predicated region fallthrough
CT: control target
= control target key end

     0   :  { %v40_v5 = vlaneseq  ;;  %vm75_vm0 = vcmask 523264   ;;  %s179_s1 = inlined_call_operand.vmem [shape: f32[1,64], index: 1, kind: input, shape index: {}]   ;;  %s180_s2 = inlined_call_operand.vmem [shape: f32[1,64], index: 2, kind: input, shape index: {}]   ;;  %s181_s0 = inlined_call_operand.vmem [shape: bf16[64,64], index: 0, kind: input, shape index: {}]   ;;  %s182_s3 = inlined_call_operand.vmem [shape: f32[64,64], index: 3, kind: output, shape index: {}]  }
   0x1   :  { %v14_v0 = vld [vmem:[%s179_s1] sm:$0x1]  ;;  %v104_v12 = vld [vmem:[%s181_s0 + $0x8] sm:$0xff]   ;;  %v105_v13 = vld [vmem:[%s181_s0 + $0x10] sm:$0xff]  }
   0x2   :  { %v16_v1 = vld [vmem:[%s180_s2] sm:$0x1]  ;;  %v15_v2 = vmul.f32 0.015625, %v14_v0  ;;  %v41_v8 = vshrl.u32 %v40_v5, 7  ;;  %v106_v14 = vld [vmem:[%s181_s0 + $0x18] sm:$0xff]   ;;  %v94_v18 = vunpack.c.l.bf16 %v104_v12  ;;  %v95_v19 = vunpack.c.h.bf16 %v104_v12 }
   0x3   :  { %v17_v3 = vmul.f32 0.015625, %v16_v1  ;;  %v89_v10 = vld [vmem:[%s181_s0] sm:$0xff]   ;;  %v98_v20 = vunpack.c.l.bf16 %v105_v13  ;;  %v99_v21 = vunpack.c.h.bf16 %v105_v13  ;;  %v102_v22 = vunpack.c.l.bf16 %v106_v14 }
   0x4   :  { %v18_v4 = vmul.f32 %v15_v2, %v15_v2  ;;  %v42_v11 = vsub.s32 0, %v41_v8  ;;  %v90_v15 = vunpack.c.l.bf16 %v89_v10  ;;  %v91_v17 = vunpack.c.h.bf16 %v89_v10 }
   0x5   :  { %v103_v23 = vunpack.c.h.bf16 %v106_v14 }
   0x6   :  { %v19_v6 = vsub.f32 %v17_v3, %v18_v4  ;;  %v43_v16 = vrot.slane %v15_v2, %v42_v11 }
   0x8   :  { %v20_v7 = vmax.f32 %v19_v6, 0.0  ;;  %v45_v24 = vsub.f32 %v90_v15, %v43_v16  ;;  %v46_v25 = vsub.f32 %v91_v17, %v43_v16  ;;  %v47_v26 = vsub.f32 %v94_v18, %v43_v16 }
   0x9   :  { %v48_v27 = vsub.f32 %v95_v19, %v43_v16  ;;  %v49_v29 = vsub.f32 %v98_v20, %v43_v16  ;;  %v50_v30 = vsub.f32 %v99_v21, %v43_v16  ;;  %v51_v31 = vsub.f32 %v102_v22, %v43_v16 }
   0xa   :  { %v21_v9 = vadd.f32 1e-05, %v20_v7  ;;  %v52_v32 = vsub.f32 %v103_v23, %v43_v16 }
   0xc   :  { %107 = vrsqrt.f32 %v21_v9 }
  0x16   :  { %v108_v28 = vpop.eup %107 }
  0x17   :  { %v57_v33 = vrot.slane %v108_v28, %v42_v11 }
  0x19   :  { %v59_v34 = vmul.f32 %v57_v33, %v45_v24  ;;  %v60_v35 = vmul.f32 %v57_v33, %v46_v25  ;;  %v61_v36 = vmul.f32 %v57_v33, %v47_v26  ;;  %v62_v37 = vmul.f32 %v57_v33, %v48_v27 }
  0x1a   :  { %v63_v38 = vmul.f32 %v57_v33, %v49_v29  ;;  %v64_v39 = vmul.f32 %v57_v33, %v50_v30  ;;  %v65_v40 = vmul.f32 %v57_v33, %v51_v31  ;;  %v66_v41 = vmul.f32 %v57_v33, %v52_v32 }
  0x1b   :  { %v67_v42 = vmax.f32 %v59_v34, 0.0  ;;  %v68_v43 = vmax.f32 %v60_v35, 0.0  ;;  %v69_v44 = vmax.f32 %v61_v36, 0.0  ;;  %v70_v45 = vmax.f32 %v62_v37, 0.0 }
  0x1c   :  { %v71_v46 = vmax.f32 %v63_v38, 0.0  ;;  %v72_v47 = vmax.f32 %v64_v39, 0.0  ;;  %v73_v48 = vmax.f32 %v65_v40, 0.0  ;;  %v74_v49 = vmax.f32 %v66_v41, 0.0 }
  0x1d   :  { %76 = vst.msk [vmem:[%s182_s3] sm:$0xff] %vm75_vm0, %v67_v42  ;;  %77 = vst.msk [vmem:[%s182_s3 + $0x8] sm:$0xff] %vm75_vm0, %v68_v43 }
  0x1e   :  { %78 = vst.msk [vmem:[%s182_s3 + $0x10] sm:$0xff] %vm75_vm0, %v69_v44  ;;  %79 = vst.msk [vmem:[%s182_s3 + $0x18] sm:$0xff] %vm75_vm0, %v70_v45 }
  0x1f   :  { %80 = vst.msk [vmem:[%s182_s3 + $0x20] sm:$0xff] %vm75_vm0, %v71_v46  ;;  %81 = vst.msk [vmem:[%s182_s3 + $0x28] sm:$0xff] %vm75_vm0, %v72_v47 }
  0x20   :  { %82 = vst.msk [vmem:[%s182_s3 + $0x30] sm:$0xff] %vm75_vm0, %v73_v48  ;;  %83 = vst.msk [vmem:[%s182_s3 + $0x38] sm:$0xff] %vm75_vm0, %v74_v49 }

// kernel: segmentation_gnn_forward.23
= control target key start
LH: loop header
LB: loop body
LE: loop exit
PB: predicated region body
PF: predicated region fallthrough
CT: control target
= control target key end

     0   :  { %vm53_vm0 = vcmask 261120   ;;  %vm176_vm1 = vcmask 516096   ;;  %v332_v14 = vmov 0.0   ;;  %vm163_vm2 = vcmask 519168   ;;  %s470_s1 = inlined_call_operand.vmem [shape: bf16[32,64], index: 1, kind: input, shape index: {}]   ;;  %s471_s0 = inlined_call_operand.vmem [shape: f32[64,32], index: 0, kind: input, shape index: {}]   ;;  %s472_s4 = inlined_call_operand.vmem [shape: f32[1,64], index: 4, kind: output, shape index: {1}]   ;;  %s473_s5 = inlined_call_operand.vmem [shape: f32[1,64], index: 5, kind: output, shape index: {2}]   ;;  %s474_s2 = inlined_call_operand.vmem [shape: f32[1,64], index: 2, kind: input, shape index: {}]   ;;  %s475_s3 = inlined_call_operand.vmem [shape: bf16[64,64], index: 3, kind: output, shape index: {0}]  }
   0x1   :  { %v330_v0 = vld [vmem:[%s470_s1] sm:$0xff]   ;;  %v331_v1 = vld [vmem:[%s470_s1 + $0x8] sm:$0xff]   ;;  %v20_v4 = vld [vmem:[%s471_s0 + $0x10] sm:$0xff]  ;;  %177 = vst.msk [vmem:[%s472_s4] sm:$0x1] %vm176_vm1, %v332_v14  ;;  %vm215_vm3 = vcmask 523264  }
   0x2   :  { %313 = vmatprep.subr.bf16.mxu0 %v330_v0  ;;  %325 = vmatprep.subr.bf16.mxu1 %v330_v0  ;;  %v18_v2 = vld [vmem:[%s471_s0] sm:$0xff]  ;;  %v19_v3 = vld [vmem:[%s471_s0 + $0x8] sm:$0xff]  ;;  %v21_v6 = vld [vmem:[%s471_s0 + $0x18] sm:$0xff]  ;;  %178 = vst.msk [vmem:[%s473_s5] sm:$0x1] %vm176_vm1, %v332_v14 }
   0x3   :  { %314 = vmatpush3.bf16.msra.mxu0 %v330_v0  ;;  %327 = vmatpush3.bf16.msra.mxu1 %v330_v0  ;;  %v26_v5 = vpack.c.bf16 %v19_v3, %v18_v2  ;;  %v22_v7 = vld [vmem:[%s471_s0 + $0x20] sm:$0xff]  ;;  %v23_v8 = vld [vmem:[%s471_s0 + $0x28] sm:$0xff]  ;;  %v24_v10 = vld [vmem:[%s471_s0 + $0x30] sm:$0xff]  ;;  %v27_v12 = vpack.c.bf16 %v21_v6, %v20_v4 }
   0x4   :  { %315 = vmatprep.subr.bf16.mxu0 %v331_v1  ;;  %326 = vmatprep.subr.bf16.mxu1 %v331_v1  ;;  %v28_v9 = vpack.c.bf16 %v23_v8, %v22_v7  ;;  %v25_v11 = vld [vmem:[%s471_s0 + $0x38] sm:$0xff]  ;;  %v284_v15 = vld [vmem:[%s474_s2] ss:$0 sm:$0xff] }
   0x5   :  { %317 = vmatprep.mubr.msk.bf16.mxu0 %vm53_vm0, %v26_v5  ;;  %v29_v13 = vpack.c.bf16 %v25_v11, %v24_v10 }
   0x6   :  { %321 = vmatprep.mubr.msk.bf16.mxu1 %vm53_vm0, %v28_v9 }
   0x7   :  { %316 = vmatpush3.bf16.msra.mxu0 %v331_v1  ;;  %328 = vmatpush3.bf16.msra.mxu1 %v331_v1 }
   0xa   :  { %318 = vmatmul.mubr.msk.bf16.vlgmr.msra.gmra.mrb[0].mxu0 %vm53_vm0, %v27_v12  ;;  %322 = vmatmul.mubr.msk.bf16.vlgmr.msra.gmra.mrb[0].mxu1 %vm53_vm0, %v29_v13 }
  0xdd   :  { %v319_v16 = vpop.f32.mrb[0].mxu0  ;;  %v323_v17 = vpop.f32.mrb[0].mxu1 }
  0xde   :  { %v109_v18 = vadd.f32 %v319_v16, %v284_v15  ;;  %v100_v19 = vpop.f32.mrb[1].mxu0  ;;  %v116_v20 = vpop.f32.mrb[1].mxu1  ;;  %v125_v27 = vadd.f32 %v323_v17, %v284_v15 }
  0xdf   :  { %v101_v21 = vadd.f32 %v284_v15, %v100_v19  ;;  %v320_v22 = vpop.f32.mrb[2].mxu0  ;;  %v324_v23 = vpop.f32.mrb[2].mxu1  ;;  %v117_v32 = vadd.f32 %v284_v15, %v116_v20 }
  0xe0   :  { %v301_v24 = vpack.c.bf16 %v109_v18, %v109_v18  ;;  %v112_v25 = vadd.f32 %v320_v22, %v284_v15  ;;  %v103_v26 = vpop.f32.mrb[3].mxu0  ;;  %v119_v28 = vpop.f32.mrb[3].mxu1  ;;  %v243_v33 = vmul.f32 %v109_v18, %v109_v18  ;;  %v219_v39 = vsel %vm215_vm3, %v109_v18, 0.0 }
  0xe1   :  { %v299_v29 = vpack.c.bf16 %v101_v21, %v101_v21  ;;  %v241_v30 = vmul.f32 %v101_v21, %v101_v21  ;;  %v104_v31 = vadd.f32 %v284_v15, %v103_v26  ;;  %v216_v35 = vsel %vm215_vm3, %v101_v21, 0.0  ;;  %v240_v26 = vld [vmem:[%s473_s5] sm:$0x1] }
  0xe2   :  { %166 = vst.msk [vmem:[%s475_s3 + $0x8] sm:$0xf] %vm163_vm2, %v301_v24  ;;  %v302_v34 = vpack.c.bf16 %v112_v25, %v112_v25  ;;  %v305_v41 = vpack.c.bf16 %v125_v27, %v125_v27  ;;  %v244_v43 = vmul.f32 %v112_v25, %v112_v25  ;;  %v303_v45 = vpack.c.bf16 %v117_v32, %v117_v32 }
  0xe3   :  { %164 = vst.msk [vmem:[%s475_s3] sm:$0xf] %vm163_vm2, %v299_v29  ;;  %v300_v36 = vpack.c.bf16 %v104_v31, %v104_v31  ;;  %v217_v37 = vsel %vm215_vm3, %v104_v31, 0.0  ;;  %v242_v38 = vmul.f32 %v104_v31, %v104_v31  ;;  %v249_v42 = vsel %vm215_vm3, %v241_v30, 0.0 }
  0xe4   :  { %167 = vst.msk [vmem:[%s475_s3 + $0xc] sm:$0xf] %vm163_vm2, %v302_v34  ;;  %v218_v40 = vadd.f32 %v217_v37, %v216_v35  ;;  %170 = vst.msk [vmem:[%s475_s3 + $0x18] sm:$0xf] %vm163_vm2, %v305_v41  ;;  %v245_v48 = vmul.f32 %v117_v32, %v117_v32  ;;  %v128_v49 = vadd.f32 %v324_v23, %v284_v15  ;;  %v252_v50 = vsel %vm215_vm3, %v243_v33, 0.0 }
  0xe5   :  { %165 = vst.msk [vmem:[%s475_s3 + $0x4] sm:$0xf] %vm163_vm2, %v300_v36  ;;  %v250_v44 = vsel %vm215_vm3, %v242_v38, 0.0  ;;  %v221_v51 = vsel %vm215_vm3, %v112_v25, 0.0  ;;  %168 = vst.msk [vmem:[%s475_s3 + $0x10] sm:$0xf] %vm163_vm2, %v303_v45  ;;  %v120_v53 = vadd.f32 %v284_v15, %v119_v28  ;;  %v247_v63 = vmul.f32 %v125_v27, %v125_v27 }
  0xe6   :  { %v220_v46 = vadd.f32 %v219_v39, %v218_v40  ;;  %v251_v47 = vadd.f32 %v250_v44, %v249_v42  ;;  %v223_v52 = vsel %vm215_vm3, %v117_v32, 0.0  ;;  %v306_v56 = vpack.c.bf16 %v128_v49, %v128_v49  ;;  %v214_v23 = vld [vmem:[%s472_s4] sm:$0x1] }
  0xe7   :  { %v254_v57 = vsel %vm215_vm3, %v244_v43, 0.0  ;;  %v256_v58 = vsel %vm215_vm3, %v245_v48, 0.0  ;;  %v304_v59 = vpack.c.bf16 %v120_v53, %v120_v53  ;;  %v246_v62 = vmul.f32 %v120_v53, %v120_v53 }
  0xe8   :  { %v253_v54 = vadd.f32 %v252_v50, %v251_v47  ;;  %v222_v55 = vadd.f32 %v221_v51, %v220_v46  ;;  %171 = vst.msk [vmem:[%s475_s3 + $0x1c] sm:$0xf] %vm163_vm2, %v306_v56  ;;  %v225_v0 = vsel %vm215_vm3, %v120_v53, 0.0  ;;  %v227_v3 = vsel %vm215_vm3, %v125_v27, 0.0 }
  0xe9   :  { %169 = vst.msk [vmem:[%s475_s3 + $0x14] sm:$0xf] %vm163_vm2, %v304_v59  ;;  %v248_v4 = vmul.f32 %v128_v49, %v128_v49  ;;  %v258_v5 = vsel %vm215_vm3, %v246_v62, 0.0  ;;  %v260_v8 = vsel %vm215_vm3, %v247_v63, 0.0  ;;  %v229_v9 = vsel %vm215_vm3, %v128_v49, 0.0 }
  0xea   :  { %v224_v60 = vadd.f32 %v223_v52, %v222_v55  ;;  %v255_v61 = vadd.f32 %v254_v57, %v253_v54 }
  0xeb   :  { %v262_v12 = vsel %vm215_vm3, %v248_v4, 0.0 }
  0xec   :  { %v257_v1 = vadd.f32 %v256_v58, %v255_v61  ;;  %v226_v2 = vadd.f32 %v225_v0, %v224_v60 }
  0xee   :  { %v228_v6 = vadd.f32 %v227_v3, %v226_v2  ;;  %v259_v7 = vadd.f32 %v258_v5, %v257_v1 }
  0xf0   :  { %v230_v10 = vadd.f32 %v229_v9, %v228_v6  ;;  %v261_v11 = vadd.f32 %v260_v8, %v259_v7 }
  0xf2   :  { %v231_v13 = vrot.slane %v230_v10, 4  ;;  %v263_v14 = vadd.f32 %v262_v12, %v261_v11 }
  0xf4   :  { %v232_v15 = vadd.f32 %v231_v13, %v230_v10  ;;  %v264_v16 = vrot.slane %v263_v14, 4 }
  0xf6   :  { %v233_v17 = vrot.slane %v232_v15, 2  ;;  %v265_v18 = vadd.f32 %v264_v16, %v263_v14 }
  0xf8   :  { %v234_v19 = vadd.f32 %v233_v17, %v232_v15  ;;  %v266_v20 = vrot.slane %v265_v18, 2 }
  0xfa   :  { %v235_v21 = vrot.slane %v234_v19, 1  ;;  %v267_v22 = vadd.f32 %v266_v20, %v265_v18 }
  0xfc   :  { %v236_v24 = vadd.f32 %v235_v21, %v234_v19  ;;  %v268_v25 = vrot.slane %v267_v22, 1 }
  0xfe   :  { %v237_v27 = vadd.f32 %v236_v24, %v214_v23  ;;  %v269_v28 = vadd.f32 %v268_v25, %v267_v22 }
 0x100   :  { %239 = vst.msk [vmem:[%s472_s4] sm:$0x1] %vm176_vm1, %v237_v27  ;;  %v270_v29 = vadd.f32 %v269_v28, %v240_v26 }
 0x102   :  { %271 = vst.msk [vmem:[%s473_s5] sm:$0x1] %vm176_vm1, %v270_v29 }

// kernel: neg.8
= control target key start
LH: loop header
LB: loop body
LE: loop exit
PB: predicated region body
PF: predicated region fallthrough
CT: control target
= control target key end

     0   :  { %s24_s0 = inlined_call_operand.vmem [shape: f32[7,64], index: 0, kind: input, shape index: {}]   ;;  %s25_s1 = inlined_call_operand.vmem [shape: f32[7,64], index: 1, kind: output, shape index: {}]  }
   0x1   :  { %v2_v0 = vld [vmem:[%s24_s0] sm:$0x7f] }
   0x2   :  { %v5_v1 = vxor.u32 2147483648, %v2_v0 }
   0x4   :  { %7 = vst [vmem:[%s25_s1] sm:$0xff] %v5_v1 }

// kernel: segmentation_gnn_forward.22
= control target key start
LH: loop header
LB: loop body
LE: loop exit
PB: predicated region body
PF: predicated region fallthrough
CT: control target
= control target key end

     0   :  { %v3675_v0 = vmov 33   ;;  %v3676_v1 = vmov 32   ;;  %v3677_v18 = vmov 34   ;;  %vm1001_vm0 = vcmask 523264   ;;  %s4899_s0 = inlined_call_operand.vmem [shape: bf16[5,64,35], index: 0, kind: input, shape index: {}]   ;;  %s4900_s4 = inlined_call_operand.vmem [shape: bf16[64,32], index: 4, kind: input, shape index: {}]   ;;  %s4901_s2 = inlined_call_operand.vmem [shape: f32[3,64], index: 2, kind: input, shape index: {}]   ;;  %s4902_s3 = inlined_call_operand.vmem [shape: f32[1,64], index: 3, kind: input, shape index: {}]   ;;  %s4903_s6 = inlined_call_operand.vmem [shape: bf16[32,64], index: 6, kind: input, shape index: {}]   ;;  %s4904_s1 = inlined_call_operand.vmem [shape: bf16[5,64,32], index: 1, kind: input, shape index: {}]   ;;  %s4905_s5 = inlined_call_operand.vmem [shape: f32[1,32], index: 5, kind: input, shape index: {}]   ;;  %s4906_s8 = inlined_call_operand.vmem [shape: bf16[64,32], index: 8, kind: input, shape index: {}]   ;;  %s4907_s7 = inlined_call_operand.vmem [shape: f32[1,64], index: 7, kind: input, shape index: {}]   ;;  %s4908_s9 = inlined_call_operand.vmem [shape: f32[1,32], index: 9, kind: input, shape index: {}]   ;;  %s4909_s10 = inlined_call_operand.vmem [shape: bf16[32,32], index: 10, kind: input, shape index: {}]   ;;  %s4910_s11 = inlined_call_operand.vmem [shape: f32[1,32], index: 11, kind: input, shape index: {}]   ;;  %s4911_s12 = inlined_call_operand.vmem [shape: f32[64,32], index: 12, kind: output, shape index: {}]  }
   0x1   :  { %3230 = vset.pattern.permute.xlu0 %v3675_v0  ;;  %3242 = vset.pattern.permute.xlu1 %v3676_v1  ;;  %v3748_v2 = vld [vmem:[%s4899_s0 + $0x8] sm:$0xff]   ;;  %v3753_v3 = vld [vmem:[%s4899_s0] sm:$0xff]   ;;  %v3770_v10 = vld [vmem:[%s4899_s0 + $0x18] sm:$0xff]   ;;  %vm1415_vm1 = vcmask 261120  }
   0x2   :  { %v2803_v4 = vunpack.c.l.bf16 %v3748_v2  ;;  %v2804_v5 = vunpack.c.h.bf16 %v3748_v2  ;;  %v2799_v6 = vunpack.c.l.bf16 %v3753_v3  ;;  %v2800_v7 = vunpack.c.h.bf16 %v3753_v3  ;;  %v3779_v13 = vld [vmem:[%s4899_s0 + $0x10] sm:$0xff]   ;;  %v3567_v17 = vld [vmem:[%s4900_s4] sm:$0xff]   ;;  %v3798_v20 = vld [vmem:[%s4899_s0 + $0x28] sm:$0xff]  }
   0x3   :  { %v2811_v11 = vunpack.c.l.bf16 %v3770_v10  ;;  %v2812_v12 = vunpack.c.h.bf16 %v3770_v10  ;;  %v2807_v15 = vunpack.c.l.bf16 %v3779_v13  ;;  %v2808_v16 = vunpack.c.h.bf16 %v3779_v13  ;;  %3071 = vmatprep.subr.bf16.mxu0 %v3567_v17  ;;  %v3568_v21 = vld [vmem:[%s4900_s4 + $0x8] sm:$0xff]   ;;  %v3810_v24 = vld [vmem:[%s4899_s0 + $0x38] sm:$0xff]   ;;  %v3569_v25 = vld [vmem:[%s4900_s4 + $0x10] sm:$0xff]  }
   0x4   :  { %v3243_v8 = vpack.i.bf16 %v2804_v5, %v2803_v4  ;;  %v3231_v9 = vpack.i.bf16 %v2800_v7, %v2799_v6  ;;  %3072 = vmatpush3.bf16.msra.mxu0 %v3567_v17  ;;  %v2819_v22 = vunpack.c.l.bf16 %v3798_v20  ;;  %v4940_v23 = vunpack.c.h.bf16 %v3798_v20  ;;  %v3825_v29 = vld [vmem:[%s4899_s0 + $0x48] sm:$0xff]   ;;  %v3570_v30 = vld [vmem:[%s4900_s4 + $0x18] sm:$0xff]   ;;  %v3839_v34 = vld [vmem:[%s4899_s0 + $0x20] sm:$0xff]  }
   0x5   :  { %v3272_v14 = vpack.i.bf16 %v2812_v12, %v2811_v11  ;;  %v3261_v19 = vpack.i.bf16 %v2808_v16, %v2807_v15  ;;  %3073 = vmatprep.subr.bf16.mxu0 %v3568_v21  ;;  %v4937_v27 = vunpack.c.l.bf16 %v3810_v24  ;;  %v4934_v28 = vunpack.c.h.bf16 %v3810_v24  ;;  %v3860_v39 = vld [vmem:[%s4899_s0 + $0x58] sm:$0xff]   ;;  %v3868_v42 = vld [vmem:[%s4899_s0 + $0x68] sm:$0xff]   ;;  %v3873_v43 = vld [vmem:[%s4899_s0 + $0x30] sm:$0xff]  }
   0x6   :  { %3244 = vperm.xlu1 %3242, %v3243_v8   ;;  %3232 = vperm.xlu0 %3230, %v3231_v9   ;;  %v3322_v26 = vpack.i.bf16 %v4940_v23, %v2819_v22  ;;  %v4931_v32 = vunpack.c.l.bf16 %v3825_v29  ;;  %v4930_v33 = vunpack.c.h.bf16 %v3825_v29  ;;  %v4939_v35 = vunpack.c.l.bf16 %v3839_v34  ;;  %v3885_v47 = vld [vmem:[%s4899_s0 + $0x78] sm:$0xff]   ;;  %v3916_v55 = vld [vmem:[%s4899_s0 + $0x40] sm:$0xff]   ;;  %v3921_v56 = vld [vmem:[%s4899_s0 + $0x88] sm:$0xff]  }
   0x7   :  { %v3350_v31 = vpack.i.bf16 %v4934_v28, %v4937_v27  ;;  %v4938_v36 = vunpack.c.h.bf16 %v3839_v34  ;;  %v4927_v40 = vunpack.c.l.bf16 %v3860_v39  ;;  %v4926_v41 = vunpack.c.h.bf16 %v3860_v39  ;;  %v3943_v63 = vld [vmem:[%s4899_s0 + $0x98] sm:$0xff]   ;;  %v3961_v17 = vld [vmem:[%s4899_s0 + $0x50] sm:$0xff]   ;;  %v2980_v10 = vld [vmem:[%s4904_s1 + $0x28] sm:$0xff]  }
   0x8   :  { %3074 = vmatpush3.bf16.msra.mxu0 %v3568_v21  ;;  %v3847_v37 = vpack.i.bf16 %v4930_v33, %v4931_v32  ;;  %v4921_v45 = vunpack.c.l.bf16 %v3868_v42  ;;  %v4920_v46 = vunpack.c.h.bf16 %v3868_v42  ;;  %v4933_v48 = vunpack.c.l.bf16 %v3873_v43  ;;  %v2978_v2 = vld [vmem:[%s4904_s1 + $0x18] sm:$0xff]  }
   0x9   :  { %3075 = vmatprep.subr.bf16.mxu0 %v3569_v25  ;;  %v3300_v38 = vpack.i.bf16 %v4938_v36, %v4939_v35  ;;  %v3411_v44 = vpack.i.bf16 %v4926_v41, %v4927_v40  ;;  %v4932_v49 = vunpack.c.h.bf16 %v3873_v43  ;;  %v4917_v51 = vunpack.c.l.bf16 %v3885_v47 }
   0xa   :  { %3248 = vset.pattern.permute.xlu1 %v3675_v0  ;;  %3236 = vset.pattern.permute.xlu0 %v3676_v1  ;;  %v3894_v50 = vpack.i.bf16 %v4920_v46, %v4921_v45  ;;  %v4916_v52 = vunpack.c.h.bf16 %v3885_v47  ;;  %v4929_v57 = vunpack.c.l.bf16 %v3916_v55  ;;  %v4928_v58 = vunpack.c.h.bf16 %v3916_v55 }
   0xb   :  { %3250 = vperm.xlu1 %3248, %v3243_v8   ;;  %3238 = vperm.xlu0 %3236, %v3231_v9   ;;  %v3328_v53 = vpack.i.bf16 %v4932_v49, %v4933_v48  ;;  %v4915_v59 = vunpack.c.l.bf16 %v3921_v56  ;;  %v4914_v60 = vunpack.c.h.bf16 %v3921_v56  ;;  %v4924_v21 = vunpack.c.h.bf16 %v3961_v17 }
   0xc   :  { %3076 = vmatpush3.bf16.msra.mxu0 %v3569_v25  ;;  %v3907_v54 = vpack.i.bf16 %v4916_v52, %v4917_v51  ;;  %v3356_v61 = vpack.i.bf16 %v4928_v58, %v4929_v57  ;;  %v122_v52 = vld [vmem:[%s4901_s2] sm:$0x7] }
   0xd   :  { %3077 = vmatprep.subr.bf16.mxu0 %v3570_v30  ;;  %v3938_v62 = vpack.i.bf16 %v4914_v60, %v4915_v59 }
   0xf   :  { %3254 = vset.pattern.permute.xlu1 %v3677_v18  ;;  %3273 = vperm.xlu0 %3236, %v3272_v14  }
  0x10   :  { %3256 = vperm.xlu1 %3254, %v3231_v9   ;;  %3078 = vmatpush3.bf16.msra.mxu0 %v3570_v30  ;;  %v4912_v9 = vunpack.c.h.bf16 %v3943_v63 }
  0x13   :  { %3277 = vset.pattern.permute.xlu0 %v3677_v18 }
  0x14   :  { %3260 = vset.pattern.permute.xlu1 %v3676_v1  ;;  %3279 = vperm.xlu0 %3277, %v3243_v8   ;;  %v4913_v8 = vunpack.c.l.bf16 %v3943_v63 }
  0x15   :  { %3262 = vperm.xlu1 %3260, %v3261_v19  }
  0x18   :  { %3295 = vperm.xlu0 %3277, %v3272_v14  }
  0x19   :  { %3266 = vset.pattern.permute.xlu1 %v3675_v0 }
  0x1a   :  { %3268 = vperm.xlu1 %3266, %v3261_v19  }
  0x1c   :  { %3323 = vperm.xlu0 %3277, %v3322_v26  }
  0x1e   :  { %3284 = vperm.xlu1 %3266, %v3272_v14   ;;  %v3956_v14 = vpack.i.bf16 %v4912_v9, %v4913_v8 }
  0x20   :  { %3351 = vperm.xlu0 %3277, %v3350_v31  }
  0x22   :  { %3288 = vset.pattern.permute.xlu1 %v3677_v18 }
  0x23   :  { %3290 = vperm.xlu1 %3288, %v3261_v19   ;;  %v4925_v19 = vunpack.c.l.bf16 %v3961_v17 }
  0x24   :  { %3379 = vperm.xlu0 %3277, %v3847_v37  }
  0x25   :  { %v3400_v25 = vpack.i.bf16 %v4924_v21, %v4925_v19 }
  0x27   :  { %3299 = vset.pattern.permute.xlu1 %v3676_v1 }
  0x28   :  { %3301 = vperm.xlu1 %3299, %v3300_v38   ;;  %3383 = vset.pattern.permute.xlu0 %v3676_v1 }
  0x29   :  { %3385 = vperm.xlu0 %3383, %v3322_v26  }
  0x2c   :  { %3305 = vset.pattern.permute.xlu1 %v3675_v0 }
  0x2d   :  { %3307 = vperm.xlu1 %3305, %v3300_v38   ;;  %3390 = vperm.xlu0 %3383, %v3350_v31  }
  0x31   :  { %3312 = vperm.xlu1 %3305, %v3322_v26   ;;  %3395 = vperm.xlu0 %3383, %v3847_v37   ;;  %v3979_v26 = vld [vmem:[%s4899_s0 + $0x60] sm:$0xff]  }
  0x32   :  { %v4919_v30 = vunpack.c.l.bf16 %v3979_v26 }
  0x35   :  { %3316 = vset.pattern.permute.xlu1 %v3677_v18  ;;  %3412 = vperm.xlu0 %3383, %v3411_v44  }
  0x36   :  { %3318 = vperm.xlu1 %3316, %v3300_v38   ;;  %v3993_v38 = vld [vmem:[%s4899_s0 + $0x70] sm:$0xff]  }
  0x39   :  { %3440 = vperm.xlu0 %3383, %v3894_v50  }
  0x3a   :  { %3327 = vset.pattern.permute.xlu1 %v3676_v1 }
  0x3b   :  { %3329 = vperm.xlu1 %3327, %v3328_v53  }
  0x3d   :  { %3468 = vperm.xlu0 %3383, %v3907_v54  }
  0x3f   :  { %3333 = vset.pattern.permute.xlu1 %v3675_v0 }
  0x40   :  { %3335 = vperm.xlu1 %3333, %v3328_v53  }
  0x41   :  { %3472 = vset.pattern.permute.xlu0 %v3677_v18 }
  0x42   :  { %3474 = vperm.xlu0 %3472, %v3411_v44  }
  0x44   :  { %3340 = vperm.xlu1 %3333, %v3350_v31   ;;  %v4918_v31 = vunpack.c.h.bf16 %v3979_v26 }
  0x46   :  { %3479 = vperm.xlu0 %3472, %v3894_v50  }
  0x48   :  { %3344 = vset.pattern.permute.xlu1 %v3677_v18 }
  0x49   :  { %3346 = vperm.xlu1 %3344, %v3328_v53   ;;  %v4923_v53 = vunpack.c.l.bf16 %v3993_v38 }
  0x4a   :  { %3495 = vperm.xlu0 %3472, %v3907_v54  }
  0x4d   :  { %3355 = vset.pattern.permute.xlu1 %v3676_v1 }
  0x4e   :  { %3357 = vperm.xlu1 %3355, %v3356_v61   ;;  %3523 = vperm.xlu0 %3472, %v3938_v62  }
  0x52   :  { %3361 = vset.pattern.permute.xlu1 %v3675_v0  ;;  %3527 = vset.pattern.permute.xlu0 %v3676_v1 }
  0x53   :  { %3363 = vperm.xlu1 %3361, %v3356_v61   ;;  %3529 = vperm.xlu0 %3527, %v3938_v62  }
  0x57   :  { %3368 = vperm.xlu1 %3361, %v3847_v37   ;;  %3546 = vperm.xlu0 %3527, %v3956_v14   ;;  %v3428_v37 = vpack.i.bf16 %v4918_v31, %v4919_v30 }
  0x5b   :  { %3372 = vset.pattern.permute.xlu1 %v3677_v18  ;;  %3561 = vset.pattern.permute.xlu0 %v3677_v18 }
  0x5c   :  { %3374 = vperm.xlu1 %3372, %v3356_v61   ;;  %3563 = vperm.xlu0 %3561, %v3956_v14   ;;  %v4922_v61 = vunpack.c.h.bf16 %v3993_v38 }
  0x5e   :  { %v3456_v9 = vpack.i.bf16 %v4922_v61, %v4923_v53 }
  0x60   :  { %3399 = vset.pattern.permute.xlu1 %v3676_v1 }
  0x61   :  { %3401 = vperm.xlu1 %3399, %v3400_v25  }
  0x65   :  { %3405 = vset.pattern.permute.xlu1 %v3675_v0 }
  0x66   :  { %3407 = vperm.xlu1 %3405, %v3400_v25  }
  0x6a   :  { %3417 = vperm.xlu1 %3405, %v3411_v44   ;;  %v323_v44 = vlaneseq }
  0x6e   :  { %3421 = vset.pattern.permute.xlu1 %v3677_v18 }
  0x6f   :  { %3423 = vperm.xlu1 %3421, %v3400_v25   ;;  %v324_v25 = vshrl.u32 %v323_v44, 7 }
  0x71   :  { %v529_v59 = vsub.s32 1, %v324_v25  ;;  %v773_v46 = vsub.s32 2, %v324_v25 }
  0x73   :  { %3427 = vset.pattern.permute.xlu1 %v3676_v1  ;;  %v4016_v58 = vrot.slane %v122_v52, %v773_v46 }
  0x74   :  { %3429 = vperm.xlu1 %3427, %v3428_v37  }
  0x78   :  { %3433 = vset.pattern.permute.xlu1 %v3675_v0 }
  0x79   :  { %3435 = vperm.xlu1 %3433, %v3428_v37  }
  0x7d   :  { %3445 = vperm.xlu1 %3433, %v3894_v50   ;;  %v325_v50 = vsub.s32 0, %v324_v25 }
  0x7f   :  { %v4009_v45 = vrot.slane %v122_v52, %v325_v50  ;;  %v4021_v50 = vld [vmem:[%s4899_s0 + $0x80] sm:$0xff]  }
  0x81   :  { %3449 = vset.pattern.permute.xlu1 %v3677_v18 }
  0x82   :  { %3451 = vperm.xlu1 %3449, %v3428_v37   ;;  %v4007_v37 = vrot.slane %v122_v52, %v529_v59  ;;  %v4936_v52 = vunpack.c.l.bf16 %v4021_v50 }
  0x85   :  { %v3245_v8 = vpop.permute.xlu1 %3244  ;;  %v3233_v60 = vpop.permute.xlu0 %3232 }
  0x86   :  { %3455 = vset.pattern.permute.xlu1 %v3676_v1  ;;  %v3235_v51 = vunpack.i.h.bf16 %v3233_v60  ;;  %v3234_v31 = vunpack.i.l.bf16 %v3233_v60  ;;  %v3246_v57 = vunpack.i.l.bf16 %v3245_v8 }
  0x87   :  { %3457 = vperm.xlu1 %3455, %v3456_v9  }
  0x88   :  { %v532_v21 = vmul.f32 %v3235_v51, %v4007_v37  ;;  %v531_v19 = vmul.f32 %v3234_v31, %v4007_v37 }
  0x8a   :  { %v3251_v44 = vpop.permute.xlu1 %3250  ;;  %v3239_v30 = vpop.permute.xlu0 %3238 }
  0x8b   :  { %3461 = vset.pattern.permute.xlu1 %v3675_v0  ;;  %v3241_v61 = vunpack.i.h.bf16 %v3239_v30  ;;  %v3240_v53 = vunpack.i.l.bf16 %v3239_v30  ;;  %v3253_v41 = vunpack.i.h.bf16 %v3251_v44  ;;  %v3252_v40 = vunpack.i.l.bf16 %v3251_v44 }
  0x8c   :  { %3463 = vperm.xlu1 %3461, %v3456_v9   ;;  %v3247_v30 = vunpack.i.h.bf16 %v3245_v8 }
  0x8d   :  { %v328_v60 = vmul.f32 %v3241_v61, %v4009_v45  ;;  %v327_v59 = vmul.f32 %v3240_v53, %v4009_v45  ;;  %v534_v61 = vmul.f32 %v3253_v41, %v4007_v37  ;;  %v533_v46 = vmul.f32 %v3252_v40, %v4007_v37 }
  0x8e   :  { %v3274_v25 = vpop.permute.xlu0 %3273  ;;  %v4935_v53 = vunpack.c.h.bf16 %v4021_v50  ;;  %v330_v8 = vmul.f32 %v3247_v30, %v4009_v45 }
  0x8f   :  { %v3257_v51 = vpop.permute.xlu1 %3256  ;;  %v571_v33 = vadd.f32 %v531_v19, %v327_v59  ;;  %v572_v31 = vadd.f32 %v532_v21, %v328_v60  ;;  %v329_v19 = vmul.f32 %v3246_v57, %v4009_v45 }
  0x90   :  { %v3259_v32 = vunpack.i.h.bf16 %v3257_v51  ;;  %v3258_v49 = vunpack.i.l.bf16 %v3257_v51  ;;  %3484 = vperm.xlu1 %3461, %v3907_v54   ;;  %v4035_v54 = vld [vmem:[%s4902_s3] ss:$0 sm:$0xff]  ;;  %v574_v28 = vadd.f32 %v534_v61, %v330_v8  ;;  %v3276_v8 = vunpack.i.h.bf16 %v3274_v25 }
  0x92   :  { %v776_v44 = vmul.f32 %v3259_v32, %v4016_v58  ;;  %v775_v48 = vmul.f32 %v3258_v49, %v4016_v58  ;;  %v573_v32 = vadd.f32 %v533_v46, %v329_v19  ;;  %v4042_v49 = vpack.i.bf16 %v4935_v53, %v4936_v52 }
  0x93   :  { %v3280_v41 = vpop.permute.xlu0 %3279  ;;  %v3275_v19 = vunpack.i.l.bf16 %v3274_v25  ;;  %v334_v25 = vmul.f32 %v3276_v8, %v4009_v45 }
  0x94   :  { %v815_v21 = vadd.f32 %v775_v48, %v571_v33  ;;  %v816_v40 = vadd.f32 %v776_v44, %v572_v31  ;;  %v3282_v60 = vunpack.i.h.bf16 %v3280_v41  ;;  %v3281_v59 = vunpack.i.l.bf16 %v3280_v41  ;;  %3488 = vset.pattern.permute.xlu1 %v3677_v18  ;;  %v3263_v51 = vpop.permute.xlu1 %3262 }
  0x95   :  { %3490 = vperm.xlu1 %3488, %v3456_v9  }
  0x96   :  { %v778_v57 = vmul.f32 %v3282_v60, %v4016_v58  ;;  %v777_v30 = vmul.f32 %v3281_v59, %v4016_v58  ;;  %v862_v33 = vadd.f32 %v4035_v54, %v815_v21  ;;  %v863_v48 = vadd.f32 %v4035_v54, %v816_v40 }
  0x97   :  { %v3296_v31 = vpop.permute.xlu0 %3295 }
  0x98   :  { %v818_v44 = vadd.f32 %v778_v57, %v574_v28  ;;  %v817_v41 = vadd.f32 %v777_v30, %v573_v32  ;;  %v902_v46 = vmax.f32 %v862_v33, 0.0  ;;  %v903_v61 = vmax.f32 %v863_v48, 0.0 }
  0x99   :  { %3499 = vset.pattern.permute.xlu1 %v3676_v1  ;;  %v3269_v9 = vpop.permute.xlu1 %3268  ;;  %v3298_v32 = vunpack.i.h.bf16 %v3296_v31  ;;  %v3297_v57 = vunpack.i.l.bf16 %v3296_v31 }
  0x9a   :  { %v865_v53 = vadd.f32 %v4035_v54, %v818_v44  ;;  %v864_v60 = vadd.f32 %v4035_v54, %v817_v41  ;;  %3501 = vperm.xlu1 %3499, %v4042_v49   ;;  %v942_v21 = vpack.c.bf16 %v903_v61, %v902_v46  ;;  %v3271_v30 = vunpack.i.h.bf16 %v3269_v9 }
  0x9b   :  { %v4052_v59 = vpop.permute.xlu0 %3323  ;;  %v3270_v33 = vunpack.i.l.bf16 %v3269_v9  ;;  %v333_v44 = vmul.f32 %v3275_v19, %v4009_v45  ;;  %v3265_v46 = vunpack.i.h.bf16 %v3263_v51  ;;  %v3264_v61 = vunpack.i.l.bf16 %v3263_v51  ;;  %v4071_v51 = vld [vmem:[%s4899_s0 + $0x90] sm:$0xff]  }
  0x9c   :  { %v905_v40 = vmax.f32 %v865_v53, 0.0  ;;  %v904_v28 = vmax.f32 %v864_v60, 0.0  ;;  %3079 = vmatprep.mubr.msk.bf16.mxu0 %vm1001_vm0, %v942_v21  ;;  %v782_v21 = vmul.f32 %v3298_v32, %v4016_v58  ;;  %v781_v8 = vmul.f32 %v3297_v57, %v4016_v58 }
  0x9d   :  { %v3285_v48 = vpop.permute.xlu1 %3284  ;;  %v536_v19 = vmul.f32 %v3271_v30, %v4007_v37  ;;  %v331_v32 = vmul.f32 %v3264_v61, %v4009_v45  ;;  %v2872_v35 = vunpack.c.h.bf16 %v4071_v51 }
  0x9e   :  { %v3287_v52 = vunpack.i.h.bf16 %v3285_v48  ;;  %v3286_v41 = vunpack.i.l.bf16 %v3285_v48  ;;  %3505 = vset.pattern.permute.xlu1 %v3675_v0  ;;  %v943_v53 = vpack.c.bf16 %v905_v40, %v904_v28  ;;  %v535_v48 = vmul.f32 %v3270_v33, %v4007_v37 }
  0x9f   :  { %3507 = vperm.xlu1 %3505, %v4042_v49   ;;  %v4059_v60 = vpop.permute.xlu0 %3351 }
  0xa0   :  { %v538_v31 = vmul.f32 %v3287_v52, %v4007_v37  ;;  %v537_v9 = vmul.f32 %v3286_v41, %v4007_v37  ;;  %3080 = vmatmul.mubr.msk.bf16.vlgmr.msra.gmra.mrb[0].mxu0 %vm1001_vm0, %v943_v53  ;;  %v332_v41 = vmul.f32 %v3265_v46, %v4009_v45  ;;  %v2871_v53 = vunpack.c.l.bf16 %v4071_v51 }
  0xa1   :  { %v575_v23 = vadd.f32 %v535_v48, %v331_v32 }
  0xa2   :  { %v577_v40 = vadd.f32 %v537_v9, %v333_v44  ;;  %v578_v28 = vadd.f32 %v538_v31, %v334_v25  ;;  %v3291_v52 = vpop.permute.xlu1 %3290  ;;  %v576_v44 = vadd.f32 %v536_v19, %v332_v41 }
  0xa3   :  { %v3293_v27 = vunpack.i.h.bf16 %v3291_v52  ;;  %v3292_v57 = vunpack.i.l.bf16 %v3291_v52  ;;  %3512 = vperm.xlu1 %3505, %v3938_v62   ;;  %v4076_v36 = vpop.permute.xlu0 %3379 }
  0xa4   :  { %v821_v30 = vadd.f32 %v781_v8, %v577_v40  ;;  %v822_v33 = vadd.f32 %v782_v21, %v578_v28 }
  0xa5   :  { %v780_v25 = vmul.f32 %v3293_v27, %v4016_v58  ;;  %v779_v46 = vmul.f32 %v3292_v57, %v4016_v58  ;;  %v3534_v27 = vpack.i.bf16 %v2872_v35, %v2871_v53 }
  0xa6   :  { %v868_v61 = vadd.f32 %v4035_v54, %v821_v30  ;;  %v869_v31 = vadd.f32 %v4035_v54, %v822_v33  ;;  %v3326_v33 = vunpack.i.h.bf16 %v4052_v59 }
  0xa7   :  { %v819_v9 = vadd.f32 %v779_v46, %v575_v23  ;;  %v820_v62 = vadd.f32 %v780_v25, %v576_v44  ;;  %3516 = vset.pattern.permute.xlu1 %v3677_v18  ;;  %v3302_v21 = vpop.permute.xlu1 %3301  ;;  %v3325_v44 = vunpack.i.l.bf16 %v4052_v59 }
  0xa8   :  { %3518 = vperm.xlu1 %3516, %v4042_v49   ;;  %v908_v19 = vmax.f32 %v868_v61, 0.0  ;;  %v909_v40 = vmax.f32 %v869_v31, 0.0  ;;  %v3386_v28 = vpop.permute.xlu0 %3385  ;;  %v786_v59 = vmul.f32 %v3326_v33, %v4016_v58 }
  0xa9   :  { %v866_v8 = vadd.f32 %v4035_v54, %v819_v9  ;;  %v867_v48 = vadd.f32 %v4035_v54, %v820_v62  ;;  %v3388_v49 = vunpack.i.h.bf16 %v3386_v28  ;;  %v3387_v57 = vunpack.i.l.bf16 %v3386_v28 }
  0xaa   :  { %v945_v30 = vpack.c.bf16 %v909_v40, %v908_v19  ;;  %v785_v19 = vmul.f32 %v3325_v44, %v4016_v58 }
  0xab   :  { %v906_v52 = vmax.f32 %v866_v8, 0.0  ;;  %v907_v23 = vmax.f32 %v867_v48, 0.0  ;;  %v337_v62 = vmul.f32 %v3387_v57, %v4009_v45  ;;  %v3304_v8 = vunpack.i.h.bf16 %v3302_v21 }
  0xac   :  { %3533 = vset.pattern.permute.xlu1 %v3676_v1  ;;  %v3308_v41 = vpop.permute.xlu1 %3307  ;;  %v338_v1 = vmul.f32 %v3388_v49, %v4009_v45  ;;  %v3303_v48 = vunpack.i.l.bf16 %v3302_v21 }
  0xad   :  { %3535 = vperm.xlu1 %3533, %v3534_v27   ;;  %v944_v32 = vpack.c.bf16 %v907_v23, %v906_v52  ;;  %v3310_v25 = vunpack.i.h.bf16 %v3308_v41  ;;  %v3309_v46 = vunpack.i.l.bf16 %v3308_v41 }
  0xae   :  { %v335_v21 = vmul.f32 %v3303_v48, %v4009_v45 }
  0xaf   :  { %3083 = vmatprep.mubr.msk.bf16.mxu0 %vm1001_vm0, %v944_v32  ;;  %v540_v52 = vmul.f32 %v3310_v25, %v4007_v37  ;;  %v539_v23 = vmul.f32 %v3309_v46, %v4007_v37 }
  0xb0   :  { %v3313_v61 = vpop.permute.xlu1 %3312  ;;  %3084 = vmatmul.mubr.msk.bf16.gmra.mrb[4].mxu0 %vm1001_vm0, %v945_v30 }
  0xb1   :  { %v3315_v31 = vunpack.i.h.bf16 %v3313_v61  ;;  %v3314_v9 = vunpack.i.l.bf16 %v3313_v61  ;;  %3539 = vset.pattern.permute.xlu1 %v3675_v0  ;;  %v336_v0 = vmul.f32 %v3304_v8, %v4009_v45  ;;  %v579_v61 = vadd.f32 %v539_v23, %v335_v21 }
  0xb2   :  { %3541 = vperm.xlu1 %3539, %v3534_v27  }
  0xb3   :  { %v542_v40 = vmul.f32 %v3315_v31, %v4007_v37  ;;  %v541_v28 = vmul.f32 %v3314_v9, %v4007_v37  ;;  %v580_v31 = vadd.f32 %v540_v52, %v336_v0 }
  0xb5   :  { %v582_v41 = vadd.f32 %v542_v40, %v338_v1  ;;  %v581_v32 = vadd.f32 %v541_v28, %v337_v62  ;;  %v3319_v49 = vpop.permute.xlu1 %3318 }
  0xb6   :  { %v3321_v57 = vunpack.i.h.bf16 %v3319_v49  ;;  %v3320_v30 = vunpack.i.l.bf16 %v3319_v49  ;;  %3551 = vperm.xlu1 %3539, %v3956_v14  }
  0xb7   :  { %v825_v33 = vadd.f32 %v785_v19, %v581_v32  ;;  %v826_v44 = vadd.f32 %v786_v59, %v582_v41  ;;  %v3391_v19 = vpop.permute.xlu0 %3390 }
  0xb8   :  { %v784_v9 = vmul.f32 %v3321_v57, %v4016_v58  ;;  %v783_v25 = vmul.f32 %v3320_v30, %v4016_v58  ;;  %v3393_v49 = vunpack.i.h.bf16 %v3391_v19  ;;  %v3392_v0 = vunpack.i.l.bf16 %v3391_v19 }
  0xb9   :  { %v872_v46 = vadd.f32 %v4035_v54, %v825_v33  ;;  %v873_v1 = vadd.f32 %v4035_v54, %v826_v44  ;;  %v3354_v57 = vunpack.i.h.bf16 %v4059_v60 }
  0xba   :  { %v823_v62 = vadd.f32 %v783_v25, %v579_v61  ;;  %v824_v8 = vadd.f32 %v784_v9, %v580_v31  ;;  %3555 = vset.pattern.permute.xlu1 %v3677_v18  ;;  %v3330_v48 = vpop.permute.xlu1 %3329  ;;  %v3353_v18 = vunpack.i.l.bf16 %v4059_v60  ;;  %v342_v31 = vmul.f32 %v3393_v49, %v4009_v45 }
  0xbb   :  { %3557 = vperm.xlu1 %3555, %v3534_v27   ;;  %v912_v40 = vmax.f32 %v872_v46, 0.0  ;;  %v913_v28 = vmax.f32 %v873_v1, 0.0  ;;  %v341_v9 = vmul.f32 %v3392_v0, %v4009_v45  ;;  %v3332_v25 = vunpack.i.h.bf16 %v3330_v48 }
  0xbc   :  { %v870_v14 = vadd.f32 %v4035_v54, %v823_v62  ;;  %v871_v59 = vadd.f32 %v4035_v54, %v824_v8  ;;  %v3331_v46 = vunpack.i.l.bf16 %v3330_v48  ;;  %v790_v1 = vmul.f32 %v3354_v57, %v4016_v58 }
  0xbd   :  { %v947_v21 = vpack.c.bf16 %v913_v28, %v912_v40  ;;  %v789_v62 = vmul.f32 %v3353_v18, %v4016_v58 }
  0xbe   :  { %v910_v52 = vmax.f32 %v870_v14, 0.0  ;;  %v911_v23 = vmax.f32 %v871_v59, 0.0 }
  0xbf   :  { %v3336_v41 = vpop.permute.xlu1 %3335 }
  0xc0   :  { %v946_v32 = vpack.c.bf16 %v911_v23, %v910_v52  ;;  %v3338_v27 = vunpack.i.h.bf16 %v3336_v41  ;;  %v3337_v30 = vunpack.i.l.bf16 %v3336_v41  ;;  %v340_v52 = vmul.f32 %v3332_v25, %v4009_v45  ;;  %v3396_v25 = vpop.permute.xlu0 %3395 }
  0xc1   :  { %v339_v23 = vmul.f32 %v3331_v46, %v4009_v45 }
  0xc2   :  { %3087 = vmatprep.mubr.msk.bf16.mxu0 %vm1001_vm0, %v946_v32  ;;  %v544_v14 = vmul.f32 %v3338_v27, %v4007_v37  ;;  %v543_v59 = vmul.f32 %v3337_v30, %v4007_v37 }
  0xc3   :  { %v3341_v33 = vpop.permute.xlu1 %3340  ;;  %3088 = vmatmul.mubr.msk.bf16.gmra.mrb[8].mxu0 %vm1001_vm0, %v947_v21 }
  0xc4   :  { %v3343_v44 = vunpack.i.h.bf16 %v3341_v33  ;;  %v3342_v61 = vunpack.i.l.bf16 %v3341_v33  ;;  %v583_v0 = vadd.f32 %v543_v59, %v339_v23  ;;  %v584_v21 = vadd.f32 %v544_v14, %v340_v52 }
  0xc5   :  { %v3398_v59 = vunpack.i.h.bf16 %v3396_v25  ;;  %v3382_v52 = vunpack.i.h.bf16 %v4076_v36  ;;  %v3381_v23 = vunpack.i.l.bf16 %v4076_v36 }
  0xc6   :  { %v546_v60 = vmul.f32 %v3343_v44, %v4007_v37  ;;  %v545_v8 = vmul.f32 %v3342_v61, %v4007_v37 }
  0xc8   :  { %v586_v19 = vadd.f32 %v546_v60, %v342_v31  ;;  %v585_v40 = vadd.f32 %v545_v8, %v341_v9  ;;  %v3347_v28 = vpop.permute.xlu1 %3346 }
  0xc9   :  { %v3349_v48 = vunpack.i.h.bf16 %v3347_v28  ;;  %v3348_v41 = vunpack.i.l.bf16 %v3347_v28 }
  0xca   :  { %v829_v32 = vadd.f32 %v789_v62, %v585_v40  ;;  %v830_v49 = vadd.f32 %v790_v1, %v586_v19  ;;  %v3397_v19 = vunpack.i.l.bf16 %v3396_v25  ;;  %v3413_v40 = vpop.permute.xlu0 %3412 }
  0xcb   :  { %v788_v57 = vmul.f32 %v3349_v48, %v4016_v58  ;;  %v787_v18 = vmul.f32 %v3348_v41, %v4016_v58 }
  0xcc   :  { %v876_v27 = vadd.f32 %v4035_v54, %v829_v32  ;;  %v877_v30 = vadd.f32 %v4035_v54, %v830_v49 }
  0xcd   :  { %v827_v33 = vadd.f32 %v787_v18, %v583_v0  ;;  %v828_v44 = vadd.f32 %v788_v57, %v584_v21  ;;  %v3358_v61 = vpop.permute.xlu1 %3357  ;;  %v346_v21 = vmul.f32 %v3398_v59, %v4009_v45  ;;  %v345_v57 = vmul.f32 %v3397_v19, %v4009_v45 }
  0xce   :  { %v916_v46 = vmax.f32 %v876_v27, 0.0  ;;  %v917_v1 = vmax.f32 %v877_v30, 0.0  ;;  %v3360_v18 = vunpack.i.h.bf16 %v3358_v61  ;;  %v3359_v27 = vunpack.i.l.bf16 %v3358_v61 }
  0xcf   :  { %v874_v31 = vadd.f32 %v4035_v54, %v827_v33  ;;  %v875_v9 = vadd.f32 %v4035_v54, %v828_v44  ;;  %v794_v30 = vmul.f32 %v3382_v52, %v4016_v58  ;;  %v793_v33 = vmul.f32 %v3381_v23, %v4016_v58 }
  0xd0   :  { %v949_v28 = vpack.c.bf16 %v917_v1, %v916_v46  ;;  %v343_v61 = vmul.f32 %v3359_v27, %v4009_v45 }
  0xd1   :  { %v914_v62 = vmax.f32 %v874_v31, 0.0  ;;  %v915_v60 = vmax.f32 %v875_v9, 0.0  ;;  %v4146_v31 = vpop.permute.xlu0 %3440 }
  0xd2   :  { %v3364_v8 = vpop.permute.xlu1 %3363 }
  0xd3   :  { %v948_v14 = vpack.c.bf16 %v915_v60, %v914_v62  ;;  %v3366_v48 = vunpack.i.h.bf16 %v3364_v8  ;;  %v3365_v41 = vunpack.i.l.bf16 %v3364_v8  ;;  %v344_v60 = vmul.f32 %v3360_v18, %v4009_v45 }
  0xd5   :  { %3091 = vmatprep.mubr.msk.bf16.mxu0 %vm1001_vm0, %v948_v14  ;;  %v548_v9 = vmul.f32 %v3366_v48, %v4007_v37  ;;  %v547_v25 = vmul.f32 %v3365_v41, %v4007_v37 }
  0xd6   :  { %v3369_v32 = vpop.permute.xlu1 %3368  ;;  %3092 = vmatmul.mubr.msk.bf16.gmra.mrb[12].mxu0 %vm1001_vm0, %v949_v28 }
  0xd7   :  { %v3371_v49 = vunpack.i.h.bf16 %v3369_v32  ;;  %v3370_v0 = vunpack.i.l.bf16 %v3369_v32  ;;  %v587_v28 = vadd.f32 %v547_v25, %v343_v61  ;;  %v588_v52 = vadd.f32 %v548_v9, %v344_v60 }
  0xd9   :  { %v550_v36 = vmul.f32 %v3371_v49, %v4007_v37  ;;  %v549_v44 = vmul.f32 %v3370_v0, %v4007_v37  ;;  %v4156_v49 = vpop.permute.xlu0 %3468 }
  0xdb   :  { %v590_v46 = vadd.f32 %v550_v36, %v346_v21  ;;  %v589_v1 = vadd.f32 %v549_v44, %v345_v57  ;;  %v3375_v62 = vpop.permute.xlu1 %3374 }
  0xdc   :  { %v3377_v8 = vunpack.i.h.bf16 %v3375_v62  ;;  %v3376_v14 = vunpack.i.l.bf16 %v3375_v62 }
  0xdd   :  { %v833_v59 = vadd.f32 %v793_v33, %v589_v1  ;;  %v834_v19 = vadd.f32 %v794_v30, %v590_v46  ;;  %v3475_v25 = vpop.permute.xlu0 %3474  ;;  %v3415_v46 = vunpack.i.h.bf16 %v3413_v40  ;;  %v3414_v1 = vunpack.i.l.bf16 %v3413_v40 }
  0xde   :  { %v792_v23 = vmul.f32 %v3377_v8, %v4016_v58  ;;  %v791_v32 = vmul.f32 %v3376_v14, %v4016_v58  ;;  %v3477_v61 = vunpack.i.h.bf16 %v3475_v25  ;;  %v3476_v8 = vunpack.i.l.bf16 %v3475_v25 }
  0xdf   :  { %v880_v48 = vadd.f32 %v4035_v54, %v833_v59  ;;  %v881_v41 = vadd.f32 %v4035_v54, %v834_v19 }
  0xe0   :  { %v831_v0 = vadd.f32 %v791_v32, %v587_v28  ;;  %v832_v21 = vadd.f32 %v792_v23, %v588_v52  ;;  %v3402_v57 = vpop.permute.xlu1 %3401  ;;  %v350_v28 = vmul.f32 %v3415_v46, %v4009_v45  ;;  %v349_v52 = vmul.f32 %v3414_v1, %v4009_v45 }
  0xe1   :  { %v920_v30 = vmax.f32 %v880_v48, 0.0  ;;  %v921_v33 = vmax.f32 %v881_v41, 0.0  ;;  %v3404_v48 = vunpack.i.h.bf16 %v3402_v57  ;;  %v3403_v41 = vunpack.i.l.bf16 %v3402_v57 }
  0xe2   :  { %v878_v18 = vadd.f32 %v4035_v54, %v831_v0  ;;  %v879_v27 = vadd.f32 %v4035_v54, %v832_v21  ;;  %v798_v21 = vmul.f32 %v3477_v61, %v4016_v58 }
  0xe3   :  { %v951_v60 = vpack.c.bf16 %v921_v33, %v920_v30  ;;  %v347_v25 = vmul.f32 %v3403_v41, %v4009_v45 }
  0xe4   :  { %v918_v36 = vmax.f32 %v878_v18, 0.0  ;;  %v919_v44 = vmax.f32 %v879_v27, 0.0  ;;  %v797_v18 = vmul.f32 %v3476_v8, %v4016_v58 }
  0xe5   :  { %v3408_v9 = vpop.permute.xlu1 %3407 }
  0xe6   :  { %v950_v62 = vpack.c.bf16 %v919_v44, %v918_v36  ;;  %v3410_v14 = vunpack.i.h.bf16 %v3408_v9  ;;  %v3409_v59 = vunpack.i.l.bf16 %v3408_v9  ;;  %v348_v9 = vmul.f32 %v3404_v48, %v4009_v45 }
  0xe8   :  { %3095 = vmatprep.mubr.msk.bf16.mxu0 %vm1001_vm0, %v950_v62  ;;  %v552_v27 = vmul.f32 %v3410_v14, %v4007_v37  ;;  %v551_v30 = vmul.f32 %v3409_v59, %v4007_v37 }
  0xe9   :  { %v3418_v19 = vpop.permute.xlu1 %3417  ;;  %3096 = vmatmul.mubr.msk.bf16.gmra.mrb[16].mxu0 %vm1001_vm0, %v951_v60 }
  0xea   :  { %v3420_v23 = vunpack.i.h.bf16 %v3418_v19  ;;  %v3419_v32 = vunpack.i.l.bf16 %v3418_v19  ;;  %v591_v60 = vadd.f32 %v551_v30, %v347_v25  ;;  %v592_v19 = vadd.f32 %v552_v27, %v348_v9  ;;  %v3480_v30 = vpop.permute.xlu0 %3479 }
  0xeb   :  { %v3482_v25 = vunpack.i.h.bf16 %v3480_v30 }
  0xec   :  { %v554_v40 = vmul.f32 %v3420_v23, %v4007_v37  ;;  %v553_v0 = vmul.f32 %v3419_v32, %v4007_v37 }
  0xee   :  { %v593_v33 = vadd.f32 %v553_v0, %v349_v52  ;;  %v594_v36 = vadd.f32 %v554_v40, %v350_v28  ;;  %v3424_v44 = vpop.permute.xlu1 %3423 }
  0xef   :  { %v3426_v57 = vunpack.i.h.bf16 %v3424_v44  ;;  %v3425_v46 = vunpack.i.l.bf16 %v3424_v44 }
  0xf0   :  { %v837_v1 = vadd.f32 %v797_v18, %v593_v33  ;;  %v838_v62 = vadd.f32 %v798_v21, %v594_v36  ;;  %v3571_v18 = vld [vmem:[%s4903_s6] sm:$0xff]   ;;  %v3443_v33 = vunpack.i.h.bf16 %v4146_v31  ;;  %v3442_v36 = vunpack.i.l.bf16 %v4146_v31 }
  0xf1   :  { %v796_v61 = vmul.f32 %v3426_v57, %v4016_v58  ;;  %v795_v8 = vmul.f32 %v3425_v46, %v4016_v58  ;;  %3119 = vmatprep.subr.bf16.mxu0 %v3571_v18  ;;  %3223 = vmatprep.subr.bf16.mxu1 %v3571_v18  ;;  %v3481_v57 = vunpack.i.l.bf16 %v3480_v30  ;;  %v3572_v46 = vld [vmem:[%s4903_s6 + $0x8] sm:$0xff]  }
  0xf2   :  { %v884_v14 = vadd.f32 %v4035_v54, %v837_v1  ;;  %v885_v59 = vadd.f32 %v4035_v54, %v838_v62  ;;  %3120 = vmatpush3.bf16.msra.mxu0 %v3571_v18  ;;  %3225 = vmatpush3.bf16.msra.mxu1 %v3571_v18  ;;  %v354_v31 = vmul.f32 %v3443_v33, %v4009_v45 }
  0xf3   :  { %v835_v28 = vadd.f32 %v795_v8, %v591_v60  ;;  %v836_v52 = vadd.f32 %v796_v61, %v592_v19  ;;  %v3430_v23 = vpop.permute.xlu1 %3429  ;;  %v353_v19 = vmul.f32 %v3442_v36, %v4009_v45  ;;  %3121 = vmatprep.subr.bf16.mxu0 %v3572_v46  ;;  %3224 = vmatprep.subr.bf16.mxu1 %v3572_v46 }
  0xf4   :  { %v924_v41 = vmax.f32 %v884_v14, 0.0  ;;  %v925_v40 = vmax.f32 %v885_v59, 0.0  ;;  %v3432_v14 = vunpack.i.h.bf16 %v3430_v23  ;;  %v3431_v59 = vunpack.i.l.bf16 %v3430_v23 }
  0xf5   :  { %v882_v32 = vadd.f32 %v4035_v54, %v835_v28  ;;  %v883_v48 = vadd.f32 %v4035_v54, %v836_v52 }
  0xf6   :  { %v953_v9 = vpack.c.bf16 %v925_v40, %v924_v41  ;;  %3122 = vmatpush3.bf16.msra.mxu0 %v3572_v46  ;;  %3226 = vmatpush3.bf16.msra.mxu1 %v3572_v46  ;;  %v351_v23 = vmul.f32 %v3431_v59, %v4009_v45 }
  0xf7   :  { %v922_v0 = vmax.f32 %v882_v32, 0.0  ;;  %v923_v21 = vmax.f32 %v883_v48, 0.0  ;;  %v802_v32 = vmul.f32 %v3482_v25, %v4016_v58  ;;  %v801_v48 = vmul.f32 %v3481_v57, %v4016_v58 }
  0xf8   :  { %v3436_v27 = vpop.permute.xlu1 %3435 }
  0xf9   :  { %v952_v44 = vpack.c.bf16 %v923_v21, %v922_v0  ;;  %v3438_v1 = vunpack.i.h.bf16 %v3436_v27  ;;  %v3437_v62 = vunpack.i.l.bf16 %v3436_v27  ;;  %v352_v27 = vmul.f32 %v3432_v14, %v4009_v45 }
  0xfb   :  { %3099 = vmatprep.mubr.msk.bf16.mxu0 %vm1001_vm0, %v952_v44  ;;  %v556_v41 = vmul.f32 %v3438_v1, %v4007_v37  ;;  %v555_v40 = vmul.f32 %v3437_v62, %v4007_v37 }
  0xfc   :  { %v3446_v60 = vpop.permute.xlu1 %3445  ;;  %3100 = vmatmul.mubr.msk.bf16.gmra.mrb[20].mxu0 %vm1001_vm0, %v953_v9 }
  0xfd   :  { %v3448_v61 = vunpack.i.h.bf16 %v3446_v60  ;;  %v3447_v8 = vunpack.i.l.bf16 %v3446_v60  ;;  %v595_v9 = vadd.f32 %v555_v40, %v351_v23  ;;  %v596_v46 = vadd.f32 %v556_v41, %v352_v27 }
  0xfe   :  { %v3471_v40 = vunpack.i.h.bf16 %v4156_v49 }
  0xff   :  { %v558_v28 = vmul.f32 %v3448_v61, %v4007_v37  ;;  %v557_v52 = vmul.f32 %v3447_v8, %v4007_v37 }
 0x101   :  { %v597_v0 = vadd.f32 %v557_v52, %v353_v19  ;;  %v598_v21 = vadd.f32 %v558_v28, %v354_v31  ;;  %v3452_v18 = vpop.permute.xlu1 %3451 }
 0x102   :  { %v3454_v30 = vunpack.i.h.bf16 %v3452_v18  ;;  %v3453_v33 = vunpack.i.l.bf16 %v3452_v18 }
 0x103   :  { %v841_v36 = vadd.f32 %v801_v48, %v597_v0  ;;  %v842_v44 = vadd.f32 %v802_v32, %v598_v21  ;;  %v3496_v48 = vpop.permute.xlu0 %3495  ;;  %v3470_v0 = vunpack.i.l.bf16 %v4156_v49 }
 0x104   :  { %v800_v25 = vmul.f32 %v3454_v30, %v4016_v58  ;;  %v799_v57 = vmul.f32 %v3453_v33, %v4016_v58  ;;  %v3498_v18 = vunpack.i.h.bf16 %v3496_v48  ;;  %v3497_v27 = vunpack.i.l.bf16 %v3496_v48 }
 0x105   :  { %v888_v1 = vadd.f32 %v4035_v54, %v841_v36  ;;  %v889_v62 = vadd.f32 %v4035_v54, %v842_v44 }
 0x106   :  { %v839_v60 = vadd.f32 %v799_v57, %v595_v9  ;;  %v840_v31 = vadd.f32 %v800_v25, %v596_v46  ;;  %v3458_v19 = vpop.permute.xlu1 %3457  ;;  %v358_v9 = vmul.f32 %v3471_v40, %v4009_v45  ;;  %v357_v46 = vmul.f32 %v3470_v0, %v4009_v45 }
 0x107   :  { %v928_v14 = vmax.f32 %v888_v1, 0.0  ;;  %v929_v59 = vmax.f32 %v889_v62, 0.0  ;;  %v3460_v25 = vunpack.i.h.bf16 %v3458_v19  ;;  %v3459_v57 = vunpack.i.l.bf16 %v3458_v19 }
 0x108   :  { %v886_v61 = vadd.f32 %v4035_v54, %v839_v60  ;;  %v887_v8 = vadd.f32 %v4035_v54, %v840_v31  ;;  %v806_v62 = vmul.f32 %v3498_v18, %v4016_v58  ;;  %v805_v60 = vmul.f32 %v3497_v27, %v4016_v58 }
 0x109   :  { %v955_v21 = vpack.c.bf16 %v929_v59, %v928_v14 }
 0x10a   :  { %v926_v28 = vmax.f32 %v886_v61, 0.0  ;;  %v927_v52 = vmax.f32 %v887_v8, 0.0 }
 0x10b   :  { %v3464_v32 = vpop.permute.xlu1 %3463 }
 0x10c   :  { %v954_v41 = vpack.c.bf16 %v927_v52, %v926_v28  ;;  %v3466_v23 = vunpack.i.h.bf16 %v3464_v32  ;;  %v3465_v30 = vunpack.i.l.bf16 %v3464_v32  ;;  %v356_v28 = vmul.f32 %v3460_v25, %v4009_v45 }
 0x10d   :  { %v355_v52 = vmul.f32 %v3459_v57, %v4009_v45 }
 0x10e   :  { %3103 = vmatprep.mubr.msk.bf16.mxu0 %vm1001_vm0, %v954_v41  ;;  %v560_v31 = vmul.f32 %v3466_v23, %v4007_v37  ;;  %v559_v61 = vmul.f32 %v3465_v30, %v4007_v37  ;;  %v3524_v30 = vpop.permute.xlu0 %3523 }
 0x10f   :  { %v3485_v33 = vpop.permute.xlu1 %3484  ;;  %3104 = vmatmul.mubr.msk.bf16.gmra.mrb[24].mxu0 %vm1001_vm0, %v955_v21 }
 0x110   :  { %v3487_v36 = vunpack.i.h.bf16 %v3485_v33  ;;  %v3486_v44 = vunpack.i.l.bf16 %v3485_v33  ;;  %v599_v40 = vadd.f32 %v559_v61, %v355_v52  ;;  %v600_v0 = vadd.f32 %v560_v31, %v356_v28 }
 0x111   :  { %v3525_v28 = vunpack.i.l.bf16 %v3524_v30 }
 0x112   :  { %v562_v49 = vmul.f32 %v3487_v36, %v4007_v37  ;;  %v561_v1 = vmul.f32 %v3486_v44, %v4007_v37 }
 0x114   :  { %v601_v8 = vadd.f32 %v561_v1, %v357_v46  ;;  %v602_v14 = vadd.f32 %v562_v49, %v358_v9  ;;  %v3491_v59 = vpop.permute.xlu1 %3490  ;;  %v3530_v49 = vpop.permute.xlu0 %3529 }
 0x115   :  { %v3493_v19 = vunpack.i.h.bf16 %v3491_v59  ;;  %v3492_v32 = vunpack.i.l.bf16 %v3491_v59  ;;  %v3532_v61 = vunpack.i.h.bf16 %v3530_v49  ;;  %v3526_v59 = vunpack.i.h.bf16 %v3524_v30 }
 0x116   :  { %v845_v48 = vadd.f32 %v805_v60, %v601_v8  ;;  %v846_v41 = vadd.f32 %v806_v62, %v602_v14  ;;  %v3531_v8 = vunpack.i.l.bf16 %v3530_v49 }
 0x117   :  { %v804_v21 = vmul.f32 %v3493_v19, %v4016_v58  ;;  %v803_v18 = vmul.f32 %v3492_v32, %v4016_v58 }
 0x118   :  { %v892_v27 = vadd.f32 %v4035_v54, %v845_v48  ;;  %v893_v23 = vadd.f32 %v4035_v54, %v846_v41 }
 0x119   :  { %v843_v33 = vadd.f32 %v803_v18, %v599_v40  ;;  %v844_v36 = vadd.f32 %v804_v21, %v600_v0  ;;  %v3502_v44 = vpop.permute.xlu1 %3501  ;;  %v362_v40 = vmul.f32 %v3532_v61, %v4009_v45  ;;  %v361_v0 = vmul.f32 %v3531_v8, %v4009_v45 }
 0x11a   :  { %v932_v25 = vmax.f32 %v892_v27, 0.0  ;;  %v933_v57 = vmax.f32 %v893_v23, 0.0  ;;  %v3504_v21 = vunpack.i.h.bf16 %v3502_v44  ;;  %v3503_v18 = vunpack.i.l.bf16 %v3502_v44 }
 0x11b   :  { %v890_v9 = vadd.f32 %v4035_v54, %v843_v33  ;;  %v891_v46 = vadd.f32 %v4035_v54, %v844_v36  ;;  %v810_v36 = vmul.f32 %v3526_v59, %v4016_v58 }
 0x11c   :  { %v957_v14 = vpack.c.bf16 %v933_v57, %v932_v25  ;;  %v360_v49 = vmul.f32 %v3504_v21, %v4009_v45 }
 0x11d   :  { %v930_v1 = vmax.f32 %v890_v9, 0.0  ;;  %v931_v62 = vmax.f32 %v891_v46, 0.0  ;;  %v809_v9 = vmul.f32 %v3525_v28, %v4016_v58 }
 0x11e   :  { %v3508_v60 = vpop.permute.xlu1 %3507 }
 0x11f   :  { %v956_v31 = vpack.c.bf16 %v931_v62, %v930_v1  ;;  %v3510_v52 = vunpack.i.h.bf16 %v3508_v60  ;;  %v3509_v19 = vunpack.i.l.bf16 %v3508_v60  ;;  %v359_v1 = vmul.f32 %v3503_v18, %v4009_v45 }
 0x121   :  { %3107 = vmatprep.mubr.msk.bf16.mxu0 %vm1001_vm0, %v956_v31  ;;  %v564_v33 = vmul.f32 %v3510_v52, %v4007_v37  ;;  %v563_v30 = vmul.f32 %v3509_v19, %v4007_v37 }
 0x122   :  { %v3513_v32 = vpop.permute.xlu1 %3512  ;;  %3108 = vmatmul.mubr.msk.bf16.gmra.mrb[28].mxu0 %vm1001_vm0, %v957_v14 }
 0x123   :  { %v3515_v48 = vunpack.i.h.bf16 %v3513_v32  ;;  %v3514_v41 = vunpack.i.l.bf16 %v3513_v32  ;;  %v603_v61 = vadd.f32 %v563_v30, %v359_v1  ;;  %v604_v8 = vadd.f32 %v564_v33, %v360_v49 }
 0x125   :  { %v566_v27 = vmul.f32 %v3515_v48, %v4007_v37  ;;  %v565_v23 = vmul.f32 %v3514_v41, %v4007_v37  ;;  %v3547_v41 = vpop.permute.xlu0 %3546 }
 0x127   :  { %v606_v46 = vadd.f32 %v566_v27, %v362_v40  ;;  %v605_v25 = vadd.f32 %v565_v23, %v361_v0  ;;  %v3519_v57 = vpop.permute.xlu1 %3518 }
 0x128   :  { %v3521_v44 = vunpack.i.h.bf16 %v3519_v57  ;;  %v3520_v62 = vunpack.i.l.bf16 %v3519_v57 }
 0x129   :  { %v849_v60 = vadd.f32 %v809_v9, %v605_v25  ;;  %v850_v31 = vadd.f32 %v810_v36, %v606_v46  ;;  %v3564_v30 = vpop.permute.xlu0 %3563  ;;  %v3549_v9 = vunpack.i.h.bf16 %v3547_v41  ;;  %v3548_v46 = vunpack.i.l.bf16 %v3547_v41 }
 0x12a   :  { %v808_v14 = vmul.f32 %v3521_v44, %v4016_v58  ;;  %v807_v52 = vmul.f32 %v3520_v62, %v4016_v58  ;;  %v3566_v57 = vunpack.i.h.bf16 %v3564_v30  ;;  %v3565_v49 = vunpack.i.l.bf16 %v3564_v30 }
 0x12b   :  { %v896_v59 = vadd.f32 %v4035_v54, %v849_v60  ;;  %v897_v28 = vadd.f32 %v4035_v54, %v850_v31 }
 0x12c   :  { %v847_v19 = vadd.f32 %v807_v52, %v603_v61  ;;  %v848_v32 = vadd.f32 %v808_v14, %v604_v8  ;;  %v3536_v48 = vpop.permute.xlu1 %3535  ;;  %v366_v14 = vmul.f32 %v3549_v9, %v4009_v45  ;;  %v365_v52 = vmul.f32 %v3548_v46, %v4009_v45 }
 0x12d   :  { %v936_v21 = vmax.f32 %v896_v59, 0.0  ;;  %v937_v18 = vmax.f32 %v897_v28, 0.0  ;;  %v3538_v61 = vunpack.i.h.bf16 %v3536_v48  ;;  %v3537_v8 = vunpack.i.l.bf16 %v3536_v48 }
 0x12e   :  { %v894_v40 = vadd.f32 %v4035_v54, %v847_v19  ;;  %v895_v0 = vadd.f32 %v4035_v54, %v848_v32  ;;  %v814_v19 = vmul.f32 %v3566_v57, %v4016_v58  ;;  %v813_v32 = vmul.f32 %v3565_v49, %v4016_v58 }
 0x12f   :  { %v959_v25 = vpack.c.bf16 %v937_v18, %v936_v21  ;;  %v364_v48 = vmul.f32 %v3538_v61, %v4009_v45 }
 0x130   :  { %v934_v27 = vmax.f32 %v894_v40, 0.0  ;;  %v935_v23 = vmax.f32 %v895_v0, 0.0 }
 0x131   :  { %v3542_v33 = vpop.permute.xlu1 %3541 }
 0x132   :  { %v958_v36 = vpack.c.bf16 %v935_v23, %v934_v27  ;;  %v3544_v1 = vunpack.i.h.bf16 %v3542_v33  ;;  %v3543_v44 = vunpack.i.l.bf16 %v3542_v33  ;;  %v363_v27 = vmul.f32 %v3537_v8, %v4009_v45 }
 0x134   :  { %3111 = vmatprep.mubr.msk.bf16.mxu0 %vm1001_vm0, %v958_v36  ;;  %v568_v41 = vmul.f32 %v3544_v1, %v4007_v37  ;;  %v567_v40 = vmul.f32 %v3543_v44, %v4007_v37 }
 0x135   :  { %v3552_v62 = vpop.permute.xlu1 %3551  ;;  %3112 = vmatmul.mubr.msk.bf16.gmra.mrb[32].mxu0 %vm1001_vm0, %v959_v25 }
 0x136   :  { %v3554_v60 = vunpack.i.h.bf16 %v3552_v62  ;;  %v3553_v31 = vunpack.i.l.bf16 %v3552_v62  ;;  %v607_v9 = vadd.f32 %v567_v40, %v363_v27  ;;  %v608_v46 = vadd.f32 %v568_v41, %v364_v48 }
 0x138   :  { %v570_v59 = vmul.f32 %v3554_v60, %v4007_v37  ;;  %v569_v28 = vmul.f32 %v3553_v31, %v4007_v37 }
 0x13a   :  { %v609_v0 = vadd.f32 %v569_v28, %v365_v52  ;;  %v610_v21 = vadd.f32 %v570_v59, %v366_v14  ;;  %v3558_v18 = vpop.permute.xlu1 %3557  ;;  %v2976_v59 = vld [vmem:[%s4904_s1 + $0x8] sm:$0xff]  }
 0x13b   :  { %v3560_v23 = vunpack.i.h.bf16 %v3558_v18  ;;  %v3559_v33 = vunpack.i.l.bf16 %v3558_v18  ;;  %v2884_v27 = vunpack.c.h.bf16 %v2976_v59 }
 0x13c   :  { %v853_v30 = vadd.f32 %v813_v32, %v609_v0  ;;  %v854_v36 = vadd.f32 %v814_v19, %v610_v21  ;;  %v2883_v32 = vunpack.c.l.bf16 %v2976_v59 }
 0x13d   :  { %v812_v25 = vmul.f32 %v3560_v23, %v4016_v58  ;;  %v811_v57 = vmul.f32 %v3559_v33, %v4016_v58  ;;  %v4265_v58 = vld [vmem:[%s4905_s5] ss:$0 sm:$0xff] }
 0x13e   :  { %v900_v49 = vadd.f32 %v4035_v54, %v853_v30  ;;  %v901_v37 = vadd.f32 %v4035_v54, %v854_v36 }
 0x13f   :  { %v851_v1 = vadd.f32 %v811_v57, %v607_v9  ;;  %v852_v44 = vadd.f32 %v812_v25, %v608_v46 }
 0x140   :  { %v940_v60 = vmax.f32 %v900_v49, 0.0  ;;  %v941_v31 = vmax.f32 %v901_v37, 0.0 }
 0x141   :  { %v898_v62 = vadd.f32 %v4035_v54, %v851_v1  ;;  %v899_v45 = vadd.f32 %v4035_v54, %v852_v44  ;;  %v2878_v54 = vld [vmem:[%s4904_s1] sm:$0xff]  }
 0x142   :  { %v961_v52 = vpack.c.bf16 %v941_v31, %v940_v60  ;;  %v2879_v0 = vunpack.c.l.bf16 %v2878_v54  ;;  %v2880_v36 = vunpack.c.h.bf16 %v2878_v54  ;;  %v2892_v54 = vunpack.c.h.bf16 %v2978_v2 }
 0x143   :  { %v938_v61 = vmax.f32 %v898_v62, 0.0  ;;  %v939_v8 = vmax.f32 %v899_v45, 0.0 }
 0x145   :  { %v960_v14 = vpack.c.bf16 %v939_v8, %v938_v61 }
 0x147   :  { %3115 = vmatprep.mubr.msk.bf16.mxu0 %vm1001_vm0, %v960_v14 }
 0x148   :  { %3116 = vmatmul.mubr.msk.bf16.gmra.mrb[36].mxu0 %vm1001_vm0, %v961_v52 }
 0x173   :  { %v3081_v28 = vpop.f32.mrb[0].mxu0 }
 0x174   :  { %v1105_v19 = vadd.f32 %v3081_v28, %v4265_v58  ;;  %v1096_v41 = vpop.f32.mrb[1].mxu0 }
 0x175   :  { %v1097_v40 = vadd.f32 %v4265_v58, %v1096_v41  ;;  %v3082_v21 = vpop.f32.mrb[2].mxu0 }
 0x176   :  { %v1257_v18 = vmax.f32 %v1105_v19, 0.0  ;;  %v1108_v48 = vadd.f32 %v3082_v21, %v4265_v58  ;;  %v1099_v23 = vpop.f32.mrb[3].mxu0 }
 0x177   :  { %v1255_v33 = vmax.f32 %v1097_v40, 0.0  ;;  %v1100_v30 = vadd.f32 %v4265_v58, %v1099_v23 }
 0x178   :  { %v1377_v9 = vadd.f32 %v2883_v32, %v1257_v18  ;;  %v1258_v46 = vmax.f32 %v1108_v48, 0.0  ;;  %v1458_v49 = vadd.f32 %v2803_v4, %v1257_v18  ;;  %v2977_v4 = vld [vmem:[%s4904_s1 + $0x10] sm:$0xff]  }
 0x179   :  { %v1375_v25 = vadd.f32 %v2879_v0, %v1255_v33  ;;  %v1256_v57 = vmax.f32 %v1100_v30, 0.0  ;;  %v1456_v44 = vadd.f32 %v2799_v6, %v1255_v33  ;;  %v2891_v6 = vunpack.c.l.bf16 %v2978_v2 }
 0x17a   :  { %1418 = vst.msk [vmem:[#allocation3 + $0x10] sm:$0xff] %vm1415_vm1, %v1377_v9  ;;  %v1378_v37 = vadd.f32 %v2884_v27, %v1258_v46  ;;  %v1459_v1 = vadd.f32 %v2804_v5, %v1258_v46  ;;  %v2887_v8 = vunpack.c.l.bf16 %v2977_v4  ;;  %v2888_v41 = vunpack.c.h.bf16 %v2977_v4 }
 0x17b   :  { %1416 = vst.msk [vmem:[#allocation3] sm:$0xff] %vm1415_vm1, %v1375_v25  ;;  %v1376_v62 = vadd.f32 %v2880_v36, %v1256_v57  ;;  %v1457_v45 = vadd.f32 %v2800_v7, %v1256_v57 }
 0x17c   :  { %1419 = vst.msk [vmem:[#allocation3 + $0x18] sm:$0xff] %vm1415_vm1, %v1378_v37  ;;  %v1497_v60 = vpack.c.bf16 %v1459_v1, %v1458_v49 }
 0x17d   :  { %1417 = vst.msk [vmem:[#allocation3 + $0x8] sm:$0xff] %vm1415_vm1, %v1376_v62  ;;  %v1496_v31 = vpack.c.bf16 %v1457_v45, %v1456_v44  ;;  %v2900_v44 = vunpack.c.h.bf16 %v2980_v10 }
 0x17f   :  { %3123 = vmatprep.mubr.msk.bf16.mxu0 %vm1415_vm1, %v1496_v31 }
 0x180   :  { %3124 = vmatmul.mubr.msk.bf16.vlgmr.msra.gmra.mrb[40].mxu0 %vm1415_vm1, %v1497_v60 }
 0x183   :  { %v3085_v3 = vpop.f32.mrb[4].mxu0 }
 0x184   :  { %v1121_v5 = vadd.f32 %v3085_v3, %v4265_v58  ;;  %v1112_v7 = vpop.f32.mrb[5].mxu0 }
 0x185   :  { %v1113_v61 = vadd.f32 %v4265_v58, %v1112_v7  ;;  %v3086_v14 = vpop.f32.mrb[6].mxu0 }
 0x186   :  { %v1261_v52 = vmax.f32 %v1121_v5, 0.0  ;;  %v1124_v59 = vadd.f32 %v3086_v14, %v4265_v58  ;;  %v1115_v28 = vpop.f32.mrb[7].mxu0  ;;  %v4942_v14 = vunpack.c.l.bf16 %v3839_v34 }
 0x187   :  { %v1259_v19 = vmax.f32 %v1113_v61, 0.0  ;;  %v1116_v32 = vadd.f32 %v4265_v58, %v1115_v28  ;;  %v4941_v61 = vunpack.c.h.bf16 %v3798_v20  ;;  %v2982_v20 = vld [vmem:[%s4904_s1 + $0x38] sm:$0xff]  }
 0x188   :  { %v1381_v40 = vadd.f32 %v2891_v6, %v1261_v52  ;;  %v1262_v0 = vmax.f32 %v1124_v59, 0.0  ;;  %v1462_v48 = vadd.f32 %v2811_v11, %v1261_v52  ;;  %v2979_v11 = vld [vmem:[%s4904_s1 + $0x20] sm:$0xff]  }
 0x189   :  { %v1379_v21 = vadd.f32 %v2887_v8, %v1259_v19  ;;  %v1260_v18 = vmax.f32 %v1116_v32, 0.0  ;;  %v1460_v33 = vadd.f32 %v2807_v15, %v1259_v19  ;;  %v2899_v15 = vunpack.c.l.bf16 %v2980_v10 }
 0x18a   :  { %1422 = vst.msk [vmem:[#allocation3 + $0x30] sm:$0xff] %vm1415_vm1, %v1381_v40  ;;  %v1382_v27 = vadd.f32 %v2892_v54, %v1262_v0  ;;  %v1463_v23 = vadd.f32 %v2812_v12, %v1262_v0  ;;  %v2895_v57 = vunpack.c.l.bf16 %v2979_v11  ;;  %v2896_v31 = vunpack.c.h.bf16 %v2979_v11 }
 0x18b   :  { %1420 = vst.msk [vmem:[#allocation3 + $0x20] sm:$0xff] %vm1415_vm1, %v1379_v21  ;;  %v1380_v30 = vadd.f32 %v2888_v41, %v1260_v18  ;;  %v1461_v36 = vadd.f32 %v2808_v16, %v1260_v18  ;;  %v4943_v54 = vunpack.c.h.bf16 %v3839_v34  ;;  %v3573_v41 = vld [vmem:[%s4906_s8] sm:$0xff]   ;;  %v2907_v0 = vunpack.c.l.bf16 %v2982_v20 }
 0x18c   :  { %1423 = vst.msk [vmem:[#allocation3 + $0x38] sm:$0xff] %vm1415_vm1, %v1382_v27  ;;  %v1499_v9 = vpack.c.bf16 %v1463_v23, %v1462_v48  ;;  %3163 = vmatprep.subr.bf16.mxu1 %v3573_v41 }
 0x18d   :  { %1421 = vst.msk [vmem:[#allocation3 + $0x28] sm:$0xff] %vm1415_vm1, %v1380_v30  ;;  %v1498_v46 = vpack.c.bf16 %v1461_v36, %v1460_v33  ;;  %v2908_v30 = vunpack.c.h.bf16 %v2982_v20 }
 0x18f   :  { %3127 = vmatprep.mubr.msk.bf16.mxu0 %vm1415_vm1, %v1498_v46 }
 0x190   :  { %3128 = vmatmul.mubr.msk.bf16.gmra.mrb[44].mxu0 %vm1415_vm1, %v1499_v9 }
 0x196   :  { %v3089_v12 = vpop.f32.mrb[8].mxu0 }
 0x197   :  { %v1137_v13 = vadd.f32 %v3089_v12, %v4265_v58  ;;  %v1128_v16 = vpop.f32.mrb[9].mxu0 }
 0x198   :  { %v1129_v25 = vadd.f32 %v4265_v58, %v1128_v16  ;;  %v3090_v49 = vpop.f32.mrb[10].mxu0  ;;  %v4944_v16 = vunpack.c.l.bf16 %v3810_v24 }
 0x199   :  { %v1265_v37 = vmax.f32 %v1137_v13, 0.0  ;;  %v1140_v1 = vadd.f32 %v3090_v49, %v4265_v58  ;;  %v1131_v62 = vpop.f32.mrb[11].mxu0  ;;  %v4945_v49 = vunpack.c.h.bf16 %v3810_v24  ;;  %v3574_v24 = vld [vmem:[%s4906_s8 + $0x8] sm:$0xff]  }
 0x19a   :  { %v1263_v45 = vmax.f32 %v1129_v25, 0.0  ;;  %v1132_v60 = vadd.f32 %v4265_v58, %v1131_v62 }
 0x19b   :  { %v1385_v2 = vadd.f32 %v2899_v15, %v1265_v37  ;;  %v1266_v4 = vmax.f32 %v1140_v1, 0.0  ;;  %v1466_v6 = vadd.f32 %v2819_v22, %v1265_v37  ;;  %v2981_v22 = vld [vmem:[%s4904_s1 + $0x30] sm:$0xff]   ;;  %v4946_v1 = vunpack.c.l.bf16 %v3873_v43 }
 0x19c   :  { %v1383_v3 = vadd.f32 %v2895_v57, %v1263_v45  ;;  %v1264_v5 = vmax.f32 %v1132_v60, 0.0  ;;  %v1464_v52 = vadd.f32 %v4942_v14, %v1263_v45  ;;  %v2903_v48 = vunpack.c.l.bf16 %v2981_v22 }
 0x19d   :  { %1426 = vst.msk [vmem:[#allocation3 + $0x50] sm:$0xff] %vm1415_vm1, %v1385_v2  ;;  %v1386_v7 = vadd.f32 %v2900_v44, %v1266_v4  ;;  %v1467_v8 = vadd.f32 %v4941_v61, %v1266_v4  ;;  %v2904_v10 = vunpack.c.h.bf16 %v2981_v22  ;;  %v4947_v45 = vunpack.c.h.bf16 %v3873_v43  ;;  %v2984_v43 = vld [vmem:[%s4904_s1 + $0x48] sm:$0xff]   ;;  %v2983_v4 = vld [vmem:[%s4904_s1 + $0x40] sm:$0xff]  }
 0x19e   :  { %1424 = vst.msk [vmem:[#allocation3 + $0x40] sm:$0xff] %vm1415_vm1, %v1383_v3  ;;  %v1384_v59 = vadd.f32 %v2896_v31, %v1264_v5  ;;  %v1465_v28 = vadd.f32 %v4943_v54, %v1264_v5  ;;  %v2916_v54 = vunpack.c.h.bf16 %v2984_v43  ;;  %v2912_v20 = vunpack.c.h.bf16 %v2983_v4 }
 0x19f   :  { %1427 = vst.msk [vmem:[#allocation3 + $0x58] sm:$0xff] %vm1415_vm1, %v1386_v7  ;;  %v1501_v19 = vpack.c.bf16 %v1467_v8, %v1466_v6  ;;  %v2915_v6 = vunpack.c.l.bf16 %v2984_v43  ;;  %v2911_v8 = vunpack.c.l.bf16 %v2983_v4  ;;  %v3575_v4 = vld [vmem:[%s4906_s8 + $0x10] sm:$0xff]  }
 0x1a0   :  { %1425 = vst.msk [vmem:[#allocation3 + $0x48] sm:$0xff] %vm1415_vm1, %v1384_v59  ;;  %v1500_v32 = vpack.c.bf16 %v1465_v28, %v1464_v52 }
 0x1a2   :  { %3131 = vmatprep.mubr.msk.bf16.mxu0 %vm1415_vm1, %v1500_v32 }
 0x1a3   :  { %3132 = vmatmul.mubr.msk.bf16.gmra.mrb[48].mxu0 %vm1415_vm1, %v1501_v19 }
 0x1a9   :  { %v3093_v34 = vpop.f32.mrb[12].mxu0 }
 0x1aa   :  { %v1153_v40 = vadd.f32 %v3093_v34, %v4265_v58  ;;  %v1144_v21 = vpop.f32.mrb[13].mxu0 }
 0x1ab   :  { %v1145_v18 = vadd.f32 %v4265_v58, %v1144_v21  ;;  %v3094_v27 = vpop.f32.mrb[14].mxu0 }
 0x1ac   :  { %v1269_v23 = vmax.f32 %v1153_v40, 0.0  ;;  %v1156_v33 = vadd.f32 %v3094_v27, %v4265_v58  ;;  %v1147_v36 = vpop.f32.mrb[15].mxu0 }
 0x1ad   :  { %v1267_v9 = vmax.f32 %v1145_v18, 0.0  ;;  %v1148_v46 = vadd.f32 %v4265_v58, %v1147_v36  ;;  %v4951_v36 = vunpack.c.h.bf16 %v3916_v55 }
 0x1ae   :  { %v1389_v11 = vadd.f32 %v2907_v0, %v1269_v23  ;;  %v1270_v12 = vmax.f32 %v1156_v33, 0.0  ;;  %v1470_v25 = vadd.f32 %v4944_v16, %v1269_v23  ;;  %v4948_v0 = vunpack.c.l.bf16 %v3825_v29 }
 0x1af   :  { %v1387_v13 = vadd.f32 %v2903_v48, %v1267_v9  ;;  %v1268_v15 = vmax.f32 %v1148_v46, 0.0  ;;  %v1468_v44 = vadd.f32 %v4946_v1, %v1267_v9  ;;  %v4949_v48 = vunpack.c.h.bf16 %v3825_v29  ;;  %v2986_v29 = vld [vmem:[%s4904_s1 + $0x58] sm:$0xff]  }
 0x1b0   :  { %1430 = vst.msk [vmem:[#allocation3 + $0x70] sm:$0xff] %vm1415_vm1, %v1389_v11  ;;  %v1390_v57 = vadd.f32 %v2908_v30, %v1270_v12  ;;  %v1471_v37 = vadd.f32 %v4945_v49, %v1270_v12  ;;  %v4950_v23 = vunpack.c.l.bf16 %v3916_v55  ;;  %v2985_v11 = vld [vmem:[%s4904_s1 + $0x50] sm:$0xff]   ;;  %v2924_v1 = vunpack.c.h.bf16 %v2986_v29 }
 0x1b1   :  { %1428 = vst.msk [vmem:[#allocation3 + $0x60] sm:$0xff] %vm1415_vm1, %v1387_v13  ;;  %v1388_v62 = vadd.f32 %v2904_v10, %v1268_v15  ;;  %v1469_v60 = vadd.f32 %v4947_v45, %v1268_v15  ;;  %v2923_v13 = vunpack.c.l.bf16 %v2986_v29 }
 0x1b2   :  { %1431 = vst.msk [vmem:[#allocation3 + $0x78] sm:$0xff] %vm1415_vm1, %v1390_v57  ;;  %v1503_v31 = vpack.c.bf16 %v1471_v37, %v1470_v25  ;;  %v2919_v25 = vunpack.c.l.bf16 %v2985_v11 }
 0x1b3   :  { %1429 = vst.msk [vmem:[#allocation3 + $0x68] sm:$0xff] %vm1415_vm1, %v1388_v62  ;;  %v1502_v2 = vpack.c.bf16 %v1469_v60, %v1468_v44  ;;  %v2920_v60 = vunpack.c.h.bf16 %v2985_v11  ;;  %v4956_v11 = vunpack.c.l.bf16 %v3868_v42 }
 0x1b5   :  { %3135 = vmatprep.mubr.msk.bf16.mxu1 %vm1415_vm1, %v1502_v2 }
 0x1b6   :  { %3136 = vmatmul.mubr.msk.bf16.vlgmr.msra.gmra.mrb[0].mxu1 %vm1415_vm1, %v1503_v31 }
 0x1b7   :  { %3164 = vmatpush3.bf16.msra.mxu1 %v3573_v41 }
 0x1b8   :  { %3165 = vmatprep.subr.bf16.mxu1 %v3574_v24 }
 0x1bb   :  { %3166 = vmatpush3.bf16.msra.mxu1 %v3574_v24 }
 0x1bc   :  { %v3097_v3 = vpop.f32.mrb[16].mxu0  ;;  %3167 = vmatprep.subr.bf16.mxu1 %v3575_v4 }
 0x1bd   :  { %v1169_v5 = vadd.f32 %v3097_v3, %v4265_v58  ;;  %v1160_v7 = vpop.f32.mrb[17].mxu0  ;;  %v4952_v3 = vunpack.c.l.bf16 %v3860_v39 }
 0x1be   :  { %v1161_v61 = vadd.f32 %v4265_v58, %v1160_v7  ;;  %v3098_v14 = vpop.f32.mrb[18].mxu0  ;;  %v4953_v7 = vunpack.c.h.bf16 %v3860_v39  ;;  %v3576_v39 = vld [vmem:[%s4906_s8 + $0x18] sm:$0xff]  }
 0x1bf   :  { %v1273_v52 = vmax.f32 %v1169_v5, 0.0  ;;  %v1172_v59 = vadd.f32 %v3098_v14, %v4265_v58  ;;  %v1163_v28 = vpop.f32.mrb[19].mxu0  ;;  %3168 = vmatpush3.bf16.msra.mxu1 %v3575_v4 }
 0x1c0   :  { %v1271_v19 = vmax.f32 %v1161_v61, 0.0  ;;  %v1164_v32 = vadd.f32 %v4265_v58, %v1163_v28  ;;  %3169 = vmatprep.subr.bf16.mxu1 %v3576_v39 }
 0x1c1   :  { %v1393_v22 = vadd.f32 %v2915_v6, %v1273_v52  ;;  %v1274_v34 = vmax.f32 %v1172_v59, 0.0  ;;  %v1474_v21 = vadd.f32 %v4948_v0, %v1273_v52  ;;  %v4955_v59 = vunpack.c.h.bf16 %v3961_v17 }
 0x1c2   :  { %v1391_v41 = vadd.f32 %v2911_v8, %v1271_v19  ;;  %v1272_v40 = vmax.f32 %v1164_v32, 0.0  ;;  %v1472_v33 = vadd.f32 %v4950_v23, %v1271_v19  ;;  %v4954_v8 = vunpack.c.l.bf16 %v3961_v17  ;;  %v2988_v17 = vld [vmem:[%s4904_s1 + $0x68] sm:$0xff]   ;;  %v2987_v32 = vld [vmem:[%s4904_s1 + $0x60] sm:$0xff]  }
 0x1c3   :  { %1434 = vst.msk [vmem:[#allocation3 + $0x90] sm:$0xff] %vm1415_vm1, %v1393_v22  ;;  %v1394_v18 = vadd.f32 %v2916_v54, %v1274_v34  ;;  %v1475_v27 = vadd.f32 %v4949_v48, %v1274_v34  ;;  %3170 = vmatpush3.bf16.msra.mxu1 %v3576_v39  ;;  %v2931_v34 = vunpack.c.l.bf16 %v2988_v17  ;;  %v2927_v0 = vunpack.c.l.bf16 %v2987_v32 }
 0x1c4   :  { %1432 = vst.msk [vmem:[#allocation3 + $0x80] sm:$0xff] %vm1415_vm1, %v1391_v41  ;;  %v1392_v30 = vadd.f32 %v2912_v20, %v1272_v40  ;;  %v1473_v9 = vadd.f32 %v4951_v36, %v1272_v40  ;;  %v2928_v36 = vunpack.c.h.bf16 %v2987_v32 }
 0x1c5   :  { %1435 = vst.msk [vmem:[#allocation3 + $0x98] sm:$0xff] %vm1415_vm1, %v1394_v18  ;;  %v1505_v46 = vpack.c.bf16 %v1475_v27, %v1474_v21  ;;  %v2932_v27 = vunpack.c.h.bf16 %v2988_v17  ;;  %v4961_v17 = vunpack.c.h.bf16 %v3885_v47 }
 0x1c6   :  { %1433 = vst.msk [vmem:[#allocation3 + $0x88] sm:$0xff] %vm1415_vm1, %v1392_v30  ;;  %v1504_v10 = vpack.c.bf16 %v1473_v9, %v1472_v33 }
 0x1c8   :  { %3139 = vmatprep.mubr.msk.bf16.mxu1 %vm1415_vm1, %v1504_v10 }
 0x1c9   :  { %3140 = vmatmul.mubr.msk.bf16.gmra.mrb[4].mxu1 %vm1415_vm1, %v1505_v46 }
 0x1cf   :  { %v3101_v55 = vpop.f32.mrb[20].mxu0 }
 0x1d0   :  { %v1185_v12 = vadd.f32 %v3101_v55, %v4265_v58  ;;  %v1176_v15 = vpop.f32.mrb[21].mxu0 }
 0x1d1   :  { %v1177_v16 = vadd.f32 %v4265_v58, %v1176_v15  ;;  %v3102_v57 = vpop.f32.mrb[22].mxu0 }
 0x1d2   :  { %v1277_v49 = vmax.f32 %v1185_v12, 0.0  ;;  %v1188_v37 = vadd.f32 %v3102_v57, %v4265_v58  ;;  %v1179_v44 = vpop.f32.mrb[23].mxu0 }
 0x1d3   :  { %v1275_v62 = vmax.f32 %v1177_v16, 0.0  ;;  %v1180_v45 = vadd.f32 %v4265_v58, %v1179_v44  ;;  %v4958_v16 = vunpack.c.l.bf16 %v3979_v26 }
 0x1d4   :  { %v1397_v31 = vadd.f32 %v2923_v13, %v1277_v49  ;;  %v1278_v2 = vmax.f32 %v1188_v37, 0.0  ;;  %v1478_v5 = vadd.f32 %v4952_v3, %v1277_v49  ;;  %v4957_v13 = vunpack.c.h.bf16 %v3868_v42  ;;  %v2990_v42 = vld [vmem:[%s4904_s1 + $0x78] sm:$0xff]  }
 0x1d5   :  { %v1395_v24 = vadd.f32 %v2919_v25, %v1275_v62  ;;  %v1276_v43 = vmax.f32 %v1180_v45, 0.0  ;;  %v1476_v14 = vadd.f32 %v4954_v8, %v1275_v62  ;;  %v4959_v49 = vunpack.c.h.bf16 %v3979_v26  ;;  %v2989_v62 = vld [vmem:[%s4904_s1 + $0x70] sm:$0xff]  }
 0x1d6   :  { %1438 = vst.msk [vmem:[#allocation3 + $0xb0] sm:$0xff] %vm1415_vm1, %v1397_v31  ;;  %v1398_v6 = vadd.f32 %v2924_v1, %v1278_v2  ;;  %v1479_v61 = vadd.f32 %v4953_v7, %v1278_v2  ;;  %v2936_v8 = vunpack.c.h.bf16 %v2989_v62 }
 0x1d7   :  { %1436 = vst.msk [vmem:[#allocation3 + $0xa0] sm:$0xff] %vm1415_vm1, %v1395_v24  ;;  %v1396_v52 = vadd.f32 %v2920_v60, %v1276_v43  ;;  %v1477_v54 = vadd.f32 %v4955_v59, %v1276_v43  ;;  %v2939_v60 = vunpack.c.l.bf16 %v2990_v42  ;;  %v2935_v24 = vunpack.c.l.bf16 %v2989_v62 }
 0x1d8   :  { %1439 = vst.msk [vmem:[#allocation3 + $0xb8] sm:$0xff] %vm1415_vm1, %v1398_v6  ;;  %v1507_v28 = vpack.c.bf16 %v1479_v61, %v1478_v5  ;;  %v2940_v5 = vunpack.c.h.bf16 %v2990_v42  ;;  %v4966_v42 = vunpack.c.l.bf16 %v4021_v50 }
 0x1d9   :  { %1437 = vst.msk [vmem:[#allocation3 + $0xa8] sm:$0xff] %vm1415_vm1, %v1396_v52  ;;  %v1506_v19 = vpack.c.bf16 %v1477_v54, %v1476_v14 }
 0x1db   :  { %3143 = vmatprep.mubr.msk.bf16.mxu1 %vm1415_vm1, %v1506_v19 }
 0x1dc   :  { %3144 = vmatmul.mubr.msk.bf16.gmra.mrb[8].mxu1 %vm1415_vm1, %v1507_v28  ;;  %v4960_v28 = vunpack.c.l.bf16 %v3885_v47  ;;  %v2992_v47 = vld [vmem:[%s4904_s1 + $0x88] sm:$0xff]  }
 0x1e2   :  { %v3105_v20 = vpop.f32.mrb[24].mxu0 }
 0x1e3   :  { %v1201_v22 = vadd.f32 %v3105_v20, %v4265_v58  ;;  %v1192_v41 = vpop.f32.mrb[25].mxu0  ;;  %v4962_v20 = vunpack.c.l.bf16 %v3993_v38 }
 0x1e4   :  { %v1193_v40 = vadd.f32 %v4265_v58, %v1192_v41  ;;  %v3106_v21 = vpop.f32.mrb[26].mxu0  ;;  %v4963_v41 = vunpack.c.h.bf16 %v3993_v38 }
 0x1e5   :  { %v1281_v18 = vmax.f32 %v1201_v22, 0.0  ;;  %v1204_v48 = vadd.f32 %v3106_v21, %v4265_v58  ;;  %v1195_v23 = vpop.f32.mrb[27].mxu0 }
 0x1e6   :  { %v1279_v33 = vmax.f32 %v1193_v40, 0.0  ;;  %v1196_v30 = vadd.f32 %v4265_v58, %v1195_v23 }
 0x1e7   :  { %v1401_v9 = vadd.f32 %v2931_v34, %v1281_v18  ;;  %v1282_v46 = vmax.f32 %v1204_v48, 0.0  ;;  %v1482_v55 = vadd.f32 %v4956_v11, %v1281_v18  ;;  %v2991_v18 = vld [vmem:[%s4904_s1 + $0x80] sm:$0xff]  }
 0x1e8   :  { %v1399_v10 = vadd.f32 %v2927_v0, %v1279_v33  ;;  %v1280_v29 = vmax.f32 %v1196_v30, 0.0  ;;  %v1480_v25 = vadd.f32 %v4958_v16, %v1279_v33  ;;  %v2943_v30 = vunpack.c.l.bf16 %v2991_v18 }
 0x1e9   :  { %1442 = vst.msk [vmem:[#allocation3 + $0xd0] sm:$0xff] %vm1415_vm1, %v1401_v9  ;;  %v1402_v12 = vadd.f32 %v2932_v27, %v1282_v46  ;;  %v1483_v15 = vadd.f32 %v4957_v13, %v1282_v46  ;;  %v2947_v27 = vunpack.c.l.bf16 %v2992_v47 }
 0x1ea   :  { %1440 = vst.msk [vmem:[#allocation3 + $0xc0] sm:$0xff] %vm1415_vm1, %v1399_v10  ;;  %v1400_v57 = vadd.f32 %v2928_v36, %v1280_v29  ;;  %v1481_v37 = vadd.f32 %v4959_v49, %v1280_v29  ;;  %v2948_v10 = vunpack.c.h.bf16 %v2992_v47 }
 0x1eb   :  { %1443 = vst.msk [vmem:[#allocation3 + $0xd8] sm:$0xff] %vm1415_vm1, %v1402_v12  ;;  %v1509_v1 = vpack.c.bf16 %v1483_v15, %v1482_v55  ;;  %v2944_v12 = vunpack.c.h.bf16 %v2991_v18 }
 0x1ec   :  { %1441 = vst.msk [vmem:[#allocation3 + $0xc8] sm:$0xff] %vm1415_vm1, %v1400_v57  ;;  %v1508_v44 = vpack.c.bf16 %v1481_v37, %v1480_v25  ;;  %v4964_v57 = vunpack.c.l.bf16 %v3921_v56 }
 0x1ee   :  { %3147 = vmatprep.mubr.msk.bf16.mxu1 %vm1415_vm1, %v1508_v44 }
 0x1ef   :  { %3148 = vmatmul.mubr.msk.bf16.gmra.mrb[12].mxu1 %vm1415_vm1, %v1509_v1  ;;  %v4965_v1 = vunpack.c.h.bf16 %v3921_v56  ;;  %v2994_v56 = vld [vmem:[%s4904_s1 + $0x98] sm:$0xff]  }
 0x1f5   :  { %v3109_v26 = vpop.f32.mrb[28].mxu0 }
 0x1f6   :  { %v1217_v45 = vadd.f32 %v3109_v26, %v4265_v58  ;;  %v1208_v31 = vpop.f32.mrb[29].mxu0 }
 0x1f7   :  { %v1209_v2 = vadd.f32 %v4265_v58, %v1208_v31  ;;  %v3110_v43 = vpop.f32.mrb[30].mxu0 }
 0x1f8   :  { %v1285_v4 = vmax.f32 %v1217_v45, 0.0  ;;  %v1220_v3 = vadd.f32 %v3110_v43, %v4265_v58  ;;  %v1211_v6 = vpop.f32.mrb[31].mxu0  ;;  %v4967_v45 = vunpack.c.h.bf16 %v4021_v50 }
 0x1f9   :  { %v1283_v7 = vmax.f32 %v1209_v2, 0.0  ;;  %v1212_v61 = vadd.f32 %v4265_v58, %v1211_v6 }
 0x1fa   :  { %v1405_v14 = vadd.f32 %v2939_v60, %v1285_v4  ;;  %v1286_v52 = vmax.f32 %v1220_v3, 0.0  ;;  %v1486_v19 = vadd.f32 %v4960_v28, %v1285_v4  ;;  %v2955_v4 = vunpack.c.l.bf16 %v2994_v56 }
 0x1fb   :  { %v1403_v59 = vadd.f32 %v2935_v24, %v1283_v7  ;;  %v1284_v54 = vmax.f32 %v1212_v61, 0.0  ;;  %v1484_v22 = vadd.f32 %v4962_v20, %v1283_v7  ;;  %v2993_v24 = vld [vmem:[%s4904_s1 + $0x90] sm:$0xff]   ;;  %v4968_v20 = vunpack.c.l.bf16 %v3943_v63 }
 0x1fc   :  { %1446 = vst.msk [vmem:[#allocation3 + $0xf0] sm:$0xff] %vm1415_vm1, %v1405_v14  ;;  %v1406_v39 = vadd.f32 %v2940_v5, %v1286_v52  ;;  %v1487_v32 = vadd.f32 %v4961_v17, %v1286_v52  ;;  %v2951_v6 = vunpack.c.l.bf16 %v2993_v24  ;;  %v2956_v14 = vunpack.c.h.bf16 %v2994_v56 }
 0x1fd   :  { %1444 = vst.msk [vmem:[#allocation3 + $0xe0] sm:$0xff] %vm1415_vm1, %v1403_v59  ;;  %v1404_v34 = vadd.f32 %v2936_v8, %v1284_v54  ;;  %v1485_v40 = vadd.f32 %v4963_v41, %v1284_v54  ;;  %v2952_v28 = vunpack.c.h.bf16 %v2993_v24  ;;  %v4969_v41 = vunpack.c.h.bf16 %v3943_v63  ;;  %v4522_v63 = vld [vmem:[%s4907_s7] ss:$0 sm:$0xff] }
 0x1fe   :  { %1447 = vst.msk [vmem:[#allocation3 + $0xf8] sm:$0xff] %vm1415_vm1, %v1406_v39  ;;  %v1511_v0 = vpack.c.bf16 %v1487_v32, %v1486_v19 }
 0x1ff   :  { %1445 = vst.msk [vmem:[#allocation3 + $0xe8] sm:$0xff] %vm1415_vm1, %v1404_v34  ;;  %v1510_v21 = vpack.c.bf16 %v1485_v40, %v1484_v22 }
 0x201   :  { %3151 = vmatprep.mubr.msk.bf16.mxu1 %vm1415_vm1, %v1510_v21 }
 0x202   :  { %3152 = vmatmul.mubr.msk.bf16.gmra.mrb[16].mxu1 %vm1415_vm1, %v1511_v0 }
 0x208   :  { %v3113_v38 = vpop.f32.mrb[32].mxu0 }
 0x209   :  { %v1233_v48 = vadd.f32 %v3113_v38, %v4265_v58  ;;  %v1224_v23 = vpop.f32.mrb[33].mxu0 }
 0x20a   :  { %v1225_v33 = vadd.f32 %v4265_v58, %v1224_v23  ;;  %v3114_v36 = vpop.f32.mrb[34].mxu0 }
 0x20b   :  { %v1289_v9 = vmax.f32 %v1233_v48, 0.0  ;;  %v1236_v46 = vadd.f32 %v3114_v36, %v4265_v58  ;;  %v1227_v29 = vpop.f32.mrb[35].mxu0 }
 0x20c   :  { %v1287_v11 = vmax.f32 %v1225_v33, 0.0  ;;  %v1228_v55 = vadd.f32 %v4265_v58, %v1227_v29 }
 0x20d   :  { %v1409_v13 = vadd.f32 %v2947_v27, %v1289_v9  ;;  %v1290_v15 = vmax.f32 %v1236_v46, 0.0  ;;  %v1490_v49 = vadd.f32 %v4964_v57, %v1289_v9 }
 0x20e   :  { %v1407_v16 = vadd.f32 %v2943_v30, %v1287_v11  ;;  %v1288_v25 = vmax.f32 %v1228_v55, 0.0  ;;  %v1488_v62 = vadd.f32 %v4966_v42, %v1287_v11 }
 0x20f   :  { %1450 = vst.msk [vmem:[#allocation3 + $0x110] sm:$0xff] %vm1415_vm1, %v1409_v13  ;;  %v1410_v37 = vadd.f32 %v2948_v10, %v1290_v15  ;;  %v1491_v44 = vadd.f32 %v4965_v1, %v1290_v15 }
 0x210   :  { %1448 = vst.msk [vmem:[#allocation3 + $0x100] sm:$0xff] %vm1415_vm1, %v1407_v16  ;;  %v1408_v26 = vadd.f32 %v2944_v12, %v1288_v25  ;;  %v1489_v60 = vadd.f32 %v4967_v45, %v1288_v25 }
 0x211   :  { %1451 = vst.msk [vmem:[#allocation3 + $0x118] sm:$0xff] %vm1415_vm1, %v1410_v37  ;;  %v1513_v31 = vpack.c.bf16 %v1491_v44, %v1490_v49 }
 0x212   :  { %1449 = vst.msk [vmem:[#allocation3 + $0x108] sm:$0xff] %vm1415_vm1, %v1408_v26  ;;  %v1512_v2 = vpack.c.bf16 %v1489_v60, %v1488_v62 }
 0x214   :  { %3155 = vmatprep.mubr.msk.bf16.mxu1 %vm1415_vm1, %v1512_v2 }
 0x215   :  { %3156 = vmatmul.mubr.msk.bf16.gmra.mrb[20].mxu1 %vm1415_vm1, %v1513_v31 }
 0x21b   :  { %v3117_v50 = vpop.f32.mrb[36].mxu0 }
 0x21c   :  { %v1249_v43 = vadd.f32 %v3117_v50, %v4265_v58  ;;  %v1240_v3 = vpop.f32.mrb[37].mxu0 }
 0x21d   :  { %v1241_v5 = vadd.f32 %v4265_v58, %v1240_v3  ;;  %v3118_v7 = vpop.f32.mrb[38].mxu0 }
 0x21e   :  { %v1293_v61 = vmax.f32 %v1249_v43, 0.0  ;;  %v1252_v8 = vadd.f32 %v3118_v7, %v4265_v58  ;;  %v1243_v52 = vpop.f32.mrb[39].mxu0 }
 0x21f   :  { %v1291_v59 = vmax.f32 %v1241_v5, 0.0  ;;  %v1244_v54 = vadd.f32 %v4265_v58, %v1243_v52 }
 0x220   :  { %v1413_v19 = vadd.f32 %v2955_v4, %v1293_v61  ;;  %v1294_v39 = vmax.f32 %v1252_v8, 0.0  ;;  %v1494_v22 = vadd.f32 %v4968_v20, %v1293_v61 }
 0x221   :  { %v1411_v17 = vadd.f32 %v2951_v6, %v1291_v59  ;;  %v1292_v32 = vmax.f32 %v1244_v54, 0.0  ;;  %v1492_v0 = vadd.f32 %v2871_v53, %v1291_v59 }
 0x222   :  { %1454 = vst.msk [vmem:[#allocation3 + $0x130] sm:$0xff] %vm1415_vm1, %v1413_v19  ;;  %v1414_v34 = vadd.f32 %v2956_v14, %v1294_v39  ;;  %v1495_v40 = vadd.f32 %v4969_v41, %v1294_v39 }
 0x223   :  { %1452 = vst.msk [vmem:[#allocation3 + $0x120] sm:$0xff] %vm1415_vm1, %v1411_v17  ;;  %v1412_v58 = vadd.f32 %v2952_v28, %v1292_v32  ;;  %v1493_v21 = vadd.f32 %v2872_v35, %v1292_v32 }
 0x224   :  { %1455 = vst.msk [vmem:[#allocation3 + $0x138] sm:$0xff] %vm1415_vm1, %v1414_v34  ;;  %v1515_v47 = vpack.c.bf16 %v1495_v40, %v1494_v22 }
 0x225   :  { %1453 = vst.msk [vmem:[#allocation3 + $0x128] sm:$0xff] %vm1415_vm1, %v1412_v58  ;;  %v1514_v18 = vpack.c.bf16 %v1493_v21, %v1492_v0 }
 0x227   :  { %3159 = vmatprep.mubr.msk.bf16.mxu1 %vm1415_vm1, %v1514_v18 }
 0x228   :  { %3160 = vmatmul.mubr.msk.bf16.gmra.mrb[24].mxu1 %vm1415_vm1, %v1515_v47 }
 0x253   :  { %v3125_v53 = vpop.f32.mrb[40].mxu0 }
 0x254   :  { %v1642_v38 = vadd.f32 %v3125_v53, %v4522_v63  ;;  %v1633_v51 = vpop.f32.mrb[41].mxu0 }
 0x255   :  { %v1634_v35 = vadd.f32 %v4522_v63, %v1633_v51  ;;  %v3126_v48 = vpop.f32.mrb[42].mxu0 }
 0x256   :  { %v1645_v27 = vadd.f32 %v3126_v48, %v4522_v63  ;;  %v1636_v23 = vpop.f32.mrb[43].mxu0  ;;  %v1794_v30 = vmax.f32 %v1642_v38, 0.0 }
 0x257   :  { %v1637_v33 = vadd.f32 %v4522_v63, %v1636_v23  ;;  %v1792_v9 = vmax.f32 %v1634_v35, 0.0 }
 0x258   :  { %v1795_v36 = vmax.f32 %v1645_v27, 0.0 }
 0x259   :  { %v1793_v46 = vmax.f32 %v1637_v33, 0.0 }
 0x25a   :  { %v1833_v10 = vpack.c.bf16 %v1795_v36, %v1794_v30 }
 0x25b   :  { %v1832_v29 = vpack.c.bf16 %v1793_v46, %v1792_v9 }
 0x25d   :  { %3171 = vmatprep.mubr.msk.bf16.mxu1 %vm1001_vm0, %v1832_v29 }
 0x25e   :  { %3172 = vmatmul.mubr.msk.bf16.vlgmr.msra.gmra.mrb[28].mxu1 %vm1001_vm0, %v1833_v10 }
 0x263   :  { %v3129_v11 = vpop.f32.mrb[44].mxu0 }
 0x264   :  { %v1658_v55 = vadd.f32 %v3129_v11, %v4522_v63  ;;  %v1649_v12 = vpop.f32.mrb[45].mxu0 }
 0x265   :  { %v1650_v13 = vadd.f32 %v4522_v63, %v1649_v12  ;;  %v3130_v15 = vpop.f32.mrb[46].mxu0 }
 0x266   :  { %v1661_v16 = vadd.f32 %v3130_v15, %v4522_v63  ;;  %v1652_v25 = vpop.f32.mrb[47].mxu0  ;;  %v1798_v49 = vmax.f32 %v1658_v55, 0.0 }
 0x267   :  { %v1653_v57 = vadd.f32 %v4522_v63, %v1652_v25  ;;  %v1796_v1 = vmax.f32 %v1650_v13, 0.0 }
 0x268   :  { %v1799_v37 = vmax.f32 %v1661_v16, 0.0 }
 0x269   :  { %v1797_v44 = vmax.f32 %v1653_v57, 0.0 }
 0x26a   :  { %v1835_v42 = vpack.c.bf16 %v1799_v37, %v1798_v49 }
 0x26b   :  { %v1834_v62 = vpack.c.bf16 %v1797_v44, %v1796_v1 }
 0x26d   :  { %3175 = vmatprep.mubr.msk.bf16.mxu1 %vm1001_vm0, %v1834_v62 }
 0x26e   :  { %3176 = vmatmul.mubr.msk.bf16.gmra.mrb[32].mxu1 %vm1001_vm0, %v1835_v42 }
 0x276   :  { %v3133_v26 = vpop.f32.mrb[48].mxu0 }
 0x277   :  { %v1674_v45 = vadd.f32 %v3133_v26, %v4522_v63  ;;  %v1665_v60 = vpop.f32.mrb[49].mxu0 }
 0x278   :  { %v1666_v31 = vadd.f32 %v4522_v63, %v1665_v60  ;;  %v3134_v2 = vpop.f32.mrb[50].mxu0 }
 0x279   :  { %v1677_v56 = vadd.f32 %v3134_v2, %v4522_v63  ;;  %v1668_v24 = vpop.f32.mrb[51].mxu0  ;;  %v1802_v43 = vmax.f32 %v1674_v45, 0.0 }
 0x27a   :  { %v1669_v50 = vadd.f32 %v4522_v63, %v1668_v24  ;;  %v1800_v3 = vmax.f32 %v1666_v31, 0.0 }
 0x27b   :  { %v1803_v4 = vmax.f32 %v1677_v56, 0.0 }
 0x27c   :  { %v1801_v5 = vmax.f32 %v1669_v50, 0.0 }
 0x27d   :  { %v1837_v6 = vpack.c.bf16 %v1803_v4, %v1802_v43 }
 0x27e   :  { %v1836_v7 = vpack.c.bf16 %v1801_v5, %v1800_v3 }
 0x280   :  { %3179 = vmatprep.mubr.msk.bf16.mxu1 %vm1001_vm0, %v1836_v7 }
 0x281   :  { %3180 = vmatmul.mubr.msk.bf16.gmra.mrb[36].mxu1 %vm1001_vm0, %v1837_v6 }
 0x289   :  { %v3137_v61 = vpop.f32.mrb[0].mxu1 }
 0x28a   :  { %v1690_v8 = vadd.f32 %v3137_v61, %v4522_v63  ;;  %v1681_v14 = vpop.f32.mrb[1].mxu1 }
 0x28b   :  { %v1682_v52 = vadd.f32 %v4522_v63, %v1681_v14  ;;  %v3138_v59 = vpop.f32.mrb[2].mxu1 }
 0x28c   :  { %v1693_v54 = vadd.f32 %v3138_v59, %v4522_v63  ;;  %v1684_v28 = vpop.f32.mrb[3].mxu1  ;;  %v1806_v39 = vmax.f32 %v1690_v8, 0.0 }
 0x28d   :  { %v1685_v19 = vadd.f32 %v4522_v63, %v1684_v28  ;;  %v1804_v32 = vmax.f32 %v1682_v52, 0.0 }
 0x28e   :  { %v1807_v17 = vmax.f32 %v1693_v54, 0.0 }
 0x28f   :  { %v1805_v20 = vmax.f32 %v1685_v19, 0.0 }
 0x290   :  { %v1839_v22 = vpack.c.bf16 %v1807_v17, %v1806_v39 }
 0x291   :  { %v1838_v34 = vpack.c.bf16 %v1805_v20, %v1804_v32 }
 0x293   :  { %3183 = vmatprep.mubr.msk.bf16.mxu1 %vm1001_vm0, %v1838_v34 }
 0x294   :  { %3184 = vmatmul.mubr.msk.bf16.gmra.mrb[40].mxu1 %vm1001_vm0, %v1839_v22 }
 0x29c   :  { %v3141_v41 = vpop.f32.mrb[4].mxu1 }
 0x29d   :  { %v1706_v40 = vadd.f32 %v3141_v41, %v4522_v63  ;;  %v1697_v0 = vpop.f32.mrb[5].mxu1 }
 0x29e   :  { %v1698_v58 = vadd.f32 %v4522_v63, %v1697_v0  ;;  %v3142_v21 = vpop.f32.mrb[6].mxu1 }
 0x29f   :  { %v1709_v47 = vadd.f32 %v3142_v21, %v4522_v63  ;;  %v1700_v18 = vpop.f32.mrb[7].mxu1  ;;  %v1810_v38 = vmax.f32 %v1706_v40, 0.0 }
 0x2a0   :  { %v1701_v53 = vadd.f32 %v4522_v63, %v1700_v18  ;;  %v1808_v35 = vmax.f32 %v1698_v58, 0.0 }
 0x2a1   :  { %v1811_v51 = vmax.f32 %v1709_v47, 0.0 }
 0x2a2   :  { %v1809_v48 = vmax.f32 %v1701_v53, 0.0 }
 0x2a3   :  { %v1841_v27 = vpack.c.bf16 %v1811_v51, %v1810_v38 }
 0x2a4   :  { %v1840_v23 = vpack.c.bf16 %v1809_v48, %v1808_v35 }
 0x2a6   :  { %3187 = vmatprep.mubr.msk.bf16.mxu1 %vm1001_vm0, %v1840_v23 }
 0x2a7   :  { %3188 = vmatmul.mubr.msk.bf16.gmra.mrb[44].mxu1 %vm1001_vm0, %v1841_v27 }
 0x2af   :  { %v3145_v33 = vpop.f32.mrb[8].mxu1 }
 0x2b0   :  { %v1722_v30 = vadd.f32 %v3145_v33, %v4522_v63  ;;  %v1713_v36 = vpop.f32.mrb[9].mxu1 }
 0x2b1   :  { %v1714_v9 = vadd.f32 %v4522_v63, %v1713_v36  ;;  %v3146_v46 = vpop.f32.mrb[10].mxu1 }
 0x2b2   :  { %v1725_v10 = vadd.f32 %v3146_v46, %v4522_v63  ;;  %v1716_v29 = vpop.f32.mrb[11].mxu1  ;;  %v1814_v55 = vmax.f32 %v1722_v30, 0.0 }
 0x2b3   :  { %v1717_v11 = vadd.f32 %v4522_v63, %v1716_v29  ;;  %v1812_v13 = vmax.f32 %v1714_v9, 0.0 }
 0x2b4   :  { %v1815_v12 = vmax.f32 %v1725_v10, 0.0 }
 0x2b5   :  { %v1813_v15 = vmax.f32 %v1717_v11, 0.0  ;;  %v4587_v11 = vld [vmem:[%s4908_s9] ss:$0 sm:$0xff] }
 0x2b6   :  { %v1843_v16 = vpack.c.bf16 %v1815_v12, %v1814_v55 }
 0x2b7   :  { %v1842_v25 = vpack.c.bf16 %v1813_v15, %v1812_v13 }
 0x2b9   :  { %3191 = vmatprep.mubr.msk.bf16.mxu1 %vm1001_vm0, %v1842_v25 }
 0x2ba   :  { %3192 = vmatmul.mubr.msk.bf16.gmra.mrb[48].mxu1 %vm1001_vm0, %v1843_v16 }
 0x2c2   :  { %v3149_v57 = vpop.f32.mrb[12].mxu1 }
 0x2c3   :  { %v1738_v49 = vadd.f32 %v3149_v57, %v4522_v63  ;;  %v1729_v37 = vpop.f32.mrb[13].mxu1 }
 0x2c4   :  { %v1730_v1 = vadd.f32 %v4522_v63, %v1729_v37  ;;  %v3150_v44 = vpop.f32.mrb[14].mxu1 }
 0x2c5   :  { %v1741_v42 = vadd.f32 %v3150_v44, %v4522_v63  ;;  %v1732_v62 = vpop.f32.mrb[15].mxu1  ;;  %v1818_v45 = vmax.f32 %v1738_v49, 0.0 }
 0x2c6   :  { %v1733_v26 = vadd.f32 %v4522_v63, %v1732_v62  ;;  %v1816_v31 = vmax.f32 %v1730_v1, 0.0 }
 0x2c7   :  { %v1819_v60 = vmax.f32 %v1741_v42, 0.0 }
 0x2c8   :  { %v1817_v2 = vmax.f32 %v1733_v26, 0.0 }
 0x2c9   :  { %v1845_v56 = vpack.c.bf16 %v1819_v60, %v1818_v45 }
 0x2ca   :  { %v1844_v24 = vpack.c.bf16 %v1817_v2, %v1816_v31 }
 0x2cc   :  { %3195 = vmatprep.mubr.msk.bf16.mxu1 %vm1001_vm0, %v1844_v24 }
 0x2cd   :  { %3196 = vmatmul.mubr.msk.bf16.gmra.mrb[52].mxu1 %vm1001_vm0, %v1845_v56 }
 0x2d5   :  { %v3153_v50 = vpop.f32.mrb[16].mxu1 }
 0x2d6   :  { %v1754_v43 = vadd.f32 %v3153_v50, %v4522_v63  ;;  %v1745_v4 = vpop.f32.mrb[17].mxu1 }
 0x2d7   :  { %v1746_v3 = vadd.f32 %v4522_v63, %v1745_v4  ;;  %v3154_v5 = vpop.f32.mrb[18].mxu1 }
 0x2d8   :  { %v1757_v6 = vadd.f32 %v3154_v5, %v4522_v63  ;;  %v1748_v7 = vpop.f32.mrb[19].mxu1  ;;  %v1822_v8 = vmax.f32 %v1754_v43, 0.0 }
 0x2d9   :  { %v1749_v61 = vadd.f32 %v4522_v63, %v1748_v7  ;;  %v1820_v52 = vmax.f32 %v1746_v3, 0.0 }
 0x2da   :  { %v1823_v14 = vmax.f32 %v1757_v6, 0.0 }
 0x2db   :  { %v1821_v59 = vmax.f32 %v1749_v61, 0.0 }
 0x2dc   :  { %v1847_v54 = vpack.c.bf16 %v1823_v14, %v1822_v8 }
 0x2dd   :  { %v1846_v28 = vpack.c.bf16 %v1821_v59, %v1820_v52 }
 0x2df   :  { %3199 = vmatprep.mubr.msk.bf16.mxu1 %vm1001_vm0, %v1846_v28 }
 0x2e0   :  { %3200 = vmatmul.mubr.msk.bf16.gmra.mrb[56].mxu1 %vm1001_vm0, %v1847_v54 }
 0x2e8   :  { %v3157_v19 = vpop.f32.mrb[20].mxu1 }
 0x2e9   :  { %v1770_v39 = vadd.f32 %v3157_v19, %v4522_v63  ;;  %v1761_v17 = vpop.f32.mrb[21].mxu1 }
 0x2ea   :  { %v1762_v32 = vadd.f32 %v4522_v63, %v1761_v17  ;;  %v3158_v20 = vpop.f32.mrb[22].mxu1  ;;  %v3578_v17 = vld [vmem:[%s4909_s10 + $0x8] sm:$0xff]  }
 0x2eb   :  { %v1773_v22 = vadd.f32 %v3158_v20, %v4522_v63  ;;  %v1764_v34 = vpop.f32.mrb[23].mxu1  ;;  %v1826_v40 = vmax.f32 %v1770_v39, 0.0  ;;  %v3577_v39 = vld [vmem:[%s4909_s10] sm:$0xff]  }
 0x2ec   :  { %v1765_v41 = vadd.f32 %v4522_v63, %v1764_v34  ;;  %v1824_v58 = vmax.f32 %v1762_v32, 0.0  ;;  %3211 = vmatprep.subr.bf16.mxu0 %v3577_v39 }
 0x2ed   :  { %v1827_v0 = vmax.f32 %v1773_v22, 0.0  ;;  %3212 = vmatpush3.bf16.msra.mxu0 %v3577_v39 }
 0x2ee   :  { %v1825_v21 = vmax.f32 %v1765_v41, 0.0  ;;  %3213 = vmatprep.subr.bf16.mxu0 %v3578_v17 }
 0x2ef   :  { %v1849_v47 = vpack.c.bf16 %v1827_v0, %v1826_v40 }
 0x2f0   :  { %v1848_v18 = vpack.c.bf16 %v1825_v21, %v1824_v58 }
 0x2f1   :  { %3214 = vmatpush3.bf16.msra.mxu0 %v3578_v17 }
 0x2f2   :  { %3203 = vmatprep.mubr.msk.bf16.mxu1 %vm1001_vm0, %v1848_v18 }
 0x2f3   :  { %3204 = vmatmul.mubr.msk.bf16.gmra.mrb[60].mxu1 %vm1001_vm0, %v1849_v47 }
 0x2fb   :  { %v3161_v53 = vpop.f32.mrb[24].mxu1 }
 0x2fc   :  { %v1786_v38 = vadd.f32 %v3161_v53, %v4522_v63  ;;  %v1777_v51 = vpop.f32.mrb[25].mxu1 }
 0x2fd   :  { %v1778_v35 = vadd.f32 %v4522_v63, %v1777_v51  ;;  %v3162_v48 = vpop.f32.mrb[26].mxu1 }
 0x2fe   :  { %v1789_v27 = vadd.f32 %v3162_v48, %v4522_v63  ;;  %v1780_v23 = vpop.f32.mrb[27].mxu1  ;;  %v1830_v30 = vmax.f32 %v1786_v38, 0.0 }
 0x2ff   :  { %v1781_v33 = vadd.f32 %v4522_v63, %v1780_v23  ;;  %v1828_v9 = vmax.f32 %v1778_v35, 0.0 }
 0x300   :  { %v1831_v36 = vmax.f32 %v1789_v27, 0.0 }
 0x301   :  { %v1829_v46 = vmax.f32 %v1781_v33, 0.0 }
 0x302   :  { %v1851_v10 = vpack.c.bf16 %v1831_v36, %v1830_v30 }
 0x303   :  { %v1850_v29 = vpack.c.bf16 %v1829_v46, %v1828_v9 }
 0x305   :  { %3207 = vmatprep.mubr.msk.bf16.mxu1 %vm1001_vm0, %v1850_v29 }
 0x306   :  { %3208 = vmatmul.mubr.msk.bf16.gmra.mrb[64].mxu1 %vm1001_vm0, %v1851_v10 }
 0x331   :  { %v3173_v55 = vpop.f32.mrb[28].mxu1 }
 0x332   :  { %v1994_v12 = vadd.f32 %v3173_v55, %v4587_v11  ;;  %v1985_v13 = vpop.f32.mrb[29].mxu1 }
 0x333   :  { %v1986_v63 = vadd.f32 %v4587_v11, %v1985_v13  ;;  %v3174_v15 = vpop.f32.mrb[30].mxu1 }
 0x334   :  { %v2146_v16 = vmax.f32 %v1994_v12, 0.0  ;;  %v1997_v25 = vadd.f32 %v3174_v15, %v4587_v11  ;;  %v1988_v57 = vpop.f32.mrb[31].mxu1 }
 0x335   :  { %v2144_v49 = vmax.f32 %v1986_v63, 0.0  ;;  %v1989_v37 = vadd.f32 %v4587_v11, %v1988_v57 }
 0x336   :  { %2186 = vst.msk [vmem:[#allocation2 + $0x10] sm:$0xff] %vm1415_vm1, %v2146_v16  ;;  %v2147_v1 = vmax.f32 %v1997_v25, 0.0 }
 0x337   :  { %2184 = vst.msk [vmem:[#allocation2] sm:$0xff] %vm1415_vm1, %v2144_v49  ;;  %v2145_v44 = vmax.f32 %v1989_v37, 0.0 }
 0x338   :  { %2187 = vst.msk [vmem:[#allocation2 + $0x18] sm:$0xff] %vm1415_vm1, %v2147_v1 }
 0x339   :  { %2185 = vst.msk [vmem:[#allocation2 + $0x8] sm:$0xff] %vm1415_vm1, %v2145_v44 }
 0x341   :  { %v3177_v42 = vpop.f32.mrb[32].mxu1 }
 0x342   :  { %v2010_v62 = vadd.f32 %v3177_v42, %v4587_v11  ;;  %v2001_v26 = vpop.f32.mrb[33].mxu1 }
 0x343   :  { %v2002_v45 = vadd.f32 %v4587_v11, %v2001_v26  ;;  %v3178_v60 = vpop.f32.mrb[34].mxu1 }
 0x344   :  { %v2150_v31 = vmax.f32 %v2010_v62, 0.0  ;;  %v2013_v2 = vadd.f32 %v3178_v60, %v4587_v11  ;;  %v2004_v56 = vpop.f32.mrb[35].mxu1 }
 0x345   :  { %v2148_v24 = vmax.f32 %v2002_v45, 0.0  ;;  %v2005_v50 = vadd.f32 %v4587_v11, %v2004_v56 }
 0x346   :  { %2190 = vst.msk [vmem:[#allocation2 + $0x30] sm:$0xff] %vm1415_vm1, %v2150_v31  ;;  %v2151_v43 = vmax.f32 %v2013_v2, 0.0 }
 0x347   :  { %2188 = vst.msk [vmem:[#allocation2 + $0x20] sm:$0xff] %vm1415_vm1, %v2148_v24  ;;  %v2149_v4 = vmax.f32 %v2005_v50, 0.0 }
 0x348   :  { %2191 = vst.msk [vmem:[#allocation2 + $0x38] sm:$0xff] %vm1415_vm1, %v2151_v43 }
 0x349   :  { %2189 = vst.msk [vmem:[#allocation2 + $0x28] sm:$0xff] %vm1415_vm1, %v2149_v4 }
 0x354   :  { %v3181_v3 = vpop.f32.mrb[36].mxu1 }
 0x355   :  { %v2026_v5 = vadd.f32 %v3181_v3, %v4587_v11  ;;  %v2017_v6 = vpop.f32.mrb[37].mxu1 }
 0x356   :  { %v2018_v7 = vadd.f32 %v4587_v11, %v2017_v6  ;;  %v3182_v61 = vpop.f32.mrb[38].mxu1 }
 0x357   :  { %v2154_v8 = vmax.f32 %v2026_v5, 0.0  ;;  %v2029_v14 = vadd.f32 %v3182_v61, %v4587_v11  ;;  %v2020_v52 = vpop.f32.mrb[39].mxu1 }
 0x358   :  { %v2152_v59 = vmax.f32 %v2018_v7, 0.0  ;;  %v2021_v54 = vadd.f32 %v4587_v11, %v2020_v52 }
 0x359   :  { %2194 = vst.msk [vmem:[#allocation2 + $0x50] sm:$0xff] %vm1415_vm1, %v2154_v8  ;;  %v2155_v28 = vmax.f32 %v2029_v14, 0.0 }
 0x35a   :  { %2192 = vst.msk [vmem:[#allocation2 + $0x40] sm:$0xff] %vm1415_vm1, %v2152_v59  ;;  %v2153_v19 = vmax.f32 %v2021_v54, 0.0 }
 0x35b   :  { %2195 = vst.msk [vmem:[#allocation2 + $0x58] sm:$0xff] %vm1415_vm1, %v2155_v28 }
 0x35c   :  { %2193 = vst.msk [vmem:[#allocation2 + $0x48] sm:$0xff] %vm1415_vm1, %v2153_v19 }
 0x367   :  { %v3185_v32 = vpop.f32.mrb[40].mxu1 }
 0x368   :  { %v2042_v20 = vadd.f32 %v3185_v32, %v4587_v11  ;;  %v2033_v22 = vpop.f32.mrb[41].mxu1 }
 0x369   :  { %v2034_v34 = vadd.f32 %v4587_v11, %v2033_v22  ;;  %v3186_v41 = vpop.f32.mrb[42].mxu1 }
 0x36a   :  { %v2158_v40 = vmax.f32 %v2042_v20, 0.0  ;;  %v2045_v0 = vadd.f32 %v3186_v41, %v4587_v11  ;;  %v2036_v58 = vpop.f32.mrb[43].mxu1 }
 0x36b   :  { %v2156_v21 = vmax.f32 %v2034_v34, 0.0  ;;  %v2037_v47 = vadd.f32 %v4587_v11, %v2036_v58 }
 0x36c   :  { %2198 = vst.msk [vmem:[#allocation2 + $0x70] sm:$0xff] %vm1415_vm1, %v2158_v40  ;;  %v2159_v18 = vmax.f32 %v2045_v0, 0.0  ;;  %v4662_v40 = vld [vmem:[#allocation2 + $0x50] sm:$0xff] }
 0x36d   :  { %2196 = vst.msk [vmem:[#allocation2 + $0x60] sm:$0xff] %vm1415_vm1, %v2156_v21  ;;  %v2157_v53 = vmax.f32 %v2037_v47, 0.0  ;;  %v4666_v47 = vld [vmem:[#allocation2 + $0x40] sm:$0xff] }
 0x36e   :  { %2199 = vst.msk [vmem:[#allocation2 + $0x78] sm:$0xff] %vm1415_vm1, %v2159_v18  ;;  %v4668_v18 = vld [vmem:[#allocation2 + $0x10] sm:$0xff] }
 0x36f   :  { %2197 = vst.msk [vmem:[#allocation2 + $0x68] sm:$0xff] %vm1415_vm1, %v2157_v53  ;;  %v4670_v53 = vld [vmem:[#allocation2 + $0x58] sm:$0xff] }
 0x37a   :  { %v3189_v38 = vpop.f32.mrb[44].mxu1 }
 0x37b   :  { %v2058_v51 = vadd.f32 %v3189_v38, %v4587_v11  ;;  %v2049_v35 = vpop.f32.mrb[45].mxu1 }
 0x37c   :  { %v2050_v48 = vadd.f32 %v4587_v11, %v2049_v35  ;;  %v3190_v27 = vpop.f32.mrb[46].mxu1  ;;  %v2242_v35 = vmax.f32 %v4668_v18, %v4662_v40 }
 0x37d   :  { %v2162_v23 = vmax.f32 %v2058_v51, 0.0  ;;  %v2061_v33 = vadd.f32 %v3190_v27, %v4587_v11  ;;  %v2052_v30 = vpop.f32.mrb[47].mxu1  ;;  %v4678_v27 = vld [vmem:[#allocation2 + $0x48] sm:$0xff] }
 0x37e   :  { %v2160_v36 = vmax.f32 %v2050_v48, 0.0  ;;  %v2053_v9 = vadd.f32 %v4587_v11, %v2052_v30  ;;  %v2224_v48 = vld [vmem:[#allocation2] sm:$0xff] }
 0x37f   :  { %2202 = vst.msk [vmem:[#allocation2 + $0x90] sm:$0xff] %vm1415_vm1, %v2162_v23  ;;  %v2163_v46 = vmax.f32 %v2061_v33, 0.0  ;;  %v4680_v33 = vld [vmem:[#allocation2 + $0x18] sm:$0xff] }
 0x380   :  { %2200 = vst.msk [vmem:[#allocation2 + $0x80] sm:$0xff] %vm1415_vm1, %v2160_v36  ;;  %v2161_v10 = vmax.f32 %v2053_v9, 0.0  ;;  %v2240_v9 = vmax.f32 %v2224_v48, %v4666_v47 }
 0x381   :  { %2203 = vst.msk [vmem:[#allocation2 + $0x98] sm:$0xff] %vm1415_vm1, %v2163_v46  ;;  %v2243_v46 = vmax.f32 %v4680_v33, %v4670_v53 }
 0x382   :  { %2201 = vst.msk [vmem:[#allocation2 + $0x88] sm:$0xff] %vm1415_vm1, %v2161_v10 }
 0x386   :  { %v4672_v38 = vld [vmem:[#allocation2 + $0x90] sm:$0xff] }
 0x387   :  { %v2248_v23 = vld [vmem:[#allocation2 + $0x80] sm:$0xff]  ;;  %v2258_v10 = vmax.f32 %v2242_v35, %v4672_v38 }
 0x388   :  { %v4682_v30 = vld [vmem:[#allocation2 + $0x98] sm:$0xff] }
 0x38d   :  { %v3193_v29 = vpop.f32.mrb[48].mxu1 }
 0x38e   :  { %v2074_v55 = vadd.f32 %v3193_v29, %v4587_v11  ;;  %v2065_v12 = vpop.f32.mrb[49].mxu1  ;;  %v2225_v29 = vld [vmem:[#allocation2 + $0x8] sm:$0xff] }
 0x38f   :  { %v2066_v13 = vadd.f32 %v4587_v11, %v2065_v12  ;;  %v3194_v63 = vpop.f32.mrb[50].mxu1 }
 0x390   :  { %v2166_v15 = vmax.f32 %v2074_v55, 0.0  ;;  %v2077_v16 = vadd.f32 %v3194_v63, %v4587_v11  ;;  %v2068_v25 = vpop.f32.mrb[51].mxu1  ;;  %v2249_v55 = vld [vmem:[#allocation2 + $0x88] sm:$0xff]  ;;  %v2241_v63 = vmax.f32 %v2225_v29, %v4678_v27 }
 0x391   :  { %v2164_v57 = vmax.f32 %v2066_v13, 0.0  ;;  %v2069_v49 = vadd.f32 %v4587_v11, %v2068_v25  ;;  %v4696_v25 = vld [vmem:[#allocation2 + $0x70] sm:$0xff] }
 0x392   :  { %2206 = vst.msk [vmem:[#allocation2 + $0xb0] sm:$0xff] %vm1415_vm1, %v2166_v15  ;;  %v2167_v37 = vmax.f32 %v2077_v16, 0.0  ;;  %v2256_v15 = vmax.f32 %v2240_v9, %v2248_v23  ;;  %v4694_v16 = vld [vmem:[#allocation2 + $0x30] sm:$0xff] }
 0x393   :  { %2204 = vst.msk [vmem:[#allocation2 + $0xa0] sm:$0xff] %vm1415_vm1, %v2164_v57  ;;  %v2165_v1 = vmax.f32 %v2069_v49, 0.0  ;;  %v2259_v57 = vmax.f32 %v2243_v46, %v4682_v30 }
 0x394   :  { %2207 = vst.msk [vmem:[#allocation2 + $0xb8] sm:$0xff] %vm1415_vm1, %v2167_v37 }
 0x395   :  { %2205 = vst.msk [vmem:[#allocation2 + $0xa8] sm:$0xff] %vm1415_vm1, %v2165_v1  ;;  %v4700_v1 = vld [vmem:[#allocation2 + $0x60] sm:$0xff] }
 0x3a0   :  { %v3197_v44 = vpop.f32.mrb[52].mxu1 }
 0x3a1   :  { %v2090_v42 = vadd.f32 %v3197_v44, %v4587_v11  ;;  %v2081_v62 = vpop.f32.mrb[53].mxu1  ;;  %v4702_v44 = vld [vmem:[#allocation2 + $0x78] sm:$0xff] }
 0x3a2   :  { %v2082_v26 = vadd.f32 %v4587_v11, %v2081_v62  ;;  %v3198_v45 = vpop.f32.mrb[54].mxu1  ;;  %v2257_v62 = vmax.f32 %v2241_v63, %v2249_v55 }
 0x3a3   :  { %v2170_v60 = vmax.f32 %v2090_v42, 0.0  ;;  %v2093_v31 = vadd.f32 %v3198_v45, %v4587_v11  ;;  %v2084_v2 = vpop.f32.mrb[55].mxu1  ;;  %v4706_v45 = vld [vmem:[#allocation2 + $0x68] sm:$0xff] }
 0x3a4   :  { %v2168_v56 = vmax.f32 %v2082_v26, 0.0  ;;  %v2085_v24 = vadd.f32 %v4587_v11, %v2084_v2 }
 0x3a5   :  { %2210 = vst.msk [vmem:[#allocation2 + $0xd0] sm:$0xff] %vm1415_vm1, %v2170_v60  ;;  %v2171_v50 = vmax.f32 %v2093_v31, 0.0  ;;  %v4708_v60 = vld [vmem:[#allocation2 + $0xb0] sm:$0xff] }
 0x3a6   :  { %2208 = vst.msk [vmem:[#allocation2 + $0xc0] sm:$0xff] %vm1415_vm1, %v2168_v56  ;;  %v2169_v43 = vmax.f32 %v2085_v24, 0.0  ;;  %v4714_v24 = vld [vmem:[#allocation2 + $0x20] sm:$0xff] }
 0x3a7   :  { %2211 = vst.msk [vmem:[#allocation2 + $0xd8] sm:$0xff] %vm1415_vm1, %v2171_v50  ;;  %v4716_v50 = vld [vmem:[#allocation2 + $0x38] sm:$0xff] }
 0x3a8   :  { %2209 = vst.msk [vmem:[#allocation2 + $0xc8] sm:$0xff] %vm1415_vm1, %v2169_v43  ;;  %v2246_v43 = vmax.f32 %v4694_v16, %v4696_v25 }
 0x3ac   :  { %v4684_v36 = vld [vmem:[#allocation2 + $0xd0] sm:$0xff] }
 0x3ad   :  { %v2264_v12 = vld [vmem:[#allocation2 + $0xc0] sm:$0xff]  ;;  %v2274_v49 = vmax.f32 %v2258_v10, %v4684_v36 }
 0x3ae   :  { %v4691_v13 = vld [vmem:[#allocation2 + $0xd8] sm:$0xff]  ;;  %v2272_v26 = vmax.f32 %v2256_v15, %v2264_v12 }
 0x3af   :  { %v2265_v37 = vld [vmem:[#allocation2 + $0xc8] sm:$0xff]  ;;  %v2275_v31 = vmax.f32 %v2259_v57, %v4691_v13 }
 0x3b3   :  { %v3201_v4 = vpop.f32.mrb[56].mxu1 }
 0x3b4   :  { %v2106_v3 = vadd.f32 %v3201_v4, %v4587_v11  ;;  %v2097_v5 = vpop.f32.mrb[57].mxu1 }
 0x3b5   :  { %v2098_v6 = vadd.f32 %v4587_v11, %v2097_v5  ;;  %v3202_v7 = vpop.f32.mrb[58].mxu1 }
 0x3b6   :  { %v2174_v61 = vmax.f32 %v2106_v3, 0.0  ;;  %v2109_v8 = vadd.f32 %v3202_v7, %v4587_v11  ;;  %v2100_v14 = vpop.f32.mrb[59].mxu1  ;;  %v2273_v3 = vmax.f32 %v2257_v62, %v2265_v37  ;;  %v2244_v7 = vmax.f32 %v4714_v24, %v4700_v1 }
 0x3b7   :  { %v2172_v52 = vmax.f32 %v2098_v6, 0.0  ;;  %v2101_v59 = vadd.f32 %v4587_v11, %v2100_v14  ;;  %v4722_v6 = vld [vmem:[#allocation2 + $0x28] sm:$0xff] }
 0x3b8   :  { %2214 = vst.msk [vmem:[#allocation2 + $0xf0] sm:$0xff] %vm1415_vm1, %v2174_v61  ;;  %v2175_v54 = vmax.f32 %v2109_v8, 0.0  ;;  %v4726_v61 = vld [vmem:[#allocation2 + $0xa0] sm:$0xff] }
 0x3b9   :  { %2212 = vst.msk [vmem:[#allocation2 + $0xe0] sm:$0xff] %vm1415_vm1, %v2172_v52  ;;  %v2173_v28 = vmax.f32 %v2101_v59, 0.0  ;;  %v2245_v52 = vmax.f32 %v4722_v6, %v4706_v45  ;;  %v2247_v59 = vmax.f32 %v4716_v50, %v4702_v44 }
 0x3ba   :  { %2215 = vst.msk [vmem:[#allocation2 + $0xf8] sm:$0xff] %vm1415_vm1, %v2175_v54  ;;  %v4736_v54 = vmax.f32 %v2246_v43, %v4708_v60 }
 0x3bb   :  { %2213 = vst.msk [vmem:[#allocation2 + $0xe8] sm:$0xff] %vm1415_vm1, %v2173_v28 }
 0x3c6   :  { %v3205_v19 = vpop.f32.mrb[60].mxu1 }
 0x3c7   :  { %v2122_v39 = vadd.f32 %v3205_v19, %v4587_v11  ;;  %v2113_v17 = vpop.f32.mrb[61].mxu1 }
 0x3c8   :  { %v2114_v32 = vadd.f32 %v4587_v11, %v2113_v17  ;;  %v3206_v20 = vpop.f32.mrb[62].mxu1 }
 0x3c9   :  { %v2178_v22 = vmax.f32 %v2122_v39, 0.0  ;;  %v2125_v34 = vadd.f32 %v3206_v20, %v4587_v11  ;;  %v2116_v41 = vpop.f32.mrb[63].mxu1 }
 0x3ca   :  { %v2176_v0 = vmax.f32 %v2114_v32, 0.0  ;;  %v2117_v58 = vadd.f32 %v4587_v11, %v2116_v41 }
 0x3cb   :  { %2218 = vst.msk [vmem:[#allocation2 + $0x110] sm:$0xff] %vm1415_vm1, %v2178_v22  ;;  %v2179_v21 = vmax.f32 %v2125_v34, 0.0  ;;  %v4742_v34 = vmax.f32 %v2244_v7, %v4726_v61 }
 0x3cc   :  { %2216 = vst.msk [vmem:[#allocation2 + $0x100] sm:$0xff] %vm1415_vm1, %v2176_v0  ;;  %v2177_v51 = vmax.f32 %v2117_v58, 0.0 }
 0x3cd   :  { %2219 = vst.msk [vmem:[#allocation2 + $0x118] sm:$0xff] %vm1415_vm1, %v2179_v21 }
 0x3ce   :  { %2217 = vst.msk [vmem:[#allocation2 + $0x108] sm:$0xff] %vm1415_vm1, %v2177_v51 }
 0x3d2   :  { %v4704_v42 = vld [vmem:[#allocation2 + $0x110] sm:$0xff] }
 0x3d3   :  { %v4712_v2 = vmax.f32 %v2274_v49, %v4704_v42  ;;  %v2280_v56 = vld [vmem:[#allocation2 + $0x100] sm:$0xff] }
 0x3d4   :  { %v4720_v4 = vld [vmem:[#allocation2 + $0x118] sm:$0xff]  ;;  %v2288_v5 = vmax.f32 %v2272_v26, %v2280_v56 }
 0x3d5   :  { %v4729_v8 = vmax.f32 %v2275_v31, %v4720_v4  ;;  %v2281_v14 = vld [vmem:[#allocation2 + $0x108] sm:$0xff]  ;;  %v2298_v22 = vsub.f32 %v4668_v18, %v4712_v2  ;;  %v4751_v26 = vld [vmem:[#allocation2 + $0xb8] sm:$0xff]  ;;  %v2354_v43 = vsub.f32 %v4662_v40, %v4712_v2 }
 0x3d6   :  { %v2289_v28 = vmax.f32 %v2273_v3, %v2281_v14  ;;  %v2296_v19 = vsub.f32 %v2224_v48, %v2288_v5  ;;  %v2352_v39 = vsub.f32 %v4666_v47, %v2288_v5  ;;  %v2408_v17 = vsub.f32 %v2248_v23, %v2288_v5  ;;  %v4756_v3 = vld [vmem:[#allocation2 + $0xa8] sm:$0xff] }
 0x3d7   :  { %v2464_v32 = vsub.f32 %v2264_v12, %v2288_v5  ;;  %v2520_v20 = vsub.f32 %v2280_v56, %v2288_v5  ;;  %v2299_v47 = vsub.f32 %v4680_v33, %v4729_v8  ;;  %v4767_v40 = vmax.f32 %v2247_v59, %v4751_v26 }
 0x3d8   :  { %v2297_v41 = vsub.f32 %v2225_v29, %v2289_v28  ;;  %v2304_v0 = vmul.f32 1.442695, %v2296_v19  ;;  %v2353_v58 = vsub.f32 %v4678_v27, %v2289_v28  ;;  %v2360_v21 = vmul.f32 1.442695, %v2352_v39 }
 0x3d9   :  { %v3209_v51 = vpop.f32.mrb[64].mxu1  ;;  %v2409_v35 = vsub.f32 %v2249_v55, %v2289_v28  ;;  %v2416_v9 = vmul.f32 1.442695, %v2408_v17  ;;  %v2465_v48 = vsub.f32 %v2265_v37, %v2289_v28  ;;  %v2472_v27 = vmul.f32 1.442695, %v2464_v32  ;;  %v4773_v32 = vld [vmem:[#allocation2 + $0xe0] sm:$0xff] }
 0x3da   :  { %v2138_v23 = vadd.f32 %v3209_v51, %v4587_v11  ;;  %v2129_v46 = vpop.f32.mrb[65].mxu1  ;;  %3579 = vpow2.f32 %v2304_v0  ;;  %v2306_v18 = vmul.f32 1.442695, %v2297_v41  ;;  %v2362_v10 = vmul.f32 1.442695, %v2353_v58  ;;  %v2328_v58 = vld [vmem:[#allocation3] sm:$0xff] }
 0x3db   :  { %v2130_v12 = vadd.f32 %v4587_v11, %v2129_v46  ;;  %v3210_v29 = vpop.f32.mrb[66].mxu1  ;;  %3581 = vpow2.f32 %v2360_v21  ;;  %v2418_v63 = vmul.f32 1.442695, %v2409_v35  ;;  %v2521_v49 = vsub.f32 %v2281_v14, %v2289_v28  ;;  %v4761_v14 = vld [vmem:[#allocation2 + $0xf0] sm:$0xff]  ;;  %v2329_v46 = vld [vmem:[#allocation3 + $0x8] sm:$0xff] }
 0x3dc   :  { %v2182_v15 = vmax.f32 %v2138_v23, 0.0  ;;  %v2141_v55 = vadd.f32 %v3210_v29, %v4587_v11  ;;  %v2132_v57 = vpop.f32.mrb[67].mxu1  ;;  %3583 = vpow2.f32 %v2306_v18  ;;  %v2474_v62 = vmul.f32 1.442695, %v2465_v48  ;;  %v2384_v48 = vld [vmem:[#allocation3 + $0x40] sm:$0xff]  ;;  %v2385_v29 = vld [vmem:[#allocation3 + $0x48] sm:$0xff] }
 0x3dd   :  { %v2180_v37 = vmax.f32 %v2130_v12, 0.0  ;;  %v2133_v33 = vadd.f32 %v4587_v11, %v2132_v57  ;;  %3585 = vpow2.f32 %v2362_v10  ;;  %v2528_v56 = vmul.f32 1.442695, %v2520_v20  ;;  %v4775_v20 = vld [vmem:[#allocation2 + $0xe8] sm:$0xff] }
 0x3de   :  { %2222 = vst.msk [vmem:[#allocation2 + $0x130] sm:$0xff] %vm1415_vm1, %v2182_v15  ;;  %v2183_v31 = vmax.f32 %v2141_v55, 0.0  ;;  %3587 = vpow2.f32 %v2416_v9  ;;  %v2530_v7 = vmul.f32 1.442695, %v2521_v49  ;;  %v2355_v11 = vsub.f32 %v4670_v53, %v4729_v8 }
 0x3df   :  { %2220 = vst.msk [vmem:[#allocation2 + $0x120] sm:$0xff] %vm1415_vm1, %v2180_v37  ;;  %v2181_v5 = vmax.f32 %v2133_v33, 0.0  ;;  %3589 = vpow2.f32 %v2418_v63  ;;  %v2308_v28 = vmul.f32 1.442695, %v2298_v22  ;;  %v2410_v19 = vsub.f32 %v4672_v38, %v4712_v2  ;;  %v2440_v37 = vld [vmem:[#allocation3 + $0x80] sm:$0xff] }
 0x3e0   :  { %2223 = vst.msk [vmem:[#allocation2 + $0x138] sm:$0xff] %vm1415_vm1, %v2183_v31  ;;  %3591 = vpow2.f32 %v2472_v27  ;;  %v2310_v39 = vmul.f32 1.442695, %v2299_v47  ;;  %v2411_v17 = vsub.f32 %v4682_v30, %v4729_v8  ;;  %v2261_v53 = vmax.f32 %v2245_v52, %v4756_v3 }
 0x3e1   :  { %2221 = vst.msk [vmem:[#allocation2 + $0x128] sm:$0xff] %vm1415_vm1, %v2181_v5  ;;  %3593 = vpow2.f32 %v2474_v62  ;;  %v2364_v22 = vmul.f32 1.442695, %v2354_v43  ;;  %v2466_v38 = vsub.f32 %v4684_v36, %v4712_v2  ;;  %v2278_v59 = vmax.f32 %v4736_v54, %v4761_v14 }
 0x3e2   :  { %3595 = vpow2.f32 %v2528_v56  ;;  %v2366_v41 = vmul.f32 1.442695, %v2355_v11  ;;  %v2467_v0 = vsub.f32 %v4691_v13, %v4729_v8  ;;  %v2522_v30 = vsub.f32 %v4704_v42, %v4712_v2  ;;  %v4794_v56 = vld [vmem:[#allocation2 + $0xf8] sm:$0xff] }
 0x3e3   :  { %3597 = vpow2.f32 %v2530_v7  ;;  %v2420_v21 = vmul.f32 1.442695, %v2410_v19  ;;  %v2276_v51 = vmax.f32 %v4742_v34, %v4773_v32  ;;  %v2277_v36 = vmax.f32 %v2261_v53, %v4775_v20 }
 0x3e4   :  { %v3580_v52 = vpop.eup %3579  ;;  %3599 = vpow2.f32 %v2308_v28  ;;  %v2422_v47 = vmul.f32 1.442695, %v2411_v17  ;;  %v2523_v13 = vsub.f32 %v4720_v4, %v4729_v8  ;;  %v2476_v18 = vmul.f32 1.442695, %v2466_v38 }
 0x3e5   :  { %v3582_v35 = vpop.eup %3581  ;;  %v2336_v9 = vmul.f32 %v3580_v52, %v2328_v58  ;;  %3601 = vpow2.f32 %v2310_v39  ;;  %v2478_v34 = vmul.f32 1.442695, %v2467_v0  ;;  %v2532_v63 = vmul.f32 1.442695, %v2522_v30  ;;  %v4799_v28 = vld [vmem:[#allocation2 + $0x130] sm:$0xff]  ;;  %v2441_v39 = vld [vmem:[#allocation3 + $0x88] sm:$0xff] }
 0x3e6   :  { %v3584_v23 = vpop.eup %3583  ;;  %v2376_v42 = vadd.f32 %v3582_v35, %v3580_v52  ;;  %v2392_v2 = vmul.f32 %v3582_v35, %v2384_v48  ;;  %3603 = vpow2.f32 %v2364_v22  ;;  %v4790_v27 = vld [vmem:[#allocation2 + $0x120] sm:$0xff]  ;;  %v2534_v31 = vmul.f32 1.442695, %v2523_v13 }
 0x3e7   :  { %v3586_v10 = vpop.eup %3585  ;;  %v2337_v12 = vmul.f32 %v3584_v23, %v2329_v46  ;;  %3605 = vpow2.f32 %v2366_v41  ;;  %v4797_v11 = vmax.f32 %v2276_v51, %v4790_v27  ;;  %v2496_v30 = vld [vmem:[#allocation3 + $0xc0] sm:$0xff]  ;;  %v2279_v52 = vmax.f32 %v4767_v40, %v4794_v56 }
 0x3e8   :  { %v3588_v15 = vpop.eup %3587  ;;  %v2377_v55 = vadd.f32 %v3586_v10, %v3584_v23  ;;  %v2393_v57 = vmul.f32 %v3586_v10, %v2385_v29  ;;  %v2400_v49 = vadd.f32 %v2392_v2, %v2336_v9  ;;  %3607 = vpow2.f32 %v2420_v21  ;;  %v4792_v4 = vld [vmem:[#allocation2 + $0x128] sm:$0xff]  ;;  %v2330_v23 = vld [vmem:[#allocation3 + $0x10] sm:$0xff]  ;;  %v2331_v10 = vld [vmem:[#allocation3 + $0x18] sm:$0xff] }
 0x3e9   :  { %v3590_v8 = vpop.eup %3589  ;;  %v2432_v33 = vadd.f32 %v3588_v15, %v2376_v42  ;;  %v2448_v62 = vmul.f32 %v3588_v15, %v2440_v37  ;;  %3609 = vpow2.f32 %v2422_v47  ;;  %v4802_v22 = vmax.f32 %v2277_v36, %v4792_v4  ;;  %v2497_v21 = vld [vmem:[#allocation3 + $0xc8] sm:$0xff] }
 0x3ea   :  { %v3592_v43 = vpop.eup %3591  ;;  %v2401_v5 = vadd.f32 %v2393_v57, %v2337_v12  ;;  %v2433_v7 = vadd.f32 %v3590_v8, %v2377_v55  ;;  %3611 = vpow2.f32 %v2476_v18  ;;  %v2449_v41 = vmul.f32 %v3590_v8, %v2441_v39  ;;  %v2552_v18 = vld [vmem:[#allocation3 + $0x100] sm:$0xff] }
 0x3eb   :  { %v3594_v19 = vpop.eup %3593  ;;  %v2456_v17 = vadd.f32 %v2448_v62, %v2400_v49  ;;  %v2488_v53 = vadd.f32 %v3592_v43, %v2432_v33  ;;  %3613 = vpow2.f32 %v2478_v34  ;;  %v2504_v51 = vmul.f32 %v3592_v43, %v2496_v30  ;;  %v2387_v49 = vld [vmem:[#allocation3 + $0x58] sm:$0xff] }
 0x3ec   :  { %v3596_v38 = vpop.eup %3595  ;;  %v2489_v0 = vadd.f32 %v3594_v19, %v2433_v7  ;;  %3615 = vpow2.f32 %v2532_v63  ;;  %v4810_v9 = vmax.f32 %v2278_v59, %v4799_v28  ;;  %v2457_v48 = vadd.f32 %v2449_v41, %v2401_v5  ;;  %v2386_v63 = vld [vmem:[#allocation3 + $0x50] sm:$0xff] }
 0x3ed   :  { %v3598_v58 = vpop.eup %3597  ;;  %v2544_v35 = vadd.f32 %v3596_v38, %v2488_v53  ;;  %3617 = vpow2.f32 %v2534_v31  ;;  %v2505_v47 = vmul.f32 %v3594_v19, %v2497_v21  ;;  %v2300_v46 = vsub.f32 %v4714_v24, %v4797_v11  ;;  %v2553_v31 = vld [vmem:[#allocation3 + $0x108] sm:$0xff] }
 0x3ee   :  { %v3600_v36 = vpop.eup %3599  ;;  %v2545_v13 = vadd.f32 %v3598_v58, %v2489_v0  ;;  %v2512_v2 = vadd.f32 %v2504_v51, %v2456_v17  ;;  %v2301_v29 = vsub.f32 %v4722_v6, %v4802_v22  ;;  %v2560_v59 = vmul.f32 %v3596_v38, %v2552_v18  ;;  %v2442_v6 = vld [vmem:[#allocation3 + $0x90] sm:$0xff]  ;;  %v2443_v51 = vld [vmem:[#allocation3 + $0x98] sm:$0xff] }
 0x3ef   :  { %v3602_v42 = vpop.eup %3601  ;;  %3619 = vrcp.f32 %v2544_v35  ;;  %v2338_v12 = vmul.f32 %v3600_v36, %v2330_v23  ;;  %v2312_v15 = vmul.f32 1.442695, %v2300_v46  ;;  %v2356_v8 = vsub.f32 %v4700_v1, %v4797_v11  ;;  %v2498_v46 = vld [vmem:[#allocation3 + $0xd0] sm:$0xff]  ;;  %v2499_v18 = vld [vmem:[#allocation3 + $0xd8] sm:$0xff] }
 0x3f0   :  { %v3604_v54 = vpop.eup %3603  ;;  %3621 = vrcp.f32 %v2545_v13  ;;  %v2339_v34 = vmul.f32 %v3602_v42, %v2331_v10  ;;  %v2314_v24 = vmul.f32 1.442695, %v2301_v29  ;;  %v2513_v62 = vadd.f32 %v2505_v47, %v2457_v48 }
 0x3f1   :  { %v3606_v55 = vpop.eup %3605  ;;  %v2378_v57 = vadd.f32 %v3604_v54, %v3600_v36  ;;  %v2394_v37 = vmul.f32 %v3604_v54, %v2386_v63  ;;  %v2357_v7 = vsub.f32 %v4706_v45, %v4802_v22  ;;  %v2561_v39 = vmul.f32 %v3598_v58, %v2553_v31 }
 0x3f2   :  { %v3608_v33 = vpop.eup %3607  ;;  %v2379_v43 = vadd.f32 %v3606_v55, %v3602_v42  ;;  %v2395_v5 = vmul.f32 %v3606_v55, %v2387_v49  ;;  %3623 = vpow2.f32 %v2312_v15  ;;  %v2368_v21 = vmul.f32 1.442695, %v2356_v8  ;;  %v4826_v49 = vld [vmem:[#allocation2 + $0x138] sm:$0xff] }
 0x3f3   :  { %v3610_v19 = vpop.eup %3609  ;;  %v2402_v17 = vadd.f32 %v2394_v37, %v2338_v12  ;;  %v2434_v53 = vadd.f32 %v3608_v33, %v2378_v57  ;;  %v2450_v38 = vmul.f32 %v3608_v33, %v2442_v6  ;;  %3625 = vpow2.f32 %v2314_v24  ;;  %v2554_v57 = vld [vmem:[#allocation3 + $0x110] sm:$0xff] }
 0x3f4   :  { %v3612_v41 = vpop.eup %3611  ;;  %v2403_v0 = vadd.f32 %v2395_v5, %v2339_v34  ;;  %v2435_v30 = vadd.f32 %v3610_v19, %v2379_v43  ;;  %v2370_v48 = vmul.f32 1.442695, %v2357_v7  ;;  %v2568_v13 = vadd.f32 %v2560_v59, %v2512_v2 }
 0x3f5   :  { %v3614_v1 = vpop.eup %3613  ;;  %v2458_v35 = vadd.f32 %v2450_v38, %v2402_v17  ;;  %v2490_v36 = vadd.f32 %v3612_v41, %v2434_v53  ;;  %v2451_v23 = vmul.f32 %v3610_v19, %v2443_v51  ;;  %3627 = vpow2.f32 %v2368_v21  ;;  %v2555_v19 = vld [vmem:[#allocation3 + $0x118] sm:$0xff] }
 0x3f6   :  { %v3616_v47 = vpop.eup %3615  ;;  %v2491_v45 = vadd.f32 %v3614_v1, %v2435_v30  ;;  %v2569_v42 = vadd.f32 %v2561_v39, %v2513_v62  ;;  %v2506_v10 = vmul.f32 %v3612_v41, %v2498_v46  ;;  %3629 = vpow2.f32 %v2370_v48  ;;  %v2388_v46 = vld [vmem:[#allocation3 + $0x60] sm:$0xff] }
 0x3f7   :  { %v3618_v58 = vpop.eup %3617  ;;  %v2546_v12 = vadd.f32 %v3616_v47, %v2490_v36  ;;  %v2459_v29 = vadd.f32 %v2451_v23, %v2403_v0  ;;  %v2507_v54 = vmul.f32 %v3614_v1, %v2499_v18  ;;  %v2412_v63 = vsub.f32 %v4726_v61, %v4797_v11 }
 0x3f8   :  { %v2547_v34 = vadd.f32 %v3618_v58, %v2491_v45  ;;  %v2514_v55 = vadd.f32 %v2506_v10, %v2458_v35  ;;  %v2413_v2 = vsub.f32 %v4756_v3, %v4802_v22  ;;  %v2468_v59 = vsub.f32 %v4773_v32, %v4797_v11  ;;  %v2332_v45 = vld [vmem:[#allocation3 + $0x20] sm:$0xff] }
 0x3f9   :  { %v3620_v15 = vpop.eup %3619  ;;  %3631 = vrcp.f32 %v2546_v12  ;;  %v2562_v8 = vmul.f32 %v3616_v47, %v2554_v57  ;;  %v2424_v33 = vmul.f32 1.442695, %v2412_v63  ;;  %v2469_v61 = vsub.f32 %v4775_v20, %v4802_v22 }
 0x3fa   :  { %v3622_v37 = vpop.eup %3621  ;;  %v2584_v24 = vmul.f32 %v3620_v15, %v2568_v13  ;;  %3633 = vrcp.f32 %v2547_v34  ;;  %v2426_v31 = vmul.f32 1.442695, %v2413_v2  ;;  %v2480_v43 = vmul.f32 1.442695, %v2468_v59 }
 0x3fb   :  { %v2585_v62 = vmul.f32 %v3622_v37, %v2569_v42  ;;  %3635 = vpow2.f32 %v2424_v33  ;;  %v2524_v3 = vsub.f32 %v4790_v27, %v4797_v11  ;;  %v2525_v32 = vsub.f32 %v4792_v4, %v4802_v22 }
 0x3fc   :  { %v4838_v5 = vmax.f32 %v2279_v52, %v4826_v49  ;;  %v2515_v7 = vadd.f32 %v2507_v54, %v2459_v29  ;;  %3637 = vpow2.f32 %v2426_v31  ;;  %v2482_v39 = vmul.f32 1.442695, %v2469_v61  ;;  %v3624_v20 = vpop.eup %3623  ;;  %v2389_v29 = vld [vmem:[#allocation3 + $0x68] sm:$0xff] }
 0x3fd   :  { %v2592_v6 = vpack.c.bf16 %v2585_v62, %v2584_v24  ;;  %v2563_v17 = vmul.f32 %v3618_v58, %v2555_v19  ;;  %3639 = vpow2.f32 %v2480_v43  ;;  %v2536_v53 = vmul.f32 1.442695, %v2524_v3  ;;  %v3626_v27 = vpop.eup %3625 }
 0x3fe   :  { %v2538_v38 = vmul.f32 1.442695, %v2525_v32  ;;  %3641 = vpow2.f32 %v2482_v39  ;;  %v2302_v4 = vsub.f32 %v4694_v16, %v4810_v9  ;;  %v2303_v40 = vsub.f32 %v4716_v50, %v4838_v5  ;;  %v2444_v32 = vld [vmem:[#allocation3 + $0xa0] sm:$0xff] }
 0x3ff   :  { %3215 = vmatprep.mubr.msk.bf16.mxu0 %vm1415_vm1, %v2592_v6  ;;  %v2358_v11 = vsub.f32 %v4696_v25, %v4810_v9  ;;  %v3628_v22 = vpop.eup %3627  ;;  %3643 = vpow2.f32 %v2536_v53  ;;  %v2359_v52 = vsub.f32 %v4702_v44, %v4838_v5  ;;  %v2414_v41 = vsub.f32 %v4708_v60, %v4810_v9  ;;  %v2445_v6 = vld [vmem:[#allocation3 + $0xa8] sm:$0xff] }
 0x400   :  { %v2415_v0 = vsub.f32 %v4751_v26, %v4838_v5  ;;  %v3630_v30 = vpop.eup %3629  ;;  %3645 = vpow2.f32 %v2538_v38  ;;  %v2316_v16 = vmul.f32 1.442695, %v2302_v4  ;;  %v2570_v21 = vadd.f32 %v2562_v8, %v2514_v55  ;;  %v2333_v26 = vld [vmem:[#allocation3 + $0x28] sm:$0xff] }
 0x401   :  { %v2571_v1 = vadd.f32 %v2563_v17, %v2515_v7  ;;  %v2318_v50 = vmul.f32 1.442695, %v2303_v40  ;;  %v2372_v51 = vmul.f32 1.442695, %v2358_v11  ;;  %v2380_v25 = vadd.f32 %v3628_v22, %v3624_v20  ;;  %v2501_v4 = vld [vmem:[#allocation3 + $0xe8] sm:$0xff] }
 0x402   :  { %3647 = vpow2.f32 %v2316_v16  ;;  %v2374_v36 = vmul.f32 1.442695, %v2359_v52  ;;  %v2428_v48 = vmul.f32 1.442695, %v2414_v41  ;;  %v2381_v13 = vadd.f32 %v3630_v30, %v3626_v27 }
 0x403   :  { %v3632_v35 = vpop.eup %3631  ;;  %3649 = vpow2.f32 %v2318_v50  ;;  %v2430_v60 = vmul.f32 1.442695, %v2415_v0  ;;  %v2470_v58 = vsub.f32 %v4761_v14, %v4810_v9  ;;  %v2471_v42 = vsub.f32 %v4794_v56, %v4838_v5  ;;  %v2556_v50 = vld [vmem:[#allocation3 + $0x120] sm:$0xff] }
 0x404   :  { %v3634_v47 = vpop.eup %3633  ;;  %v2586_v44 = vmul.f32 %v3632_v35, %v2570_v21  ;;  %3651 = vpow2.f32 %v2372_v51  ;;  %v2340_v10 = vmul.f32 %v3624_v20, %v2332_v45  ;;  %v2341_v12 = vmul.f32 %v3626_v27, %v2333_v26  ;;  %v2500_v27 = vld [vmem:[#allocation3 + $0xe0] sm:$0xff]  ;;  %v2557_v51 = vld [vmem:[#allocation3 + $0x128] sm:$0xff]  ;;  %v2334_v35 = vld [vmem:[#allocation3 + $0x30] sm:$0xff] }
 0x405   :  { %v2587_v23 = vmul.f32 %v3634_v47, %v2571_v1  ;;  %v3636_v18 = vpop.eup %3635  ;;  %v2396_v54 = vmul.f32 %v3628_v22, %v2388_v46  ;;  %3653 = vpow2.f32 %v2374_v36  ;;  %v2397_v15 = vmul.f32 %v3630_v30, %v2389_v29  ;;  %v2335_v47 = vld [vmem:[#allocation3 + $0x38] sm:$0xff] }
 0x406   :  { %v3638_v34 = vpop.eup %3637  ;;  %v2436_v55 = vadd.f32 %v3636_v18, %v2380_v25  ;;  %3655 = vpow2.f32 %v2428_v48  ;;  %v2484_v59 = vmul.f32 1.442695, %v2470_v58  ;;  %v2526_v14 = vsub.f32 %v4799_v28, %v4810_v9 }
 0x407   :  { %v2593_v63 = vpack.c.bf16 %v2587_v23, %v2586_v44  ;;  %v3640_v57 = vpop.eup %3639  ;;  %v2437_v2 = vadd.f32 %v3638_v34, %v2381_v13  ;;  %3657 = vpow2.f32 %v2430_v60  ;;  %v2486_v24 = vmul.f32 1.442695, %v2471_v42  ;;  %v2390_v13 = vld [vmem:[#allocation3 + $0x70] sm:$0xff]  ;;  %v2391_v60 = vld [vmem:[#allocation3 + $0x78] sm:$0xff] }
 0x408   :  { %v3642_v37 = vpop.eup %3641  ;;  %v2492_v56 = vadd.f32 %v3640_v57, %v2436_v55  ;;  %v2527_v8 = vsub.f32 %v4826_v49, %v4838_v5  ;;  %v2404_v61 = vadd.f32 %v2396_v54, %v2340_v10  ;;  %v2405_v43 = vadd.f32 %v2397_v15, %v2341_v12 }
 0x409   :  { %3216 = vmatmul.mubr.msk.bf16.vlgmr.msra.gmra.mrb[52].mxu0 %vm1415_vm1, %v2593_v63  ;;  %v3644_v33 = vpop.eup %3643  ;;  %v2493_v62 = vadd.f32 %v3642_v37, %v2437_v2  ;;  %3659 = vpow2.f32 %v2484_v59  ;;  %v2540_v28 = vmul.f32 1.442695, %v2526_v14  ;;  %v2452_v19 = vmul.f32 %v3636_v18, %v2444_v32  ;;  %v2446_v14 = vld [vmem:[#allocation3 + $0xb0] sm:$0xff] }
 0x40a   :  { %v3646_v31 = vpop.eup %3645  ;;  %v2548_v3 = vadd.f32 %v3644_v33, %v2492_v56  ;;  %3661 = vpow2.f32 %v2486_v24  ;;  %v2453_v39 = vmul.f32 %v3638_v34, %v2445_v6  ;;  %v2542_v20 = vmul.f32 1.442695, %v2527_v8 }
 0x40b   :  { %v2549_v7 = vadd.f32 %v3646_v31, %v2493_v62  ;;  %v2460_v5 = vadd.f32 %v2452_v19, %v2404_v61  ;;  %v2508_v22 = vmul.f32 %v3640_v57, %v2500_v27  ;;  %v2509_v52 = vmul.f32 %v3642_v37, %v2501_v4  ;;  %v2447_v37 = vld [vmem:[#allocation3 + $0xb8] sm:$0xff]  ;;  %v2790_v27 = vld [vmem:[%s4910_s11] ss:$0 sm:$0xff] }
 0x40c   :  { %v3648_v9 = vpop.eup %3647  ;;  %3663 = vrcp.f32 %v2548_v3  ;;  %v2461_v53 = vadd.f32 %v2453_v39, %v2405_v43  ;;  %v2564_v36 = vmul.f32 %v3644_v33, %v2556_v50  ;;  %v2565_v48 = vmul.f32 %v3646_v31, %v2557_v51  ;;  %v2502_v31 = vld [vmem:[#allocation3 + $0xf0] sm:$0xff]  ;;  %v2503_v61 = vld [vmem:[#allocation3 + $0xf8] sm:$0xff] }
 0x40d   :  { %v3650_v17 = vpop.eup %3649  ;;  %3665 = vrcp.f32 %v2549_v7  ;;  %v2516_v16 = vadd.f32 %v2508_v22, %v2460_v5  ;;  %v2342_v44 = vmul.f32 %v3648_v9, %v2334_v35  ;;  %v2558_v7 = vld [vmem:[#allocation3 + $0x130] sm:$0xff] }
 0x40e   :  { %v3652_v49 = vpop.eup %3651  ;;  %3667 = vpow2.f32 %v2540_v28  ;;  %v2517_v21 = vadd.f32 %v2509_v52, %v2461_v53  ;;  %v2343_v45 = vmul.f32 %v3650_v17, %v2335_v47  ;;  %v2559_v28 = vld [vmem:[#allocation3 + $0x138] sm:$0xff] }
 0x40f   :  { %v3654_v38 = vpop.eup %3653  ;;  %v2382_v40 = vadd.f32 %v3652_v49, %v3648_v9  ;;  %3669 = vpow2.f32 %v2542_v20  ;;  %v2398_v26 = vmul.f32 %v3652_v49, %v2390_v13  ;;  %v2572_v18 = vadd.f32 %v2564_v36, %v2516_v16 }
 0x410   :  { %v3656_v11 = vpop.eup %3655  ;;  %v2383_v41 = vadd.f32 %v3654_v38, %v3650_v17  ;;  %v2399_v46 = vmul.f32 %v3654_v38, %v2391_v60  ;;  %v2573_v10 = vadd.f32 %v2565_v48, %v2517_v21 }
 0x411   :  { %v3658_v0 = vpop.eup %3657  ;;  %v2438_v30 = vadd.f32 %v3656_v11, %v2382_v40  ;;  %v2406_v55 = vadd.f32 %v2398_v26, %v2342_v44  ;;  %v2454_v24 = vmul.f32 %v3656_v11, %v2446_v14 }
 0x412   :  { %v2439_v1 = vadd.f32 %v3658_v0, %v2383_v41  ;;  %v2407_v57 = vadd.f32 %v2399_v46, %v2343_v45  ;;  %v2455_v8 = vmul.f32 %v3658_v0, %v2447_v37 }
 0x413   :  { %v3660_v25 = vpop.eup %3659  ;;  %v2462_v33 = vadd.f32 %v2454_v24, %v2406_v55 }
 0x414   :  { %v3662_v23 = vpop.eup %3661  ;;  %v2494_v58 = vadd.f32 %v3660_v25, %v2438_v30  ;;  %v2463_v62 = vadd.f32 %v2455_v8, %v2407_v57  ;;  %v2510_v43 = vmul.f32 %v3660_v25, %v2502_v31 }
 0x415   :  { %v2495_v12 = vadd.f32 %v3662_v23, %v2439_v1  ;;  %v2511_v3 = vmul.f32 %v3662_v23, %v2503_v61 }
 0x416   :  { %v3664_v42 = vpop.eup %3663  ;;  %v2518_v32 = vadd.f32 %v2510_v43, %v2462_v33 }
 0x417   :  { %v3666_v29 = vpop.eup %3665  ;;  %v2588_v34 = vmul.f32 %v3664_v42, %v2572_v18  ;;  %v2519_v6 = vadd.f32 %v2511_v3, %v2463_v62 }
 0x418   :  { %v3668_v54 = vpop.eup %3667  ;;  %v2589_v63 = vmul.f32 %v3666_v29, %v2573_v10 }
 0x419   :  { %v3670_v15 = vpop.eup %3669  ;;  %v2550_v2 = vadd.f32 %v3668_v54, %v2494_v58  ;;  %v2566_v9 = vmul.f32 %v3668_v54, %v2558_v7 }
 0x41a   :  { %v2594_v59 = vpack.c.bf16 %v2589_v63, %v2588_v34  ;;  %v2551_v56 = vadd.f32 %v3670_v15, %v2495_v12  ;;  %v2567_v19 = vmul.f32 %v3670_v15, %v2559_v28 }
 0x41b   :  { %3671 = vrcp.f32 %v2550_v2  ;;  %v2574_v20 = vadd.f32 %v2566_v9, %v2518_v32 }
 0x41c   :  { %3219 = vmatprep.mubr.msk.bf16.mxu0 %vm1415_vm1, %v2594_v59  ;;  %3673 = vrcp.f32 %v2551_v56  ;;  %v2575_v17 = vadd.f32 %v2567_v19, %v2519_v6 }
 0x425   :  { %v3672_v39 = vpop.eup %3671 }
 0x426   :  { %v3674_v49 = vpop.eup %3673  ;;  %v2590_v5 = vmul.f32 %v3672_v39, %v2574_v20 }
 0x427   :  { %v2591_v53 = vmul.f32 %v3674_v49, %v2575_v17 }
 0x429   :  { %v2595_v38 = vpack.c.bf16 %v2591_v53, %v2590_v5 }
 0x42b   :  { %3220 = vmatmul.mubr.msk.bf16.gmra.mrb[56].mxu0 %vm1415_vm1, %v2595_v38 }
 0x4dc   :  { %v3217_v4 = vpop.f32.mrb[52].mxu0 }
 0x4dd   :  { %v2674_v40 = vadd.f32 %v3217_v4, %v2790_v27  ;;  %v2665_v11 = vpop.f32.mrb[53].mxu0 }
 0x4de   :  { %v2666_v22 = vadd.f32 %v2790_v27, %v2665_v11  ;;  %v3218_v52 = vpop.f32.mrb[54].mxu0 }
 0x4df   :  { %v2698_v41 = vmax.f32 %v2674_v40, 0.0  ;;  %v2677_v0 = vadd.f32 %v3218_v52, %v2790_v27  ;;  %v2668_v30 = vpop.f32.mrb[55].mxu0 }
 0x4e0   :  { %v2696_v16 = vmax.f32 %v2666_v22, 0.0  ;;  %v2669_v21 = vadd.f32 %v2790_v27, %v2668_v30 }
 0x4e1   :  { %2706 = vst.msk [vmem:[%s4911_s12 + $0x10] sm:$0xff] %vm1415_vm1, %v2698_v41  ;;  %v2699_v1 = vmax.f32 %v2677_v0, 0.0 }
 0x4e2   :  { %2704 = vst.msk [vmem:[%s4911_s12] sm:$0xff] %vm1415_vm1, %v2696_v16  ;;  %v2697_v50 = vmax.f32 %v2669_v21, 0.0 }
 0x4e3   :  { %2707 = vst.msk [vmem:[%s4911_s12 + $0x18] sm:$0xff] %vm1415_vm1, %v2699_v1 }
 0x4e4   :  { %2705 = vst.msk [vmem:[%s4911_s12 + $0x8] sm:$0xff] %vm1415_vm1, %v2697_v50 }
 0x4fe   :  { %v3221_v51 = vpop.f32.mrb[56].mxu0 }
 0x4ff   :  { %v2690_v35 = vadd.f32 %v3221_v51, %v2790_v27  ;;  %v2681_v25 = vpop.f32.mrb[57].mxu0 }
 0x500   :  { %v2682_v36 = vadd.f32 %v2790_v27, %v2681_v25  ;;  %v3222_v48 = vpop.f32.mrb[58].mxu0 }
 0x501   :  { %v2702_v47 = vmax.f32 %v2690_v35, 0.0  ;;  %v2693_v44 = vadd.f32 %v3222_v48, %v2790_v27  ;;  %v2684_v13 = vpop.f32.mrb[59].mxu0 }
 0x502   :  { %v2700_v60 = vmax.f32 %v2682_v36, 0.0  ;;  %v2685_v23 = vadd.f32 %v2790_v27, %v2684_v13 }
 0x503   :  { %2710 = vst.msk [vmem:[%s4911_s12 + $0x30] sm:$0xff] %vm1415_vm1, %v2702_v47  ;;  %v2703_v45 = vmax.f32 %v2693_v44, 0.0 }
 0x504   :  { %2708 = vst.msk [vmem:[%s4911_s12 + $0x20] sm:$0xff] %vm1415_vm1, %v2700_v60  ;;  %v2701_v26 = vmax.f32 %v2685_v23, 0.0 }
 0x505   :  { %2711 = vst.msk [vmem:[%s4911_s12 + $0x38] sm:$0xff] %vm1415_vm1, %v2703_v45 }
 0x506   :  { %2709 = vst.msk [vmem:[%s4911_s12 + $0x28] sm:$0xff] %vm1415_vm1, %v2701_v26 }

// kernel: segmentation_gnn_forward.25
= control target key start
LH: loop header
LB: loop body
LE: loop exit
PB: predicated region body
PF: predicated region fallthrough
CT: control target
= control target key end

     0   :  { %vm18_vm0 = vcmask 519168   ;;  %s52_s0 = inlined_call_operand.vmem [shape: bf16[4,8,64], index: 0, kind: input, shape index: {}]   ;;  %s53_s1 = inlined_call_operand.vmem [shape: bf16[8,64], index: 1, kind: output, shape index: {}]  }
   0x1   :  { %v8_v0 = vld [vmem:[%s52_s0] sm:$0xf]  ;;  %v24_v1 = vld [vmem:[%s52_s0 + $0x4] sm:$0xf]  ;;  %v25_v2 = vld [vmem:[%s52_s0 + $0x8] sm:$0xf] }
   0x2   :  { %v11_v3 = vmax.bf16 %v24_v1, %v8_v0  ;;  %v26_v4 = vld [vmem:[%s52_s0 + $0xc] sm:$0xf] }
   0x4   :  { %v14_v5 = vmax.bf16 %v25_v2, %v11_v3 }
   0x6   :  { %v17_v6 = vmax.bf16 %v26_v4, %v14_v5 }
   0x8   :  { %19 = vst.msk [vmem:[%s53_s1] sm:$0xf] %vm18_vm0, %v17_v6 }

// kernel: segmentation_gnn_forward.26
= control target key start
LH: loop header
LB: loop body
LE: loop exit
PB: predicated region body
PF: predicated region fallthrough
CT: control target
= control target key end

     0   :  { %v280_v0 = vmov 0.0   ;;  %vm281_vm0 = vmmov 0   ;;  %vm61_vm1 = vcmask 523264   ;;  %v282_v14 = vmov 0   ;;  %s363_s1 = inlined_call_operand.vmem [shape: bf16[64,64], index: 1, kind: input, shape index: {}]   ;;  %s364_s3 = inlined_call_operand.vmem [shape: bf16[64,192], index: 3, kind: input, shape index: {}]   ;;  %s365_s0 = inlined_call_operand.vmem [shape: bf16[8,64], index: 0, kind: input, shape index: {}]   ;;  %s366_s2 = inlined_call_operand.vmem [shape: f32[1,64], index: 2, kind: input, shape index: {}]   ;;  %s367_s4 = inlined_call_operand.vmem [shape: f32[1,192], index: 4, kind: input, shape index: {}]   ;;  %s368_s5 = inlined_call_operand.vmem [shape: bf16[8,192], index: 5, kind: output, shape index: {}]  }
   0x1   :  { %249 = vmatprep.subr.bf16.mxu0 %v280_v0  ;;  %v264_v1 = vld [vmem:[%s363_s1] sm:$0xff]   ;;  %257 = vmatprep.mubr.msk.bf16.mxu0 %vm281_vm0, %v280_v0  ;;  %v265_v2 = vld [vmem:[%s363_s1 + $0x8] sm:$0xff]   ;;  %v266_v5 = vld [vmem:[%s363_s1 + $0x10] sm:$0xff]   ;;  %v117_v23 = vlaneseq  ;;  %vm219_vm2 = vcmask 1043456   ;;  %vm220_vm3 = vcmask 523268  }
   0x2   :  { %250 = vmatpush3.bf16.msra.mxu0 %v264_v1  ;;  %v268_v3 = vld [vmem:[%s364_s3 + $0x4] ss:$8 sps:$4 sm:$0xff]   ;;  %v270_v4 = vld [vmem:[%s364_s3] ss:$8 sps:$4 sm:$0xff]   ;;  %v271_v6 = vld [vmem:[%s364_s3 + $0x14] ss:$8 sps:$4 sm:$0xff]   ;;  %202 = vmatprep.mubr.bf16.mxu1 %v282_v14 }
   0x3   :  { %251 = vmatprep.subr.bf16.mxu0 %v280_v0  ;;  %170 = vmatprep.subr.bf16.mxu1 %v268_v3  ;;  %v273_v7 = vld [vmem:[%s364_s3 + $0x10] ss:$8 sps:$4 sm:$0xff]   ;;  %v274_v8 = vld [vmem:[%s364_s3 + $0x24] ss:$8 sps:$4 sm:$0xff]   ;;  %v21_v10 = vld [vmem:[%s365_s0] sm:$0xf] }
   0x4   :  { %171 = vmatpush1.bf16.msra.mxu1 %v270_v4  ;;  %v267_v9 = vld [vmem:[%s363_s1 + $0x18] sm:$0xff]   ;;  %v276_v11 = vld [vmem:[%s364_s3 + $0x20] ss:$8 sps:$4 sm:$0xff]   ;;  %v118_v24 = vshrl.u32 %v117_v23, 7  ;;  %vm221_vm4 = vmor %vm220_vm3, %vm219_vm2 }
   0x5   :  { %172 = vmatprep.subr.bf16.mxu1 %v271_v6  ;;  %v277_v12 = vld [vmem:[%s364_s3 + $0x34] ss:$8 sps:$4 sm:$0xff]   ;;  %v279_v13 = vld [vmem:[%s364_s3 + $0x30] ss:$8 sps:$4 sm:$0xff]   ;;  %v227_v15 = vld [vmem:[%s366_s2] ss:$0 sm:$0xff] }
   0x6   :  { %252 = vmatpush3.bf16.msra.mxu0 %v265_v2  ;;  %v119_v25 = vsub.s32 0, %v118_v24  ;;  %v114_v26 = vld [vmem:[%s367_s4] sm:$0x3]  ;;  %v123_v27 = vsub.s32 1, %v118_v24 }
   0x7   :  { %253 = vmatprep.subr.bf16.mxu0 %v280_v0 }
   0x8   :  { %173 = vmatpush1.bf16.msra.mxu1 %v273_v7  ;;  %v120_v28 = vrot.slane %v114_v26, %v119_v25  ;;  %v124_v29 = vrot.slane %v114_v26, %v123_v27 }
   0x9   :  { %174 = vmatprep.subr.bf16.mxu1 %v274_v8 }
   0xa   :  { %254 = vmatpush3.bf16.msra.mxu0 %v266_v5 }
   0xb   :  { %255 = vmatprep.subr.bf16.mxu0 %v280_v0 }
   0xc   :  { %175 = vmatpush1.bf16.msra.mxu1 %v276_v11 }
   0xd   :  { %176 = vmatprep.subr.bf16.mxu1 %v277_v12 }
   0xe   :  { %256 = vmatpush3.bf16.msra.mxu0 %v267_v9 }
  0x10   :  { %177 = vmatpush1.bf16.msra.mxu1 %v279_v13 }
  0x11   :  { %258 = vmatmul.mubr.msk.bf16.vlgmr.msra.gmra.mrb[0].mxu0 %vm61_vm1, %v21_v10 }
  0xe4   :  { %v99_v16 = vpop.f32.mrb[0].mxu0 }
  0xe5   :  { %v100_v17 = vadd.f32 %v227_v15, %v99_v16  ;;  %v259_v18 = vpop.f32.mrb[1].mxu0 }
  0xe6   :  { %v102_v19 = vpop.f32.mrb[2].mxu0 }
  0xe7   :  { %v105_v20 = vmax.f32 %v100_v17, 0.0  ;;  %v260_v21 = vpop.f32.mrb[3].mxu0 }
  0xe9   :  { %v115_v22 = vpack.c.bf16 %v105_v20, %v105_v20 }
  0xeb   :  { %241 = vmatmul.mubr.msk.bf16.vlgmr.msra.gmra.mrb[0].mxu1 %vm61_vm1, %v115_v22 }
 0x1be   :  { %v204_v30 = vpop.f32.mrb[0].mxu1 }
 0x1bf   :  { %v205_v31 = vadd.f32 %v204_v30, %v120_v28  ;;  %v206_v32 = vpop.f32.mrb[1].mxu1 }
 0x1c0   :  { %v207_v33 = vadd.f32 %v206_v32, %v124_v29  ;;  %v208_v34 = vpop.f32.mrb[2].mxu1 }
 0x1c1   :  { %v209_v35 = vpop.f32.mrb[3].mxu1 }
 0x1c2   :  { %v243_v36 = vpack.c.bf16 %v207_v33, %v205_v31 }
 0x1c4   :  { %222 = vst.msk [vmem:[%s368_s5] sm:$0xff] %vm221_vm4, %v243_v36 }

// kernel: segmentation_gnn_forward.28
= control target key start
LH: loop header
LB: loop body
LE: loop exit
PB: predicated region body
PF: predicated region fallthrough
CT: control target
= control target key end

     0   :  { %v135_v0 = vmov 0.0   ;;  %vm136_vm0 = vmmov 0   ;;  %vm56_vm1 = vcmask 523264   ;;  %s178_s1 = inlined_call_operand.vmem [shape: bf16[64,64], index: 1, kind: input, shape index: {}]   ;;  %s179_s0 = inlined_call_operand.vmem [shape: f32[8,64], index: 0, kind: input, shape index: {}]   ;;  %s180_s2 = inlined_call_operand.vmem [shape: f32[1,64], index: 2, kind: input, shape index: {}]   ;;  %s181_s3 = inlined_call_operand.vmem [shape: f32[8,64], index: 3, kind: output, shape index: {}]  }
   0x1   :  { %117 = vmatprep.subr.bf16.mxu0 %v135_v0  ;;  %v131_v1 = vld [vmem:[%s178_s1] sm:$0xff]   ;;  %125 = vmatprep.mubr.msk.bf16.mxu0 %vm136_vm0, %v135_v0  ;;  %v132_v2 = vld [vmem:[%s178_s1 + $0x8] sm:$0xff]   ;;  %v133_v3 = vld [vmem:[%s178_s1 + $0x10] sm:$0xff]  }
   0x2   :  { %118 = vmatpush3.bf16.msra.mxu0 %v131_v1  ;;  %v134_v4 = vld [vmem:[%s178_s1 + $0x18] sm:$0xff]   ;;  %v15_v5 = vld [vmem:[%s179_s0] sm:$0xff] }
   0x3   :  { %119 = vmatprep.subr.bf16.mxu0 %v135_v0  ;;  %v25_v6 = vpack.c.bf16 %v15_v5, %v15_v5  ;;  %v106_v7 = vld [vmem:[%s180_s2] ss:$0 sm:$0xff] }
   0x6   :  { %120 = vmatpush3.bf16.msra.mxu0 %v132_v2 }
   0x7   :  { %121 = vmatprep.subr.bf16.mxu0 %v135_v0 }
   0xa   :  { %122 = vmatpush3.bf16.msra.mxu0 %v133_v3 }
   0xb   :  { %123 = vmatprep.subr.bf16.mxu0 %v135_v0 }
   0xe   :  { %124 = vmatpush3.bf16.msra.mxu0 %v134_v4 }
  0x11   :  { %126 = vmatmul.mubr.msk.bf16.vlgmr.msra.gmra.mrb[0].mxu0 %vm56_vm1, %v25_v6 }
  0xe4   :  { %v94_v8 = vpop.f32.mrb[0].mxu0 }
  0xe5   :  { %v95_v9 = vadd.f32 %v106_v7, %v94_v8  ;;  %v127_v10 = vpop.f32.mrb[1].mxu0 }
  0xe6   :  { %v97_v11 = vpop.f32.mrb[2].mxu0 }
  0xe7   :  { %v100_v12 = vmax.f32 %v95_v9, 0.0  ;;  %v128_v13 = vpop.f32.mrb[3].mxu0 }
  0xe9   :  { %101 = vst.msk [vmem:[%s181_s3] sm:$0xff] %vm56_vm1, %v100_v12 }

// kernel: segmentation_gnn_forward.27
= control target key start
LH: loop header
LB: loop body
LE: loop exit
PB: predicated region body
PF: predicated region fallthrough
CT: control target
= control target key end

     0   :  { %v892_v0 = vmov 66   ;;  %v893_v1 = vmov 64   ;;  %v894_v11 = vmov 0.0   ;;  %v895_v12 = vmov 65   ;;  %s1136_s0 = inlined_call_operand.vmem [shape: bf16[5,8,67], index: 0, kind: input, shape index: {}]   ;;  %s1137_s4 = inlined_call_operand.vmem [shape: bf16[64,64], index: 4, kind: input, shape index: {}]   ;;  %s1138_s6 = inlined_call_operand.vmem [shape: bf16[64,64], index: 6, kind: input, shape index: {}]   ;;  %s1139_s2 = inlined_call_operand.vmem [shape: f32[3,64], index: 2, kind: input, shape index: {}]   ;;  %s1140_s3 = inlined_call_operand.vmem [shape: f32[1,64], index: 3, kind: input, shape index: {}]   ;;  %s1141_s8 = inlined_call_operand.vmem [shape: bf16[64,64], index: 8, kind: input, shape index: {}]   ;;  %s1142_s1 = inlined_call_operand.vmem [shape: bf16[5,8,64], index: 1, kind: input, shape index: {}]   ;;  %s1143_s5 = inlined_call_operand.vmem [shape: f32[1,64], index: 5, kind: input, shape index: {}]   ;;  %s1144_s7 = inlined_call_operand.vmem [shape: f32[1,64], index: 7, kind: input, shape index: {}]   ;;  %s1145_s10 = inlined_call_operand.vmem [shape: bf16[64,64], index: 10, kind: input, shape index: {}]   ;;  %s1146_s9 = inlined_call_operand.vmem [shape: f32[1,64], index: 9, kind: input, shape index: {}]   ;;  %s1147_s11 = inlined_call_operand.vmem [shape: f32[1,64], index: 11, kind: input, shape index: {}]   ;;  %s1148_s12 = inlined_call_operand.vmem [shape: f32[8,64], index: 12, kind: output, shape index: {}]  }
   0x1   :  { %838 = vset.pattern.permute.xlu1 %v892_v0  ;;  %826 = vset.pattern.permute.xlu0 %v893_v1  ;;  %v965_v2 = vld [vmem:[%s1136_s0] sm:$0xff]   ;;  %v970_v3 = vld [vmem:[%s1136_s0 + $0x8] sm:$0xff]   ;;  %v46_v13 = vld [vmem:[%s1136_s0 + $0x10] sm:$0xf]  ;;  %vm896_vm0 = vmmov 0   ;;  %v78_v19 = vlaneseq  ;;  %vm214_vm1 = vcmask 523264  }
   0x2   :  { %v707_v4 = vunpack.c.l.bf16 %v965_v2  ;;  %v708_v5 = vunpack.c.h.bf16 %v965_v2  ;;  %v711_v6 = vunpack.c.l.bf16 %v970_v3  ;;  %v712_v7 = vunpack.c.h.bf16 %v970_v3  ;;  %v864_v10 = vld [vmem:[%s1137_s4] sm:$0xff]   ;;  %749 = vmatprep.subr.bf16.mxu0 %v894_v11  ;;  %769 = vmatprep.subr.bf16.mxu1 %v894_v11  ;;  %v865_v14 = vld [vmem:[%s1137_s4 + $0x8] sm:$0xff]   ;;  %v866_v16 = vld [vmem:[%s1137_s4 + $0x10] sm:$0xff]  }
   0x3   :  { %750 = vmatpush3.bf16.msra.mxu0 %v864_v10  ;;  %v996_v15 = vunpack.c.l.bf16 %v46_v13  ;;  %v867_v17 = vld [vmem:[%s1137_s4 + $0x18] sm:$0xff]   ;;  %757 = vmatprep.mubr.msk.bf16.mxu0 %vm896_vm0, %v894_v11  ;;  %v868_v18 = vld [vmem:[%s1138_s6] sm:$0xff]   ;;  %v79_v20 = vshrl.u32 %v78_v19, 7 }
   0x4   :  { %v839_v8 = vpack.i.bf16 %v708_v5, %v707_v4  ;;  %v845_v9 = vpack.i.bf16 %v712_v7, %v711_v6  ;;  %751 = vmatprep.subr.bf16.mxu0 %v894_v11  ;;  %777 = vmatprep.mubr.msk.bf16.mxu1 %vm896_vm0, %v894_v11  ;;  %v52_v22 = vld [vmem:[%s1139_s2] sm:$0x7] }
   0x5   :  { %770 = vmatpush3.bf16.msra.mxu1 %v868_v18  ;;  %v80_v21 = vsub.s32 0, %v79_v20  ;;  %v109_v25 = vsub.s32 1, %v79_v20  ;;  %v143_v26 = vsub.s32 2, %v79_v20  ;;  %v674_v50 = vld [vmem:[%s1140_s3] ss:$0 sm:$0xff] }
   0x6   :  { %840 = vperm.xlu1 %838, %v839_v8   ;;  %828 = vperm.xlu0 %826, %v839_v8  }
   0x7   :  { %752 = vmatpush3.bf16.msra.mxu0 %v865_v14  ;;  %771 = vmatprep.subr.bf16.mxu1 %v894_v11  ;;  %v81_v27 = vrot.slane %v52_v22, %v80_v21  ;;  %v110_v30 = vrot.slane %v52_v22, %v109_v25  ;;  %v144_v31 = vrot.slane %v52_v22, %v143_v26 }
   0x8   :  { %753 = vmatprep.subr.bf16.mxu0 %v894_v11 }
   0xa   :  { %844 = vset.pattern.permute.xlu1 %v893_v1  ;;  %832 = vset.pattern.permute.xlu0 %v895_v12 }
   0xb   :  { %846 = vperm.xlu1 %844, %v845_v9   ;;  %834 = vperm.xlu0 %832, %v839_v8  }
   0xc   :  { %754 = vmatpush3.bf16.msra.mxu0 %v866_v16 }
   0xd   :  { %755 = vmatprep.subr.bf16.mxu0 %v894_v11 }
   0xf   :  { %850 = vset.pattern.permute.xlu1 %v895_v12  ;;  %856 = vset.pattern.permute.xlu0 %v892_v0 }
  0x10   :  { %852 = vperm.xlu1 %850, %v845_v9   ;;  %858 = vperm.xlu0 %856, %v845_v9  }
  0x11   :  { %756 = vmatpush3.bf16.msra.mxu0 %v867_v17 }
  0x12   :  { %789 = vmatprep.subr.bf16.mxu0 %v894_v11 }
  0x14   :  { %862 = vset.pattern.permute.xlu1 %v893_v1  ;;  %138 = vperm.xlu0 %856, %v996_v15  }
  0x15   :  { %75 = vperm.xlu1 %862, %v996_v15  }
  0x19   :  { %863 = vset.pattern.permute.xlu1 %v895_v12 }
  0x1a   :  { %104 = vperm.xlu1 %863, %v996_v15  }
  0x85   :  { %v829_v23 = vpop.permute.xlu0 %828  ;;  %v841_v24 = vpop.permute.xlu1 %840 }
  0x86   :  { %v831_v28 = vunpack.i.h.bf16 %v829_v23  ;;  %v830_v29 = vunpack.i.l.bf16 %v829_v23  ;;  %v843_v34 = vunpack.i.h.bf16 %v841_v24  ;;  %v842_v35 = vunpack.i.l.bf16 %v841_v24 }
  0x88   :  { %v83_v38 = vmul.f32 %v831_v28, %v81_v27  ;;  %v82_v39 = vmul.f32 %v830_v29, %v81_v27  ;;  %v146_v44 = vmul.f32 %v843_v34, %v144_v31  ;;  %v145_v45 = vmul.f32 %v842_v35, %v144_v31  ;;  %v871_v34 = vld [vmem:[%s1138_s6 + $0x18] sm:$0xff]   ;;  %v872_v35 = vld [vmem:[%s1141_s8] sm:$0xff]  }
  0x8a   :  { %v835_v32 = vpop.permute.xlu0 %834  ;;  %v847_v33 = vpop.permute.xlu1 %846 }
  0x8b   :  { %v837_v36 = vunpack.i.h.bf16 %v835_v32  ;;  %v836_v37 = vunpack.i.l.bf16 %v835_v32  ;;  %v849_v42 = vunpack.i.h.bf16 %v847_v33  ;;  %v848_v43 = vunpack.i.l.bf16 %v847_v33 }
  0x8d   :  { %v112_v40 = vmul.f32 %v837_v36, %v110_v30  ;;  %v111_v41 = vmul.f32 %v836_v37, %v110_v30  ;;  %v85_v57 = vmul.f32 %v849_v42, %v81_v27  ;;  %v84_v58 = vmul.f32 %v848_v43, %v81_v27  ;;  %v873_v36 = vld [vmem:[%s1141_s8 + $0x8] sm:$0xff]   ;;  %v874_v37 = vld [vmem:[%s1141_s8 + $0x10] sm:$0xff]  }
  0x8f   :  { %v116_v46 = vadd.f32 %v111_v41, %v82_v39  ;;  %v117_v47 = vadd.f32 %v112_v40, %v83_v38  ;;  %v853_v48 = vpop.permute.xlu1 %852  ;;  %v859_v49 = vpop.permute.xlu0 %858  ;;  %v675_v38 = vld [vmem:[%s1143_s5] ss:$0 sm:$0xff] }
  0x90   :  { %v855_v51 = vunpack.i.h.bf16 %v853_v48  ;;  %v854_v52 = vunpack.i.l.bf16 %v853_v48  ;;  %v861_v53 = vunpack.i.h.bf16 %v859_v49  ;;  %v860_v54 = vunpack.i.l.bf16 %v859_v49  ;;  %v714_v39 = vld [vmem:[%s1142_s1] sm:$0xff]  }
  0x91   :  { %v150_v55 = vadd.f32 %v145_v45, %v116_v46  ;;  %v151_v56 = vadd.f32 %v146_v44, %v117_v47  ;;  %v715_v42 = vunpack.c.l.bf16 %v714_v39  ;;  %v716_v47 = vunpack.c.h.bf16 %v714_v39 }
  0x92   :  { %v114_v59 = vmul.f32 %v855_v51, %v110_v30  ;;  %v113_v60 = vmul.f32 %v854_v52, %v110_v30  ;;  %v148_v61 = vmul.f32 %v861_v53, %v144_v31  ;;  %v147_v62 = vmul.f32 %v860_v54, %v144_v31  ;;  %v722_v51 = vld [vmem:[%s1142_s1 + $0x8] sm:$0xff]  }
  0x93   :  { %v162_v63 = vadd.f32 %v674_v50, %v150_v55  ;;  %v163_v0 = vadd.f32 %v674_v50, %v151_v56  ;;  %v139_v20 = vpop.permute.xlu0 %138 }
  0x94   :  { %v118_v1 = vadd.f32 %v113_v60, %v84_v58  ;;  %v119_v8 = vadd.f32 %v114_v59, %v85_v57  ;;  %v76_v9 = vpop.permute.xlu1 %75  ;;  %v149_v25 = vmul.f32 %v144_v31, %v139_v20  ;;  %v870_v31 = vld [vmem:[%s1138_s6 + $0x10] sm:$0xff]   ;;  %v719_v58 = vunpack.c.l.bf16 %v722_v51 }
  0x95   :  { %v167_v10 = vmax.f32 %v162_v63, 0.0  ;;  %v168_v12 = vmax.f32 %v163_v0, 0.0  ;;  %v86_v19 = vmul.f32 %v81_v27, %v76_v9  ;;  %v720_v63 = vunpack.c.h.bf16 %v722_v51 }
  0x96   :  { %v153_v13 = vadd.f32 %v148_v61, %v119_v8  ;;  %v152_v14 = vadd.f32 %v147_v62, %v118_v1 }
  0x97   :  { %v172_v16 = vpack.c.bf16 %v168_v12, %v167_v10 }
  0x98   :  { %v165_v17 = vadd.f32 %v674_v50, %v153_v13  ;;  %v164_v18 = vadd.f32 %v674_v50, %v152_v14 }
  0x99   :  { %v105_v21 = vpop.permute.xlu1 %104  ;;  %758 = vmatmul.mubr.msk.bf16.vlgmr.msra.gmra.mrb[0].mxu0 %vm214_vm1, %v172_v16 }
  0x9a   :  { %v115_v22 = vmul.f32 %v110_v30, %v105_v21  ;;  %761 = vmatprep.mubr.msk.bf16.mxu0 %vm896_vm0, %v894_v11  ;;  %v170_v23 = vmax.f32 %v165_v17, 0.0  ;;  %v169_v24 = vmax.f32 %v164_v18, 0.0  ;;  %v869_v30 = vld [vmem:[%s1138_s6 + $0x8] sm:$0xff]   ;;  %790 = vmatpush3.bf16.msra.mxu0 %v872_v35  ;;  %v683_v21 = vld [vmem:[%s1144_s7] ss:$0 sm:$0xff] }
  0x9b   :  { %772 = vmatpush3.bf16.msra.mxu1 %v869_v30  ;;  %791 = vmatprep.subr.bf16.mxu0 %v894_v11 }
  0x9c   :  { %v120_v26 = vadd.f32 %v115_v22, %v86_v19  ;;  %v173_v29 = vpack.c.bf16 %v170_v23, %v169_v24  ;;  %773 = vmatprep.subr.bf16.mxu1 %v894_v11 }
  0x9e   :  { %v154_v28 = vadd.f32 %v149_v25, %v120_v26  ;;  %792 = vmatpush3.bf16.msra.mxu0 %v873_v36 }
  0x9f   :  { %774 = vmatpush3.bf16.msra.mxu1 %v870_v31  ;;  %793 = vmatprep.subr.bf16.mxu0 %v894_v11 }
  0xa0   :  { %v166_v32 = vadd.f32 %v674_v50, %v154_v28  ;;  %775 = vmatprep.subr.bf16.mxu1 %v894_v11 }
  0xa1   :  { %762 = vmatmul.mubr.msk.bf16.gmra.mrb[4].mxu0 %vm214_vm1, %v173_v29 }
  0xa2   :  { %765 = vmatprep.mubr.msk.bf16.mxu0 %vm896_vm0, %v894_v11  ;;  %v171_v27 = vmax.f32 %v166_v32, 0.0  ;;  %794 = vmatpush3.bf16.msra.mxu0 %v874_v37 }
  0xa3   :  { %776 = vmatpush3.bf16.msra.mxu1 %v871_v34  ;;  %795 = vmatprep.subr.bf16.mxu0 %v894_v11 }
  0xa4   :  { %v174_v33 = vpack.c.bf16 %v171_v27, %v171_v27  ;;  %809 = vmatprep.subr.bf16.mxu1 %v894_v11 }
  0xa9   :  { %766 = vmatmul.mubr.msk.bf16.gmra.mrb[8].mxu0 %vm214_vm1, %v174_v33 }
  0xaa   :  { %797 = vmatprep.mubr.msk.bf16.mxu0 %vm896_vm0, %v894_v11 }
 0x16c   :  { %v258_v40 = vpop.f32.mrb[0].mxu0 }
 0x16d   :  { %v259_v41 = vadd.f32 %v675_v38, %v258_v40  ;;  %v759_v43 = vpop.f32.mrb[1].mxu0 }
 0x16e   :  { %v261_v44 = vpop.f32.mrb[2].mxu0 }
 0x16f   :  { %v280_v45 = vmax.f32 %v259_v41, 0.0  ;;  %v262_v46 = vadd.f32 %v675_v38, %v261_v44  ;;  %v760_v48 = vpop.f32.mrb[3].mxu0 }
 0x170   :  { %v878_v48 = vld [vmem:[%s1145_s10 + $0x10] sm:$0xff]  }
 0x171   :  { %v295_v49 = vadd.f32 %v715_v42, %v280_v45  ;;  %v281_v50 = vmax.f32 %v262_v46, 0.0  ;;  %v305_v52 = vadd.f32 %v707_v4, %v280_v45  ;;  %v876_v46 = vld [vmem:[%s1145_s10] sm:$0xff]  }
 0x173   :  { %300 = vst.msk [vmem:[#allocation3] sm:$0xff] %vm214_vm1, %v295_v49  ;;  %v296_v53 = vadd.f32 %v716_v47, %v281_v50  ;;  %v306_v54 = vadd.f32 %v708_v5, %v281_v50  ;;  %v289_v5 = vld [vmem:[%s1142_s1 + $0x10] sm:$0xf]  ;;  %v877_v47 = vld [vmem:[%s1145_s10 + $0x8] sm:$0xff]   ;;  %v879_v49 = vld [vmem:[%s1145_s10 + $0x18] sm:$0xff]  }
 0x174   :  { %v266_v55 = vpop.f32.mrb[4].mxu0  ;;  %v294_v14 = vunpack.c.l.bf16 %v289_v5  ;;  %v691_v50 = vld [vmem:[%s1146_s9] ss:$0 sm:$0xff] }
 0x175   :  { %301 = vst.msk [vmem:[#allocation3 + $0x8] sm:$0xff] %vm214_vm1, %v296_v53  ;;  %v310_v56 = vpack.c.bf16 %v306_v54, %v305_v52  ;;  %v267_v57 = vadd.f32 %v675_v38, %v266_v55  ;;  %v763_v59 = vpop.f32.mrb[5].mxu0 }
 0x176   :  { %v269_v60 = vpop.f32.mrb[6].mxu0 }
 0x177   :  { %v282_v61 = vmax.f32 %v267_v57, 0.0  ;;  %v270_v62 = vadd.f32 %v675_v38, %v269_v60  ;;  %v764_v0 = vpop.f32.mrb[7].mxu0  ;;  %778 = vmatmul.mubr.msk.bf16.vlgmr.msra.gmra.mrb[0].mxu1 %vm214_vm1, %v310_v56 }
 0x178   :  { %781 = vmatprep.mubr.msk.bf16.mxu1 %vm896_vm0, %v894_v11  ;;  %810 = vmatpush3.bf16.msra.mxu1 %v876_v46 }
 0x179   :  { %v297_v4 = vadd.f32 %v719_v58, %v282_v61  ;;  %v283_v2 = vmax.f32 %v270_v62, 0.0  ;;  %v307_v1 = vadd.f32 %v711_v6, %v282_v61  ;;  %811 = vmatprep.subr.bf16.mxu1 %v894_v11 }
 0x17b   :  { %302 = vst.msk [vmem:[#allocation3 + $0x10] sm:$0xff] %vm214_vm1, %v297_v4  ;;  %v298_v8 = vadd.f32 %v720_v63, %v283_v2  ;;  %v308_v9 = vadd.f32 %v712_v7, %v283_v2  ;;  %v875_v7 = vld [vmem:[%s1141_s8 + $0x18] sm:$0xff]  }
 0x17c   :  { %v274_v10 = vpop.f32.mrb[8].mxu0  ;;  %796 = vmatpush3.bf16.msra.mxu0 %v875_v7  ;;  %812 = vmatpush3.bf16.msra.mxu1 %v877_v47 }
 0x17d   :  { %303 = vst.msk [vmem:[#allocation3 + $0x18] sm:$0xff] %vm214_vm1, %v298_v8  ;;  %v311_v12 = vpack.c.bf16 %v308_v9, %v307_v1  ;;  %v275_v13 = vadd.f32 %v675_v38, %v274_v10  ;;  %v767_v16 = vpop.f32.mrb[9].mxu0  ;;  %813 = vmatprep.subr.bf16.mxu1 %v894_v11 }
 0x17e   :  { %v277_v17 = vpop.f32.mrb[10].mxu0 }
 0x17f   :  { %v284_v18 = vmax.f32 %v275_v13, 0.0  ;;  %v768_v19 = vpop.f32.mrb[11].mxu0  ;;  %782 = vmatmul.mubr.msk.bf16.gmra.mrb[4].mxu1 %vm214_vm1, %v311_v12 }
 0x180   :  { %785 = vmatprep.mubr.msk.bf16.mxu1 %vm896_vm0, %v894_v11  ;;  %814 = vmatpush3.bf16.msra.mxu1 %v878_v48 }
 0x181   :  { %v299_v6 = vadd.f32 %v294_v14, %v284_v18  ;;  %v309_v20 = vadd.f32 %v284_v18, %v996_v15  ;;  %815 = vmatprep.subr.bf16.mxu1 %v894_v11 }
 0x183   :  { %304 = vst.msk [vmem:[#allocation3 + $0x20] sm:$0xff] %vm214_vm1, %v299_v6  ;;  %v312_v3 = vpack.c.bf16 %v309_v20, %v309_v20 }
 0x184   :  { %816 = vmatpush3.bf16.msra.mxu1 %v879_v49 }
 0x187   :  { %786 = vmatmul.mubr.msk.bf16.gmra.mrb[8].mxu1 %vm214_vm1, %v312_v3 }
 0x188   :  { %817 = vmatprep.mubr.msk.bf16.mxu1 %vm896_vm0, %v894_v11 }
 0x18a   :  { %v580_v48 = vld [vmem:[#allocation3 + $0x20] sm:$0xff] }
 0x24a   :  { %v395_v22 = vpop.f32.mrb[0].mxu1 }
 0x24b   :  { %v396_v23 = vadd.f32 %v683_v21, %v395_v22  ;;  %v779_v15 = vpop.f32.mrb[1].mxu1 }
 0x24c   :  { %v398_v24 = vpop.f32.mrb[2].mxu1 }
 0x24d   :  { %v399_v25 = vadd.f32 %v683_v21, %v398_v24  ;;  %v780_v26 = vpop.f32.mrb[3].mxu1  ;;  %v417_v28 = vmax.f32 %v396_v23, 0.0 }
 0x24f   :  { %v418_v29 = vmax.f32 %v399_v25, 0.0 }
 0x251   :  { %v422_v32 = vpack.c.bf16 %v418_v29, %v417_v28 }
 0x252   :  { %v403_v27 = vpop.f32.mrb[4].mxu1 }
 0x253   :  { %v404_v33 = vadd.f32 %v683_v21, %v403_v27  ;;  %v783_v30 = vpop.f32.mrb[5].mxu1  ;;  %798 = vmatmul.mubr.msk.bf16.vlgmr.msra.gmra.mrb[12].mxu0 %vm214_vm1, %v422_v32  ;;  %v552_v27 = vld [vmem:[#allocation3] sm:$0xff] }
 0x254   :  { %v406_v31 = vpop.f32.mrb[6].mxu1  ;;  %801 = vmatprep.mubr.msk.bf16.mxu0 %vm896_vm0, %v894_v11  ;;  %v559_v30 = vld [vmem:[#allocation3 + $0x8] sm:$0xff] }
 0x255   :  { %v407_v34 = vadd.f32 %v683_v21, %v406_v31  ;;  %v784_v35 = vpop.f32.mrb[7].mxu1  ;;  %v419_v36 = vmax.f32 %v404_v33, 0.0 }
 0x257   :  { %v420_v37 = vmax.f32 %v407_v34, 0.0 }
 0x259   :  { %v423_v38 = vpack.c.bf16 %v420_v37, %v419_v36 }
 0x25a   :  { %v411_v39 = vpop.f32.mrb[8].mxu1 }
 0x25b   :  { %v412_v40 = vadd.f32 %v683_v21, %v411_v39  ;;  %v787_v41 = vpop.f32.mrb[9].mxu1  ;;  %802 = vmatmul.mubr.msk.bf16.gmra.mrb[16].mxu0 %vm214_vm1, %v423_v38 }
 0x25c   :  { %v414_v42 = vpop.f32.mrb[10].mxu1  ;;  %805 = vmatprep.mubr.msk.bf16.mxu0 %vm896_vm0, %v894_v11  ;;  %v566_v41 = vld [vmem:[#allocation3 + $0x10] sm:$0xff] }
 0x25d   :  { %v421_v43 = vmax.f32 %v412_v40, 0.0  ;;  %v788_v44 = vpop.f32.mrb[11].mxu1 }
 0x25f   :  { %v424_v45 = vpack.c.bf16 %v421_v43, %v421_v43 }
 0x263   :  { %806 = vmatmul.mubr.msk.bf16.gmra.mrb[20].mxu0 %vm214_vm1, %v424_v45  ;;  %v573_v45 = vld [vmem:[#allocation3 + $0x18] sm:$0xff] }
 0x326   :  { %v507_v51 = vpop.f32.mrb[12].mxu0 }
 0x327   :  { %v508_v52 = vadd.f32 %v691_v50, %v507_v51  ;;  %v799_v53 = vpop.f32.mrb[13].mxu0 }
 0x328   :  { %v510_v54 = vpop.f32.mrb[14].mxu0 }
 0x329   :  { %v529_v55 = vmax.f32 %v508_v52, 0.0  ;;  %v511_v56 = vadd.f32 %v691_v50, %v510_v54  ;;  %v800_v57 = vpop.f32.mrb[15].mxu0  ;;  %v699_v54 = vld [vmem:[%s1147_s11] ss:$0 sm:$0xff] }
 0x32b   :  { %534 = vst.msk [vmem:[#allocation2] sm:$0xff] %vm214_vm1, %v529_v55  ;;  %v530_v58 = vmax.f32 %v511_v56, 0.0 }
 0x32d   :  { %535 = vst.msk [vmem:[#allocation2 + $0x8] sm:$0xff] %vm214_vm1, %v530_v58 }
 0x32e   :  { %v515_v59 = vpop.f32.mrb[16].mxu0 }
 0x32f   :  { %v516_v60 = vadd.f32 %v691_v50, %v515_v59  ;;  %v803_v11 = vpop.f32.mrb[17].mxu0 }
 0x330   :  { %v518_v61 = vpop.f32.mrb[18].mxu0 }
 0x331   :  { %v531_v62 = vmax.f32 %v516_v60, 0.0  ;;  %v519_v63 = vadd.f32 %v691_v50, %v518_v61  ;;  %v804_v0 = vpop.f32.mrb[19].mxu0 }
 0x332   :  { %v539_v13 = vld [vmem:[#allocation2] sm:$0xff] }
 0x333   :  { %536 = vst.msk [vmem:[#allocation2 + $0x10] sm:$0xff] %vm214_vm1, %v531_v62  ;;  %v532_v4 = vmax.f32 %v519_v63, 0.0 }
 0x334   :  { %v540_v8 = vld [vmem:[#allocation2 + $0x8] sm:$0xff] }
 0x335   :  { %537 = vst.msk [vmem:[#allocation2 + $0x18] sm:$0xff] %vm214_vm1, %v532_v4  ;;  %v541_v16 = vmax.f32 %v539_v13, %v540_v8 }
 0x336   :  { %v523_v2 = vpop.f32.mrb[20].mxu0 }
 0x337   :  { %v524_v5 = vadd.f32 %v691_v50, %v523_v2  ;;  %v807_v1 = vpop.f32.mrb[21].mxu0 }
 0x338   :  { %v526_v9 = vpop.f32.mrb[22].mxu0 }
 0x339   :  { %v533_v10 = vmax.f32 %v524_v5, 0.0  ;;  %v808_v12 = vpop.f32.mrb[23].mxu0 }
 0x33a   :  { %v542_v14 = vld [vmem:[#allocation2 + $0x10] sm:$0xff] }
 0x33b   :  { %538 = vst.msk [vmem:[#allocation2 + $0x20] sm:$0xff] %vm214_vm1, %v533_v10  ;;  %v543_v17 = vmax.f32 %v541_v16, %v542_v14 }
 0x33c   :  { %v544_v18 = vld [vmem:[#allocation2 + $0x18] sm:$0xff] }
 0x33d   :  { %v545_v19 = vmax.f32 %v543_v17, %v544_v18 }
 0x342   :  { %v546_v6 = vld [vmem:[#allocation2 + $0x20] sm:$0xff] }
 0x343   :  { %v547_v20 = vmax.f32 %v545_v19, %v546_v6 }
 0x345   :  { %v548_v3 = vsub.f32 %v539_v13, %v547_v20  ;;  %v555_v7 = vsub.f32 %v540_v8, %v547_v20  ;;  %v562_v21 = vsub.f32 %v542_v14, %v547_v20  ;;  %v569_v22 = vsub.f32 %v544_v18, %v547_v20 }
 0x346   :  { %v576_v25 = vsub.f32 %v546_v6, %v547_v20 }
 0x347   :  { %v549_v23 = vmul.f32 1.442695, %v548_v3  ;;  %v556_v15 = vmul.f32 1.442695, %v555_v7  ;;  %v563_v24 = vmul.f32 1.442695, %v562_v21 }
 0x348   :  { %v570_v26 = vmul.f32 1.442695, %v569_v22  ;;  %v577_v28 = vmul.f32 1.442695, %v576_v25 }
 0x349   :  { %880 = vpow2.f32 %v549_v23 }
 0x34a   :  { %882 = vpow2.f32 %v556_v15 }
 0x34b   :  { %884 = vpow2.f32 %v563_v24 }
 0x34c   :  { %886 = vpow2.f32 %v570_v26 }
 0x34d   :  { %888 = vpow2.f32 %v577_v28 }
 0x353   :  { %v881_v29 = vpop.eup %880 }
 0x354   :  { %v883_v32 = vpop.eup %882  ;;  %v553_v34 = vmul.f32 %v881_v29, %v552_v27 }
 0x355   :  { %v558_v33 = vadd.f32 %v883_v32, %v881_v29  ;;  %v885_v31 = vpop.eup %884  ;;  %v560_v35 = vmul.f32 %v883_v32, %v559_v30 }
 0x356   :  { %v887_v37 = vpop.eup %886  ;;  %v567_v43 = vmul.f32 %v885_v31, %v566_v41 }
 0x357   :  { %v565_v36 = vadd.f32 %v885_v31, %v558_v33  ;;  %v889_v39 = vpop.eup %888  ;;  %v561_v40 = vadd.f32 %v560_v35, %v553_v34  ;;  %v574_v46 = vmul.f32 %v887_v37, %v573_v45 }
 0x358   :  { %v581_v49 = vmul.f32 %v889_v39, %v580_v48 }
 0x359   :  { %v572_v38 = vadd.f32 %v887_v37, %v565_v36  ;;  %v568_v44 = vadd.f32 %v567_v43, %v561_v40 }
 0x35b   :  { %v579_v42 = vadd.f32 %v889_v39, %v572_v38  ;;  %v575_v47 = vadd.f32 %v574_v46, %v568_v44 }
 0x35d   :  { %890 = vrcp.f32 %v579_v42  ;;  %v582_v50 = vadd.f32 %v581_v49, %v575_v47 }
 0x367   :  { %v891_v51 = vpop.eup %890 }
 0x368   :  { %v584_v52 = vmul.f32 %v891_v51, %v582_v50 }
 0x36a   :  { %v585_v53 = vpack.c.bf16 %v584_v52, %v584_v52 }
 0x36c   :  { %818 = vmatmul.mubr.msk.bf16.vlgmr.msra.gmra.mrb[12].mxu1 %vm214_vm1, %v585_v53 }
 0x43f   :  { %v662_v55 = vpop.f32.mrb[12].mxu1 }
 0x440   :  { %v663_v56 = vadd.f32 %v699_v54, %v662_v55  ;;  %v819_v57 = vpop.f32.mrb[13].mxu1 }
 0x441   :  { %v665_v58 = vpop.f32.mrb[14].mxu1 }
 0x442   :  { %v668_v59 = vmax.f32 %v663_v56, 0.0  ;;  %v820_v60 = vpop.f32.mrb[15].mxu1 }
 0x444   :  { %669 = vst.msk [vmem:[%s1148_s12] sm:$0xff] %vm214_vm1, %v668_v59 }

// kernel: segmentation_gnn_forward.29
= control target key start
LH: loop header
LB: loop body
LE: loop exit
PB: predicated region body
PF: predicated region fallthrough
CT: control target
= control target key end

     0   :  { %v281_v0 = vmov 0.0   ;;  %vm282_vm0 = vmmov 0   ;;  %vm62_vm1 = vcmask 523264   ;;  %v283_v15 = vmov 0   ;;  %s364_s1 = inlined_call_operand.vmem [shape: bf16[64,64], index: 1, kind: input, shape index: {}]   ;;  %s365_s3 = inlined_call_operand.vmem [shape: bf16[64,192], index: 3, kind: input, shape index: {}]   ;;  %s366_s0 = inlined_call_operand.vmem [shape: f32[8,64], index: 0, kind: input, shape index: {}]   ;;  %s367_s2 = inlined_call_operand.vmem [shape: f32[1,64], index: 2, kind: input, shape index: {}]   ;;  %s368_s4 = inlined_call_operand.vmem [shape: f32[1,192], index: 4, kind: input, shape index: {}]   ;;  %s369_s5 = inlined_call_operand.vmem [shape: bf16[8,192], index: 5, kind: output, shape index: {}]  }
   0x1   :  { %250 = vmatprep.subr.bf16.mxu0 %v281_v0  ;;  %v265_v1 = vld [vmem:[%s364_s1] sm:$0xff]   ;;  %258 = vmatprep.mubr.msk.bf16.mxu0 %vm282_vm0, %v281_v0  ;;  %v266_v2 = vld [vmem:[%s364_s1 + $0x8] sm:$0xff]   ;;  %v267_v5 = vld [vmem:[%s364_s1 + $0x10] sm:$0xff]   ;;  %v118_v24 = vlaneseq  ;;  %vm220_vm2 = vcmask 1043456   ;;  %vm221_vm3 = vcmask 523268  }
   0x2   :  { %251 = vmatpush3.bf16.msra.mxu0 %v265_v1  ;;  %v269_v3 = vld [vmem:[%s365_s3 + $0x4] ss:$8 sps:$4 sm:$0xff]   ;;  %v271_v4 = vld [vmem:[%s365_s3] ss:$8 sps:$4 sm:$0xff]   ;;  %v272_v6 = vld [vmem:[%s365_s3 + $0x14] ss:$8 sps:$4 sm:$0xff]   ;;  %203 = vmatprep.mubr.bf16.mxu1 %v283_v15 }
   0x3   :  { %252 = vmatprep.subr.bf16.mxu0 %v281_v0  ;;  %171 = vmatprep.subr.bf16.mxu1 %v269_v3  ;;  %v274_v7 = vld [vmem:[%s365_s3 + $0x10] ss:$8 sps:$4 sm:$0xff]   ;;  %v275_v8 = vld [vmem:[%s365_s3 + $0x24] ss:$8 sps:$4 sm:$0xff]   ;;  %v277_v12 = vld [vmem:[%s365_s3 + $0x20] ss:$8 sps:$4 sm:$0xff]  }
   0x4   :  { %172 = vmatpush1.bf16.msra.mxu1 %v271_v4  ;;  %v268_v9 = vld [vmem:[%s364_s1 + $0x18] sm:$0xff]   ;;  %v21_v10 = vld [vmem:[%s366_s0] sm:$0xff]  ;;  %v119_v25 = vshrl.u32 %v118_v24, 7  ;;  %vm222_vm4 = vmor %vm221_vm3, %vm220_vm2 }
   0x5   :  { %173 = vmatprep.subr.bf16.mxu1 %v272_v6  ;;  %v31_v11 = vpack.c.bf16 %v21_v10, %v21_v10  ;;  %v278_v13 = vld [vmem:[%s365_s3 + $0x34] ss:$8 sps:$4 sm:$0xff]   ;;  %v280_v14 = vld [vmem:[%s365_s3 + $0x30] ss:$8 sps:$4 sm:$0xff]   ;;  %v228_v16 = vld [vmem:[%s367_s2] ss:$0 sm:$0xff] }
   0x6   :  { %253 = vmatpush3.bf16.msra.mxu0 %v266_v2  ;;  %v120_v26 = vsub.s32 0, %v119_v25  ;;  %v115_v27 = vld [vmem:[%s368_s4] sm:$0x3]  ;;  %v124_v28 = vsub.s32 1, %v119_v25 }
   0x7   :  { %254 = vmatprep.subr.bf16.mxu0 %v281_v0 }
   0x8   :  { %174 = vmatpush1.bf16.msra.mxu1 %v274_v7  ;;  %v121_v29 = vrot.slane %v115_v27, %v120_v26  ;;  %v125_v30 = vrot.slane %v115_v27, %v124_v28 }
   0x9   :  { %175 = vmatprep.subr.bf16.mxu1 %v275_v8 }
   0xa   :  { %255 = vmatpush3.bf16.msra.mxu0 %v267_v5 }
   0xb   :  { %256 = vmatprep.subr.bf16.mxu0 %v281_v0 }
   0xc   :  { %176 = vmatpush1.bf16.msra.mxu1 %v277_v12 }
   0xd   :  { %177 = vmatprep.subr.bf16.mxu1 %v278_v13 }
   0xe   :  { %257 = vmatpush3.bf16.msra.mxu0 %v268_v9 }
  0x10   :  { %178 = vmatpush1.bf16.msra.mxu1 %v280_v14 }
  0x11   :  { %259 = vmatmul.mubr.msk.bf16.vlgmr.msra.gmra.mrb[0].mxu0 %vm62_vm1, %v31_v11 }
  0xe4   :  { %v100_v17 = vpop.f32.mrb[0].mxu0 }
  0xe5   :  { %v101_v18 = vadd.f32 %v228_v16, %v100_v17  ;;  %v260_v19 = vpop.f32.mrb[1].mxu0 }
  0xe6   :  { %v103_v20 = vpop.f32.mrb[2].mxu0 }
  0xe7   :  { %v106_v21 = vmax.f32 %v101_v18, 0.0  ;;  %v261_v22 = vpop.f32.mrb[3].mxu0 }
  0xe9   :  { %v116_v23 = vpack.c.bf16 %v106_v21, %v106_v21 }
  0xeb   :  { %242 = vmatmul.mubr.msk.bf16.vlgmr.msra.gmra.mrb[0].mxu1 %vm62_vm1, %v116_v23 }
 0x1be   :  { %v205_v31 = vpop.f32.mrb[0].mxu1 }
 0x1bf   :  { %v206_v32 = vadd.f32 %v205_v31, %v121_v29  ;;  %v207_v33 = vpop.f32.mrb[1].mxu1 }
 0x1c0   :  { %v208_v34 = vadd.f32 %v207_v33, %v125_v30  ;;  %v209_v35 = vpop.f32.mrb[2].mxu1 }
 0x1c1   :  { %v210_v36 = vpop.f32.mrb[3].mxu1 }
 0x1c2   :  { %v244_v37 = vpack.c.bf16 %v208_v34, %v206_v32 }
 0x1c4   :  { %223 = vst.msk [vmem:[%s369_s5] sm:$0xff] %vm222_vm4, %v244_v37 }

// kernel: neg.11
= control target key start
LH: loop header
LB: loop body
LE: loop exit
PB: predicated region body
PF: predicated region fallthrough
CT: control target
= control target key end

     0   :  { %s24_s0 = inlined_call_operand.vmem [shape: f32[64,7], index: 0, kind: input, shape index: {}]   ;;  %s25_s1 = inlined_call_operand.vmem [shape: f32[64,7], index: 1, kind: output, shape index: {}]  }
   0x1   :  { %v2_v0 = vld [vmem:[%s24_s0] sm:$0x7f] }
   0x2   :  { %v5_v1 = vxor.u32 2147483648, %v2_v0 }
   0x4   :  { %7 = vst [vmem:[%s25_s1] sm:$0xff] %v5_v1 }

// kernel: segmentation_gnn_forward.32
= control target key start
LH: loop header
LB: loop body
LE: loop exit
PB: predicated region body
PF: predicated region fallthrough
CT: control target
= control target key end

     0   :  { %v26_v5 = vlaneseq  ;;  %vm40_vm0 = vcmask 261120   ;;  %s80_s1 = inlined_call_operand.vmem [shape: f32[1,32], index: 1, kind: input, shape index: {}]   ;;  %s81_s2 = inlined_call_operand.vmem [shape: f32[1,32], index: 2, kind: input, shape index: {}]   ;;  %s82_s0 = inlined_call_operand.vmem [shape: bf16[8,32], index: 0, kind: input, shape index: {}]   ;;  %s83_s3 = inlined_call_operand.vmem [shape: f32[8,32], index: 3, kind: output, shape index: {}]  }
   0x1   :  { %v14_v0 = vld [vmem:[%s80_s1] sm:$0x1] }
   0x2   :  { %v16_v1 = vld [vmem:[%s81_s2] sm:$0x1]  ;;  %v15_v2 = vmul.f32 0.14285715, %v14_v0  ;;  %v27_v8 = vshrl.u32 %v26_v5, 7 }
   0x3   :  { %v17_v3 = vmul.f32 0.14285715, %v16_v1  ;;  %v23_v11 = vld [vmem:[%s82_s0] sm:$0xf] }
   0x4   :  { %v18_v4 = vmul.f32 %v15_v2, %v15_v2  ;;  %v28_v10 = vsub.s32 0, %v27_v8  ;;  %v24_v12 = vunpack.c.l.bf16 %v23_v11 }
   0x6   :  { %v19_v6 = vsub.f32 %v17_v3, %v18_v4  ;;  %v29_v13 = vrot.slane %v15_v2, %v28_v10 }
   0x8   :  { %v20_v7 = vmax.f32 %v19_v6, 0.0  ;;  %v31_v14 = vsub.f32 %v24_v12, %v29_v13 }
   0xa   :  { %v21_v9 = vadd.f32 1e-05, %v20_v7 }
   0xc   :  { %46 = vrsqrt.f32 %v21_v9 }
  0x16   :  { %v47_v15 = vpop.eup %46 }
  0x17   :  { %v36_v16 = vrot.slane %v47_v15, %v28_v10 }
  0x19   :  { %v38_v17 = vmul.f32 %v36_v16, %v31_v14 }
  0x1b   :  { %v39_v18 = vmax.f32 %v38_v17, 0.0 }
  0x1d   :  { %41 = vst.msk [vmem:[%s83_s3] sm:$0xff] %vm40_vm0, %v39_v18 }

// kernel: segmentation_gnn_forward.31
= control target key start
LH: loop header
LB: loop body
LE: loop exit
PB: predicated region body
PF: predicated region fallthrough
CT: control target
= control target key end

     0   :  { %v184_v0 = vmov 0.0   ;;  %vm185_vm0 = vmmov 0   ;;  %vm59_vm1 = vcmask 523264   ;;  %vm110_vm2 = vcmask 253952   ;;  %s259_s1 = inlined_call_operand.vmem [shape: bf16[64,32], index: 1, kind: input, shape index: {}]   ;;  %s260_s0 = inlined_call_operand.vmem [shape: f32[8,64], index: 0, kind: input, shape index: {}]   ;;  %s261_s4 = inlined_call_operand.vmem [shape: f32[1,32], index: 4, kind: output, shape index: {1}]   ;;  %s262_s5 = inlined_call_operand.vmem [shape: f32[1,32], index: 5, kind: output, shape index: {2}]   ;;  %s263_s2 = inlined_call_operand.vmem [shape: f32[1,32], index: 2, kind: input, shape index: {}]   ;;  %s264_s3 = inlined_call_operand.vmem [shape: bf16[8,32], index: 3, kind: output, shape index: {0}]  }
   0x1   :  { %166 = vmatprep.subr.bf16.mxu0 %v184_v0  ;;  %v180_v1 = vld [vmem:[%s259_s1] sm:$0xff]   ;;  %174 = vmatprep.mubr.msk.bf16.mxu0 %vm185_vm0, %v184_v0  ;;  %v181_v2 = vld [vmem:[%s259_s1 + $0x8] sm:$0xff]   ;;  %v182_v3 = vld [vmem:[%s259_s1 + $0x10] sm:$0xff]   ;;  %111 = vst.msk [vmem:[%s261_s4] sm:$0x1] %vm110_vm2, %v184_v0  ;;  %v114_v7 = vlaneseq  ;;  %vm121_vm4 = vcmask 261120  }
   0x2   :  { %167 = vmatpush3.bf16.msra.mxu0 %v180_v1  ;;  %v183_v4 = vld [vmem:[%s259_s1 + $0x18] sm:$0xff]   ;;  %v18_v5 = vld [vmem:[%s260_s0] sm:$0xff]  ;;  %112 = vst.msk [vmem:[%s262_s5] sm:$0x1] %vm110_vm2, %v184_v0  ;;  %vm104_vm5 = vcmask 257024  }
   0x3   :  { %168 = vmatprep.subr.bf16.mxu0 %v184_v0  ;;  %v19_v6 = vpack.c.bf16 %v18_v5, %v18_v5  ;;  %v115_v8 = vshrl.u32 %v114_v7, 7  ;;  %v155_v9 = vld [vmem:[%s263_s2] ss:$0 sm:$0xff] }
   0x5   :  { %vm118_vm3 = vcmp.lt.s32.totalorder %v115_v8, 7 }
   0x6   :  { %169 = vmatpush3.bf16.msra.mxu0 %v181_v2 }
   0x7   :  { %170 = vmatprep.subr.bf16.mxu0 %v184_v0 }
   0x8   :  { %v120_v29 = vld [vmem:[%s261_s4] sm:$0x1] }
   0x9   :  { %v132_v32 = vld [vmem:[%s262_s5] sm:$0x1] }
   0xa   :  { %171 = vmatpush3.bf16.msra.mxu0 %v182_v3 }
   0xb   :  { %172 = vmatprep.subr.bf16.mxu0 %v184_v0 }
   0xe   :  { %173 = vmatpush3.bf16.msra.mxu0 %v183_v4 }
  0x11   :  { %175 = vmatmul.mubr.msk.bf16.vlgmr.msra.gmra.mrb[0].mxu0 %vm59_vm1, %v19_v6 }
  0xe4   :  { %v97_v10 = vpop.f32.mrb[0].mxu0 }
  0xe5   :  { %v98_v11 = vadd.f32 %v155_v9, %v97_v10  ;;  %v176_v12 = vpop.f32.mrb[1].mxu0 }
  0xe6   :  { %v100_v13 = vpop.f32.mrb[2].mxu0 }
  0xe7   :  { %v103_v14 = vpack.c.bf16 %v98_v11, %v98_v11  ;;  %v119_v15 = vsel %vm118_vm3, %v98_v11, 0.0  ;;  %v177_v16 = vpop.f32.mrb[3].mxu0 }
  0xe8   :  { %v122_v17 = vsel %vm121_vm4, %v119_v15, 0.0  ;;  %v133_v18 = vmul.f32 %v119_v15, %v119_v15 }
  0xe9   :  { %105 = vst.msk [vmem:[%s264_s3] sm:$0xf] %vm104_vm5, %v103_v14  ;;  %v123_v19 = vrot.slane %v122_v17, 4 }
  0xea   :  { %v134_v20 = vsel %vm121_vm4, %v133_v18, 0.0 }
  0xeb   :  { %v124_v21 = vadd.f32 %v123_v19, %v122_v17  ;;  %v135_v22 = vrot.slane %v134_v20, 4 }
  0xed   :  { %v125_v23 = vrot.slane %v124_v21, 2  ;;  %v136_v24 = vadd.f32 %v135_v22, %v134_v20 }
  0xef   :  { %v126_v25 = vadd.f32 %v125_v23, %v124_v21  ;;  %v137_v26 = vrot.slane %v136_v24, 2 }
  0xf1   :  { %v127_v27 = vrot.slane %v126_v25, 1  ;;  %v138_v28 = vadd.f32 %v137_v26, %v136_v24 }
  0xf3   :  { %v128_v30 = vadd.f32 %v127_v27, %v126_v25  ;;  %v139_v31 = vrot.slane %v138_v28, 1 }
  0xf5   :  { %v129_v33 = vadd.f32 %v128_v30, %v120_v29  ;;  %v140_v34 = vadd.f32 %v139_v31, %v138_v28 }
  0xf7   :  { %131 = vst.msk [vmem:[%s261_s4] sm:$0x1] %vm110_vm2, %v129_v33  ;;  %v141_v35 = vadd.f32 %v140_v34, %v132_v32 }
  0xf9   :  { %142 = vst.msk [vmem:[%s262_s5] sm:$0x1] %vm110_vm2, %v141_v35 }

// kernel: segmentation_gnn_forward.33
= control target key start
LH: loop header
LB: loop body
LE: loop exit
PB: predicated region body
PF: predicated region fallthrough
CT: control target
= control target key end

     0   :  { %vm53_vm0 = vcmask 261120   ;;  %vm176_vm1 = vcmask 253952   ;;  %v331_v14 = vmov 0.0   ;;  %vm163_vm2 = vcmask 257024   ;;  %s469_s1 = inlined_call_operand.vmem [shape: bf16[32,32], index: 1, kind: input, shape index: {}]   ;;  %s470_s0 = inlined_call_operand.vmem [shape: f32[64,32], index: 0, kind: input, shape index: {}]   ;;  %s471_s4 = inlined_call_operand.vmem [shape: f32[1,32], index: 4, kind: output, shape index: {1}]   ;;  %s472_s5 = inlined_call_operand.vmem [shape: f32[1,32], index: 5, kind: output, shape index: {2}]   ;;  %s473_s2 = inlined_call_operand.vmem [shape: f32[1,32], index: 2, kind: input, shape index: {}]   ;;  %s474_s3 = inlined_call_operand.vmem [shape: bf16[64,32], index: 3, kind: output, shape index: {0}]  }
   0x1   :  { %v329_v0 = vld [vmem:[%s469_s1] sm:$0xff]   ;;  %v330_v1 = vld [vmem:[%s469_s1 + $0x8] sm:$0xff]   ;;  %v20_v4 = vld [vmem:[%s470_s0 + $0x10] sm:$0xff]  ;;  %177 = vst.msk [vmem:[%s471_s4] sm:$0x1] %vm176_vm1, %v331_v14 }
   0x2   :  { %312 = vmatprep.subr.bf16.mxu0 %v329_v0  ;;  %324 = vmatprep.subr.bf16.mxu1 %v329_v0  ;;  %v18_v2 = vld [vmem:[%s470_s0] sm:$0xff]  ;;  %v19_v3 = vld [vmem:[%s470_s0 + $0x8] sm:$0xff]  ;;  %v21_v6 = vld [vmem:[%s470_s0 + $0x18] sm:$0xff]  ;;  %178 = vst.msk [vmem:[%s472_s5] sm:$0x1] %vm176_vm1, %v331_v14 }
   0x3   :  { %313 = vmatpush3.bf16.msra.mxu0 %v329_v0  ;;  %326 = vmatpush3.bf16.msra.mxu1 %v329_v0  ;;  %v26_v5 = vpack.c.bf16 %v19_v3, %v18_v2  ;;  %v22_v7 = vld [vmem:[%s470_s0 + $0x20] sm:$0xff]  ;;  %v23_v8 = vld [vmem:[%s470_s0 + $0x28] sm:$0xff]  ;;  %v24_v10 = vld [vmem:[%s470_s0 + $0x30] sm:$0xff]  ;;  %v27_v12 = vpack.c.bf16 %v21_v6, %v20_v4 }
   0x4   :  { %314 = vmatprep.subr.bf16.mxu0 %v330_v1  ;;  %325 = vmatprep.subr.bf16.mxu1 %v330_v1  ;;  %v28_v9 = vpack.c.bf16 %v23_v8, %v22_v7  ;;  %v25_v11 = vld [vmem:[%s470_s0 + $0x38] sm:$0xff]  ;;  %v283_v15 = vld [vmem:[%s473_s2] ss:$0 sm:$0xff] }
   0x5   :  { %316 = vmatprep.mubr.msk.bf16.mxu0 %vm53_vm0, %v26_v5  ;;  %v29_v13 = vpack.c.bf16 %v25_v11, %v24_v10 }
   0x6   :  { %320 = vmatprep.mubr.msk.bf16.mxu1 %vm53_vm0, %v28_v9 }
   0x7   :  { %315 = vmatpush3.bf16.msra.mxu0 %v330_v1  ;;  %327 = vmatpush3.bf16.msra.mxu1 %v330_v1 }
   0xa   :  { %317 = vmatmul.mubr.msk.bf16.vlgmr.msra.gmra.mrb[0].mxu0 %vm53_vm0, %v27_v12  ;;  %321 = vmatmul.mubr.msk.bf16.vlgmr.msra.gmra.mrb[0].mxu1 %vm53_vm0, %v29_v13 }
  0xdd   :  { %v318_v16 = vpop.f32.mrb[0].mxu0  ;;  %v322_v17 = vpop.f32.mrb[0].mxu1 }
  0xde   :  { %v109_v18 = vadd.f32 %v318_v16, %v283_v15  ;;  %v100_v19 = vpop.f32.mrb[1].mxu0  ;;  %v116_v20 = vpop.f32.mrb[1].mxu1  ;;  %v125_v27 = vadd.f32 %v322_v17, %v283_v15 }
  0xdf   :  { %v101_v21 = vadd.f32 %v283_v15, %v100_v19  ;;  %v319_v22 = vpop.f32.mrb[2].mxu0  ;;  %v323_v23 = vpop.f32.mrb[2].mxu1  ;;  %v117_v32 = vadd.f32 %v283_v15, %v116_v20 }
  0xe0   :  { %v300_v24 = vpack.c.bf16 %v109_v18, %v109_v18  ;;  %v112_v25 = vadd.f32 %v319_v22, %v283_v15  ;;  %v103_v26 = vpop.f32.mrb[3].mxu0  ;;  %v119_v28 = vpop.f32.mrb[3].mxu1  ;;  %v242_v33 = vmul.f32 %v109_v18, %v109_v18  ;;  %v218_v39 = vsel %vm53_vm0, %v109_v18, 0.0 }
  0xe1   :  { %v298_v29 = vpack.c.bf16 %v101_v21, %v101_v21  ;;  %v240_v30 = vmul.f32 %v101_v21, %v101_v21  ;;  %v104_v31 = vadd.f32 %v283_v15, %v103_v26  ;;  %v215_v35 = vsel %vm53_vm0, %v101_v21, 0.0  ;;  %v239_v26 = vld [vmem:[%s472_s5] sm:$0x1] }
  0xe2   :  { %166 = vst.msk [vmem:[%s474_s3 + $0x8] sm:$0xf] %vm163_vm2, %v300_v24  ;;  %v301_v34 = vpack.c.bf16 %v112_v25, %v112_v25  ;;  %v304_v41 = vpack.c.bf16 %v125_v27, %v125_v27  ;;  %v243_v43 = vmul.f32 %v112_v25, %v112_v25  ;;  %v302_v45 = vpack.c.bf16 %v117_v32, %v117_v32 }
  0xe3   :  { %164 = vst.msk [vmem:[%s474_s3] sm:$0xf] %vm163_vm2, %v298_v29  ;;  %v299_v36 = vpack.c.bf16 %v104_v31, %v104_v31  ;;  %v216_v37 = vsel %vm53_vm0, %v104_v31, 0.0  ;;  %v241_v38 = vmul.f32 %v104_v31, %v104_v31  ;;  %v248_v42 = vsel %vm53_vm0, %v240_v30, 0.0 }
  0xe4   :  { %167 = vst.msk [vmem:[%s474_s3 + $0xc] sm:$0xf] %vm163_vm2, %v301_v34  ;;  %v217_v40 = vadd.f32 %v216_v37, %v215_v35  ;;  %170 = vst.msk [vmem:[%s474_s3 + $0x18] sm:$0xf] %vm163_vm2, %v304_v41  ;;  %v244_v48 = vmul.f32 %v117_v32, %v117_v32  ;;  %v128_v49 = vadd.f32 %v323_v23, %v283_v15  ;;  %v251_v50 = vsel %vm53_vm0, %v242_v33, 0.0 }
  0xe5   :  { %165 = vst.msk [vmem:[%s474_s3 + $0x4] sm:$0xf] %vm163_vm2, %v299_v36  ;;  %v249_v44 = vsel %vm53_vm0, %v241_v38, 0.0  ;;  %v220_v51 = vsel %vm53_vm0, %v112_v25, 0.0  ;;  %168 = vst.msk [vmem:[%s474_s3 + $0x10] sm:$0xf] %vm163_vm2, %v302_v45  ;;  %v120_v53 = vadd.f32 %v283_v15, %v119_v28  ;;  %v246_v63 = vmul.f32 %v125_v27, %v125_v27 }
  0xe6   :  { %v219_v46 = vadd.f32 %v218_v39, %v217_v40  ;;  %v250_v47 = vadd.f32 %v249_v44, %v248_v42  ;;  %v222_v52 = vsel %vm53_vm0, %v117_v32, 0.0  ;;  %v305_v56 = vpack.c.bf16 %v128_v49, %v128_v49  ;;  %v214_v23 = vld [vmem:[%s471_s4] sm:$0x1] }
  0xe7   :  { %v253_v57 = vsel %vm53_vm0, %v243_v43, 0.0  ;;  %v255_v58 = vsel %vm53_vm0, %v244_v48, 0.0  ;;  %v303_v59 = vpack.c.bf16 %v120_v53, %v120_v53  ;;  %v245_v62 = vmul.f32 %v120_v53, %v120_v53 }
  0xe8   :  { %v252_v54 = vadd.f32 %v251_v50, %v250_v47  ;;  %v221_v55 = vadd.f32 %v220_v51, %v219_v46  ;;  %171 = vst.msk [vmem:[%s474_s3 + $0x1c] sm:$0xf] %vm163_vm2, %v305_v56  ;;  %v224_v0 = vsel %vm53_vm0, %v120_v53, 0.0  ;;  %v226_v3 = vsel %vm53_vm0, %v125_v27, 0.0 }
  0xe9   :  { %169 = vst.msk [vmem:[%s474_s3 + $0x14] sm:$0xf] %vm163_vm2, %v303_v59  ;;  %v247_v4 = vmul.f32 %v128_v49, %v128_v49  ;;  %v257_v5 = vsel %vm53_vm0, %v245_v62, 0.0  ;;  %v259_v8 = vsel %vm53_vm0, %v246_v63, 0.0  ;;  %v228_v9 = vsel %vm53_vm0, %v128_v49, 0.0 }
  0xea   :  { %v223_v60 = vadd.f32 %v222_v52, %v221_v55  ;;  %v254_v61 = vadd.f32 %v253_v57, %v252_v54 }
  0xeb   :  { %v261_v12 = vsel %vm53_vm0, %v247_v4, 0.0 }
  0xec   :  { %v256_v1 = vadd.f32 %v255_v58, %v254_v61  ;;  %v225_v2 = vadd.f32 %v224_v0, %v223_v60 }
  0xee   :  { %v227_v6 = vadd.f32 %v226_v3, %v225_v2  ;;  %v258_v7 = vadd.f32 %v257_v5, %v256_v1 }
  0xf0   :  { %v229_v10 = vadd.f32 %v228_v9, %v227_v6  ;;  %v260_v11 = vadd.f32 %v259_v8, %v258_v7 }
  0xf2   :  { %v230_v13 = vrot.slane %v229_v10, 4  ;;  %v262_v14 = vadd.f32 %v261_v12, %v260_v11 }
  0xf4   :  { %v231_v15 = vadd.f32 %v230_v13, %v229_v10  ;;  %v263_v16 = vrot.slane %v262_v14, 4 }
  0xf6   :  { %v232_v17 = vrot.slane %v231_v15, 2  ;;  %v264_v18 = vadd.f32 %v263_v16, %v262_v14 }
  0xf8   :  { %v233_v19 = vadd.f32 %v232_v17, %v231_v15  ;;  %v265_v20 = vrot.slane %v264_v18, 2 }
  0xfa   :  { %v234_v21 = vrot.slane %v233_v19, 1  ;;  %v266_v22 = vadd.f32 %v265_v20, %v264_v18 }
  0xfc   :  { %v235_v24 = vadd.f32 %v234_v21, %v233_v19  ;;  %v267_v25 = vrot.slane %v266_v22, 1 }
  0xfe   :  { %v236_v27 = vadd.f32 %v235_v24, %v214_v23  ;;  %v268_v28 = vadd.f32 %v267_v25, %v266_v22 }
 0x100   :  { %238 = vst.msk [vmem:[%s471_s4] sm:$0x1] %vm176_vm1, %v236_v27  ;;  %v269_v29 = vadd.f32 %v268_v28, %v239_v26 }
 0x102   :  { %270 = vst.msk [vmem:[%s472_s5] sm:$0x1] %vm176_vm1, %v269_v29 }

// kernel: segmentation_gnn_forward.37
= control target key start
LH: loop header
LB: loop body
LE: loop exit
PB: predicated region body
PF: predicated region fallthrough
CT: control target
= control target key end

     0   :  { %vm62_vm0 = vcmask 261120   ;;  %vm191_vm1 = vcmask 523264   ;;  %vm397_vm2 = vcmask 39936   ;;  %s834_s1 = inlined_call_operand.vmem [shape: bf16[32,64], index: 1, kind: input, shape index: {}]   ;;  %s835_s0 = inlined_call_operand.vmem [shape: f32[64,32], index: 0, kind: input, shape index: {}]   ;;  %s836_s3 = inlined_call_operand.vmem [shape: bf16[64,64], index: 3, kind: input, shape index: {}]   ;;  %s837_s5 = inlined_call_operand.vmem [shape: bf16[64,5], index: 5, kind: input, shape index: {}]   ;;  %s838_s2 = inlined_call_operand.vmem [shape: f32[1,64], index: 2, kind: input, shape index: {}]   ;;  %s839_s4 = inlined_call_operand.vmem [shape: f32[1,64], index: 4, kind: input, shape index: {}]   ;;  %s840_s6 = inlined_call_operand.vmem [shape: f32[1,5], index: 6, kind: input, shape index: {}]   ;;  %s841_s7 = inlined_call_operand.vmem [shape: f32[64,5], index: 7, kind: output, shape index: {}]  }
   0x1   :  { %v597_v0 = vld [vmem:[%s834_s1] sm:$0xff]   ;;  %v598_v1 = vld [vmem:[%s834_s1 + $0x8] sm:$0xff]   ;;  %v29_v5 = vld [vmem:[%s835_s0 + $0x10] sm:$0xff] }
   0x2   :  { %553 = vmatprep.subr.bf16.mxu0 %v597_v0  ;;  %v27_v2 = vld [vmem:[%s835_s0] sm:$0xff]  ;;  %v28_v3 = vld [vmem:[%s835_s0 + $0x8] sm:$0xff]  ;;  %v30_v6 = vld [vmem:[%s835_s0 + $0x18] sm:$0xff] }
   0x3   :  { %554 = vmatpush3.bf16.msra.mxu0 %v597_v0  ;;  %v40_v4 = vpack.c.bf16 %v28_v3, %v27_v2  ;;  %v31_v7 = vld [vmem:[%s835_s0 + $0x20] sm:$0xff]  ;;  %v32_v8 = vld [vmem:[%s835_s0 + $0x28] sm:$0xff]  ;;  %v41_v10 = vpack.c.bf16 %v30_v6, %v29_v5  ;;  %v33_v13 = vld [vmem:[%s835_s0 + $0x30] sm:$0xff] }
   0x4   :  { %555 = vmatprep.subr.bf16.mxu0 %v598_v1  ;;  %v599_v9 = vld [vmem:[%s836_s3] sm:$0xff]   ;;  %v600_v11 = vld [vmem:[%s836_s3 + $0x8] sm:$0xff]   ;;  %v42_v12 = vpack.c.bf16 %v32_v8, %v31_v7  ;;  %v34_v14 = vld [vmem:[%s835_s0 + $0x38] sm:$0xff] }
   0x5   :  { %557 = vmatprep.mubr.msk.bf16.mxu0 %vm62_vm0, %v40_v4  ;;  %565 = vmatprep.subr.bf16.mxu1 %v599_v9  ;;  %v43_v15 = vpack.c.bf16 %v34_v14, %v33_v13  ;;  %v601_v16 = vld [vmem:[%s836_s3 + $0x10] sm:$0xff]   ;;  %v602_v17 = vld [vmem:[%s836_s3 + $0x18] sm:$0xff]   ;;  %v603_v18 = vld [vmem:[%s837_s5] sm:$0xff]  }
   0x6   :  { %566 = vmatpush3.bf16.msra.mxu1 %v599_v9  ;;  %v604_v19 = vld [vmem:[%s837_s5 + $0x8] sm:$0xff]   ;;  %v506_v20 = vld [vmem:[%s838_s2] ss:$0 sm:$0xff]  ;;  %v605_v49 = vld [vmem:[%s837_s5 + $0x10] sm:$0xff]  }
   0x7   :  { %556 = vmatpush3.bf16.msra.mxu0 %v598_v1  ;;  %567 = vmatprep.subr.bf16.mxu1 %v600_v11  ;;  %v606_v50 = vld [vmem:[%s837_s5 + $0x18] sm:$0xff]   ;;  %v513_v51 = vld [vmem:[%s839_s4] ss:$0 sm:$0xff] }
   0x8   :  { %581 = vmatprep.subr.bf16.mxu0 %v603_v18 }
   0xa   :  { %558 = vmatmul.mubr.msk.bf16.vlgmr.msra.gmra.mrb[0].mxu0 %vm62_vm0, %v41_v10  ;;  %568 = vmatpush3.bf16.msra.mxu1 %v600_v11 }
   0xb   :  { %561 = vmatprep.mubr.msk.bf16.mxu0 %vm62_vm0, %v42_v12  ;;  %569 = vmatprep.subr.bf16.mxu1 %v601_v16 }
   0xc   :  { %582 = vmatpush3.bf16.msra.mxu0 %v603_v18 }
   0xd   :  { %583 = vmatprep.subr.bf16.mxu0 %v604_v19 }
   0xe   :  { %570 = vmatpush3.bf16.msra.mxu1 %v601_v16  ;;  %v522_v16 = vld [vmem:[%s840_s6] ss:$0 sm:$0xff] }
   0xf   :  { %571 = vmatprep.subr.bf16.mxu1 %v602_v17 }
  0x10   :  { %584 = vmatpush3.bf16.msra.mxu0 %v604_v19 }
  0x11   :  { %585 = vmatprep.subr.bf16.mxu0 %v605_v49 }
  0x12   :  { %562 = vmatmul.mubr.msk.bf16.gmra.mrb[4].mxu0 %vm62_vm0, %v43_v15  ;;  %572 = vmatpush3.bf16.msra.mxu1 %v602_v17 }
  0x14   :  { %586 = vmatpush3.bf16.msra.mxu0 %v605_v49 }
  0x15   :  { %587 = vmatprep.subr.bf16.mxu0 %v606_v50 }
  0x18   :  { %588 = vmatpush3.bf16.msra.mxu0 %v606_v50 }
  0xdd   :  { %v559_v21 = vpop.f32.mrb[0].mxu0 }
  0xde   :  { %v118_v22 = vadd.f32 %v559_v21, %v506_v20  ;;  %v109_v23 = vpop.f32.mrb[1].mxu0 }
  0xdf   :  { %v110_v24 = vadd.f32 %v506_v20, %v109_v23  ;;  %v560_v25 = vpop.f32.mrb[2].mxu0 }
  0xe0   :  { %v121_v26 = vadd.f32 %v560_v25, %v506_v20  ;;  %v112_v27 = vpop.f32.mrb[3].mxu0  ;;  %v142_v29 = vmax.f32 %v118_v22, 0.0 }
  0xe1   :  { %v113_v28 = vadd.f32 %v506_v20, %v112_v27  ;;  %v140_v31 = vmax.f32 %v110_v24, 0.0 }
  0xe2   :  { %v143_v30 = vmax.f32 %v121_v26, 0.0 }
  0xe3   :  { %v141_v32 = vmax.f32 %v113_v28, 0.0 }
  0xe4   :  { %v158_v33 = vpack.c.bf16 %v143_v30, %v142_v29 }
  0xe5   :  { %v563_v34 = vpop.f32.mrb[4].mxu0  ;;  %v157_v35 = vpack.c.bf16 %v141_v32, %v140_v31 }
  0xe6   :  { %v134_v36 = vadd.f32 %v563_v34, %v506_v20  ;;  %v125_v37 = vpop.f32.mrb[5].mxu0 }
  0xe7   :  { %v126_v38 = vadd.f32 %v506_v20, %v125_v37  ;;  %v564_v39 = vpop.f32.mrb[6].mxu0  ;;  %573 = vmatprep.mubr.msk.bf16.mxu1 %vm191_vm1, %v157_v35 }
  0xe8   :  { %v146_v40 = vmax.f32 %v134_v36, 0.0  ;;  %v137_v41 = vadd.f32 %v564_v39, %v506_v20  ;;  %v128_v42 = vpop.f32.mrb[7].mxu0  ;;  %574 = vmatmul.mubr.msk.bf16.vlgmr.msra.gmra.mrb[0].mxu1 %vm191_vm1, %v158_v33 }
  0xe9   :  { %v129_v43 = vadd.f32 %v506_v20, %v128_v42  ;;  %v144_v45 = vmax.f32 %v126_v38, 0.0 }
  0xea   :  { %v147_v44 = vmax.f32 %v137_v41, 0.0 }
  0xeb   :  { %v145_v46 = vmax.f32 %v129_v43, 0.0 }
  0xec   :  { %v160_v47 = vpack.c.bf16 %v147_v44, %v146_v40 }
  0xed   :  { %v159_v48 = vpack.c.bf16 %v145_v46, %v144_v45 }
  0xef   :  { %577 = vmatprep.mubr.msk.bf16.mxu1 %vm191_vm1, %v159_v48 }
  0xf0   :  { %578 = vmatmul.mubr.msk.bf16.gmra.mrb[4].mxu1 %vm191_vm1, %v160_v47 }
 0x1bb   :  { %v575_v52 = vpop.f32.mrb[0].mxu1 }
 0x1bc   :  { %v247_v53 = vadd.f32 %v575_v52, %v513_v51  ;;  %v238_v54 = vpop.f32.mrb[1].mxu1 }
 0x1bd   :  { %v239_v55 = vadd.f32 %v513_v51, %v238_v54  ;;  %v576_v56 = vpop.f32.mrb[2].mxu1 }
 0x1be   :  { %v250_v57 = vadd.f32 %v576_v56, %v513_v51  ;;  %v241_v58 = vpop.f32.mrb[3].mxu1  ;;  %v271_v60 = vmax.f32 %v247_v53, 0.0 }
 0x1bf   :  { %v242_v59 = vadd.f32 %v513_v51, %v241_v58  ;;  %v269_v62 = vmax.f32 %v239_v55, 0.0 }
 0x1c0   :  { %v272_v61 = vmax.f32 %v250_v57, 0.0 }
 0x1c1   :  { %v270_v63 = vmax.f32 %v242_v59, 0.0 }
 0x1c2   :  { %v287_v0 = vpack.c.bf16 %v272_v61, %v271_v60 }
 0x1c3   :  { %v286_v1 = vpack.c.bf16 %v270_v63, %v269_v62  ;;  %v579_v2 = vpop.f32.mrb[4].mxu1 }
 0x1c4   :  { %v263_v3 = vadd.f32 %v579_v2, %v513_v51  ;;  %v254_v4 = vpop.f32.mrb[5].mxu1 }
 0x1c5   :  { %v255_v5 = vadd.f32 %v513_v51, %v254_v4  ;;  %v580_v6 = vpop.f32.mrb[6].mxu1  ;;  %589 = vmatprep.mubr.msk.bf16.mxu0 %vm191_vm1, %v286_v1 }
 0x1c6   :  { %v266_v7 = vadd.f32 %v580_v6, %v513_v51  ;;  %v257_v8 = vpop.f32.mrb[7].mxu1  ;;  %590 = vmatmul.mubr.msk.bf16.vlgmr.msra.gmra.mrb[8].mxu0 %vm191_vm1, %v287_v0  ;;  %v275_v10 = vmax.f32 %v263_v3, 0.0 }
 0x1c7   :  { %v258_v9 = vadd.f32 %v513_v51, %v257_v8  ;;  %v273_v12 = vmax.f32 %v255_v5, 0.0 }
 0x1c8   :  { %v276_v11 = vmax.f32 %v266_v7, 0.0 }
 0x1c9   :  { %v274_v13 = vmax.f32 %v258_v9, 0.0 }
 0x1ca   :  { %v289_v14 = vpack.c.bf16 %v276_v11, %v275_v10 }
 0x1cb   :  { %v288_v15 = vpack.c.bf16 %v274_v13, %v273_v12 }
 0x1cd   :  { %593 = vmatprep.mubr.msk.bf16.mxu0 %vm191_vm1, %v288_v15 }
 0x1ce   :  { %594 = vmatmul.mubr.msk.bf16.gmra.mrb[12].mxu0 %vm191_vm1, %v289_v14 }
 0x299   :  { %v591_v17 = vpop.f32.mrb[8].mxu0 }
 0x29a   :  { %v375_v18 = vadd.f32 %v591_v17, %v522_v16  ;;  %v366_v19 = vpop.f32.mrb[9].mxu0 }
 0x29b   :  { %v367_v20 = vadd.f32 %v522_v16, %v366_v19  ;;  %v592_v21 = vpop.f32.mrb[10].mxu0 }
 0x29c   :  { %v378_v22 = vadd.f32 %v592_v21, %v522_v16  ;;  %v369_v23 = vpop.f32.mrb[11].mxu0  ;;  %v404_v24 = vsel %vm397_vm2, %v375_v18, -inf }
 0x29d   :  { %v370_v25 = vadd.f32 %v522_v16, %v369_v23  ;;  %405 = vmax.xlane.f32.xlu1 %v404_v24  ;;  %v398_v26 = vsel %vm397_vm2, %v367_v20, -inf }
 0x29e   :  { %399 = vmax.xlane.f32.xlu0 %v398_v26  ;;  %v407_v27 = vsel %vm397_vm2, %v378_v22, -inf }
 0x29f   :  { %v401_v29 = vsel %vm397_vm2, %v370_v25, -inf }
 0x2a1   :  { %408 = vmax.xlane.f32.xlu1 %v407_v27  ;;  %v595_v28 = vpop.f32.mrb[12].mxu0 }
 0x2a2   :  { %v382_v30 = vpop.f32.mrb[13].mxu0  ;;  %402 = vmax.xlane.f32.xlu0 %v401_v29  ;;  %v391_v34 = vadd.f32 %v595_v28, %v522_v16 }
 0x2a3   :  { %v383_v31 = vadd.f32 %v522_v16, %v382_v30  ;;  %v596_v32 = vpop.f32.mrb[14].mxu0 }
 0x2a4   :  { %v385_v33 = vpop.f32.mrb[15].mxu0  ;;  %v394_v37 = vadd.f32 %v596_v32, %v522_v16  ;;  %v416_v39 = vsel %vm397_vm2, %v391_v34, -inf }
 0x2a5   :  { %v386_v35 = vadd.f32 %v522_v16, %v385_v33  ;;  %v410_v36 = vsel %vm397_vm2, %v383_v31, -inf }
 0x2a6   :  { %411 = vmax.xlane.f32.xlu0 %v410_v36  ;;  %v419_v40 = vsel %vm397_vm2, %v394_v37, -inf }
 0x2a7   :  { %v413_v38 = vsel %vm397_vm2, %v386_v35, -inf }
 0x2a8   :  { %414 = vmax.xlane.f32.xlu1 %v413_v38 }
 0x2aa   :  { %417 = vmax.xlane.f32.xlu0 %v416_v39 }
 0x2ac   :  { %420 = vmax.xlane.f32.xlu1 %v419_v40 }
 0x32a   :  { %v406_v41 = vpop.xlane.xlu1 %405 }
 0x32b   :  { %v762_v42 = vsub.f32 %v375_v18, %v406_v41  ;;  %v400_v43 = vpop.xlane.xlu0 %399 }
 0x32c   :  { %v764_v44 = vsub.f32 %v367_v20, %v400_v43 }
 0x32d   :  { %v434_v45 = vmul.f32 1.442695, %v762_v42 }
 0x32e   :  { %v430_v46 = vmul.f32 1.442695, %v764_v44  ;;  %v409_v47 = vpop.xlane.xlu1 %408 }
 0x32f   :  { %607 = vpow2.f32 %v434_v45  ;;  %v768_v48 = vsub.f32 %v378_v22, %v409_v47  ;;  %v403_v49 = vpop.xlane.xlu0 %402 }
 0x330   :  { %v770_v50 = vsub.f32 %v370_v25, %v403_v49  ;;  %609 = vpow2.f32 %v430_v46 }
 0x331   :  { %v436_v51 = vmul.f32 1.442695, %v768_v48 }
 0x332   :  { %v432_v52 = vmul.f32 1.442695, %v770_v50 }
 0x333   :  { %611 = vpow2.f32 %v436_v51  ;;  %v412_v53 = vpop.xlane.xlu0 %411 }
 0x334   :  { %v774_v54 = vsub.f32 %v383_v31, %v412_v53  ;;  %613 = vpow2.f32 %v432_v52 }
 0x335   :  { %v415_v55 = vpop.xlane.xlu1 %414 }
 0x336   :  { %v438_v56 = vmul.f32 1.442695, %v774_v54  ;;  %v777_v57 = vsub.f32 %v386_v35, %v415_v55 }
 0x337   :  { %v418_v58 = vpop.xlane.xlu0 %417 }
 0x338   :  { %615 = vpow2.f32 %v438_v56  ;;  %v440_v59 = vmul.f32 1.442695, %v777_v57  ;;  %v780_v60 = vsub.f32 %v391_v34, %v418_v58 }
 0x339   :  { %v608_v61 = vpop.eup %607  ;;  %v421_v62 = vpop.xlane.xlu1 %420 }
 0x33a   :  { %617 = vpow2.f32 %v440_v59  ;;  %v442_v63 = vmul.f32 1.442695, %v780_v60  ;;  %v783_v0 = vsub.f32 %v394_v37, %v421_v62  ;;  %v452_v1 = vsel %vm397_vm2, %v608_v61, 0.0  ;;  %v610_v2 = vpop.eup %609 }
 0x33b   :  { %453 = vadd.xlane.f32.xlu0 %v452_v1  ;;  %v446_v6 = vsel %vm397_vm2, %v610_v2, 0.0 }
 0x33c   :  { %619 = vpow2.f32 %v442_v63  ;;  %v444_v3 = vmul.f32 1.442695, %v783_v0 }
 0x33d   :  { %v612_v4 = vpop.eup %611 }
 0x33e   :  { %621 = vpow2.f32 %v444_v3  ;;  %v455_v5 = vsel %vm397_vm2, %v612_v4, 0.0  ;;  %v614_v7 = vpop.eup %613 }
 0x33f   :  { %456 = vadd.xlane.f32.xlu1 %v455_v5  ;;  %447 = vadd.xlane.f32.xlu0 %v446_v6  ;;  %v449_v9 = vsel %vm397_vm2, %v614_v7, 0.0 }
 0x342   :  { %v616_v8 = vpop.eup %615 }
 0x343   :  { %450 = vadd.xlane.f32.xlu1 %v449_v9  ;;  %v458_v10 = vsel %vm397_vm2, %v616_v8, 0.0 }
 0x344   :  { %v618_v11 = vpop.eup %617  ;;  %459 = vadd.xlane.f32.xlu0 %v458_v10 }
 0x345   :  { %v461_v12 = vsel %vm397_vm2, %v618_v11, 0.0 }
 0x346   :  { %v620_v13 = vpop.eup %619 }
 0x347   :  { %462 = vadd.xlane.f32.xlu1 %v461_v12  ;;  %v464_v14 = vsel %vm397_vm2, %v620_v13, 0.0 }
 0x348   :  { %v622_v15 = vpop.eup %621  ;;  %465 = vadd.xlane.f32.xlu0 %v464_v14 }
 0x349   :  { %v467_v16 = vsel %vm397_vm2, %v622_v15, 0.0 }
 0x34b   :  { %468 = vadd.xlane.f32.xlu1 %v467_v16 }
 0x3c8   :  { %v454_v17 = vpop.xlane.xlu0 %453 }
 0x3c9   :  { %623 = vlog2.f32 %v454_v17 }
 0x3cc   :  { %v457_v18 = vpop.xlane.xlu1 %456  ;;  %v448_v19 = vpop.xlane.xlu0 %447 }
 0x3cd   :  { %625 = vlog2.f32 %v457_v18 }
 0x3ce   :  { %627 = vlog2.f32 %v448_v19 }
 0x3d0   :  { %v451_v20 = vpop.xlane.xlu1 %450 }
 0x3d1   :  { %629 = vlog2.f32 %v451_v20  ;;  %v460_v21 = vpop.xlane.xlu0 %459 }
 0x3d2   :  { %631 = vlog2.f32 %v460_v21 }
 0x3d3   :  { %v624_v22 = vpop.eup %623 }
 0x3d4   :  { %v475_v23 = vmul.f32 0.6931472, %v624_v22  ;;  %v463_v24 = vpop.xlane.xlu1 %462 }
 0x3d5   :  { %633 = vlog2.f32 %v463_v24  ;;  %v466_v25 = vpop.xlane.xlu0 %465 }
 0x3d6   :  { %v488_v26 = vsub.f32 %v762_v42, %v475_v23  ;;  %635 = vlog2.f32 %v466_v25 }
 0x3d7   :  { %v626_v27 = vpop.eup %625 }
 0x3d8   :  { %v628_v28 = vpop.eup %627  ;;  %496 = vst.msk [vmem:[%s841_s7 + $0x10] sm:$0xff] %vm397_vm2, %v488_v26  ;;  %v477_v29 = vmul.f32 0.6931472, %v626_v27  ;;  %v469_v30 = vpop.xlane.xlu1 %468 }
 0x3d9   :  { %v471_v31 = vmul.f32 0.6931472, %v628_v28  ;;  %637 = vlog2.f32 %v469_v30 }
 0x3da   :  { %v489_v32 = vsub.f32 %v768_v48, %v477_v29 }
 0x3db   :  { %v630_v33 = vpop.eup %629  ;;  %v486_v34 = vsub.f32 %v764_v44, %v471_v31 }
 0x3dc   :  { %v632_v35 = vpop.eup %631  ;;  %497 = vst.msk [vmem:[%s841_s7 + $0x18] sm:$0xff] %vm397_vm2, %v489_v32  ;;  %v473_v36 = vmul.f32 0.6931472, %v630_v33 }
 0x3dd   :  { %494 = vst.msk [vmem:[%s841_s7] sm:$0xff] %vm397_vm2, %v486_v34  ;;  %v479_v37 = vmul.f32 0.6931472, %v632_v35 }
 0x3de   :  { %v487_v38 = vsub.f32 %v770_v50, %v473_v36 }
 0x3df   :  { %v634_v39 = vpop.eup %633  ;;  %v490_v40 = vsub.f32 %v774_v54, %v479_v37 }
 0x3e0   :  { %v636_v41 = vpop.eup %635  ;;  %495 = vst.msk [vmem:[%s841_s7 + $0x8] sm:$0xff] %vm397_vm2, %v487_v38  ;;  %v481_v42 = vmul.f32 0.6931472, %v634_v39 }
 0x3e1   :  { %498 = vst.msk [vmem:[%s841_s7 + $0x20] sm:$0xff] %vm397_vm2, %v490_v40  ;;  %v483_v43 = vmul.f32 0.6931472, %v636_v41 }
 0x3e2   :  { %v491_v44 = vsub.f32 %v777_v57, %v481_v42 }
 0x3e3   :  { %v638_v45 = vpop.eup %637  ;;  %v492_v46 = vsub.f32 %v780_v60, %v483_v43 }
 0x3e4   :  { %499 = vst.msk [vmem:[%s841_s7 + $0x28] sm:$0xff] %vm397_vm2, %v491_v44  ;;  %v485_v47 = vmul.f32 0.6931472, %v638_v45 }
 0x3e5   :  { %500 = vst.msk [vmem:[%s841_s7 + $0x30] sm:$0xff] %vm397_vm2, %v492_v46 }
 0x3e6   :  { %v493_v48 = vsub.f32 %v783_v0, %v485_v47 }
 0x3e8   :  { %501 = vst.msk [vmem:[%s841_s7 + $0x38] sm:$0xff] %vm397_vm2, %v493_v48 }

</bundles_post_ra>
